<compile_context>
chip_gen: v5e
topology: v5e:2x2
jax: 0.10.0
libtpu: 0.0.40
codegen_flags: <defaults>
</compile_context>

<pallas_src>
import functools
import math

import jax
import jax.numpy as jnp
from jax.experimental import pallas as pl
from jax.experimental.pallas import tpu as pltpu

# ----------------- scaled-down YOLACT config -----------------
NUM_CLASSES = 5            # includes background
MASK_DIM = 8               # protonet output channels
FPN_CH = 32                # FPN / head channel width (256 in real YOLACT)
NUM_DOWNSAMPLE = 2         # P6, P7
NUM_PRIORS = 3             # aspect ratios per location
ASPECT_RATIOS = (1.0, 0.5, 2.0)
PRED_SCALES = (8, 16, 24, 32, 48)
IMG_SIZE = 32

LANE = 128                             # output (lane) width of every matmul
LOC_C = 4 * NUM_PRIORS                 # 12
CONF_C = NUM_CLASSES * NUM_PRIORS      # 15
MASK_C = MASK_DIM * NUM_PRIORS         # 24
HEAD_C = LOC_C + CONF_C + MASK_C       # 51 (fused head output columns)
TM_MAX = 512                           # max M tile for the matmul grid


def _cdiv(a, b):
    return (a + b - 1) // b


def _round_up(x, m):
    return _cdiv(x, m) * m


def _choose_tile(m):
    """Pick (tm, mp): M tile and padded M.  >=2 grid steps when M allows."""
    mp = _round_up(max(m, 8), 8)
    if mp <= 16:
        return mp, mp
    tm = min(TM_MAX, _round_up(_cdiv(mp, 2), 16))
    mp = _round_up(mp, tm)
    return tm, mp


# ----------------- Pallas kernel: matmul + bias + fused epilogue -----------------
def _mm_kernel(a_ref, w_ref, b_ref, o_ref, *, act):
    # bf16 x bf16 on the MXU, f32 accumulate, f32 epilogue.
    acc = jnp.dot(a_ref[...], w_ref[...], preferred_element_type=jnp.float32)
    acc = acc + b_ref[...]                       # (1, LANE) broadcast over rows
    if act == "relu":
        acc = jnp.maximum(acc, 0.0)
    elif act == "head":
        # Fused loc|conf|mask head epilogue:
        #   tanh on the mask-coefficient columns,
        #   per-prior softmax over the 5 class columns (replaces F.softmax).
        col = jax.lax.broadcasted_iota(jnp.int32, acc.shape, 1)
        mask_cols = (col >= LOC_C + CONF_C) & (col < HEAD_C)
        acc = jnp.where(mask_cols, jnp.tanh(acc), acc)
        out = acc
        for p in range(NUM_PRIORS):
            lo = LOC_C + p * NUM_CLASSES
            cmask = (col >= lo) & (col < lo + NUM_CLASSES)
            masked = jnp.where(cmask, acc, jnp.float32(-1e30))
            m = jnp.max(masked, axis=-1, keepdims=True)
            e = jnp.exp(masked - m)              # non-class lanes underflow to 0
            s = jnp.sum(e, axis=-1, keepdims=True)
            out = jnp.where(cmask, e * pl.reciprocal(s, approx=True), out)
        acc = out
    o_ref[...] = acc.astype(o_ref.dtype)


def _stacked_matmul(a, w, b, act, out_dtype):
    """a: (L, M, K) bf16, w: (L, K, 128) bf16, b: (L, 1, 128) f32 ->
    (L, mp, 128) out_dtype.  Grid (L, M_tiles), both axes parallel."""
    L, M, K = a.shape
    assert w.shape == (L, K, LANE) and b.shape == (L, 1, LANE)
    tm, mp = _choose_tile(M)
    if mp != M:
        a = jnp.pad(a, ((0, 0), (0, mp - M), (0, 0)))
    return pl.pallas_call(
        functools.partial(_mm_kernel, act=act),
        out_shape=jax.ShapeDtypeStruct((L, mp, LANE), out_dtype),
        grid=(L, mp // tm),
        in_specs=[pl.BlockSpec((None, tm, K), lambda l, i: (l, i, 0)),
                  pl.BlockSpec((None, K, LANE), lambda l, i: (l, 0, 0)),
                  pl.BlockSpec((None, 1, LANE), lambda l, i: (l, 0, 0))],
        out_specs=pl.BlockSpec((None, tm, LANE), lambda l, i: (l, i, 0)),
        compiler_params=pltpu.CompilerParams(
            dimension_semantics=("parallel", "parallel")),
    )(a, w, b)


def matmul_bias_act(a, p, act=None, out_dtype=jnp.bfloat16):
    """(M, K) @ packed weight (1, K, 128) + bias, fused epilogue."""
    out = _stacked_matmul(a[None], p["w"], p["b"], act, out_dtype)
    return out[0]                                 # (mp, 128); caller slices rows


# ----------------- conv = im2col glue + Pallas matmul -----------------
def im2col(x, kh, kw, stride, padding, cin_pad):
    """x: (N,H,W,C) -> bf16 patch matrix (N*Ho*Wo, kh*kw*cin_pad)."""
    n, h, w, c = x.shape
    if c > cin_pad:
        x = x[..., :cin_pad]                      # drop zero-padded lanes
    elif c < cin_pad:
        x = jnp.pad(x, ((0, 0), (0, 0), (0, 0), (0, cin_pad - c)))
    x = x.astype(jnp.bfloat16)
    if padding:
        x = jnp.pad(x, ((0, 0), (padding, padding), (padding, padding), (0, 0)))
    ho = (h + 2 * padding - kh) // stride + 1
    wo = (w + 2 * padding - kw) // stride + 1
    if kh == 1 and kw == 1 and stride == 1:
        a = x.reshape(n * ho * wo, cin_pad)       # 1x1 conv: plain matmul
    else:
        cols = [x[:, i:i + (ho - 1) * stride + 1:stride,
                   j:j + (wo - 1) * stride + 1:stride, :]
                for i in range(kh) for j in range(kw)]
        a = jnp.concatenate(cols, axis=-1).reshape(n * ho * wo, kh * kw * cin_pad)
    return a, (n, ho, wo)


def conv_multi(xs, p, ksize, stride=1, padding=0, act=None,
               out_dtype=jnp.bfloat16):
    """Apply per-level stacked weights p['w']: (L, K, 128) to the L inputs in
    ONE pallas_call.  Returns list of (n, ho, wo, 128) maps."""
    L, K, _ = p["w"].shape
    assert L == len(xs)
    cin_pad = K // (ksize * ksize)
    a_list, meta = [], []
    for x in xs:
        a, m = im2col(x, ksize, ksize, stride, padding, cin_pad)
        a_list.append(a)
        meta.append(m)
    m_common = max(a.shape[0] for a in a_list)
    a_stack = jnp.stack([jnp.pad(a, ((0, m_common - a.shape[0]), (0, 0)))
                         for a in a_list])
    out = _stacked_matmul(a_stack, p["w"], p["b"], act, out_dtype)
    return [out[l, :n * ho * wo].reshape(n, ho, wo, LANE)
            for l, (n, ho, wo) in enumerate(meta)]


def conv2d(x, p, ksize, stride=1, padding=0, act=None, out_dtype=jnp.bfloat16):
    return conv_multi([x], p, ksize, stride, padding, act, out_dtype)[0]


# ----------------- deterministic parameter init (packed once) -----------------
def _raw_conv_w(key, kh, kw, cin, cout):
    fan_in = kh * kw * cin
    return jax.random.normal(key, (kh, kw, cin, cout), jnp.float32) / math.sqrt(fan_in)


def _pack_conv(w, b, cin_pad=None):
    """Pack to MXU layout: w -> (1, kh*kw*cin_pad, 128) bf16, b -> (1, 1, 128) f32."""
    kh, kw, cin, cout = w.shape
    if cin_pad is None:
        cin_pad = _round_up(cin, 8)
    wp = jnp.zeros((kh * kw, cin_pad, LANE), jnp.float32)
    wp = wp.at[:, :cin, :cout].set(w.reshape(kh * kw, cin, cout))
    wp = wp.reshape(1, kh * kw * cin_pad, LANE).astype(jnp.bfloat16)
    bp = jnp.zeros((1, 1, LANE), jnp.float32).at[0, 0, :cout].set(
        b.astype(jnp.float32))
    return {"w": wp, "b": bp}


def _pack_conv_stack(ws, bs, cin_pad):
    packs = [_pack_conv(w, b, cin_pad) for w, b in zip(ws, bs)]
    return {"w": jnp.concatenate([q["w"] for q in packs], axis=0),
            "b": jnp.concatenate([q["b"] for q in packs], axis=0)}


def _init_conv(key, kh, kw, cin, cout):
    return _pack_conv(_raw_conv_w(key, kh, kw, cin, cout),
                      jnp.zeros((cout,), jnp.float32))


def init_params(key):
    it = iter(jax.random.split(key, 32))
    p = {}
    # simplified ResNet-ish backbone: stem + 3 stages -> (C3, C4, C5)
    p["stem"] = _init_conv(next(it), 3, 3, 3, 8)
    p["layer1"] = _init_conv(next(it), 3, 3, 8, 16)     # stride 2 -> C3
    p["layer2"] = _init_conv(next(it), 3, 3, 16, 32)    # stride 2 -> C4
    p["layer3"] = _init_conv(next(it), 3, 3, 32, 64)    # stride 2 -> C5
    # FPN: 3 lateral 1x1 convs stacked into one call (common cin_pad=64),
    # 3 pred convs stacked (cin_pad=32), 2 sequential downsample convs.
    lat_ws = [_raw_conv_w(next(it), 1, 1, c, FPN_CH) for c in (16, 32, 64)]
    p["fpn_lat"] = _pack_conv_stack(
        lat_ws, [jnp.zeros((FPN_CH,), jnp.float32)] * 3, cin_pad=64)
    pred_ws = [_raw_conv_w(next(it), 3, 3, FPN_CH, FPN_CH) for _ in range(3)]
    p["fpn_pred"] = _pack_conv_stack(
        pred_ws, [jnp.zeros((FPN_CH,), jnp.float32)] * 3, cin_pad=FPN_CH)
    p["fpn_down"] = [_init_conv(next(it), 3, 3, FPN_CH, FPN_CH)
                     for _ in range(NUM_DOWNSAMPLE)]
    # protonet (3x3 relu, 3x3 relu, upsample, 3x3 relu, 1x1 -> mask_dim, relu)
    p["proto"] = [_init_conv(next(it), 3, 3, FPN_CH, FPN_CH),
                  _init_conv(next(it), 3, 3, FPN_CH, FPN_CH),
                  _init_conv(next(it), 3, 3, FPN_CH, FPN_CH),
                  _init_conv(next(it), 1, 1, FPN_CH, MASK_DIM)]
    # shared prediction head: upfeature + FUSED loc|conf|mask conv (one matmul)
    p["head_up"] = _init_conv(next(it), 3, 3, FPN_CH, FPN_CH)
    w_loc = _raw_conv_w(next(it), 3, 3, FPN_CH, LOC_C)
    w_conf = _raw_conv_w(next(it), 3, 3, FPN_CH, CONF_C)
    w_mask = _raw_conv_w(next(it), 3, 3, FPN_CH, MASK_C)
    w_fused = jnp.concatenate([w_loc, w_conf, w_mask], axis=-1)   # cout = 51
    p["head_fused"] = _pack_conv(w_fused, jnp.zeros((HEAD_C,), jnp.float32))
    # semantic-seg conv (training branch only; unused in eval forward)
    p["semantic"] = _init_conv(next(it), 1, 1, FPN_CH, NUM_CLASSES - 1)
    return p


def make_priors(h, w, scale, img_size):
    ys = (jnp.arange(h, dtype=jnp.float32) + 0.5) / h
    xs = (jnp.arange(w, dtype=jnp.float32) + 0.5) / w
    cy, cx = jnp.meshgrid(ys, xs, indexing="ij")
    cx = cx.reshape(-1)
    cy = cy.reshape(-1)
    per_ar = []
    for ar in ASPECT_RATIOS:
        r = math.sqrt(ar)
        pw = scale * r / img_size
        ph = scale / r / img_size
        per_ar.append(jnp.stack([cx, cy,
                                 jnp.full_like(cx, pw),
                                 jnp.full_like(cy, ph)], axis=-1))
    return jnp.stack(per_ar, axis=1).reshape(-1, 4)      # (h*w*num_priors, 4)


# ----------------- YOLACT forward (eval branch) -----------------
def yolact_forward(params, x_nchw):
    x = jnp.transpose(x_nchw, (0, 2, 3, 1)).astype(jnp.bfloat16)  # NCHW -> NHWC
    n = x.shape[0]

    # backbone
    c1 = conv2d(x, params["stem"], 3, stride=1, padding=1, act="relu")
    c3 = conv2d(c1, params["layer1"], 3, stride=2, padding=1, act="relu")
    c4 = conv2d(c3, params["layer2"], 3, stride=2, padding=1, act="relu")
    c5 = conv2d(c4, params["layer3"], 3, stride=2, padding=1, act="relu")

    # FPN: lateral 1x1 (ONE stacked call) -> top-down add (bilinear, real 32ch)
    #      -> 3x3 pred (ONE stacked call) -> sequential downsamples.
    # NOTE: jax.image.resize 'bilinear' is half-pixel; it differs slightly from
    # PyTorch F.interpolate(align_corners=False) at these tiny sizes.
    lat = conv_multi([c3, c4, c5], params["fpn_lat"], 1, stride=1, padding=0)
    p5 = lat[2][..., :FPN_CH]
    p4 = lat[1][..., :FPN_CH] + jax.image.resize(
        p5, (n, lat[1].shape[1], lat[1].shape[2], FPN_CH), "bilinear")
    p3 = lat[0][..., :FPN_CH] + jax.image.resize(
        p4, (n, lat[0].shape[1], lat[0].shape[2], FPN_CH), "bilinear")
    fpn_outs = conv_multi([p3, p4, p5], params["fpn_pred"], 3,
                          stride=1, padding=1, act="relu")
    last = fpn_outs[-1]
    for i in range(NUM_DOWNSAMPLE):
        last = conv2d(last, params["fpn_down"][i], 3, stride=2, padding=1)
        fpn_outs.append(last)

    # protonet on P3 (channel-last layout already; upsample on real 32 channels)
    q = conv2d(fpn_outs[0], params["proto"][0], 3, stride=1, padding=1, act="relu")
    q = conv2d(q, params["proto"][1], 3, stride=1, padding=1, act="relu")
    q32 = q[..., :FPN_CH]
    q32 = jax.image.resize(
        q32, (n, q32.shape[1] * 2, q32.shape[2] * 2, FPN_CH), "bilinear")
    q = conv2d(q32, params["proto"][2], 3, stride=1, padding=1, act="relu")
    q = conv2d(q, params["proto"][3], 1, stride=1, padding=0, act="relu",
               out_dtype=jnp.float32)
    proto_out = q[..., :MASK_DIM]

    # shared prediction head, BATCHED across all 5 FPN levels: 2 pallas_calls.
    cin_up = params["head_up"]["w"].shape[1] // 9       # 32
    a_up, meta = [], []
    for f in fpn_outs:
        a, m = im2col(f, 3, 3, 1, 1, cin_up)
        a_up.append(a)
        meta.append(m)
    h_all = matmul_bias_act(jnp.concatenate(a_up, axis=0), params["head_up"],
                            act="relu", out_dtype=jnp.bfloat16)
    cin_hd = params["head_fused"]["w"].shape[1] // 9    # 32
    a_hd, off = [], 0
    for (bn, ho, wo) in meta:
        rows = bn * ho * wo
        h_map = h_all[off:off + rows].reshape(bn, ho, wo, LANE)
        off += rows
        a, _ = im2col(h_map, 3, 3, 1, 1, cin_hd)
        a_hd.append(a)
    # fused loc|conf|mask conv; epilogue applies tanh to mask cols and the
    # per-prior class softmax (replacing the separate F.softmax pass).
    head = matmul_bias_act(jnp.concatenate(a_hd, axis=0), params["head_fused"],
                           act="head", out_dtype=jnp.float32)

    loc_l, conf_l, mask_l, prior_l = [], [], [], []
    off = 0
    for li, (bn, ho, wo) in enumerate(meta):
        rows = bn * ho * wo
        o = head[off:off + rows].reshape(bn, ho, wo, LANE)
        off += rows
        loc_l.append(o[..., :LOC_C].reshape(bn, ho * wo * NUM_PRIORS, 4))
        conf_l.append(o[..., LOC_C:LOC_C + CONF_C]
                      .reshape(bn, ho * wo * NUM_PRIORS, NUM_CLASSES))
        mask_l.append(o[..., LOC_C + CONF_C:HEAD_C]
                      .reshape(bn, ho * wo * NUM_PRIORS, MASK_DIM))
        prior_l.append(make_priors(ho, wo, PRED_SCALES[li], IMG_SIZE))

    pred_outs = {
        "loc": jnp.concatenate(loc_l, axis=-2),
        "conf": jnp.concatenate(conf_l, axis=-2),   # already softmaxed in-kernel
        "mask": jnp.concatenate(mask_l, axis=-2),
        "priors": jnp.concatenate(prior_l, axis=-2),
        "proto": proto_out,
    }
    return pred_outs


if __name__ == "__main__":
    key = jax.random.PRNGKey(0)
    pkey, xkey = jax.random.split(key)
    params = init_params(pkey)
    x = jax.random.normal(xkey, (2, 3, IMG_SIZE, IMG_SIZE), jnp.float32)  # NCHW

    fwd = jax.jit(yolact_forward)
    out = fwd(params, x)
    out = jax.block_until_ready(out)

    # basic sanity checks
    total_priors = (16 * 16 + 8 * 8 + 4 * 4 + 2 * 2 + 1 * 1) * NUM_PRIORS
    assert out["loc"].shape == (2, total_priors, 4)
    assert out["conf"].shape == (2, total_priors, NUM_CLASSES)
    assert out["mask"].shape == (2, total_priors, MASK_DIM)
    assert out["priors"].shape == (total_priors, 4)
    assert out["proto"].shape == (2, 32, 32, MASK_DIM)
    assert bool(jnp.all(jnp.isfinite(out["conf"])))
    assert bool(jnp.all((out["conf"] >= 0.0) & (out["conf"] <= 1.0 + 1e-3)))
    # softmax rows sum to 1 (approx reciprocal -> slightly looser tolerance)
    assert bool(jnp.allclose(jnp.sum(out["conf"], axis=-1), 1.0, atol=2e-3))
    # mask coefficients are tanh-bounded
    assert bool(jnp.all(jnp.abs(out["mask"]) <= 1.0 + 1e-5))

    print("KERNEL_OK")
</pallas_src>

<mosaic_0001>
module attributes {stable_mosaic.version = 11 : i64} {
  func.func @_mm_kernel(%arg0: i32, %arg1: i32, %arg2: memref<1x512x72xbf16, #tpu.memory_space<vmem>>, %arg3: memref<1x72x128xbf16, #tpu.memory_space<vmem>>, %arg4: memref<1x1x128xf32, #tpu.memory_space<vmem>>, %arg5: memref<1x512x128xbf16, #tpu.memory_space<vmem>>) attributes {dimension_semantics = [#tpu.dimension_semantics<parallel>, #tpu.dimension_semantics<parallel>], iteration_bounds = array<i64: 1, 4>, scalar_prefetch = 0 : i64, scratch_operands = 0 : i64, tpu.core_type = #tpu.core_type<tc>, window_params = [{transform_indices = @transform_0, window_bounds = array<i64: 1, 512, 72>}, {transform_indices = @transform_1, window_bounds = array<i64: 1, 72, 128>}, {transform_indices = @transform_2, window_bounds = array<i64: 1, 1, 128>}, {transform_indices = @transform_3, window_bounds = array<i64: 1, 512, 128>}]} {
    %c0 = arith.constant 0 : index
    %c0_0 = arith.constant 0 : index
    %c0_1 = arith.constant 0 : index
    %0 = vector.load %arg2[%c0, %c0_0, %c0_1] : memref<1x512x72xbf16, #tpu.memory_space<vmem>>, vector<1x512x72xbf16>
    %1 = vector.shape_cast %0 : vector<1x512x72xbf16> to vector<512x72xbf16>
    %c0_2 = arith.constant 0 : index
    %c0_3 = arith.constant 0 : index
    %c0_4 = arith.constant 0 : index
    %2 = vector.load %arg3[%c0_2, %c0_3, %c0_4] : memref<1x72x128xbf16, #tpu.memory_space<vmem>>, vector<1x72x128xbf16>
    %3 = vector.shape_cast %2 : vector<1x72x128xbf16> to vector<72x128xbf16>
    %cst = arith.constant dense<0.000000e+00> : vector<512x128xf32>
    %4 = tpu.matmul %1, %3, %cst {dimension_numbers = #tpu.dot_dimension_numbers<[1], [0], [0], [1], [0, 0, 1, 1], [], []>} : vector<512x72xbf16>, vector<72x128xbf16>, vector<512x128xf32> -> vector<512x128xf32>
    %c0_5 = arith.constant 0 : index
    %c0_6 = arith.constant 0 : index
    %c0_7 = arith.constant 0 : index
    %5 = vector.load %arg4[%c0_5, %c0_6, %c0_7] : memref<1x1x128xf32, #tpu.memory_space<vmem>>, vector<1x1x128xf32>
    %6 = vector.shape_cast %5 : vector<1x1x128xf32> to vector<1x128xf32>
    %7 = vector.broadcast %6 : vector<1x128xf32> to vector<512x128xf32>
    %8 = arith.addf %4, %7 : vector<512x128xf32>
    %cst_8 = arith.constant 0.000000e+00 : f32
    %9 = vector.broadcast %cst_8 : f32 to vector<512x128xf32>
    %10 = arith.maximumf %8, %9 : vector<512x128xf32>
    %11 = arith.truncf %10 : vector<512x128xf32> to vector<512x128xbf16>
    %c0_9 = arith.constant 0 : index
    %c0_10 = arith.constant 0 : index
    %c0_11 = arith.constant 0 : index
    %12 = vector.load %arg5[%c0_9, %c0_10, %c0_11] : memref<1x512x128xbf16, #tpu.memory_space<vmem>>, vector<1x512x128xbf16>
    %13 = vector.shape_cast %12 : vector<1x512x128xbf16> to vector<512x128xbf16>
    %14 = vector.shape_cast %11 : vector<512x128xbf16> to vector<1x512x128xbf16>
    tpu.vector_store %arg5[%c0_9, %c0_10, %c0_11], %14 {strides = array<i32>} : memref<1x512x128xbf16, #tpu.memory_space<vmem>>, vector<1x512x128xbf16>,
    return
  }
  func.func @transform_0(%arg0: i32, %arg1: i32) -> (i32, i32, i32) {
    %c0_i32 = arith.constant 0 : i32
    %c0_i32_0 = arith.constant 0 : i32
    return %arg0, %arg1, %c0_i32 : i32, i32, i32
  }
  func.func @transform_1(%arg0: i32, %arg1: i32) -> (i32, i32, i32) {
    %c0_i32 = arith.constant 0 : i32
    %c0_i32_0 = arith.constant 0 : i32
    %c0_i32_1 = arith.constant 0 : i32
    return %arg0, %c0_i32, %c0_i32_0 : i32, i32, i32
  }
  func.func @transform_2(%arg0: i32, %arg1: i32) -> (i32, i32, i32) {
    %c0_i32 = arith.constant 0 : i32
    %c0_i32_0 = arith.constant 0 : i32
    %c0_i32_1 = arith.constant 0 : i32
    return %arg0, %c0_i32, %c0_i32_0 : i32, i32, i32
  }
  func.func @transform_3(%arg0: i32, %arg1: i32) -> (i32, i32, i32) {
    %c0_i32 = arith.constant 0 : i32
    %c0_i32_0 = arith.constant 0 : i32
    return %arg0, %arg1, %c0_i32 : i32, i32, i32
  }
}

module attributes {stable_mosaic.version = 11 : i64} {
  func.func @_mm_kernel(%arg0: i32, %arg1: i32, %arg2: memref<1x256x72xbf16, #tpu.memory_space<vmem>>, %arg3: memref<1x72x128xbf16, #tpu.memory_space<vmem>>, %arg4: memref<1x1x128xf32, #tpu.memory_space<vmem>>, %arg5: memref<1x256x128xbf16, #tpu.memory_space<vmem>>) attributes {dimension_semantics = [#tpu.dimension_semantics<parallel>, #tpu.dimension_semantics<parallel>], iteration_bounds = array<i64: 1, 2>, scalar_prefetch = 0 : i64, scratch_operands = 0 : i64, tpu.core_type = #tpu.core_type<tc>, window_params = [{transform_indices = @transform_0, window_bounds = array<i64: 1, 256, 72>}, {transform_indices = @transform_1, window_bounds = array<i64: 1, 72, 128>}, {transform_indices = @transform_2, window_bounds = array<i64: 1, 1, 128>}, {transform_indices = @transform_3, window_bounds = array<i64: 1, 256, 128>}]} {
    %c0 = arith.constant 0 : index
    %c0_0 = arith.constant 0 : index
    %c0_1 = arith.constant 0 : index
    %0 = vector.load %arg2[%c0, %c0_0, %c0_1] : memref<1x256x72xbf16, #tpu.memory_space<vmem>>, vector<1x256x72xbf16>
    %1 = vector.shape_cast %0 : vector<1x256x72xbf16> to vector<256x72xbf16>
    %c0_2 = arith.constant 0 : index
    %c0_3 = arith.constant 0 : index
    %c0_4 = arith.constant 0 : index
    %2 = vector.load %arg3[%c0_2, %c0_3, %c0_4] : memref<1x72x128xbf16, #tpu.memory_space<vmem>>, vector<1x72x128xbf16>
    %3 = vector.shape_cast %2 : vector<1x72x128xbf16> to vector<72x128xbf16>
    %cst = arith.constant dense<0.000000e+00> : vector<256x128xf32>
    %4 = tpu.matmul %1, %3, %cst {dimension_numbers = #tpu.dot_dimension_numbers<[1], [0], [0], [1], [0, 0, 1, 1], [], []>} : vector<256x72xbf16>, vector<72x128xbf16>, vector<256x128xf32> -> vector<256x128xf32>
    %c0_5 = arith.constant 0 : index
    %c0_6 = arith.constant 0 : index
    %c0_7 = arith.constant 0 : index
    %5 = vector.load %arg4[%c0_5, %c0_6, %c0_7] : memref<1x1x128xf32, #tpu.memory_space<vmem>>, vector<1x1x128xf32>
    %6 = vector.shape_cast %5 : vector<1x1x128xf32> to vector<1x128xf32>
    %7 = vector.broadcast %6 : vector<1x128xf32> to vector<256x128xf32>
    %8 = arith.addf %4, %7 : vector<256x128xf32>
    %cst_8 = arith.constant 0.000000e+00 : f32
    %9 = vector.broadcast %cst_8 : f32 to vector<256x128xf32>
    %10 = arith.maximumf %8, %9 : vector<256x128xf32>
    %11 = arith.truncf %10 : vector<256x128xf32> to vector<256x128xbf16>
    %c0_9 = arith.constant 0 : index
    %c0_10 = arith.constant 0 : index
    %c0_11 = arith.constant 0 : index
    %12 = vector.load %arg5[%c0_9, %c0_10, %c0_11] : memref<1x256x128xbf16, #tpu.memory_space<vmem>>, vector<1x256x128xbf16>
    %13 = vector.shape_cast %12 : vector<1x256x128xbf16> to vector<256x128xbf16>
    %14 = vector.shape_cast %11 : vector<256x128xbf16> to vector<1x256x128xbf16>
    tpu.vector_store %arg5[%c0_9, %c0_10, %c0_11], %14 {strides = array<i32>} : memref<1x256x128xbf16, #tpu.memory_space<vmem>>, vector<1x256x128xbf16>,
    return
  }
  func.func @transform_0(%arg0: i32, %arg1: i32) -> (i32, i32, i32) {
    %c0_i32 = arith.constant 0 : i32
    %c0_i32_0 = arith.constant 0 : i32
    return %arg0, %arg1, %c0_i32 : i32, i32, i32
  }
  func.func @transform_1(%arg0: i32, %arg1: i32) -> (i32, i32, i32) {
    %c0_i32 = arith.constant 0 : i32
    %c0_i32_0 = arith.constant 0 : i32
    %c0_i32_1 = arith.constant 0 : i32
    return %arg0, %c0_i32, %c0_i32_0 : i32, i32, i32
  }
  func.func @transform_2(%arg0: i32, %arg1: i32) -> (i32, i32, i32) {
    %c0_i32 = arith.constant 0 : i32
    %c0_i32_0 = arith.constant 0 : i32
    %c0_i32_1 = arith.constant 0 : i32
    return %arg0, %c0_i32, %c0_i32_0 : i32, i32, i32
  }
  func.func @transform_3(%arg0: i32, %arg1: i32) -> (i32, i32, i32) {
    %c0_i32 = arith.constant 0 : i32
    %c0_i32_0 = arith.constant 0 : i32
    return %arg0, %arg1, %c0_i32 : i32, i32, i32
  }
}

module attributes {stable_mosaic.version = 11 : i64} {
  func.func @_mm_kernel(%arg0: i32, %arg1: i32, %arg2: memref<1x64x144xbf16, #tpu.memory_space<vmem>>, %arg3: memref<1x144x128xbf16, #tpu.memory_space<vmem>>, %arg4: memref<1x1x128xf32, #tpu.memory_space<vmem>>, %arg5: memref<1x64x128xbf16, #tpu.memory_space<vmem>>) attributes {dimension_semantics = [#tpu.dimension_semantics<parallel>, #tpu.dimension_semantics<parallel>], iteration_bounds = array<i64: 1, 2>, scalar_prefetch = 0 : i64, scratch_operands = 0 : i64, tpu.core_type = #tpu.core_type<tc>, window_params = [{transform_indices = @transform_0, window_bounds = array<i64: 1, 64, 144>}, {transform_indices = @transform_1, window_bounds = array<i64: 1, 144, 128>}, {transform_indices = @transform_2, window_bounds = array<i64: 1, 1, 128>}, {transform_indices = @transform_3, window_bounds = array<i64: 1, 64, 128>}]} {
    %c0 = arith.constant 0 : index
    %c0_0 = arith.constant 0 : index
    %c0_1 = arith.constant 0 : index
    %0 = vector.load %arg2[%c0, %c0_0, %c0_1] : memref<1x64x144xbf16, #tpu.memory_space<vmem>>, vector<1x64x144xbf16>
    %1 = vector.shape_cast %0 : vector<1x64x144xbf16> to vector<64x144xbf16>
    %c0_2 = arith.constant 0 : index
    %c0_3 = arith.constant 0 : index
    %c0_4 = arith.constant 0 : index
    %2 = vector.load %arg3[%c0_2, %c0_3, %c0_4] : memref<1x144x128xbf16, #tpu.memory_space<vmem>>, vector<1x144x128xbf16>
    %3 = vector.shape_cast %2 : vector<1x144x128xbf16> to vector<144x128xbf16>
    %cst = arith.constant dense<0.000000e+00> : vector<64x128xf32>
    %4 = tpu.matmul %1, %3, %cst {dimension_numbers = #tpu.dot_dimension_numbers<[1], [0], [0], [1], [0, 0, 1, 1], [], []>} : vector<64x144xbf16>, vector<144x128xbf16>, vector<64x128xf32> -> vector<64x128xf32>
    %c0_5 = arith.constant 0 : index
    %c0_6 = arith.constant 0 : index
    %c0_7 = arith.constant 0 : index
    %5 = vector.load %arg4[%c0_5, %c0_6, %c0_7] : memref<1x1x128xf32, #tpu.memory_space<vmem>>, vector<1x1x128xf32>
    %6 = vector.shape_cast %5 : vector<1x1x128xf32> to vector<1x128xf32>
    %7 = vector.broadcast %6 : vector<1x128xf32> to vector<64x128xf32>
    %8 = arith.addf %4, %7 : vector<64x128xf32>
    %cst_8 = arith.constant 0.000000e+00 : f32
    %9 = vector.broadcast %cst_8 : f32 to vector<64x128xf32>
    %10 = arith.maximumf %8, %9 : vector<64x128xf32>
    %11 = arith.truncf %10 : vector<64x128xf32> to vector<64x128xbf16>
    %c0_9 = arith.constant 0 : index
    %c0_10 = arith.constant 0 : index
    %c0_11 = arith.constant 0 : index
    %12 = vector.load %arg5[%c0_9, %c0_10, %c0_11] : memref<1x64x128xbf16, #tpu.memory_space<vmem>>, vector<1x64x128xbf16>
    %13 = vector.shape_cast %12 : vector<1x64x128xbf16> to vector<64x128xbf16>
    %14 = vector.shape_cast %11 : vector<64x128xbf16> to vector<1x64x128xbf16>
    tpu.vector_store %arg5[%c0_9, %c0_10, %c0_11], %14 {strides = array<i32>} : memref<1x64x128xbf16, #tpu.memory_space<vmem>>, vector<1x64x128xbf16>,
    return
  }
  func.func @transform_0(%arg0: i32, %arg1: i32) -> (i32, i32, i32) {
    %c0_i32 = arith.constant 0 : i32
    %c0_i32_0 = arith.constant 0 : i32
    return %arg0, %arg1, %c0_i32 : i32, i32, i32
  }
  func.func @transform_1(%arg0: i32, %arg1: i32) -> (i32, i32, i32) {
    %c0_i32 = arith.constant 0 : i32
    %c0_i32_0 = arith.constant 0 : i32
    %c0_i32_1 = arith.constant 0 : i32
    return %arg0, %c0_i32, %c0_i32_0 : i32, i32, i32
  }
  func.func @transform_2(%arg0: i32, %arg1: i32) -> (i32, i32, i32) {
    %c0_i32 = arith.constant 0 : i32
    %c0_i32_0 = arith.constant 0 : i32
    %c0_i32_1 = arith.constant 0 : i32
    return %arg0, %c0_i32, %c0_i32_0 : i32, i32, i32
  }
  func.func @transform_3(%arg0: i32, %arg1: i32) -> (i32, i32, i32) {
    %c0_i32 = arith.constant 0 : i32
    %c0_i32_0 = arith.constant 0 : i32
    return %arg0, %arg1, %c0_i32 : i32, i32, i32
  }
}

module attributes {stable_mosaic.version = 11 : i64} {
  func.func @_mm_kernel(%arg0: i32, %arg1: i32, %arg2: memref<1x16x288xbf16, #tpu.memory_space<vmem>>, %arg3: memref<1x288x128xbf16, #tpu.memory_space<vmem>>, %arg4: memref<1x1x128xf32, #tpu.memory_space<vmem>>, %arg5: memref<1x16x128xbf16, #tpu.memory_space<vmem>>) attributes {dimension_semantics = [#tpu.dimension_semantics<parallel>, #tpu.dimension_semantics<parallel>], iteration_bounds = array<i64: 1, 2>, scalar_prefetch = 0 : i64, scratch_operands = 0 : i64, tpu.core_type = #tpu.core_type<tc>, window_params = [{transform_indices = @transform_0, window_bounds = array<i64: 1, 16, 288>}, {transform_indices = @transform_1, window_bounds = array<i64: 1, 288, 128>}, {transform_indices = @transform_2, window_bounds = array<i64: 1, 1, 128>}, {transform_indices = @transform_3, window_bounds = array<i64: 1, 16, 128>}]} {
    %c0 = arith.constant 0 : index
    %c0_0 = arith.constant 0 : index
    %c0_1 = arith.constant 0 : index
    %0 = vector.load %arg2[%c0, %c0_0, %c0_1] : memref<1x16x288xbf16, #tpu.memory_space<vmem>>, vector<1x16x288xbf16>
    %1 = vector.shape_cast %0 : vector<1x16x288xbf16> to vector<16x288xbf16>
    %c0_2 = arith.constant 0 : index
    %c0_3 = arith.constant 0 : index
    %c0_4 = arith.constant 0 : index
    %2 = vector.load %arg3[%c0_2, %c0_3, %c0_4] : memref<1x288x128xbf16, #tpu.memory_space<vmem>>, vector<1x288x128xbf16>
    %3 = vector.shape_cast %2 : vector<1x288x128xbf16> to vector<288x128xbf16>
    %cst = arith.constant dense<0.000000e+00> : vector<16x128xf32>
    %4 = tpu.matmul %1, %3, %cst {dimension_numbers = #tpu.dot_dimension_numbers<[1], [0], [0], [1], [0, 0, 1, 1], [], []>} : vector<16x288xbf16>, vector<288x128xbf16>, vector<16x128xf32> -> vector<16x128xf32>
    %c0_5 = arith.constant 0 : index
    %c0_6 = arith.constant 0 : index
    %c0_7 = arith.constant 0 : index
    %5 = vector.load %arg4[%c0_5, %c0_6, %c0_7] : memref<1x1x128xf32, #tpu.memory_space<vmem>>, vector<1x1x128xf32>
    %6 = vector.shape_cast %5 : vector<1x1x128xf32> to vector<1x128xf32>
    %7 = vector.broadcast %6 : vector<1x128xf32> to vector<16x128xf32>
    %8 = arith.addf %4, %7 : vector<16x128xf32>
    %cst_8 = arith.constant 0.000000e+00 : f32
    %9 = vector.broadcast %cst_8 : f32 to vector<16x128xf32>
    %10 = arith.maximumf %8, %9 : vector<16x128xf32>
    %11 = arith.truncf %10 : vector<16x128xf32> to vector<16x128xbf16>
    %c0_9 = arith.constant 0 : index
    %c0_10 = arith.constant 0 : index
    %c0_11 = arith.constant 0 : index
    %12 = vector.load %arg5[%c0_9, %c0_10, %c0_11] : memref<1x16x128xbf16, #tpu.memory_space<vmem>>, vector<1x16x128xbf16>
    %13 = vector.shape_cast %12 : vector<1x16x128xbf16> to vector<16x128xbf16>
    %14 = vector.shape_cast %11 : vector<16x128xbf16> to vector<1x16x128xbf16>
    tpu.vector_store %arg5[%c0_9, %c0_10, %c0_11], %14 {strides = array<i32>} : memref<1x16x128xbf16, #tpu.memory_space<vmem>>, vector<1x16x128xbf16>,
    return
  }
  func.func @transform_0(%arg0: i32, %arg1: i32) -> (i32, i32, i32) {
    %c0_i32 = arith.constant 0 : i32
    %c0_i32_0 = arith.constant 0 : i32
    return %arg0, %arg1, %c0_i32 : i32, i32, i32
  }
  func.func @transform_1(%arg0: i32, %arg1: i32) -> (i32, i32, i32) {
    %c0_i32 = arith.constant 0 : i32
    %c0_i32_0 = arith.constant 0 : i32
    %c0_i32_1 = arith.constant 0 : i32
    return %arg0, %c0_i32, %c0_i32_0 : i32, i32, i32
  }
  func.func @transform_2(%arg0: i32, %arg1: i32) -> (i32, i32, i32) {
    %c0_i32 = arith.constant 0 : i32
    %c0_i32_0 = arith.constant 0 : i32
    %c0_i32_1 = arith.constant 0 : i32
    return %arg0, %c0_i32, %c0_i32_0 : i32, i32, i32
  }
  func.func @transform_3(%arg0: i32, %arg1: i32) -> (i32, i32, i32) {
    %c0_i32 = arith.constant 0 : i32
    %c0_i32_0 = arith.constant 0 : i32
    return %arg0, %arg1, %c0_i32 : i32, i32, i32
  }
}

module attributes {stable_mosaic.version = 11 : i64} {
  func.func @_mm_kernel(%arg0: i32, %arg1: i32, %arg2: memref<1x256x64xbf16, #tpu.memory_space<vmem>>, %arg3: memref<1x64x128xbf16, #tpu.memory_space<vmem>>, %arg4: memref<1x1x128xf32, #tpu.memory_space<vmem>>, %arg5: memref<1x256x128xbf16, #tpu.memory_space<vmem>>) attributes {dimension_semantics = [#tpu.dimension_semantics<parallel>, #tpu.dimension_semantics<parallel>], iteration_bounds = array<i64: 3, 2>, scalar_prefetch = 0 : i64, scratch_operands = 0 : i64, tpu.core_type = #tpu.core_type<tc>, window_params = [{transform_indices = @transform_0, window_bounds = array<i64: 1, 256, 64>}, {transform_indices = @transform_1, window_bounds = array<i64: 1, 64, 128>}, {transform_indices = @transform_2, window_bounds = array<i64: 1, 1, 128>}, {transform_indices = @transform_3, window_bounds = array<i64: 1, 256, 128>}]} {
    %c0 = arith.constant 0 : index
    %c0_0 = arith.constant 0 : index
    %c0_1 = arith.constant 0 : index
    %0 = vector.load %arg2[%c0, %c0_0, %c0_1] : memref<1x256x64xbf16, #tpu.memory_space<vmem>>, vector<1x256x64xbf16>
    %1 = vector.shape_cast %0 : vector<1x256x64xbf16> to vector<256x64xbf16>
    %c0_2 = arith.constant 0 : index
    %c0_3 = arith.constant 0 : index
    %c0_4 = arith.constant 0 : index
    %2 = vector.load %arg3[%c0_2, %c0_3, %c0_4] : memref<1x64x128xbf16, #tpu.memory_space<vmem>>, vector<1x64x128xbf16>
    %3 = vector.shape_cast %2 : vector<1x64x128xbf16> to vector<64x128xbf16>
    %cst = arith.constant dense<0.000000e+00> : vector<256x128xf32>
    %4 = tpu.matmul %1, %3, %cst {dimension_numbers = #tpu.dot_dimension_numbers<[1], [0], [0], [1], [0, 0, 1, 1], [], []>} : vector<256x64xbf16>, vector<64x128xbf16>, vector<256x128xf32> -> vector<256x128xf32>
    %c0_5 = arith.constant 0 : index
    %c0_6 = arith.constant 0 : index
    %c0_7 = arith.constant 0 : index
    %5 = vector.load %arg4[%c0_5, %c0_6, %c0_7] : memref<1x1x128xf32, #tpu.memory_space<vmem>>, vector<1x1x128xf32>
    %6 = vector.shape_cast %5 : vector<1x1x128xf32> to vector<1x128xf32>
    %7 = vector.broadcast %6 : vector<1x128xf32> to vector<256x128xf32>
    %8 = arith.addf %4, %7 : vector<256x128xf32>
    %9 = arith.truncf %8 : vector<256x128xf32> to vector<256x128xbf16>
    %c0_8 = arith.constant 0 : index
    %c0_9 = arith.constant 0 : index
    %c0_10 = arith.constant 0 : index
    %10 = vector.load %arg5[%c0_8, %c0_9, %c0_10] : memref<1x256x128xbf16, #tpu.memory_space<vmem>>, vector<1x256x128xbf16>
    %11 = vector.shape_cast %10 : vector<1x256x128xbf16> to vector<256x128xbf16>
    %12 = vector.shape_cast %9 : vector<256x128xbf16> to vector<1x256x128xbf16>
    tpu.vector_store %arg5[%c0_8, %c0_9, %c0_10], %12 {strides = array<i32>} : memref<1x256x128xbf16, #tpu.memory_space<vmem>>, vector<1x256x128xbf16>,
    return
  }
  func.func @transform_0(%arg0: i32, %arg1: i32) -> (i32, i32, i32) {
    %c0_i32 = arith.constant 0 : i32
    %c0_i32_0 = arith.constant 0 : i32
    return %arg0, %arg1, %c0_i32 : i32, i32, i32
  }
  func.func @transform_1(%arg0: i32, %arg1: i32) -> (i32, i32, i32) {
    %c0_i32 = arith.constant 0 : i32
    %c0_i32_0 = arith.constant 0 : i32
    %c0_i32_1 = arith.constant 0 : i32
    return %arg0, %c0_i32, %c0_i32_0 : i32, i32, i32
  }
  func.func @transform_2(%arg0: i32, %arg1: i32) -> (i32, i32, i32) {
    %c0_i32 = arith.constant 0 : i32
    %c0_i32_0 = arith.constant 0 : i32
    %c0_i32_1 = arith.constant 0 : i32
    return %arg0, %c0_i32, %c0_i32_0 : i32, i32, i32
  }
  func.func @transform_3(%arg0: i32, %arg1: i32) -> (i32, i32, i32) {
    %c0_i32 = arith.constant 0 : i32
    %c0_i32_0 = arith.constant 0 : i32
    return %arg0, %arg1, %c0_i32 : i32, i32, i32
  }
}

module attributes {stable_mosaic.version = 11 : i64} {
  func.func @_mm_kernel(%arg0: i32, %arg1: i32, %arg2: memref<1x256x288xbf16, #tpu.memory_space<vmem>>, %arg3: memref<1x288x128xbf16, #tpu.memory_space<vmem>>, %arg4: memref<1x1x128xf32, #tpu.memory_space<vmem>>, %arg5: memref<1x256x128xbf16, #tpu.memory_space<vmem>>) attributes {dimension_semantics = [#tpu.dimension_semantics<parallel>, #tpu.dimension_semantics<parallel>], iteration_bounds = array<i64: 3, 2>, scalar_prefetch = 0 : i64, scratch_operands = 0 : i64, tpu.core_type = #tpu.core_type<tc>, window_params = [{transform_indices = @transform_0, window_bounds = array<i64: 1, 256, 288>}, {transform_indices = @transform_1, window_bounds = array<i64: 1, 288, 128>}, {transform_indices = @transform_2, window_bounds = array<i64: 1, 1, 128>}, {transform_indices = @transform_3, window_bounds = array<i64: 1, 256, 128>}]} {
    %c0 = arith.constant 0 : index
    %c0_0 = arith.constant 0 : index
    %c0_1 = arith.constant 0 : index
    %0 = vector.load %arg2[%c0, %c0_0, %c0_1] : memref<1x256x288xbf16, #tpu.memory_space<vmem>>, vector<1x256x288xbf16>
    %1 = vector.shape_cast %0 : vector<1x256x288xbf16> to vector<256x288xbf16>
    %c0_2 = arith.constant 0 : index
    %c0_3 = arith.constant 0 : index
    %c0_4 = arith.constant 0 : index
    %2 = vector.load %arg3[%c0_2, %c0_3, %c0_4] : memref<1x288x128xbf16, #tpu.memory_space<vmem>>, vector<1x288x128xbf16>
    %3 = vector.shape_cast %2 : vector<1x288x128xbf16> to vector<288x128xbf16>
    %cst = arith.constant dense<0.000000e+00> : vector<256x128xf32>
    %4 = tpu.matmul %1, %3, %cst {dimension_numbers = #tpu.dot_dimension_numbers<[1], [0], [0], [1], [0, 0, 1, 1], [], []>} : vector<256x288xbf16>, vector<288x128xbf16>, vector<256x128xf32> -> vector<256x128xf32>
    %c0_5 = arith.constant 0 : index
    %c0_6 = arith.constant 0 : index
    %c0_7 = arith.constant 0 : index
    %5 = vector.load %arg4[%c0_5, %c0_6, %c0_7] : memref<1x1x128xf32, #tpu.memory_space<vmem>>, vector<1x1x128xf32>
    %6 = vector.shape_cast %5 : vector<1x1x128xf32> to vector<1x128xf32>
    %7 = vector.broadcast %6 : vector<1x128xf32> to vector<256x128xf32>
    %8 = arith.addf %4, %7 : vector<256x128xf32>
    %cst_8 = arith.constant 0.000000e+00 : f32
    %9 = vector.broadcast %cst_8 : f32 to vector<256x128xf32>
    %10 = arith.maximumf %8, %9 : vector<256x128xf32>
    %11 = arith.truncf %10 : vector<256x128xf32> to vector<256x128xbf16>
    %c0_9 = arith.constant 0 : index
    %c0_10 = arith.constant 0 : index
    %c0_11 = arith.constant 0 : index
    %12 = vector.load %arg5[%c0_9, %c0_10, %c0_11] : memref<1x256x128xbf16, #tpu.memory_space<vmem>>, vector<1x256x128xbf16>
    %13 = vector.shape_cast %12 : vector<1x256x128xbf16> to vector<256x128xbf16>
    %14 = vector.shape_cast %11 : vector<256x128xbf16> to vector<1x256x128xbf16>
    tpu.vector_store %arg5[%c0_9, %c0_10, %c0_11], %14 {strides = array<i32>} : memref<1x256x128xbf16, #tpu.memory_space<vmem>>, vector<1x256x128xbf16>,
    return
  }
  func.func @transform_0(%arg0: i32, %arg1: i32) -> (i32, i32, i32) {
    %c0_i32 = arith.constant 0 : i32
    %c0_i32_0 = arith.constant 0 : i32
    return %arg0, %arg1, %c0_i32 : i32, i32, i32
  }
  func.func @transform_1(%arg0: i32, %arg1: i32) -> (i32, i32, i32) {
    %c0_i32 = arith.constant 0 : i32
    %c0_i32_0 = arith.constant 0 : i32
    %c0_i32_1 = arith.constant 0 : i32
    return %arg0, %c0_i32, %c0_i32_0 : i32, i32, i32
  }
  func.func @transform_2(%arg0: i32, %arg1: i32) -> (i32, i32, i32) {
    %c0_i32 = arith.constant 0 : i32
    %c0_i32_0 = arith.constant 0 : i32
    %c0_i32_1 = arith.constant 0 : i32
    return %arg0, %c0_i32, %c0_i32_0 : i32, i32, i32
  }
  func.func @transform_3(%arg0: i32, %arg1: i32) -> (i32, i32, i32) {
    %c0_i32 = arith.constant 0 : i32
    %c0_i32_0 = arith.constant 0 : i32
    return %arg0, %arg1, %c0_i32 : i32, i32, i32
  }
}

module attributes {stable_mosaic.version = 11 : i64} {
  func.func @_mm_kernel(%arg0: i32, %arg1: i32, %arg2: memref<1x8x288xbf16, #tpu.memory_space<vmem>>, %arg3: memref<1x288x128xbf16, #tpu.memory_space<vmem>>, %arg4: memref<1x1x128xf32, #tpu.memory_space<vmem>>, %arg5: memref<1x8x128xbf16, #tpu.memory_space<vmem>>) attributes {dimension_semantics = [#tpu.dimension_semantics<parallel>, #tpu.dimension_semantics<parallel>], iteration_bounds = array<i64: 1, 1>, scalar_prefetch = 0 : i64, scratch_operands = 0 : i64, tpu.core_type = #tpu.core_type<tc>, window_params = [{transform_indices = @transform_0, window_bounds = array<i64: 1, 8, 288>}, {transform_indices = @transform_1, window_bounds = array<i64: 1, 288, 128>}, {transform_indices = @transform_2, window_bounds = array<i64: 1, 1, 128>}, {transform_indices = @transform_3, window_bounds = array<i64: 1, 8, 128>}]} {
    %c0 = arith.constant 0 : index
    %c0_0 = arith.constant 0 : index
    %c0_1 = arith.constant 0 : index
    %0 = vector.load %arg2[%c0, %c0_0, %c0_1] : memref<1x8x288xbf16, #tpu.memory_space<vmem>>, vector<1x8x288xbf16>
    %1 = vector.shape_cast %0 : vector<1x8x288xbf16> to vector<8x288xbf16>
    %c0_2 = arith.constant 0 : index
    %c0_3 = arith.constant 0 : index
    %c0_4 = arith.constant 0 : index
    %2 = vector.load %arg3[%c0_2, %c0_3, %c0_4] : memref<1x288x128xbf16, #tpu.memory_space<vmem>>, vector<1x288x128xbf16>
    %3 = vector.shape_cast %2 : vector<1x288x128xbf16> to vector<288x128xbf16>
    %cst = arith.constant dense<0.000000e+00> : vector<8x128xf32>
    %4 = tpu.matmul %1, %3, %cst {dimension_numbers = #tpu.dot_dimension_numbers<[1], [0], [0], [1], [0, 0, 1, 1], [], []>} : vector<8x288xbf16>, vector<288x128xbf16>, vector<8x128xf32> -> vector<8x128xf32>
    %c0_5 = arith.constant 0 : index
    %c0_6 = arith.constant 0 : index
    %c0_7 = arith.constant 0 : index
    %5 = vector.load %arg4[%c0_5, %c0_6, %c0_7] : memref<1x1x128xf32, #tpu.memory_space<vmem>>, vector<1x1x128xf32>
    %6 = vector.shape_cast %5 : vector<1x1x128xf32> to vector<1x128xf32>
    %7 = vector.broadcast %6 : vector<1x128xf32> to vector<8x128xf32>
    %8 = arith.addf %4, %7 : vector<8x128xf32>
    %9 = arith.truncf %8 : vector<8x128xf32> to vector<8x128xbf16>
    %c0_8 = arith.constant 0 : index
    %c0_9 = arith.constant 0 : index
    %c0_10 = arith.constant 0 : index
    %10 = vector.load %arg5[%c0_8, %c0_9, %c0_10] : memref<1x8x128xbf16, #tpu.memory_space<vmem>>, vector<1x8x128xbf16>
    %11 = vector.shape_cast %10 : vector<1x8x128xbf16> to vector<8x128xbf16>
    %12 = vector.shape_cast %9 : vector<8x128xbf16> to vector<1x8x128xbf16>
    tpu.vector_store %arg5[%c0_8, %c0_9, %c0_10], %12 {strides = array<i32>} : memref<1x8x128xbf16, #tpu.memory_space<vmem>>, vector<1x8x128xbf16>,
    return
  }
  func.func @transform_0(%arg0: i32, %arg1: i32) -> (i32, i32, i32) {
    %c0_i32 = arith.constant 0 : i32
    %c0_i32_0 = arith.constant 0 : i32
    return %arg0, %arg1, %c0_i32 : i32, i32, i32
  }
  func.func @transform_1(%arg0: i32, %arg1: i32) -> (i32, i32, i32) {
    %c0_i32 = arith.constant 0 : i32
    %c0_i32_0 = arith.constant 0 : i32
    %c0_i32_1 = arith.constant 0 : i32
    return %arg0, %c0_i32, %c0_i32_0 : i32, i32, i32
  }
  func.func @transform_2(%arg0: i32, %arg1: i32) -> (i32, i32, i32) {
    %c0_i32 = arith.constant 0 : i32
    %c0_i32_0 = arith.constant 0 : i32
    %c0_i32_1 = arith.constant 0 : i32
    return %arg0, %c0_i32, %c0_i32_0 : i32, i32, i32
  }
  func.func @transform_3(%arg0: i32, %arg1: i32) -> (i32, i32, i32) {
    %c0_i32 = arith.constant 0 : i32
    %c0_i32_0 = arith.constant 0 : i32
    return %arg0, %arg1, %c0_i32 : i32, i32, i32
  }
}

module attributes {stable_mosaic.version = 11 : i64} {
  func.func @_mm_kernel(%arg0: i32, %arg1: i32, %arg2: memref<1x256x288xbf16, #tpu.memory_space<vmem>>, %arg3: memref<1x288x128xbf16, #tpu.memory_space<vmem>>, %arg4: memref<1x1x128xf32, #tpu.memory_space<vmem>>, %arg5: memref<1x256x128xbf16, #tpu.memory_space<vmem>>) attributes {dimension_semantics = [#tpu.dimension_semantics<parallel>, #tpu.dimension_semantics<parallel>], iteration_bounds = array<i64: 1, 2>, scalar_prefetch = 0 : i64, scratch_operands = 0 : i64, tpu.core_type = #tpu.core_type<tc>, window_params = [{transform_indices = @transform_0, window_bounds = array<i64: 1, 256, 288>}, {transform_indices = @transform_1, window_bounds = array<i64: 1, 288, 128>}, {transform_indices = @transform_2, window_bounds = array<i64: 1, 1, 128>}, {transform_indices = @transform_3, window_bounds = array<i64: 1, 256, 128>}]} {
    %c0 = arith.constant 0 : index
    %c0_0 = arith.constant 0 : index
    %c0_1 = arith.constant 0 : index
    %0 = vector.load %arg2[%c0, %c0_0, %c0_1] : memref<1x256x288xbf16, #tpu.memory_space<vmem>>, vector<1x256x288xbf16>
    %1 = vector.shape_cast %0 : vector<1x256x288xbf16> to vector<256x288xbf16>
    %c0_2 = arith.constant 0 : index
    %c0_3 = arith.constant 0 : index
    %c0_4 = arith.constant 0 : index
    %2 = vector.load %arg3[%c0_2, %c0_3, %c0_4] : memref<1x288x128xbf16, #tpu.memory_space<vmem>>, vector<1x288x128xbf16>
    %3 = vector.shape_cast %2 : vector<1x288x128xbf16> to vector<288x128xbf16>
    %cst = arith.constant dense<0.000000e+00> : vector<256x128xf32>
    %4 = tpu.matmul %1, %3, %cst {dimension_numbers = #tpu.dot_dimension_numbers<[1], [0], [0], [1], [0, 0, 1, 1], [], []>} : vector<256x288xbf16>, vector<288x128xbf16>, vector<256x128xf32> -> vector<256x128xf32>
    %c0_5 = arith.constant 0 : index
    %c0_6 = arith.constant 0 : index
    %c0_7 = arith.constant 0 : index
    %5 = vector.load %arg4[%c0_5, %c0_6, %c0_7] : memref<1x1x128xf32, #tpu.memory_space<vmem>>, vector<1x1x128xf32>
    %6 = vector.shape_cast %5 : vector<1x1x128xf32> to vector<1x128xf32>
    %7 = vector.broadcast %6 : vector<1x128xf32> to vector<256x128xf32>
    %8 = arith.addf %4, %7 : vector<256x128xf32>
    %cst_8 = arith.constant 0.000000e+00 : f32
    %9 = vector.broadcast %cst_8 : f32 to vector<256x128xf32>
    %10 = arith.maximumf %8, %9 : vector<256x128xf32>
    %11 = arith.truncf %10 : vector<256x128xf32> to vector<256x128xbf16>
    %c0_9 = arith.constant 0 : index
    %c0_10 = arith.constant 0 : index
    %c0_11 = arith.constant 0 : index
    %12 = vector.load %arg5[%c0_9, %c0_10, %c0_11] : memref<1x256x128xbf16, #tpu.memory_space<vmem>>, vector<1x256x128xbf16>
    %13 = vector.shape_cast %12 : vector<1x256x128xbf16> to vector<256x128xbf16>
    %14 = vector.shape_cast %11 : vector<256x128xbf16> to vector<1x256x128xbf16>
    tpu.vector_store %arg5[%c0_9, %c0_10, %c0_11], %14 {strides = array<i32>} : memref<1x256x128xbf16, #tpu.memory_space<vmem>>, vector<1x256x128xbf16>,
    return
  }
  func.func @transform_0(%arg0: i32, %arg1: i32) -> (i32, i32, i32) {
    %c0_i32 = arith.constant 0 : i32
    %c0_i32_0 = arith.constant 0 : i32
    return %arg0, %arg1, %c0_i32 : i32, i32, i32
  }
  func.func @transform_1(%arg0: i32, %arg1: i32) -> (i32, i32, i32) {
    %c0_i32 = arith.constant 0 : i32
    %c0_i32_0 = arith.constant 0 : i32
    %c0_i32_1 = arith.constant 0 : i32
    return %arg0, %c0_i32, %c0_i32_0 : i32, i32, i32
  }
  func.func @transform_2(%arg0: i32, %arg1: i32) -> (i32, i32, i32) {
    %c0_i32 = arith.constant 0 : i32
    %c0_i32_0 = arith.constant 0 : i32
    %c0_i32_1 = arith.constant 0 : i32
    return %arg0, %c0_i32, %c0_i32_0 : i32, i32, i32
  }
  func.func @transform_3(%arg0: i32, %arg1: i32) -> (i32, i32, i32) {
    %c0_i32 = arith.constant 0 : i32
    %c0_i32_0 = arith.constant 0 : i32
    return %arg0, %arg1, %c0_i32 : i32, i32, i32
  }
}

module attributes {stable_mosaic.version = 11 : i64} {
  func.func @_mm_kernel(%arg0: i32, %arg1: i32, %arg2: memref<1x352x288xbf16, #tpu.memory_space<vmem>>, %arg3: memref<1x288x128xbf16, #tpu.memory_space<vmem>>, %arg4: memref<1x1x128xf32, #tpu.memory_space<vmem>>, %arg5: memref<1x352x128xbf16, #tpu.memory_space<vmem>>) attributes {dimension_semantics = [#tpu.dimension_semantics<parallel>, #tpu.dimension_semantics<parallel>], iteration_bounds = array<i64: 1, 2>, scalar_prefetch = 0 : i64, scratch_operands = 0 : i64, tpu.core_type = #tpu.core_type<tc>, window_params = [{transform_indices = @transform_0, window_bounds = array<i64: 1, 352, 288>}, {transform_indices = @transform_1, window_bounds = array<i64: 1, 288, 128>}, {transform_indices = @transform_2, window_bounds = array<i64: 1, 1, 128>}, {transform_indices = @transform_3, window_bounds = array<i64: 1, 352, 128>}]} {
    %c0 = arith.constant 0 : index
    %c0_0 = arith.constant 0 : index
    %c0_1 = arith.constant 0 : index
    %0 = vector.load %arg2[%c0, %c0_0, %c0_1] : memref<1x352x288xbf16, #tpu.memory_space<vmem>>, vector<1x352x288xbf16>
    %1 = vector.shape_cast %0 : vector<1x352x288xbf16> to vector<352x288xbf16>
    %c0_2 = arith.constant 0 : index
    %c0_3 = arith.constant 0 : index
    %c0_4 = arith.constant 0 : index
    %2 = vector.load %arg3[%c0_2, %c0_3, %c0_4] : memref<1x288x128xbf16, #tpu.memory_space<vmem>>, vector<1x288x128xbf16>
    %3 = vector.shape_cast %2 : vector<1x288x128xbf16> to vector<288x128xbf16>
    %cst = arith.constant dense<0.000000e+00> : vector<352x128xf32>
    %4 = tpu.matmul %1, %3, %cst {dimension_numbers = #tpu.dot_dimension_numbers<[1], [0], [0], [1], [0, 0, 1, 1], [], []>} : vector<352x288xbf16>, vector<288x128xbf16>, vector<352x128xf32> -> vector<352x128xf32>
    %c0_5 = arith.constant 0 : index
    %c0_6 = arith.constant 0 : index
    %c0_7 = arith.constant 0 : index
    %5 = vector.load %arg4[%c0_5, %c0_6, %c0_7] : memref<1x1x128xf32, #tpu.memory_space<vmem>>, vector<1x1x128xf32>
    %6 = vector.shape_cast %5 : vector<1x1x128xf32> to vector<1x128xf32>
    %7 = vector.broadcast %6 : vector<1x128xf32> to vector<352x128xf32>
    %8 = arith.addf %4, %7 : vector<352x128xf32>
    %cst_8 = arith.constant 0.000000e+00 : f32
    %9 = vector.broadcast %cst_8 : f32 to vector<352x128xf32>
    %10 = arith.maximumf %8, %9 : vector<352x128xf32>
    %11 = arith.truncf %10 : vector<352x128xf32> to vector<352x128xbf16>
    %c0_9 = arith.constant 0 : index
    %c0_10 = arith.constant 0 : index
    %c0_11 = arith.constant 0 : index
    %12 = vector.load %arg5[%c0_9, %c0_10, %c0_11] : memref<1x352x128xbf16, #tpu.memory_space<vmem>>, vector<1x352x128xbf16>
    %13 = vector.shape_cast %12 : vector<1x352x128xbf16> to vector<352x128xbf16>
    %14 = vector.shape_cast %11 : vector<352x128xbf16> to vector<1x352x128xbf16>
    tpu.vector_store %arg5[%c0_9, %c0_10, %c0_11], %14 {strides = array<i32>} : memref<1x352x128xbf16, #tpu.memory_space<vmem>>, vector<1x352x128xbf16>,
    return
  }
  func.func @transform_0(%arg0: i32, %arg1: i32) -> (i32, i32, i32) {
    %c0_i32 = arith.constant 0 : i32
    %c0_i32_0 = arith.constant 0 : i32
    return %arg0, %arg1, %c0_i32 : i32, i32, i32
  }
  func.func @transform_1(%arg0: i32, %arg1: i32) -> (i32, i32, i32) {
    %c0_i32 = arith.constant 0 : i32
    %c0_i32_0 = arith.constant 0 : i32
    %c0_i32_1 = arith.constant 0 : i32
    return %arg0, %c0_i32, %c0_i32_0 : i32, i32, i32
  }
  func.func @transform_2(%arg0: i32, %arg1: i32) -> (i32, i32, i32) {
    %c0_i32 = arith.constant 0 : i32
    %c0_i32_0 = arith.constant 0 : i32
    %c0_i32_1 = arith.constant 0 : i32
    return %arg0, %c0_i32, %c0_i32_0 : i32, i32, i32
  }
  func.func @transform_3(%arg0: i32, %arg1: i32) -> (i32, i32, i32) {
    %c0_i32 = arith.constant 0 : i32
    %c0_i32_0 = arith.constant 0 : i32
    return %arg0, %arg1, %c0_i32 : i32, i32, i32
  }
}

module attributes {stable_mosaic.version = 11 : i64} {
  func.func @_mm_kernel(%arg0: i32, %arg1: i32, %arg2: memref<1x352x288xbf16, #tpu.memory_space<vmem>>, %arg3: memref<1x288x128xbf16, #tpu.memory_space<vmem>>, %arg4: memref<1x1x128xf32, #tpu.memory_space<vmem>>, %arg5: memref<1x352x128xf32, #tpu.memory_space<vmem>>) attributes {dimension_semantics = [#tpu.dimension_semantics<parallel>, #tpu.dimension_semantics<parallel>], iteration_bounds = array<i64: 1, 2>, scalar_prefetch = 0 : i64, scratch_operands = 0 : i64, tpu.core_type = #tpu.core_type<tc>, window_params = [{transform_indices = @transform_0, window_bounds = array<i64: 1, 352, 288>}, {transform_indices = @transform_1, window_bounds = array<i64: 1, 288, 128>}, {transform_indices = @transform_2, window_bounds = array<i64: 1, 1, 128>}, {transform_indices = @transform_3, window_bounds = array<i64: 1, 352, 128>}]} {
    %c0 = arith.constant 0 : index
    %c0_0 = arith.constant 0 : index
    %c0_1 = arith.constant 0 : index
    %0 = vector.load %arg2[%c0, %c0_0, %c0_1] : memref<1x352x288xbf16, #tpu.memory_space<vmem>>, vector<1x352x288xbf16>
    %1 = vector.shape_cast %0 : vector<1x352x288xbf16> to vector<352x288xbf16>
    %c0_2 = arith.constant 0 : index
    %c0_3 = arith.constant 0 : index
    %c0_4 = arith.constant 0 : index
    %2 = vector.load %arg3[%c0_2, %c0_3, %c0_4] : memref<1x288x128xbf16, #tpu.memory_space<vmem>>, vector<1x288x128xbf16>
    %3 = vector.shape_cast %2 : vector<1x288x128xbf16> to vector<288x128xbf16>
    %cst = arith.constant dense<0.000000e+00> : vector<352x128xf32>
    %4 = tpu.matmul %1, %3, %cst {dimension_numbers = #tpu.dot_dimension_numbers<[1], [0], [0], [1], [0, 0, 1, 1], [], []>} : vector<352x288xbf16>, vector<288x128xbf16>, vector<352x128xf32> -> vector<352x128xf32>
    %c0_5 = arith.constant 0 : index
    %c0_6 = arith.constant 0 : index
    %c0_7 = arith.constant 0 : index
    %5 = vector.load %arg4[%c0_5, %c0_6, %c0_7] : memref<1x1x128xf32, #tpu.memory_space<vmem>>, vector<1x1x128xf32>
    %6 = vector.shape_cast %5 : vector<1x1x128xf32> to vector<1x128xf32>
    %7 = vector.broadcast %6 : vector<1x128xf32> to vector<352x128xf32>
    %8 = arith.addf %4, %7 : vector<352x128xf32>
    %9 = tpu.iota {dimensions = array<i32: 1>} : vector<352x128xi32>
    %c27_i32 = arith.constant 27 : i32
    %10 = vector.broadcast %c27_i32 : i32 to vector<352x128xi32>
    %11 = arith.cmpi sge, %9, %10 : vector<352x128xi32>
    %c51_i32 = arith.constant 51 : i32
    %12 = vector.broadcast %c51_i32 : i32 to vector<352x128xi32>
    %13 = arith.cmpi slt, %9, %12 : vector<352x128xi32>
    %14 = arith.andi %11, %13 : vector<352x128xi1>
    %15 = math.tanh %8 : vector<352x128xf32>
    %16 = arith.select %14, %15, %8 : vector<352x128xi1>, vector<352x128xf32>
    %c12_i32 = arith.constant 12 : i32
    %17 = vector.broadcast %c12_i32 : i32 to vector<352x128xi32>
    %18 = arith.cmpi sge, %9, %17 : vector<352x128xi32>
    %c17_i32 = arith.constant 17 : i32
    %19 = vector.broadcast %c17_i32 : i32 to vector<352x128xi32>
    %20 = arith.cmpi slt, %9, %19 : vector<352x128xi32>
    %21 = arith.andi %18, %20 : vector<352x128xi1>
    %cst_8 = arith.constant -1.000000e+30 : f32
    %22 = vector.broadcast %cst_8 : f32 to vector<352x128xf32>
    %23 = arith.select %21, %16, %22 : vector<352x128xi1>, vector<352x128xf32>
    %cst_9 = arith.constant dense<0xFF800000> : vector<352xf32>
    %24 = vector.multi_reduction <maximumf>, %23, %cst_9 [1] : vector<352x128xf32> to vector<352xf32>
    %25 = vector.shape_cast %24 : vector<352xf32> to vector<352x1xf32>
    %26 = vector.broadcast %25 : vector<352x1xf32> to vector<352x128xf32>
    %27 = arith.subf %23, %26 : vector<352x128xf32>
    %28 = math.exp %27 : vector<352x128xf32>
    %cst_10 = arith.constant dense<0.000000e+00> : vector<352xf32>
    %29 = vector.multi_reduction <add>, %28, %cst_10 [1] : vector<352x128xf32> to vector<352xf32>
    %30 = vector.shape_cast %29 : vector<352xf32> to vector<352x1xf32>
    %31 = tpu.reciprocal %30 {approx = true} : vector<352x1xf32> -> vector<352x1xf32>
    %32 = vector.broadcast %31 : vector<352x1xf32> to vector<352x128xf32>
    %33 = arith.mulf %28, %32 : vector<352x128xf32>
    %34 = arith.select %21, %33, %16 : vector<352x128xi1>, vector<352x128xf32>
    %c17_i32_11 = arith.constant 17 : i32
    %35 = vector.broadcast %c17_i32_11 : i32 to vector<352x128xi32>
    %36 = arith.cmpi sge, %9, %35 : vector<352x128xi32>
    %c22_i32 = arith.constant 22 : i32
    %37 = vector.broadcast %c22_i32 : i32 to vector<352x128xi32>
    %38 = arith.cmpi slt, %9, %37 : vector<352x128xi32>
    %39 = arith.andi %36, %38 : vector<352x128xi1>
    %cst_12 = arith.constant -1.000000e+30 : f32
    %40 = vector.broadcast %cst_12 : f32 to vector<352x128xf32>
    %41 = arith.select %39, %16, %40 : vector<352x128xi1>, vector<352x128xf32>
    %cst_13 = arith.constant dense<0xFF800000> : vector<352xf32>
    %42 = vector.multi_reduction <maximumf>, %41, %cst_13 [1] : vector<352x128xf32> to vector<352xf32>
    %43 = vector.shape_cast %42 : vector<352xf32> to vector<352x1xf32>
    %44 = vector.broadcast %43 : vector<352x1xf32> to vector<352x128xf32>
    %45 = arith.subf %41, %44 : vector<352x128xf32>
    %46 = math.exp %45 : vector<352x128xf32>
    %cst_14 = arith.constant dense<0.000000e+00> : vector<352xf32>
    %47 = vector.multi_reduction <add>, %46, %cst_14 [1] : vector<352x128xf32> to vector<352xf32>
    %48 = vector.shape_cast %47 : vector<352xf32> to vector<352x1xf32>
    %49 = tpu.reciprocal %48 {approx = true} : vector<352x1xf32> -> vector<352x1xf32>
    %50 = vector.broadcast %49 : vector<352x1xf32> to vector<352x128xf32>
    %51 = arith.mulf %46, %50 : vector<352x128xf32>
    %52 = arith.select %39, %51, %34 : vector<352x128xi1>, vector<352x128xf32>
    %c22_i32_15 = arith.constant 22 : i32
    %53 = vector.broadcast %c22_i32_15 : i32 to vector<352x128xi32>
    %54 = arith.cmpi sge, %9, %53 : vector<352x128xi32>
    %c27_i32_16 = arith.constant 27 : i32
    %55 = vector.broadcast %c27_i32_16 : i32 to vector<352x128xi32>
    %56 = arith.cmpi slt, %9, %55 : vector<352x128xi32>
    %57 = arith.andi %54, %56 : vector<352x128xi1>
    %cst_17 = arith.constant -1.000000e+30 : f32
    %58 = vector.broadcast %cst_17 : f32 to vector<352x128xf32>
    %59 = arith.select %57, %16, %58 : vector<352x128xi1>, vector<352x128xf32>
    %cst_18 = arith.constant dense<0xFF800000> : vector<352xf32>
    %60 = vector.multi_reduction <maximumf>, %59, %cst_18 [1] : vector<352x128xf32> to vector<352xf32>
    %61 = vector.shape_cast %60 : vector<352xf32> to vector<352x1xf32>
    %62 = vector.broadcast %61 : vector<352x1xf32> to vector<352x128xf32>
    %63 = arith.subf %59, %62 : vector<352x128xf32>
    %64 = math.exp %63 : vector<352x128xf32>
    %cst_19 = arith.constant dense<0.000000e+00> : vector<352xf32>
    %65 = vector.multi_reduction <add>, %64, %cst_19 [1] : vector<352x128xf32> to vector<352xf32>
    %66 = vector.shape_cast %65 : vector<352xf32> to vector<352x1xf32>
    %67 = tpu.reciprocal %66 {approx = true} : vector<352x1xf32> -> vector<352x1xf32>
    %68 = vector.broadcast %67 : vector<352x1xf32> to vector<352x128xf32>
    %69 = arith.mulf %64, %68 : vector<352x128xf32>
    %70 = arith.select %57, %69, %52 : vector<352x128xi1>, vector<352x128xf32>
    %c0_20 = arith.constant 0 : index
    %c0_21 = arith.constant 0 : index
    %c0_22 = arith.constant 0 : index
    %71 = vector.load %arg5[%c0_20, %c0_21, %c0_22] : memref<1x352x128xf32, #tpu.memory_space<vmem>>, vector<1x352x128xf32>
    %72 = vector.shape_cast %71 : vector<1x352x128xf32> to vector<352x128xf32>
    %73 = vector.shape_cast %70 : vector<352x128xf32> to vector<1x352x128xf32>
    tpu.vector_store %arg5[%c0_20, %c0_21, %c0_22], %73 {strides = array<i32>} : memref<1x352x128xf32, #tpu.memory_space<vmem>>, vector<1x352x128xf32>,
    return
  }
  func.func @transform_0(%arg0: i32, %arg1: i32) -> (i32, i32, i32) {
    %c0_i32 = arith.constant 0 : i32
    %c0_i32_0 = arith.constant 0 : i32
    return %arg0, %arg1, %c0_i32 : i32, i32, i32
  }
  func.func @transform_1(%arg0: i32, %arg1: i32) -> (i32, i32, i32) {
    %c0_i32 = arith.constant 0 : i32
    %c0_i32_0 = arith.constant 0 : i32
    %c0_i32_1 = arith.constant 0 : i32
    return %arg0, %c0_i32, %c0_i32_0 : i32, i32, i32
  }
  func.func @transform_2(%arg0: i32, %arg1: i32) -> (i32, i32, i32) {
    %c0_i32 = arith.constant 0 : i32
    %c0_i32_0 = arith.constant 0 : i32
    %c0_i32_1 = arith.constant 0 : i32
    return %arg0, %c0_i32, %c0_i32_0 : i32, i32, i32
  }
  func.func @transform_3(%arg0: i32, %arg1: i32) -> (i32, i32, i32) {
    %c0_i32 = arith.constant 0 : i32
    %c0_i32_0 = arith.constant 0 : i32
    return %arg0, %arg1, %c0_i32 : i32, i32, i32
  }
}

module attributes {stable_mosaic.version = 11 : i64} {
  func.func @_mm_kernel(%arg0: i32, %arg1: i32, %arg2: memref<1x512x288xbf16, #tpu.memory_space<vmem>>, %arg3: memref<1x288x128xbf16, #tpu.memory_space<vmem>>, %arg4: memref<1x1x128xf32, #tpu.memory_space<vmem>>, %arg5: memref<1x512x128xbf16, #tpu.memory_space<vmem>>) attributes {dimension_semantics = [#tpu.dimension_semantics<parallel>, #tpu.dimension_semantics<parallel>], iteration_bounds = array<i64: 1, 4>, scalar_prefetch = 0 : i64, scratch_operands = 0 : i64, tpu.core_type = #tpu.core_type<tc>, window_params = [{transform_indices = @transform_0, window_bounds = array<i64: 1, 512, 288>}, {transform_indices = @transform_1, window_bounds = array<i64: 1, 288, 128>}, {transform_indices = @transform_2, window_bounds = array<i64: 1, 1, 128>}, {transform_indices = @transform_3, window_bounds = array<i64: 1, 512, 128>}]} {
    %c0 = arith.constant 0 : index
    %c0_0 = arith.constant 0 : index
    %c0_1 = arith.constant 0 : index
    %0 = vector.load %arg2[%c0, %c0_0, %c0_1] : memref<1x512x288xbf16, #tpu.memory_space<vmem>>, vector<1x512x288xbf16>
    %1 = vector.shape_cast %0 : vector<1x512x288xbf16> to vector<512x288xbf16>
    %c0_2 = arith.constant 0 : index
    %c0_3 = arith.constant 0 : index
    %c0_4 = arith.constant 0 : index
    %2 = vector.load %arg3[%c0_2, %c0_3, %c0_4] : memref<1x288x128xbf16, #tpu.memory_space<vmem>>, vector<1x288x128xbf16>
    %3 = vector.shape_cast %2 : vector<1x288x128xbf16> to vector<288x128xbf16>
    %cst = arith.constant dense<0.000000e+00> : vector<512x128xf32>
    %4 = tpu.matmul %1, %3, %cst {dimension_numbers = #tpu.dot_dimension_numbers<[1], [0], [0], [1], [0, 0, 1, 1], [], []>} : vector<512x288xbf16>, vector<288x128xbf16>, vector<512x128xf32> -> vector<512x128xf32>
    %c0_5 = arith.constant 0 : index
    %c0_6 = arith.constant 0 : index
    %c0_7 = arith.constant 0 : index
    %5 = vector.load %arg4[%c0_5, %c0_6, %c0_7] : memref<1x1x128xf32, #tpu.memory_space<vmem>>, vector<1x1x128xf32>
    %6 = vector.shape_cast %5 : vector<1x1x128xf32> to vector<1x128xf32>
    %7 = vector.broadcast %6 : vector<1x128xf32> to vector<512x128xf32>
    %8 = arith.addf %4, %7 : vector<512x128xf32>
    %cst_8 = arith.constant 0.000000e+00 : f32
    %9 = vector.broadcast %cst_8 : f32 to vector<512x128xf32>
    %10 = arith.maximumf %8, %9 : vector<512x128xf32>
    %11 = arith.truncf %10 : vector<512x128xf32> to vector<512x128xbf16>
    %c0_9 = arith.constant 0 : index
    %c0_10 = arith.constant 0 : index
    %c0_11 = arith.constant 0 : index
    %12 = vector.load %arg5[%c0_9, %c0_10, %c0_11] : memref<1x512x128xbf16, #tpu.memory_space<vmem>>, vector<1x512x128xbf16>
    %13 = vector.shape_cast %12 : vector<1x512x128xbf16> to vector<512x128xbf16>
    %14 = vector.shape_cast %11 : vector<512x128xbf16> to vector<1x512x128xbf16>
    tpu.vector_store %arg5[%c0_9, %c0_10, %c0_11], %14 {strides = array<i32>} : memref<1x512x128xbf16, #tpu.memory_space<vmem>>, vector<1x512x128xbf16>,
    return
  }
  func.func @transform_0(%arg0: i32, %arg1: i32) -> (i32, i32, i32) {
    %c0_i32 = arith.constant 0 : i32
    %c0_i32_0 = arith.constant 0 : i32
    return %arg0, %arg1, %c0_i32 : i32, i32, i32
  }
  func.func @transform_1(%arg0: i32, %arg1: i32) -> (i32, i32, i32) {
    %c0_i32 = arith.constant 0 : i32
    %c0_i32_0 = arith.constant 0 : i32
    %c0_i32_1 = arith.constant 0 : i32
    return %arg0, %c0_i32, %c0_i32_0 : i32, i32, i32
  }
  func.func @transform_2(%arg0: i32, %arg1: i32) -> (i32, i32, i32) {
    %c0_i32 = arith.constant 0 : i32
    %c0_i32_0 = arith.constant 0 : i32
    %c0_i32_1 = arith.constant 0 : i32
    return %arg0, %c0_i32, %c0_i32_0 : i32, i32, i32
  }
  func.func @transform_3(%arg0: i32, %arg1: i32) -> (i32, i32, i32) {
    %c0_i32 = arith.constant 0 : i32
    %c0_i32_0 = arith.constant 0 : i32
    return %arg0, %arg1, %c0_i32 : i32, i32, i32
  }
}

module attributes {stable_mosaic.version = 11 : i64} {
  func.func @_mm_kernel(%arg0: i32, %arg1: i32, %arg2: memref<1x512x32xbf16, #tpu.memory_space<vmem>>, %arg3: memref<1x32x128xbf16, #tpu.memory_space<vmem>>, %arg4: memref<1x1x128xf32, #tpu.memory_space<vmem>>, %arg5: memref<1x512x128xf32, #tpu.memory_space<vmem>>) attributes {dimension_semantics = [#tpu.dimension_semantics<parallel>, #tpu.dimension_semantics<parallel>], iteration_bounds = array<i64: 1, 4>, scalar_prefetch = 0 : i64, scratch_operands = 0 : i64, tpu.core_type = #tpu.core_type<tc>, window_params = [{transform_indices = @transform_0, window_bounds = array<i64: 1, 512, 32>}, {transform_indices = @transform_1, window_bounds = array<i64: 1, 32, 128>}, {transform_indices = @transform_2, window_bounds = array<i64: 1, 1, 128>}, {transform_indices = @transform_3, window_bounds = array<i64: 1, 512, 128>}]} {
    %c0 = arith.constant 0 : index
    %c0_0 = arith.constant 0 : index
    %c0_1 = arith.constant 0 : index
    %0 = vector.load %arg2[%c0, %c0_0, %c0_1] : memref<1x512x32xbf16, #tpu.memory_space<vmem>>, vector<1x512x32xbf16>
    %1 = vector.shape_cast %0 : vector<1x512x32xbf16> to vector<512x32xbf16>
    %c0_2 = arith.constant 0 : index
    %c0_3 = arith.constant 0 : index
    %c0_4 = arith.constant 0 : index
    %2 = vector.load %arg3[%c0_2, %c0_3, %c0_4] : memref<1x32x128xbf16, #tpu.memory_space<vmem>>, vector<1x32x128xbf16>
    %3 = vector.shape_cast %2 : vector<1x32x128xbf16> to vector<32x128xbf16>
    %cst = arith.constant dense<0.000000e+00> : vector<512x128xf32>
    %4 = tpu.matmul %1, %3, %cst {dimension_numbers = #tpu.dot_dimension_numbers<[1], [0], [0], [1], [0, 0, 1, 1], [], []>} : vector<512x32xbf16>, vector<32x128xbf16>, vector<512x128xf32> -> vector<512x128xf32>
    %c0_5 = arith.constant 0 : index
    %c0_6 = arith.constant 0 : index
    %c0_7 = arith.constant 0 : index
    %5 = vector.load %arg4[%c0_5, %c0_6, %c0_7] : memref<1x1x128xf32, #tpu.memory_space<vmem>>, vector<1x1x128xf32>
    %6 = vector.shape_cast %5 : vector<1x1x128xf32> to vector<1x128xf32>
    %7 = vector.broadcast %6 : vector<1x128xf32> to vector<512x128xf32>
    %8 = arith.addf %4, %7 : vector<512x128xf32>
    %cst_8 = arith.constant 0.000000e+00 : f32
    %9 = vector.broadcast %cst_8 : f32 to vector<512x128xf32>
    %10 = arith.maximumf %8, %9 : vector<512x128xf32>
    %c0_9 = arith.constant 0 : index
    %c0_10 = arith.constant 0 : index
    %c0_11 = arith.constant 0 : index
    %11 = vector.load %arg5[%c0_9, %c0_10, %c0_11] : memref<1x512x128xf32, #tpu.memory_space<vmem>>, vector<1x512x128xf32>
    %12 = vector.shape_cast %11 : vector<1x512x128xf32> to vector<512x128xf32>
    %13 = vector.shape_cast %10 : vector<512x128xf32> to vector<1x512x128xf32>
    tpu.vector_store %arg5[%c0_9, %c0_10, %c0_11], %13 {strides = array<i32>} : memref<1x512x128xf32, #tpu.memory_space<vmem>>, vector<1x512x128xf32>,
    return
  }
  func.func @transform_0(%arg0: i32, %arg1: i32) -> (i32, i32, i32) {
    %c0_i32 = arith.constant 0 : i32
    %c0_i32_0 = arith.constant 0 : i32
    return %arg0, %arg1, %c0_i32 : i32, i32, i32
  }
  func.func @transform_1(%arg0: i32, %arg1: i32) -> (i32, i32, i32) {
    %c0_i32 = arith.constant 0 : i32
    %c0_i32_0 = arith.constant 0 : i32
    %c0_i32_1 = arith.constant 0 : i32
    return %arg0, %c0_i32, %c0_i32_0 : i32, i32, i32
  }
  func.func @transform_2(%arg0: i32, %arg1: i32) -> (i32, i32, i32) {
    %c0_i32 = arith.constant 0 : i32
    %c0_i32_0 = arith.constant 0 : i32
    %c0_i32_1 = arith.constant 0 : i32
    return %arg0, %c0_i32, %c0_i32_0 : i32, i32, i32
  }
  func.func @transform_3(%arg0: i32, %arg1: i32) -> (i32, i32, i32) {
    %c0_i32 = arith.constant 0 : i32
    %c0_i32_0 = arith.constant 0 : i32
    return %arg0, %arg1, %c0_i32 : i32, i32, i32
  }
}

</mosaic_0001>

<bundles_post_ra>
// kernel: yolact_forward.14
= control target key start
LH: loop header
LB: loop body
LE: loop exit
PB: predicated region body
PF: predicated region fallthrough
CT: control target
= control target key end

     0   :  { %s1585_s12 = smov 0   ;;  %s1587_s13 = smov 0   ;;  %s1809_s0 = inlined_call_operand.vmem [shape: bf16[1,2048,72], index: 0, kind: input, shape index: {}]   ;;  %s1810_s1 = inlined_call_operand.vmem [shape: bf16[1,72,128], index: 1, kind: input, shape index: {}]   ;;  %s1811_s2 = inlined_call_operand.vmem [shape: f32[1,1,128], index: 2, kind: input, shape index: {}]   ;;  %s1812_s3 = inlined_call_operand.vmem [shape: bf16[1,2048,128], index: 3, kind: output, shape index: {}]  }
   0x1   :  { %s1589_s14 = smov 0  }
   0x2 LB: > { %s22_s15 = sadd.s32 1, %s1559_s13  ;;  %p1091_p0 = scmp.ge.s32.totalorder %s1563_s14, 1  ;;  %s1563_s14 = sphi %s1589_s14, %s13_s14   ;;  %s1559_s13 = sphi %s1587_s13, %s1814_s13   ;;  %s1555_s12 = sphi %s1585_s12, %s1813_s12  }
   0x3   : > { %p23_p1 = scmp.ge.s32.totalorder %s22_s15, 4  ;;  %p176_p2 = scmp.lt.s32.totalorder %s1563_s14, 5 }
   0x5   : > { %s1816_s15 = smov (%p23_p1, %s22_s15), 0  ;;  %p177_p3 = pnand %p1091_p0, %p176_p2 }
   0x6   : > { %s1092_s18 = sshll.u32 (!%p177_p3), %s1555_s12, 6 }
   0x7   : > { %180 = sbr.rel (%p177_p3) target bundleno = 298 (0x12a), region = 32  ;;  %p219_p4 = scmp.lt.s32.totalorder (!%p177_p3), %s1092_s18, 255 }
   0xc   : > { %v317_v0 = vld [vmem:[%s1810_s1 + $0x20] sm:$0xf]  ;;  %vm606_vm0 = vcmask 1043456   ;;  %v1309_v4 = vld [vmem:[%s1810_s1 + $0x18] sm:$0xff]  ;;  %v1308_v5 = vld [vmem:[%s1810_s1 + $0x10] sm:$0xff]  ;;  %s1818_s18 = smov (!%p219_p4, %s1092_s18), 255 }
   0xd   : > { %v499_v1 = vunpack.c.l.b16 %v317_v0  ;;  %v1307_v6 = vld [vmem:[%s1810_s1 + $0x8] sm:$0xff]  ;;  %s1093_s25 = sshll.u32 %s1818_s18, 2  ;;  %v1306_v7 = vld [vmem:[%s1810_s1] sm:$0xff]  ;;  %vm509_vm1 = vcmask 588800  }
   0xe   : > { %s1626_s30 = scalar_lea.vmem %s1809_s0, %s1093_s25  ;;  %v1695_v42 = vld [vmem:[%s1811_s2] ss:$0 sm:$0xff]  ;;  %s1706_s8 = scalar_lea.vmem %s1812_s3, %s1093_s25 }
   0xf   : > { %v504_v2 = vpack.c.b16 %v499_v1, %v499_v1  ;;  %v1274_v8 = vld [vmem:[%s1626_s30] sm:$0xff]  ;;  %v1275_v12 = vld [vmem:[%s1626_s30 + $0x8] sm:$0xff]  ;;  %v1276_v16 = vld [vmem:[%s1626_s30 + $0x10] sm:$0xff] }
  0x10   : > { %v1282_v9 = vld [vmem:[%s1626_s30 + $0x40] sm:$0xff]  ;;  %v1283_v13 = vld [vmem:[%s1626_s30 + $0x48] sm:$0xff]  ;;  %v1284_v17 = vld [vmem:[%s1626_s30 + $0x50] sm:$0xff] }
  0x11   : > { %v608_v3 = vsel %vm606_vm0, %v504_v2, 0  ;;  %v1290_v10 = vld [vmem:[%s1626_s30 + $0x80] sm:$0xff]  ;;  %v1291_v14 = vld [vmem:[%s1626_s30 + $0x88] sm:$0xff]  ;;  %v1292_v18 = vld [vmem:[%s1626_s30 + $0x90] sm:$0xff] }
  0x12   : > { %613 = vmatpush.bf16.msra.mxu0 %v608_v3  ;;  %1501 = vmatpush.bf16.msra.mxu1 %v608_v3  ;;  %v1298_v11 = vld [vmem:[%s1626_s30 + $0xc0] sm:$0xff]  ;;  %v1299_v15 = vld [vmem:[%s1626_s30 + $0xc8] sm:$0xff]  ;;  %v1300_v19 = vld [vmem:[%s1626_s30 + $0xd0] sm:$0xff] }
  0x13   : > { %1502 = vmatpush.bf16.msra.mxu2 %v608_v3  ;;  %1503 = vmatpush.bf16.msra.mxu3 %v608_v3  ;;  %v1277_v20 = vld [vmem:[%s1626_s30 + $0x18] sm:$0xff]  ;;  %v1278_v24 = vld [vmem:[%s1626_s30 + $0x20] sm:$0xff]  ;;  %v1279_v28 = vld [vmem:[%s1626_s30 + $0x28] sm:$0xff] }
  0x14   : > { %v1285_v21 = vld [vmem:[%s1626_s30 + $0x58] sm:$0xff]  ;;  %v1286_v25 = vld [vmem:[%s1626_s30 + $0x60] sm:$0xff]  ;;  %v1287_v29 = vld [vmem:[%s1626_s30 + $0x68] sm:$0xff] }
  0x15   : > { %v1293_v22 = vld [vmem:[%s1626_s30 + $0x98] sm:$0xff]  ;;  %v1294_v26 = vld [vmem:[%s1626_s30 + $0xa0] sm:$0xff]  ;;  %v1295_v30 = vld [vmem:[%s1626_s30 + $0xa8] sm:$0xff] }
  0x16   : > { %614 = vmatpush.bf16.msra.mxu0 %v1309_v4  ;;  %1504 = vmatpush.bf16.msra.mxu1 %v1309_v4  ;;  %v1301_v23 = vld [vmem:[%s1626_s30 + $0xd8] sm:$0xff]  ;;  %v1302_v27 = vld [vmem:[%s1626_s30 + $0xe0] sm:$0xff]  ;;  %v1303_v31 = vld [vmem:[%s1626_s30 + $0xe8] sm:$0xff] }
  0x17   : > { %1505 = vmatpush.bf16.msra.mxu2 %v1309_v4  ;;  %1506 = vmatpush.bf16.msra.mxu3 %v1309_v4  ;;  %v1280_v32 = vld [vmem:[%s1626_s30 + $0x30] sm:$0xff]  ;;  %v1281_v36 = vld [vmem:[%s1626_s30 + $0x38] sm:$0xff] }
  0x18   : > { %v1288_v33 = vld [vmem:[%s1626_s30 + $0x70] sm:$0xff]  ;;  %v1289_v37 = vld [vmem:[%s1626_s30 + $0x78] sm:$0xff] }
  0x19   : > { %v1296_v34 = vld [vmem:[%s1626_s30 + $0xb0] sm:$0xff]  ;;  %v1297_v38 = vld [vmem:[%s1626_s30 + $0xb8] sm:$0xff] }
  0x1a   : > { %615 = vmatpush.bf16.msra.mxu0 %v1308_v5  ;;  %1507 = vmatpush.bf16.msra.mxu1 %v1308_v5  ;;  %v1304_v35 = vld [vmem:[%s1626_s30 + $0xf0] sm:$0xff]  ;;  %v1305_v39 = vld [vmem:[%s1626_s30 + $0xf8] sm:$0xff] }
  0x1b   : > { %1508 = vmatpush.bf16.msra.mxu2 %v1308_v5  ;;  %1509 = vmatpush.bf16.msra.mxu3 %v1308_v5 }
  0x1e   : > { %616 = vmatpush.bf16.msra.mxu0 %v1307_v6  ;;  %1510 = vmatpush.bf16.msra.mxu1 %v1307_v6 }
  0x1f   : > { %1511 = vmatpush.bf16.msra.mxu2 %v1307_v6  ;;  %1512 = vmatpush.bf16.msra.mxu3 %v1307_v6 }
  0x22   : > { %617 = vmatpush.bf16.msra.mxu0 %v1306_v7  ;;  %1513 = vmatpush.bf16.msra.mxu1 %v1306_v7 }
  0x23   : > { %1514 = vmatpush.bf16.msra.mxu2 %v1306_v7  ;;  %1515 = vmatpush.bf16.msra.mxu3 %v1306_v7 }
  0x25   : > { %1240 = vmatmul.msk.bf16.vlgmr.msra.gmra.mxu0 %vm509_vm1, %v1274_v8  ;;  %1248 = vmatmul.msk.bf16.vlgmr.msra.gmra.mxu1 %vm509_vm1, %v1282_v9 }
  0x26   : > { %1256 = vmatmul.msk.bf16.vlgmr.msra.gmra.mxu2 %vm509_vm1, %v1290_v10  ;;  %1264 = vmatmul.msk.bf16.vlgmr.msra.gmra.mxu3 %vm509_vm1, %v1298_v11 }
  0x35   : > { %1241 = vmatmul.msk.bf16.gmra.mxu0 %vm509_vm1, %v1275_v12  ;;  %1249 = vmatmul.msk.bf16.gmra.mxu1 %vm509_vm1, %v1283_v13 }
  0x36   : > { %1257 = vmatmul.msk.bf16.gmra.mxu2 %vm509_vm1, %v1291_v14  ;;  %1265 = vmatmul.msk.bf16.gmra.mxu3 %vm509_vm1, %v1299_v15 }
  0x45   : > { %1242 = vmatmul.msk.bf16.gmra.mxu0 %vm509_vm1, %v1276_v16  ;;  %1250 = vmatmul.msk.bf16.gmra.mxu1 %vm509_vm1, %v1284_v17 }
  0x46   : > { %1258 = vmatmul.msk.bf16.gmra.mxu2 %vm509_vm1, %v1292_v18  ;;  %1266 = vmatmul.msk.bf16.gmra.mxu3 %vm509_vm1, %v1300_v19 }
  0x55   : > { %1243 = vmatmul.msk.bf16.gmra.mxu0 %vm509_vm1, %v1277_v20  ;;  %1251 = vmatmul.msk.bf16.gmra.mxu1 %vm509_vm1, %v1285_v21 }
  0x56   : > { %1259 = vmatmul.msk.bf16.gmra.mxu2 %vm509_vm1, %v1293_v22  ;;  %1267 = vmatmul.msk.bf16.gmra.mxu3 %vm509_vm1, %v1301_v23 }
  0x65   : > { %1244 = vmatmul.msk.bf16.gmra.mxu0 %vm509_vm1, %v1278_v24  ;;  %1252 = vmatmul.msk.bf16.gmra.mxu1 %vm509_vm1, %v1286_v25 }
  0x66   : > { %1260 = vmatmul.msk.bf16.gmra.mxu2 %vm509_vm1, %v1294_v26  ;;  %1268 = vmatmul.msk.bf16.gmra.mxu3 %vm509_vm1, %v1302_v27 }
  0x75   : > { %1245 = vmatmul.msk.bf16.gmra.mxu0 %vm509_vm1, %v1279_v28  ;;  %1253 = vmatmul.msk.bf16.gmra.mxu1 %vm509_vm1, %v1287_v29 }
  0x76   : > { %1261 = vmatmul.msk.bf16.gmra.mxu2 %vm509_vm1, %v1295_v30  ;;  %1269 = vmatmul.msk.bf16.gmra.mxu3 %vm509_vm1, %v1303_v31 }
  0x85   : > { %1246 = vmatmul.msk.bf16.gmra.mxu0 %vm509_vm1, %v1280_v32  ;;  %1254 = vmatmul.msk.bf16.gmra.mxu1 %vm509_vm1, %v1288_v33 }
  0x86   : > { %1262 = vmatmul.msk.bf16.gmra.mxu2 %vm509_vm1, %v1296_v34  ;;  %1270 = vmatmul.msk.bf16.gmra.mxu3 %vm509_vm1, %v1304_v35 }
  0x95   : > { %1247 = vmatmul.msk.bf16.gmra.mxu0 %vm509_vm1, %v1281_v36  ;;  %1255 = vmatmul.msk.bf16.gmra.mxu1 %vm509_vm1, %v1289_v37 }
  0x96   : > { %1263 = vmatmul.msk.bf16.gmra.mxu2 %vm509_vm1, %v1297_v38  ;;  %1271 = vmatmul.msk.bf16.gmra.mxu3 %vm509_vm1, %v1305_v39 }
  0xa2   : > { %v619_v40 = vpop.f32.mrf.mxu0  ;;  %v659_v41 = vpop.f32.mrf.mxu1 }
  0xa3   : > { %v620_v43 = vadd.f32 %v1695_v42, %v619_v40  ;;  %v660_v44 = vadd.f32 %v1695_v42, %v659_v41 }
  0xa5   : > { %v779_v51 = vmax.f32 %v620_v43, 0.0  ;;  %v795_v52 = vmax.f32 %v660_v44, 0.0 }
  0xa9   : > { %v699_v45 = vpop.f32.mrf.mxu2  ;;  %v739_v46 = vpop.f32.mrf.mxu3 }
  0xaa   : > { %v621_v47 = vpop.f32.mrf.mxu0  ;;  %v661_v48 = vpop.f32.mrf.mxu1  ;;  %v700_v57 = vadd.f32 %v1695_v42, %v699_v45  ;;  %v740_v58 = vadd.f32 %v1695_v42, %v739_v46 }
  0xab   : > { %v622_v49 = vadd.f32 %v1695_v42, %v621_v47  ;;  %v662_v50 = vadd.f32 %v1695_v42, %v661_v48 }
  0xac   : > { %v811_v1 = vmax.f32 %v700_v57, 0.0  ;;  %v827_v2 = vmax.f32 %v740_v58, 0.0 }
  0xad   : > { %v780_v53 = vmax.f32 %v622_v49, 0.0  ;;  %v796_v54 = vmax.f32 %v662_v50, 0.0 }
  0xaf   : > { %v1313_v55 = vpack.c.bf16 %v780_v53, %v779_v51  ;;  %v1353_v56 = vpack.c.bf16 %v796_v54, %v795_v52 }
  0xb1   : > { %1314 = vst [vmem:[%s1706_s8] sm:$0xff] %v1313_v55   ;;  %v701_v59 = vpop.f32.mrf.mxu2  ;;  %v741_v60 = vpop.f32.mrf.mxu3 }
  0xb2   : > { %1477 = vst [vmem:[%s1706_s8 + $0x40] sm:$0xff] %v1353_v56   ;;  %v702_v61 = vadd.f32 %v1695_v42, %v701_v59  ;;  %v742_v62 = vadd.f32 %v1695_v42, %v741_v60  ;;  %v624_v63 = vpop.f32.mrf.mxu0  ;;  %v664_v0 = vpop.f32.mrf.mxu1 }
  0xb3   : > { %v625_v7 = vadd.f32 %v1695_v42, %v624_v63  ;;  %v665_v8 = vadd.f32 %v1695_v42, %v664_v0 }
  0xb4   : > { %v812_v3 = vmax.f32 %v702_v61, 0.0  ;;  %v828_v4 = vmax.f32 %v742_v62, 0.0 }
  0xb5   : > { %v781_v15 = vmax.f32 %v625_v7, 0.0  ;;  %v797_v16 = vmax.f32 %v665_v8, 0.0 }
  0xb6   : > { %v1393_v5 = vpack.c.bf16 %v812_v3, %v811_v1  ;;  %v1433_v6 = vpack.c.bf16 %v828_v4, %v827_v2 }
  0xb8   : > { %1485 = vst [vmem:[%s1706_s8 + $0x80] sm:$0xff] %v1393_v5  }
  0xb9   : > { %1493 = vst [vmem:[%s1706_s8 + $0xc0] sm:$0xff] %v1433_v6   ;;  %v704_v9 = vpop.f32.mrf.mxu2  ;;  %v744_v10 = vpop.f32.mrf.mxu3 }
  0xba   : > { %v626_v11 = vpop.f32.mrf.mxu0  ;;  %v666_v12 = vpop.f32.mrf.mxu1  ;;  %v705_v21 = vadd.f32 %v1695_v42, %v704_v9  ;;  %v745_v22 = vadd.f32 %v1695_v42, %v744_v10 }
  0xbb   : > { %v627_v13 = vadd.f32 %v1695_v42, %v626_v11  ;;  %v667_v14 = vadd.f32 %v1695_v42, %v666_v12 }
  0xbc   : > { %v813_v29 = vmax.f32 %v705_v21, 0.0  ;;  %v829_v30 = vmax.f32 %v745_v22, 0.0 }
  0xbd   : > { %v782_v17 = vmax.f32 %v627_v13, 0.0  ;;  %v798_v18 = vmax.f32 %v667_v14, 0.0 }
  0xbf   : > { %v1318_v19 = vpack.c.bf16 %v782_v17, %v781_v15  ;;  %v1358_v20 = vpack.c.bf16 %v798_v18, %v797_v16 }
  0xc1   : > { %1470 = vst [vmem:[%s1706_s8 + $0x8] sm:$0xff] %v1318_v19   ;;  %v706_v23 = vpop.f32.mrf.mxu2  ;;  %v746_v24 = vpop.f32.mrf.mxu3 }
  0xc2   : > { %1478 = vst [vmem:[%s1706_s8 + $0x48] sm:$0xff] %v1358_v20   ;;  %v707_v25 = vadd.f32 %v1695_v42, %v706_v23  ;;  %v747_v26 = vadd.f32 %v1695_v42, %v746_v24  ;;  %v629_v27 = vpop.f32.mrf.mxu0  ;;  %v669_v28 = vpop.f32.mrf.mxu1 }
  0xc3   : > { %v630_v35 = vadd.f32 %v1695_v42, %v629_v27  ;;  %v670_v36 = vadd.f32 %v1695_v42, %v669_v28 }
  0xc4   : > { %v814_v31 = vmax.f32 %v707_v25, 0.0  ;;  %v830_v32 = vmax.f32 %v747_v26, 0.0 }
  0xc5   : > { %v783_v44 = vmax.f32 %v630_v35, 0.0  ;;  %v799_v45 = vmax.f32 %v670_v36, 0.0 }
  0xc6   : > { %v1398_v33 = vpack.c.bf16 %v814_v31, %v813_v29  ;;  %v1438_v34 = vpack.c.bf16 %v830_v32, %v829_v30 }
  0xc8   : > { %1486 = vst [vmem:[%s1706_s8 + $0x88] sm:$0xff] %v1398_v33  }
  0xc9   : > { %1494 = vst [vmem:[%s1706_s8 + $0xc8] sm:$0xff] %v1438_v34   ;;  %v709_v37 = vpop.f32.mrf.mxu2  ;;  %v749_v38 = vpop.f32.mrf.mxu3 }
  0xca   : > { %v631_v39 = vpop.f32.mrf.mxu0  ;;  %v671_v40 = vpop.f32.mrf.mxu1  ;;  %v710_v50 = vadd.f32 %v1695_v42, %v709_v37  ;;  %v750_v51 = vadd.f32 %v1695_v42, %v749_v38 }
  0xcb   : > { %v632_v41 = vadd.f32 %v1695_v42, %v631_v39  ;;  %v672_v43 = vadd.f32 %v1695_v42, %v671_v40 }
  0xcc   : > { %v815_v58 = vmax.f32 %v710_v50, 0.0  ;;  %v831_v59 = vmax.f32 %v750_v51, 0.0 }
  0xcd   : > { %v784_v46 = vmax.f32 %v632_v41, 0.0  ;;  %v800_v47 = vmax.f32 %v672_v43, 0.0 }
  0xcf   : > { %v1323_v48 = vpack.c.bf16 %v784_v46, %v783_v44  ;;  %v1363_v49 = vpack.c.bf16 %v800_v47, %v799_v45 }
  0xd1   : > { %1471 = vst [vmem:[%s1706_s8 + $0x10] sm:$0xff] %v1323_v48   ;;  %v711_v52 = vpop.f32.mrf.mxu2  ;;  %v751_v53 = vpop.f32.mrf.mxu3 }
  0xd2   : > { %1479 = vst [vmem:[%s1706_s8 + $0x50] sm:$0xff] %v1363_v49   ;;  %v712_v54 = vadd.f32 %v1695_v42, %v711_v52  ;;  %v752_v55 = vadd.f32 %v1695_v42, %v751_v53  ;;  %v634_v56 = vpop.f32.mrf.mxu0  ;;  %v674_v57 = vpop.f32.mrf.mxu1 }
  0xd3   : > { %v635_v0 = vadd.f32 %v1695_v42, %v634_v56  ;;  %v675_v1 = vadd.f32 %v1695_v42, %v674_v57 }
  0xd4   : > { %v816_v60 = vmax.f32 %v712_v54, 0.0  ;;  %v832_v61 = vmax.f32 %v752_v55, 0.0 }
  0xd5   : > { %v785_v8 = vmax.f32 %v635_v0, 0.0  ;;  %v801_v9 = vmax.f32 %v675_v1, 0.0 }
  0xd6   : > { %v1403_v62 = vpack.c.bf16 %v816_v60, %v815_v58  ;;  %v1443_v63 = vpack.c.bf16 %v832_v61, %v831_v59 }
  0xd8   : > { %1487 = vst [vmem:[%s1706_s8 + $0x90] sm:$0xff] %v1403_v62  }
  0xd9   : > { %1495 = vst [vmem:[%s1706_s8 + $0xd0] sm:$0xff] %v1443_v63   ;;  %v714_v2 = vpop.f32.mrf.mxu2  ;;  %v754_v3 = vpop.f32.mrf.mxu3 }
  0xda   : > { %v636_v4 = vpop.f32.mrf.mxu0  ;;  %v676_v5 = vpop.f32.mrf.mxu1  ;;  %v715_v14 = vadd.f32 %v1695_v42, %v714_v2  ;;  %v755_v15 = vadd.f32 %v1695_v42, %v754_v3 }
  0xdb   : > { %v637_v6 = vadd.f32 %v1695_v42, %v636_v4  ;;  %v677_v7 = vadd.f32 %v1695_v42, %v676_v5 }
  0xdc   : > { %v817_v22 = vmax.f32 %v715_v14, 0.0  ;;  %v833_v23 = vmax.f32 %v755_v15, 0.0 }
  0xdd   : > { %v786_v10 = vmax.f32 %v637_v6, 0.0  ;;  %v802_v11 = vmax.f32 %v677_v7, 0.0 }
  0xdf   : > { %v1328_v12 = vpack.c.bf16 %v786_v10, %v785_v8  ;;  %v1368_v13 = vpack.c.bf16 %v802_v11, %v801_v9 }
  0xe1   : > { %1472 = vst [vmem:[%s1706_s8 + $0x18] sm:$0xff] %v1328_v12   ;;  %v716_v16 = vpop.f32.mrf.mxu2  ;;  %v756_v17 = vpop.f32.mrf.mxu3 }
  0xe2   : > { %1480 = vst [vmem:[%s1706_s8 + $0x58] sm:$0xff] %v1368_v13   ;;  %v717_v18 = vadd.f32 %v1695_v42, %v716_v16  ;;  %v757_v19 = vadd.f32 %v1695_v42, %v756_v17  ;;  %v639_v20 = vpop.f32.mrf.mxu0  ;;  %v679_v21 = vpop.f32.mrf.mxu1 }
  0xe3   : > { %v640_v28 = vadd.f32 %v1695_v42, %v639_v20  ;;  %v680_v29 = vadd.f32 %v1695_v42, %v679_v21 }
  0xe4   : > { %v818_v24 = vmax.f32 %v717_v18, 0.0  ;;  %v834_v25 = vmax.f32 %v757_v19, 0.0 }
  0xe5   : > { %v787_v36 = vmax.f32 %v640_v28, 0.0  ;;  %v803_v37 = vmax.f32 %v680_v29, 0.0 }
  0xe6   : > { %v1408_v26 = vpack.c.bf16 %v818_v24, %v817_v22  ;;  %v1448_v27 = vpack.c.bf16 %v834_v25, %v833_v23 }
  0xe8   : > { %1488 = vst [vmem:[%s1706_s8 + $0x98] sm:$0xff] %v1408_v26  }
  0xe9   : > { %1496 = vst [vmem:[%s1706_s8 + $0xd8] sm:$0xff] %v1448_v27   ;;  %v719_v30 = vpop.f32.mrf.mxu2  ;;  %v759_v31 = vpop.f32.mrf.mxu3 }
  0xea   : > { %v641_v32 = vpop.f32.mrf.mxu0  ;;  %v681_v33 = vpop.f32.mrf.mxu1  ;;  %v720_v43 = vadd.f32 %v1695_v42, %v719_v30  ;;  %v760_v44 = vadd.f32 %v1695_v42, %v759_v31 }
  0xeb   : > { %v642_v34 = vadd.f32 %v1695_v42, %v641_v32  ;;  %v682_v35 = vadd.f32 %v1695_v42, %v681_v33 }
  0xec   : > { %v819_v51 = vmax.f32 %v720_v43, 0.0  ;;  %v835_v52 = vmax.f32 %v760_v44, 0.0 }
  0xed   : > { %v788_v38 = vmax.f32 %v642_v34, 0.0  ;;  %v804_v39 = vmax.f32 %v682_v35, 0.0 }
  0xef   : > { %v1333_v40 = vpack.c.bf16 %v788_v38, %v787_v36  ;;  %v1373_v41 = vpack.c.bf16 %v804_v39, %v803_v37 }
  0xf1   : > { %1473 = vst [vmem:[%s1706_s8 + $0x20] sm:$0xff] %v1333_v40   ;;  %v721_v45 = vpop.f32.mrf.mxu2  ;;  %v761_v46 = vpop.f32.mrf.mxu3 }
  0xf2   : > { %1481 = vst [vmem:[%s1706_s8 + $0x60] sm:$0xff] %v1373_v41   ;;  %v722_v47 = vadd.f32 %v1695_v42, %v721_v45  ;;  %v762_v48 = vadd.f32 %v1695_v42, %v761_v46  ;;  %v644_v49 = vpop.f32.mrf.mxu0  ;;  %v684_v50 = vpop.f32.mrf.mxu1 }
  0xf3   : > { %v645_v57 = vadd.f32 %v1695_v42, %v644_v49  ;;  %v685_v58 = vadd.f32 %v1695_v42, %v684_v50 }
  0xf4   : > { %v820_v53 = vmax.f32 %v722_v47, 0.0  ;;  %v836_v54 = vmax.f32 %v762_v48, 0.0 }
  0xf5   : > { %v789_v1 = vmax.f32 %v645_v57, 0.0  ;;  %v805_v2 = vmax.f32 %v685_v58, 0.0 }
  0xf6   : > { %v1413_v55 = vpack.c.bf16 %v820_v53, %v819_v51  ;;  %v1453_v56 = vpack.c.bf16 %v836_v54, %v835_v52 }
  0xf8   : > { %1489 = vst [vmem:[%s1706_s8 + $0xa0] sm:$0xff] %v1413_v55  }
  0xf9   : > { %1497 = vst [vmem:[%s1706_s8 + $0xe0] sm:$0xff] %v1453_v56   ;;  %v724_v59 = vpop.f32.mrf.mxu2  ;;  %v764_v60 = vpop.f32.mrf.mxu3 }
  0xfa   : > { %v646_v61 = vpop.f32.mrf.mxu0  ;;  %v686_v62 = vpop.f32.mrf.mxu1  ;;  %v725_v7 = vadd.f32 %v1695_v42, %v724_v59  ;;  %v765_v8 = vadd.f32 %v1695_v42, %v764_v60 }
  0xfb   : > { %v647_v63 = vadd.f32 %v1695_v42, %v646_v61  ;;  %v687_v0 = vadd.f32 %v1695_v42, %v686_v62 }
  0xfc   : > { %v821_v15 = vmax.f32 %v725_v7, 0.0  ;;  %v837_v16 = vmax.f32 %v765_v8, 0.0 }
  0xfd   : > { %v790_v3 = vmax.f32 %v647_v63, 0.0  ;;  %v806_v4 = vmax.f32 %v687_v0, 0.0 }
  0xff   : > { %v1338_v5 = vpack.c.bf16 %v790_v3, %v789_v1  ;;  %v1378_v6 = vpack.c.bf16 %v806_v4, %v805_v2 }
 0x101   : > { %1474 = vst [vmem:[%s1706_s8 + $0x28] sm:$0xff] %v1338_v5   ;;  %v726_v9 = vpop.f32.mrf.mxu2  ;;  %v766_v10 = vpop.f32.mrf.mxu3 }
 0x102   : > { %1482 = vst [vmem:[%s1706_s8 + $0x68] sm:$0xff] %v1378_v6   ;;  %v727_v11 = vadd.f32 %v1695_v42, %v726_v9  ;;  %v767_v12 = vadd.f32 %v1695_v42, %v766_v10  ;;  %v649_v13 = vpop.f32.mrf.mxu0  ;;  %v689_v14 = vpop.f32.mrf.mxu1 }
 0x103   : > { %v650_v21 = vadd.f32 %v1695_v42, %v649_v13  ;;  %v690_v22 = vadd.f32 %v1695_v42, %v689_v14 }
 0x104   : > { %v822_v17 = vmax.f32 %v727_v11, 0.0  ;;  %v838_v18 = vmax.f32 %v767_v12, 0.0 }
 0x105   : > { %v791_v29 = vmax.f32 %v650_v21, 0.0  ;;  %v807_v30 = vmax.f32 %v690_v22, 0.0 }
 0x106   : > { %v1418_v19 = vpack.c.bf16 %v822_v17, %v821_v15  ;;  %v1458_v20 = vpack.c.bf16 %v838_v18, %v837_v16 }
 0x108   : > { %1490 = vst [vmem:[%s1706_s8 + $0xa8] sm:$0xff] %v1418_v19  }
 0x109   : > { %1498 = vst [vmem:[%s1706_s8 + $0xe8] sm:$0xff] %v1458_v20   ;;  %v729_v23 = vpop.f32.mrf.mxu2  ;;  %v769_v24 = vpop.f32.mrf.mxu3 }
 0x10a   : > { %v651_v25 = vpop.f32.mrf.mxu0  ;;  %v691_v26 = vpop.f32.mrf.mxu1  ;;  %v730_v35 = vadd.f32 %v1695_v42, %v729_v23  ;;  %v770_v36 = vadd.f32 %v1695_v42, %v769_v24 }
 0x10b   : > { %v652_v27 = vadd.f32 %v1695_v42, %v651_v25  ;;  %v692_v28 = vadd.f32 %v1695_v42, %v691_v26 }
 0x10c   : > { %v823_v44 = vmax.f32 %v730_v35, 0.0  ;;  %v839_v45 = vmax.f32 %v770_v36, 0.0 }
 0x10d   : > { %v792_v31 = vmax.f32 %v652_v27, 0.0  ;;  %v808_v32 = vmax.f32 %v692_v28, 0.0 }
 0x10f   : > { %v1343_v33 = vpack.c.bf16 %v792_v31, %v791_v29  ;;  %v1383_v34 = vpack.c.bf16 %v808_v32, %v807_v30 }
 0x111   : > { %1475 = vst [vmem:[%s1706_s8 + $0x30] sm:$0xff] %v1343_v33   ;;  %v731_v37 = vpop.f32.mrf.mxu2  ;;  %v771_v38 = vpop.f32.mrf.mxu3 }
 0x112   : > { %1483 = vst [vmem:[%s1706_s8 + $0x70] sm:$0xff] %v1383_v34   ;;  %v732_v39 = vadd.f32 %v1695_v42, %v731_v37  ;;  %v772_v40 = vadd.f32 %v1695_v42, %v771_v38  ;;  %v654_v41 = vpop.f32.mrf.mxu0  ;;  %v694_v43 = vpop.f32.mrf.mxu1 }
 0x113   : > { %v655_v50 = vadd.f32 %v1695_v42, %v654_v41  ;;  %v695_v51 = vadd.f32 %v1695_v42, %v694_v43 }
 0x114   : > { %v824_v46 = vmax.f32 %v732_v39, 0.0  ;;  %v840_v47 = vmax.f32 %v772_v40, 0.0 }
 0x115   : > { %v793_v58 = vmax.f32 %v655_v50, 0.0  ;;  %v809_v59 = vmax.f32 %v695_v51, 0.0 }
 0x116   : > { %v1423_v48 = vpack.c.bf16 %v824_v46, %v823_v44  ;;  %v1463_v49 = vpack.c.bf16 %v840_v47, %v839_v45 }
 0x118   : > { %1491 = vst [vmem:[%s1706_s8 + $0xb0] sm:$0xff] %v1423_v48  }
 0x119   : > { %1499 = vst [vmem:[%s1706_s8 + $0xf0] sm:$0xff] %v1463_v49   ;;  %v734_v52 = vpop.f32.mrf.mxu2  ;;  %v774_v53 = vpop.f32.mrf.mxu3 }
 0x11a   : > { %v656_v54 = vpop.f32.mrf.mxu0  ;;  %v696_v55 = vpop.f32.mrf.mxu1  ;;  %v735_v0 = vadd.f32 %v1695_v42, %v734_v52  ;;  %v775_v1 = vadd.f32 %v1695_v42, %v774_v53 }
 0x11b   : > { %v657_v56 = vadd.f32 %v1695_v42, %v656_v54  ;;  %v697_v57 = vadd.f32 %v1695_v42, %v696_v55 }
 0x11c   : > { %v825_v6 = vmax.f32 %v735_v0, 0.0  ;;  %v841_v7 = vmax.f32 %v775_v1, 0.0 }
 0x11d   : > { %v794_v60 = vmax.f32 %v657_v56, 0.0  ;;  %v810_v61 = vmax.f32 %v697_v57, 0.0 }
 0x11f   : > { %v1348_v62 = vpack.c.bf16 %v794_v60, %v793_v58  ;;  %v1388_v63 = vpack.c.bf16 %v810_v61, %v809_v59 }
 0x121   : > { %1476 = vst [vmem:[%s1706_s8 + $0x38] sm:$0xff] %v1348_v62   ;;  %v736_v2 = vpop.f32.mrf.mxu2  ;;  %v776_v3 = vpop.f32.mrf.mxu3 }
 0x122   : > { %1484 = vst [vmem:[%s1706_s8 + $0x78] sm:$0xff] %v1388_v63   ;;  %v737_v4 = vadd.f32 %v1695_v42, %v736_v2  ;;  %v777_v5 = vadd.f32 %v1695_v42, %v776_v3 }
 0x124   : > { %v826_v8 = vmax.f32 %v737_v4, 0.0  ;;  %v842_v9 = vmax.f32 %v777_v5, 0.0 }
 0x126   : > { %v1428_v10 = vpack.c.bf16 %v826_v8, %v825_v6  ;;  %v1468_v11 = vpack.c.bf16 %v842_v9, %v841_v7 }
 0x128   : > { %1492 = vst [vmem:[%s1706_s8 + $0xb8] sm:$0xff] %v1428_v10  }
 0x129   : > { %1500 = vst [vmem:[%s1706_s8 + $0xf8] sm:$0xff] %v1468_v11  }
 0x12a PF: > { %s13_s14 = sadd.s32 1, %s1563_s14   ;;  %s1813_s12 = smov %s1559_s13 }
 0x12b   : > { %p10_p5 = scmp.ge.s32.totalorder %s13_s14, 6   ;;  %s1814_s13 = smov %s1816_s15 }
 0x12d   :  { %12 = sbr.rel (!%p10_p5) target bundleno = 2 (0x2), region = 68 }

// kernel: yolact_forward.15
= control target key start
LH: loop header
LB: loop body
LE: loop exit
PB: predicated region body
PF: predicated region fallthrough
CT: control target
= control target key end

     0   :  { %s1057_s12 = smov 0   ;;  %s1059_s13 = smov 0   ;;  %s1201_s0 = inlined_call_operand.vmem [shape: bf16[1,512,72], index: 0, kind: input, shape index: {}]   ;;  %s1202_s1 = inlined_call_operand.vmem [shape: bf16[1,72,128], index: 1, kind: input, shape index: {}]   ;;  %s1203_s2 = inlined_call_operand.vmem [shape: f32[1,1,128], index: 2, kind: input, shape index: {}]   ;;  %s1204_s3 = inlined_call_operand.vmem [shape: bf16[1,512,128], index: 3, kind: output, shape index: {}]  }
   0x1   :  { %s1061_s14 = smov 0  }
   0x2 LB: > { %s22_s15 = sadd.s32 1, %s1031_s13  ;;  %p755_p0 = scmp.ge.s32.totalorder %s1035_s14, 1  ;;  %s1035_s14 = sphi %s1061_s14, %s13_s14   ;;  %s1031_s13 = sphi %s1059_s13, %s1206_s13   ;;  %s1027_s12 = sphi %s1057_s12, %s1205_s12  }
   0x3   : > { %p23_p1 = scmp.ge.s32.totalorder %s22_s15, 2  ;;  %p176_p2 = scmp.lt.s32.totalorder %s1035_s14, 3 }
   0x5   : > { %s1208_s15 = smov (%p23_p1, %s22_s15), 0  ;;  %p177_p3 = pnand %p755_p0, %p176_p2 }
   0x6   : > { %s756_s18 = sshll.u32 (!%p177_p3), %s1027_s12, 5 }
   0x7   : > { %180 = sbr.rel (%p177_p3) target bundleno = 234 (0xea), region = 32  ;;  %p219_p4 = scmp.lt.s32.totalorder (!%p177_p3), %s756_s18, 63 }
   0xc   : > { %v285_v0 = vld [vmem:[%s1202_s1 + $0x20] sm:$0xf]  ;;  %vm446_vm0 = vcmask 1043456   ;;  %v877_v4 = vld [vmem:[%s1202_s1 + $0x18] sm:$0xff]  ;;  %v876_v5 = vld [vmem:[%s1202_s1 + $0x10] sm:$0xff]  ;;  %s1210_s18 = smov (!%p219_p4, %s756_s18), 63 }
   0xd   : > { %v387_v1 = vunpack.c.l.b16 %v285_v0  ;;  %v875_v6 = vld [vmem:[%s1202_s1 + $0x8] sm:$0xff]  ;;  %s757_s25 = sshll.u32 %s1210_s18, 2  ;;  %v874_v7 = vld [vmem:[%s1202_s1] sm:$0xff]  ;;  %vm397_vm1 = vcmask 588800  }
   0xe   : > { %s1098_s30 = scalar_lea.vmem %s1201_s0, %s757_s25  ;;  %v1135_v26 = vld [vmem:[%s1203_s2] ss:$0 sm:$0xff]  ;;  %s1146_s8 = scalar_lea.vmem %s1204_s3, %s757_s25 }
   0xf   : > { %v392_v2 = vpack.c.b16 %v387_v1, %v387_v1  ;;  %v858_v8 = vld [vmem:[%s1098_s30] sm:$0xff]  ;;  %v859_v12 = vld [vmem:[%s1098_s30 + $0x8] sm:$0xff]  ;;  %v860_v16 = vld [vmem:[%s1098_s30 + $0x10] sm:$0xff] }
  0x10   : > { %v862_v9 = vld [vmem:[%s1098_s30 + $0x20] sm:$0xff]  ;;  %v863_v13 = vld [vmem:[%s1098_s30 + $0x28] sm:$0xff]  ;;  %v864_v17 = vld [vmem:[%s1098_s30 + $0x30] sm:$0xff] }
  0x11   : > { %v448_v3 = vsel %vm446_vm0, %v392_v2, 0  ;;  %v866_v10 = vld [vmem:[%s1098_s30 + $0x40] sm:$0xff]  ;;  %v867_v14 = vld [vmem:[%s1098_s30 + $0x48] sm:$0xff]  ;;  %v868_v18 = vld [vmem:[%s1098_s30 + $0x50] sm:$0xff] }
  0x12   : > { %453 = vmatpush.bf16.msra.mxu0 %v448_v3  ;;  %973 = vmatpush.bf16.msra.mxu1 %v448_v3  ;;  %v870_v11 = vld [vmem:[%s1098_s30 + $0x60] sm:$0xff]  ;;  %v871_v15 = vld [vmem:[%s1098_s30 + $0x68] sm:$0xff]  ;;  %v872_v19 = vld [vmem:[%s1098_s30 + $0x70] sm:$0xff] }
  0x13   : > { %974 = vmatpush.bf16.msra.mxu2 %v448_v3  ;;  %975 = vmatpush.bf16.msra.mxu3 %v448_v3  ;;  %v861_v20 = vld [vmem:[%s1098_s30 + $0x18] sm:$0xff] }
  0x14   : > { %v865_v21 = vld [vmem:[%s1098_s30 + $0x38] sm:$0xff] }
  0x15   : > { %v869_v22 = vld [vmem:[%s1098_s30 + $0x58] sm:$0xff] }
  0x16   : > { %454 = vmatpush.bf16.msra.mxu0 %v877_v4  ;;  %976 = vmatpush.bf16.msra.mxu1 %v877_v4  ;;  %v873_v23 = vld [vmem:[%s1098_s30 + $0x78] sm:$0xff] }
  0x17   : > { %977 = vmatpush.bf16.msra.mxu2 %v877_v4  ;;  %978 = vmatpush.bf16.msra.mxu3 %v877_v4 }
  0x1a   : > { %455 = vmatpush.bf16.msra.mxu0 %v876_v5  ;;  %979 = vmatpush.bf16.msra.mxu1 %v876_v5 }
  0x1b   : > { %980 = vmatpush.bf16.msra.mxu2 %v876_v5  ;;  %981 = vmatpush.bf16.msra.mxu3 %v876_v5 }
  0x1e   : > { %456 = vmatpush.bf16.msra.mxu0 %v875_v6  ;;  %982 = vmatpush.bf16.msra.mxu1 %v875_v6 }
  0x1f   : > { %983 = vmatpush.bf16.msra.mxu2 %v875_v6  ;;  %984 = vmatpush.bf16.msra.mxu3 %v875_v6 }
  0x22   : > { %457 = vmatpush.bf16.msra.mxu0 %v874_v7  ;;  %985 = vmatpush.bf16.msra.mxu1 %v874_v7 }
  0x23   : > { %986 = vmatpush.bf16.msra.mxu2 %v874_v7  ;;  %987 = vmatpush.bf16.msra.mxu3 %v874_v7 }
  0x25   : > { %840 = vmatmul.msk.bf16.vlgmr.msra.gmra.mxu0 %vm397_vm1, %v858_v8  ;;  %844 = vmatmul.msk.bf16.vlgmr.msra.gmra.mxu1 %vm397_vm1, %v862_v9 }
  0x26   : > { %848 = vmatmul.msk.bf16.vlgmr.msra.gmra.mxu2 %vm397_vm1, %v866_v10  ;;  %852 = vmatmul.msk.bf16.vlgmr.msra.gmra.mxu3 %vm397_vm1, %v870_v11 }
  0x35   : > { %841 = vmatmul.msk.bf16.gmra.mxu0 %vm397_vm1, %v859_v12  ;;  %845 = vmatmul.msk.bf16.gmra.mxu1 %vm397_vm1, %v863_v13 }
  0x36   : > { %849 = vmatmul.msk.bf16.gmra.mxu2 %vm397_vm1, %v867_v14  ;;  %853 = vmatmul.msk.bf16.gmra.mxu3 %vm397_vm1, %v871_v15 }
  0x45   : > { %842 = vmatmul.msk.bf16.gmra.mxu0 %vm397_vm1, %v860_v16  ;;  %846 = vmatmul.msk.bf16.gmra.mxu1 %vm397_vm1, %v864_v17 }
  0x46   : > { %850 = vmatmul.msk.bf16.gmra.mxu2 %vm397_vm1, %v868_v18  ;;  %854 = vmatmul.msk.bf16.gmra.mxu3 %vm397_vm1, %v872_v19 }
  0x55   : > { %843 = vmatmul.msk.bf16.gmra.mxu0 %vm397_vm1, %v861_v20  ;;  %847 = vmatmul.msk.bf16.gmra.mxu1 %vm397_vm1, %v865_v21 }
  0x56   : > { %851 = vmatmul.msk.bf16.gmra.mxu2 %vm397_vm1, %v869_v22  ;;  %855 = vmatmul.msk.bf16.gmra.mxu3 %vm397_vm1, %v873_v23 }
  0xa2   : > { %v459_v24 = vpop.f32.mrf.mxu0  ;;  %v479_v25 = vpop.f32.mrf.mxu1 }
  0xa3   : > { %v460_v27 = vadd.f32 %v1135_v26, %v459_v24  ;;  %v480_v28 = vadd.f32 %v1135_v26, %v479_v25 }
  0xa5   : > { %v539_v35 = vmax.f32 %v460_v27, 0.0  ;;  %v547_v36 = vmax.f32 %v480_v28, 0.0 }
  0xa9   : > { %v499_v29 = vpop.f32.mrf.mxu2  ;;  %v519_v30 = vpop.f32.mrf.mxu3 }
  0xaa   : > { %v461_v31 = vpop.f32.mrf.mxu0  ;;  %v481_v32 = vpop.f32.mrf.mxu1  ;;  %v500_v41 = vadd.f32 %v1135_v26, %v499_v29  ;;  %v520_v42 = vadd.f32 %v1135_v26, %v519_v30 }
  0xab   : > { %v462_v33 = vadd.f32 %v1135_v26, %v461_v31  ;;  %v482_v34 = vadd.f32 %v1135_v26, %v481_v32 }
  0xac   : > { %v555_v49 = vmax.f32 %v500_v41, 0.0  ;;  %v563_v50 = vmax.f32 %v520_v42, 0.0 }
  0xad   : > { %v540_v37 = vmax.f32 %v462_v33, 0.0  ;;  %v548_v38 = vmax.f32 %v482_v34, 0.0 }
  0xaf   : > { %v881_v39 = vpack.c.bf16 %v540_v37, %v539_v35  ;;  %v901_v40 = vpack.c.bf16 %v548_v38, %v547_v36 }
  0xb1   : > { %882 = vst [vmem:[%s1146_s8] sm:$0xff] %v881_v39   ;;  %v501_v43 = vpop.f32.mrf.mxu2  ;;  %v521_v44 = vpop.f32.mrf.mxu3 }
  0xb2   : > { %961 = vst [vmem:[%s1146_s8 + $0x20] sm:$0xff] %v901_v40   ;;  %v502_v45 = vadd.f32 %v1135_v26, %v501_v43  ;;  %v522_v46 = vadd.f32 %v1135_v26, %v521_v44  ;;  %v464_v47 = vpop.f32.mrf.mxu0  ;;  %v484_v48 = vpop.f32.mrf.mxu1 }
  0xb3   : > { %v465_v55 = vadd.f32 %v1135_v26, %v464_v47  ;;  %v485_v56 = vadd.f32 %v1135_v26, %v484_v48 }
  0xb4   : > { %v556_v51 = vmax.f32 %v502_v45, 0.0  ;;  %v564_v52 = vmax.f32 %v522_v46, 0.0 }
  0xb5   : > { %v541_v63 = vmax.f32 %v465_v55, 0.0  ;;  %v549_v0 = vmax.f32 %v485_v56, 0.0 }
  0xb6   : > { %v921_v53 = vpack.c.bf16 %v556_v51, %v555_v49  ;;  %v941_v54 = vpack.c.bf16 %v564_v52, %v563_v50 }
  0xb8   : > { %965 = vst [vmem:[%s1146_s8 + $0x40] sm:$0xff] %v921_v53  }
  0xb9   : > { %969 = vst [vmem:[%s1146_s8 + $0x60] sm:$0xff] %v941_v54   ;;  %v504_v57 = vpop.f32.mrf.mxu2  ;;  %v524_v58 = vpop.f32.mrf.mxu3 }
  0xba   : > { %v466_v59 = vpop.f32.mrf.mxu0  ;;  %v486_v60 = vpop.f32.mrf.mxu1  ;;  %v505_v5 = vadd.f32 %v1135_v26, %v504_v57  ;;  %v525_v6 = vadd.f32 %v1135_v26, %v524_v58 }
  0xbb   : > { %v467_v61 = vadd.f32 %v1135_v26, %v466_v59  ;;  %v487_v62 = vadd.f32 %v1135_v26, %v486_v60 }
  0xbc   : > { %v557_v13 = vmax.f32 %v505_v5, 0.0  ;;  %v565_v14 = vmax.f32 %v525_v6, 0.0 }
  0xbd   : > { %v542_v1 = vmax.f32 %v467_v61, 0.0  ;;  %v550_v2 = vmax.f32 %v487_v62, 0.0 }
  0xbf   : > { %v886_v3 = vpack.c.bf16 %v542_v1, %v541_v63  ;;  %v906_v4 = vpack.c.bf16 %v550_v2, %v549_v0 }
  0xc1   : > { %958 = vst [vmem:[%s1146_s8 + $0x8] sm:$0xff] %v886_v3   ;;  %v506_v7 = vpop.f32.mrf.mxu2  ;;  %v526_v8 = vpop.f32.mrf.mxu3 }
  0xc2   : > { %962 = vst [vmem:[%s1146_s8 + $0x28] sm:$0xff] %v906_v4   ;;  %v507_v9 = vadd.f32 %v1135_v26, %v506_v7  ;;  %v527_v10 = vadd.f32 %v1135_v26, %v526_v8  ;;  %v469_v11 = vpop.f32.mrf.mxu0  ;;  %v489_v12 = vpop.f32.mrf.mxu1 }
  0xc3   : > { %v470_v19 = vadd.f32 %v1135_v26, %v469_v11  ;;  %v490_v20 = vadd.f32 %v1135_v26, %v489_v12 }
  0xc4   : > { %v558_v15 = vmax.f32 %v507_v9, 0.0  ;;  %v566_v16 = vmax.f32 %v527_v10, 0.0 }
  0xc5   : > { %v543_v28 = vmax.f32 %v470_v19, 0.0  ;;  %v551_v29 = vmax.f32 %v490_v20, 0.0 }
  0xc6   : > { %v926_v17 = vpack.c.bf16 %v558_v15, %v557_v13  ;;  %v946_v18 = vpack.c.bf16 %v566_v16, %v565_v14 }
  0xc8   : > { %966 = vst [vmem:[%s1146_s8 + $0x48] sm:$0xff] %v926_v17  }
  0xc9   : > { %970 = vst [vmem:[%s1146_s8 + $0x68] sm:$0xff] %v946_v18   ;;  %v509_v21 = vpop.f32.mrf.mxu2  ;;  %v529_v22 = vpop.f32.mrf.mxu3 }
  0xca   : > { %v471_v23 = vpop.f32.mrf.mxu0  ;;  %v491_v24 = vpop.f32.mrf.mxu1  ;;  %v510_v34 = vadd.f32 %v1135_v26, %v509_v21  ;;  %v530_v35 = vadd.f32 %v1135_v26, %v529_v22 }
  0xcb   : > { %v472_v25 = vadd.f32 %v1135_v26, %v471_v23  ;;  %v492_v27 = vadd.f32 %v1135_v26, %v491_v24 }
  0xcc   : > { %v559_v42 = vmax.f32 %v510_v34, 0.0  ;;  %v567_v43 = vmax.f32 %v530_v35, 0.0 }
  0xcd   : > { %v544_v30 = vmax.f32 %v472_v25, 0.0  ;;  %v552_v31 = vmax.f32 %v492_v27, 0.0 }
  0xcf   : > { %v891_v32 = vpack.c.bf16 %v544_v30, %v543_v28  ;;  %v911_v33 = vpack.c.bf16 %v552_v31, %v551_v29 }
  0xd1   : > { %959 = vst [vmem:[%s1146_s8 + $0x10] sm:$0xff] %v891_v32   ;;  %v511_v36 = vpop.f32.mrf.mxu2  ;;  %v531_v37 = vpop.f32.mrf.mxu3 }
  0xd2   : > { %963 = vst [vmem:[%s1146_s8 + $0x30] sm:$0xff] %v911_v33   ;;  %v512_v38 = vadd.f32 %v1135_v26, %v511_v36  ;;  %v532_v39 = vadd.f32 %v1135_v26, %v531_v37  ;;  %v474_v40 = vpop.f32.mrf.mxu0  ;;  %v494_v41 = vpop.f32.mrf.mxu1 }
  0xd3   : > { %v475_v48 = vadd.f32 %v1135_v26, %v474_v40  ;;  %v495_v49 = vadd.f32 %v1135_v26, %v494_v41 }
  0xd4   : > { %v560_v44 = vmax.f32 %v512_v38, 0.0  ;;  %v568_v45 = vmax.f32 %v532_v39, 0.0 }
  0xd5   : > { %v545_v56 = vmax.f32 %v475_v48, 0.0  ;;  %v553_v57 = vmax.f32 %v495_v49, 0.0 }
  0xd6   : > { %v931_v46 = vpack.c.bf16 %v560_v44, %v559_v42  ;;  %v951_v47 = vpack.c.bf16 %v568_v45, %v567_v43 }
  0xd8   : > { %967 = vst [vmem:[%s1146_s8 + $0x50] sm:$0xff] %v931_v46  }
  0xd9   : > { %971 = vst [vmem:[%s1146_s8 + $0x70] sm:$0xff] %v951_v47   ;;  %v514_v50 = vpop.f32.mrf.mxu2  ;;  %v534_v51 = vpop.f32.mrf.mxu3 }
  0xda   : > { %v476_v52 = vpop.f32.mrf.mxu0  ;;  %v496_v53 = vpop.f32.mrf.mxu1  ;;  %v515_v62 = vadd.f32 %v1135_v26, %v514_v50  ;;  %v535_v63 = vadd.f32 %v1135_v26, %v534_v51 }
  0xdb   : > { %v477_v54 = vadd.f32 %v1135_v26, %v476_v52  ;;  %v497_v55 = vadd.f32 %v1135_v26, %v496_v53 }
  0xdc   : > { %v561_v4 = vmax.f32 %v515_v62, 0.0  ;;  %v569_v5 = vmax.f32 %v535_v63, 0.0 }
  0xdd   : > { %v546_v58 = vmax.f32 %v477_v54, 0.0  ;;  %v554_v59 = vmax.f32 %v497_v55, 0.0 }
  0xdf   : > { %v896_v60 = vpack.c.bf16 %v546_v58, %v545_v56  ;;  %v916_v61 = vpack.c.bf16 %v554_v59, %v553_v57 }
  0xe1   : > { %960 = vst [vmem:[%s1146_s8 + $0x18] sm:$0xff] %v896_v60   ;;  %v516_v0 = vpop.f32.mrf.mxu2  ;;  %v536_v1 = vpop.f32.mrf.mxu3 }
  0xe2   : > { %964 = vst [vmem:[%s1146_s8 + $0x38] sm:$0xff] %v916_v61   ;;  %v517_v2 = vadd.f32 %v1135_v26, %v516_v0  ;;  %v537_v3 = vadd.f32 %v1135_v26, %v536_v1 }
  0xe4   : > { %v562_v6 = vmax.f32 %v517_v2, 0.0  ;;  %v570_v7 = vmax.f32 %v537_v3, 0.0 }
  0xe6   : > { %v936_v8 = vpack.c.bf16 %v562_v6, %v561_v4  ;;  %v956_v9 = vpack.c.bf16 %v570_v7, %v569_v5 }
  0xe8   : > { %968 = vst [vmem:[%s1146_s8 + $0x58] sm:$0xff] %v936_v8  }
  0xe9   : > { %972 = vst [vmem:[%s1146_s8 + $0x78] sm:$0xff] %v956_v9  }
  0xea PF: > { %s13_s14 = sadd.s32 1, %s1035_s14   ;;  %s1205_s12 = smov %s1031_s13 }
  0xeb   : > { %p10_p5 = scmp.ge.s32.totalorder %s13_s14, 4   ;;  %s1206_s13 = smov %s1208_s15 }
  0xed   :  { %12 = sbr.rel (!%p10_p5) target bundleno = 2 (0x2), region = 68 }

// kernel: yolact_forward.16
= control target key start
LH: loop header
LB: loop body
LE: loop exit
PB: predicated region body
PF: predicated region fallthrough
CT: control target
= control target key end

     0   :  { %s785_s12 = smov 0   ;;  %s787_s13 = smov 0   ;;  %s880_s0 = inlined_call_operand.vmem [shape: bf16[1,128,144], index: 0, kind: input, shape index: {}]   ;;  %s881_s1 = inlined_call_operand.vmem [shape: bf16[1,144,128], index: 1, kind: input, shape index: {}]   ;;  %s882_s2 = inlined_call_operand.vmem [shape: f32[1,1,128], index: 2, kind: input, shape index: {}]   ;;  %s883_s3 = inlined_call_operand.vmem [shape: bf16[1,128,128], index: 3, kind: output, shape index: {}]  }
   0x1   :  { %s789_s14 = smov 0  }
   0x2 LB: > { %s22_s15 = sadd.s32 1, %s759_s13  ;;  %p586_p0 = scmp.ge.s32.totalorder %s763_s14, 1  ;;  %s763_s14 = sphi %s789_s14, %s13_s14   ;;  %s759_s13 = sphi %s787_s13, %s885_s13   ;;  %s755_s12 = sphi %s785_s12, %s884_s12  }
   0x3   : > { %p23_p1 = scmp.ge.s32.totalorder %s22_s15, 2  ;;  %p177_p2 = scmp.lt.s32.totalorder %s763_s14, 3 }
   0x5   : > { %s887_s15 = smov (%p23_p1, %s22_s15), 0  ;;  %p178_p3 = pnand %p586_p0, %p177_p2 }
   0x6   : > { %s587_s20 = sshll.u32 (!%p178_p3), %s755_s12, 3 }
   0x7   : > { %181 = sbr.rel (%p178_p3) target bundleno = 209 (0xd1), region = 32  ;;  %p221_p4 = scmp.lt.s32.totalorder (!%p178_p3), %s587_s20, 15 }
   0xc   : > { %v682_v0 = vld [vmem:[%s881_s1 + $0x38] sm:$0xff]  ;;  %v683_v1 = vld [vmem:[%s881_s1 + $0x40] sm:$0xff]  ;;  %v681_v2 = vld [vmem:[%s881_s1 + $0x30] sm:$0xff]  ;;  %s889_s20 = smov (!%p221_p4, %s587_s20), 15  ;;  %vm368_vm0 = vcmask 130048  }
   0xd   : > { %381 = vmatpush.bf16.msra.mxu0 %v682_v0  ;;  %707 = vmatpush.bf16.msra.mxu2 %v682_v0  ;;  %s666_s23 = sshll.u32 %s889_s20, 3  ;;  %v680_v3 = vld [vmem:[%s881_s1 + $0x28] sm:$0xff]  ;;  %v679_v8 = vld [vmem:[%s881_s1 + $0x20] sm:$0xff]  ;;  %v678_v11 = vld [vmem:[%s881_s1 + $0x18] sm:$0xff]  ;;  %s591_s17 = sshll.u32 %s889_s20, 2 }
   0xe   : > { %715 = vmatpush.bf16.msra.mxu3 %v683_v1  ;;  %417 = vmatpush.bf16.msra.mxu1 %v683_v1  ;;  %s821_s28 = scalar_lea.vmem %s880_s0, %s666_s23  ;;  %v677_v12 = vld [vmem:[%s881_s1 + $0x10] sm:$0xff]  ;;  %v676_v15 = vld [vmem:[%s881_s1 + $0x8] sm:$0xff]  ;;  %v675_v17 = vld [vmem:[%s881_s1] sm:$0xff]  ;;  %s865_s21 = scalar_lea.vmem %s883_s3, %s591_s17 }
   0xf   : > { %v669_v4 = vld [vmem:[%s821_s28 + $0x14] sm:$0xf]  ;;  %v604_v5 = vld [vmem:[%s821_s28 + $0x18] sm:$0xf0]  ;;  %v667_v7 = vld [vmem:[%s821_s28 + $0x4] sm:$0xf] }
  0x10   : > { %v607_v6 = vor.u32 %v669_v4, %v604_v5  ;;  %v596_v9 = vld [vmem:[%s821_s28 + $0x8] sm:$0xf0]  ;;  %v671_v13 = vld [vmem:[%s821_s28 + $0x24] sm:$0xf]  ;;  %v594_v18 = vld [vmem:[%s821_s28] sm:$0xf] }
  0x11   : > { %382 = vmatpush.bf16.msra.mxu0 %v681_v2  ;;  %708 = vmatpush.bf16.msra.mxu2 %v681_v2  ;;  %v599_v10 = vor.u32 %v667_v7, %v596_v9  ;;  %v612_v14 = vld [vmem:[%s821_s28 + $0x28] sm:$0xf0]  ;;  %v668_v19 = vld [vmem:[%s821_s28 + $0x4] sm:$0xf0]  ;;  %v610_v20 = vld [vmem:[%s821_s28 + $0x20] sm:$0xf] }
  0x12   : > { %661 = vmatmul.msk.bf16.vlgmr.msra.gmra.mxu3 %vm368_vm0, %v607_v6  ;;  %v615_v16 = vor.u32 %v671_v13, %v612_v14  ;;  %v672_v21 = vld [vmem:[%s821_s28 + $0x24] sm:$0xf0]  ;;  %v595_v22 = vor.u32 %v668_v19, %v594_v18  ;;  %v673_v24 = vld [vmem:[%s821_s28 + $0x34] sm:$0xf]  ;;  %v620_v25 = vld [vmem:[%s821_s28 + $0x38] sm:$0xf0] }
  0x13   : > { %660 = vmatmul.msk.bf16.vlgmr.msra.gmra.mxu1 %vm368_vm0, %v599_v10  ;;  %v611_v23 = vor.u32 %v672_v21, %v610_v20  ;;  %v623_v26 = vor.u32 %v673_v24, %v620_v25  ;;  %v602_v27 = vld [vmem:[%s821_s28 + $0x10] sm:$0xf]  ;;  %v670_v28 = vld [vmem:[%s821_s28 + $0x14] sm:$0xf0]  ;;  %v740_v37 = vld [vmem:[%s882_s2] ss:$0 sm:$0xff] }
  0x14   : > { %v618_v29 = vld [vmem:[%s821_s28 + $0x30] sm:$0xf]  ;;  %v674_v30 = vld [vmem:[%s821_s28 + $0x34] sm:$0xf0]  ;;  %v603_v31 = vor.u32 %v670_v28, %v602_v27 }
  0x15   : > { %383 = vmatpush.bf16.msra.mxu0 %v680_v3  ;;  %709 = vmatpush.bf16.msra.mxu2 %v680_v3  ;;  %v619_v32 = vor.u32 %v674_v30, %v618_v29 }
  0x19   : > { %384 = vmatpush.bf16.msra.mxu0 %v679_v8  ;;  %710 = vmatpush.bf16.msra.mxu2 %v679_v8 }
  0x1d   : > { %385 = vmatpush.bf16.msra.mxu0 %v678_v11  ;;  %711 = vmatpush.bf16.msra.mxu2 %v678_v11 }
  0x21   : > { %386 = vmatpush.bf16.msra.mxu0 %v677_v12  ;;  %712 = vmatpush.bf16.msra.mxu2 %v677_v12 }
  0x22   : > { %662 = vmatmul.msk.bf16.gmra.mxu3 %vm368_vm0, %v615_v16 }
  0x25   : > { %387 = vmatpush.bf16.msra.mxu0 %v676_v15  ;;  %713 = vmatpush.bf16.msra.mxu2 %v676_v15 }
  0x29   : > { %388 = vmatpush.bf16.msra.mxu0 %v675_v17  ;;  %714 = vmatpush.bf16.msra.mxu2 %v675_v17 }
  0x2c   : > { %389 = vmatmul.bf16.vlgmr.msra.gmra.mxu0 %v595_v22  ;;  %399 = vmatmul.bf16.vlgmr.msra.gmra.mxu2 %v611_v23 }
  0x32   : > { %663 = vmatmul.msk.bf16.gmra.mxu3 %vm368_vm0, %v623_v26 }
  0x3c   : > { %394 = vmatmul.bf16.gmra.mxu0 %v603_v31  ;;  %404 = vmatmul.bf16.gmra.mxu2 %v619_v32 }
  0x90   : > { %v419_v35 = vpop.f32.mrf.mxu1 }
  0x95   : > { %v424_v33 = vpop.f32.mrf.mxu3 }
  0x98   : > { %v421_v42 = vpop.f32.mrf.mxu1 }
  0x9d   : > { %v426_v34 = vpop.f32.mrf.mxu3 }
  0xa5   : > { %v429_v38 = vpop.f32.mrf.mxu3 }
  0xa9   : > { %v390_v36 = vpop.f32.mrf.mxu0 }
  0xaa   : > { %v391_v39 = vadd.f32 %v740_v37, %v390_v36 }
  0xac   : > { %v420_v43 = vadd.f32 %v419_v35, %v391_v39 }
  0xad   : > { %v431_v47 = vpop.f32.mrf.mxu3 }
  0xae   : > { %v439_v48 = vmax.f32 %v420_v43, 0.0 }
  0xaf   : > { %v400_v40 = vpop.f32.mrf.mxu2 }
  0xb0   : > { %v401_v45 = vadd.f32 %v740_v37, %v400_v40 }
  0xb1   : > { %v392_v41 = vpop.f32.mrf.mxu0 }
  0xb2   : > { %v393_v44 = vadd.f32 %v740_v37, %v392_v41  ;;  %v430_v51 = vadd.f32 %v429_v38, %v401_v45 }
  0xb4   : > { %v422_v46 = vadd.f32 %v421_v42, %v393_v44  ;;  %v443_v56 = vmax.f32 %v430_v51, 0.0 }
  0xb5   : > { %v434_v60 = vpop.f32.mrf.mxu3 }
  0xb6   : > { %v440_v49 = vmax.f32 %v422_v46, 0.0 }
  0xb7   : > { %v402_v50 = vpop.f32.mrf.mxu2 }
  0xb8   : > { %v687_v52 = vpack.c.bf16 %v440_v49, %v439_v48  ;;  %v403_v53 = vadd.f32 %v740_v37, %v402_v50 }
  0xb9   : > { %v395_v54 = vpop.f32.mrf.mxu0 }
  0xba   : > { %688 = vst [vmem:[%s865_s21] sm:$0xff] %v687_v52   ;;  %v432_v55 = vadd.f32 %v431_v47, %v403_v53  ;;  %v396_v59 = vadd.f32 %v740_v37, %v395_v54 }
  0xbc   : > { %v444_v57 = vmax.f32 %v432_v55, 0.0  ;;  %v425_v63 = vadd.f32 %v424_v33, %v396_v59 }
  0xbd   : > { %v436_v9 = vpop.f32.mrf.mxu3 }
  0xbe   : > { %v697_v58 = vpack.c.bf16 %v444_v57, %v443_v56  ;;  %v441_v3 = vmax.f32 %v425_v63, 0.0 }
  0xbf   : > { %v405_v61 = vpop.f32.mrf.mxu2 }
  0xc0   : > { %705 = vst [vmem:[%s865_s21 + $0x10] sm:$0xff] %v697_v58   ;;  %v406_v1 = vadd.f32 %v740_v37, %v405_v61 }
  0xc1   : > { %v397_v62 = vpop.f32.mrf.mxu0 }
  0xc2   : > { %v398_v0 = vadd.f32 %v740_v37, %v397_v62  ;;  %v435_v6 = vadd.f32 %v434_v60, %v406_v1 }
  0xc4   : > { %v427_v2 = vadd.f32 %v426_v34, %v398_v0  ;;  %v445_v11 = vmax.f32 %v435_v6, 0.0 }
  0xc6   : > { %v442_v4 = vmax.f32 %v427_v2, 0.0 }
  0xc7   : > { %v407_v5 = vpop.f32.mrf.mxu2 }
  0xc8   : > { %v692_v7 = vpack.c.bf16 %v442_v4, %v441_v3  ;;  %v408_v8 = vadd.f32 %v740_v37, %v407_v5 }
  0xca   : > { %704 = vst [vmem:[%s865_s21 + $0x8] sm:$0xff] %v692_v7   ;;  %v437_v10 = vadd.f32 %v436_v9, %v408_v8 }
  0xcc   : > { %v446_v12 = vmax.f32 %v437_v10, 0.0 }
  0xce   : > { %v702_v13 = vpack.c.bf16 %v446_v12, %v445_v11 }
  0xd0   : > { %706 = vst [vmem:[%s865_s21 + $0x18] sm:$0xff] %v702_v13  }
  0xd1 PF: > { %s13_s14 = sadd.s32 1, %s763_s14   ;;  %s884_s12 = smov %s759_s13 }
  0xd2   : > { %p10_p5 = scmp.ge.s32.totalorder %s13_s14, 4   ;;  %s885_s13 = smov %s887_s15 }
  0xd4   :  { %12 = sbr.rel (!%p10_p5) target bundleno = 2 (0x2), region = 68 }

// kernel: yolact_forward.17
= control target key start
LH: loop header
LB: loop body
LE: loop exit
PB: predicated region body
PF: predicated region fallthrough
CT: control target
= control target key end

     0   :  { %s778_s12 = smov 0   ;;  %s780_s13 = smov 0   ;;  %s872_s0 = inlined_call_operand.vmem [shape: bf16[1,32,288], index: 0, kind: input, shape index: {}]   ;;  %s873_s1 = inlined_call_operand.vmem [shape: bf16[1,288,128], index: 1, kind: input, shape index: {}]   ;;  %s874_s2 = inlined_call_operand.vmem [shape: f32[1,1,128], index: 2, kind: input, shape index: {}]   ;;  %s875_s3 = inlined_call_operand.vmem [shape: bf16[1,32,128], index: 3, kind: output, shape index: {}]  }
   0x1   :  { %s782_s14 = smov 0  }
   0x2 LB: > { %s22_s15 = sadd.s32 1, %s752_s13  ;;  %p590_p0 = scmp.ge.s32.totalorder %s756_s14, 1  ;;  %s756_s14 = sphi %s782_s14, %s13_s14   ;;  %s752_s13 = sphi %s780_s13, %s877_s13   ;;  %s748_s12 = sphi %s778_s12, %s876_s12  }
   0x3   : > { %p23_p1 = scmp.ge.s32.totalorder %s22_s15, 2  ;;  %p177_p2 = scmp.lt.s32.totalorder %s756_s14, 3 }
   0x5   : > { %s879_s15 = smov (%p23_p1, %s22_s15), 0  ;;  %p178_p3 = pnand %p590_p0, %p177_p2 }
   0x6   : > { %s591_s20 = sshll.u32 (!%p178_p3), %s748_s12, 1 }
   0x7   : > { %181 = sbr.rel (%p178_p3) target bundleno = 189 (0xbd), region = 32  ;;  %p221_p4 = scmp.lt.s32.totalorder (!%p178_p3), %s591_s20, 3 }
   0xc   : > { %v692_v0 = vld [vmem:[%s873_s1 + $0x38] sm:$0xff]  ;;  %v691_v2 = vld [vmem:[%s873_s1 + $0x30] sm:$0xff]  ;;  %v702_v4 = vld [vmem:[%s873_s1 + $0x88] sm:$0xff]  ;;  %s881_s20 = smov (!%p221_p4, %s591_s20), 3  ;;  %vm415_vm0 = vcmask 261120  }
   0xd   : > { %v700_v1 = vld [vmem:[%s873_s1 + $0x78] sm:$0xff]  ;;  %419 = vmatpush.bf16.msra.mxu0 %v692_v0  ;;  %v699_v3 = vld [vmem:[%s873_s1 + $0x70] sm:$0xff]  ;;  %453 = vmatpush.bf16.msra.mxu2 %v702_v4  ;;  %v701_v5 = vld [vmem:[%s873_s1 + $0x80] sm:$0xff]  ;;  %s708_s29 = smul.u32 12, %s881_s20 }
   0xe   : > { %433 = vmatpush.bf16.msra.mxu1 %v700_v1  ;;  %v690_v6 = vld [vmem:[%s873_s1 + $0x28] sm:$0xff]  ;;  %v689_v11 = vld [vmem:[%s873_s1 + $0x20] sm:$0xff]  ;;  %v688_v13 = vld [vmem:[%s873_s1 + $0x18] sm:$0xff] }
   0xf   : > { %v698_v7 = vld [vmem:[%s873_s1 + $0x68] sm:$0xff]  ;;  %s227_s9 = scalar_lea.vmem %s872_s0, %s708_s29  ;;  %v697_v12 = vld [vmem:[%s873_s1 + $0x60] sm:$0xff]  ;;  %v696_v14 = vld [vmem:[%s873_s1 + $0x58] sm:$0xff] }
  0x10   : > { %v605_v8 = vld [vmem:[%s227_s9 + $0x8] sm:$0xf]  ;;  %v684_v9 = vld [vmem:[%s227_s9 + $0x10] sm:$0xf0]  ;;  %v685_v19 = vld [vmem:[%s873_s1] sm:$0xff] }
  0x11   : > { %420 = vmatpush.bf16.msra.mxu0 %v691_v2  ;;  %454 = vmatpush.bf16.msra.mxu2 %v701_v5  ;;  %v606_v10 = vor.u32 %v684_v9, %v605_v8  ;;  %v687_v15 = vld [vmem:[%s873_s1 + $0x10] sm:$0xff]  ;;  %v686_v17 = vld [vmem:[%s873_s1 + $0x8] sm:$0xff]  ;;  %v693_v20 = vld [vmem:[%s873_s1 + $0x40] sm:$0xff] }
  0x12   : > { %434 = vmatpush.bf16.msra.mxu1 %v699_v3  ;;  %v695_v16 = vld [vmem:[%s873_s1 + $0x50] sm:$0xff]  ;;  %v694_v18 = vld [vmem:[%s873_s1 + $0x48] sm:$0xff]  ;;  %v597_v21 = vld [vmem:[%s227_s9] sm:$0xf] }
  0x13   : > { %v683_v22 = vld [vmem:[%s227_s9 + $0x8] sm:$0xf0]  ;;  %v682_v23 = vld [vmem:[%s227_s9 + $0x4] sm:$0xf]  ;;  %v599_v24 = vld [vmem:[%s227_s9 + $0xc] sm:$0xf0] }
  0x14   : > { %679 = vmatmul.msk.bf16.vlgmr.msra.gmra.mxu2 %vm415_vm0, %v606_v10  ;;  %v598_v25 = vor.u32 %v683_v22, %v597_v21  ;;  %v602_v26 = vor.u32 %v682_v23, %v599_v24  ;;  %v733_v27 = vld [vmem:[%s874_s2] ss:$0 sm:$0xff]  ;;  %s594_s9 = sshll.u32 %s881_s20, 2 }
  0x15   : > { %421 = vmatpush.bf16.msra.mxu0 %v690_v6  ;;  %s245_s12 = scalar_lea.vmem %s875_s3, %s594_s9 }
  0x16   : > { %435 = vmatpush.bf16.msra.mxu1 %v698_v7 }
  0x19   : > { %422 = vmatpush.bf16.msra.mxu0 %v689_v11 }
  0x1a   : > { %436 = vmatpush.bf16.msra.mxu1 %v697_v12 }
  0x1d   : > { %423 = vmatpush.bf16.msra.mxu0 %v688_v13 }
  0x1e   : > { %437 = vmatpush.bf16.msra.mxu1 %v696_v14 }
  0x21   : > { %424 = vmatpush.bf16.msra.mxu0 %v687_v15 }
  0x22   : > { %438 = vmatpush.bf16.msra.mxu1 %v695_v16 }
  0x25   : > { %425 = vmatpush.bf16.msra.mxu0 %v686_v17 }
  0x26   : > { %439 = vmatpush.bf16.msra.mxu1 %v694_v18 }
  0x29   : > { %426 = vmatpush.bf16.msra.mxu0 %v685_v19 }
  0x2a   : > { %440 = vmatpush.bf16.msra.mxu1 %v693_v20 }
  0x2c   : > { %427 = vmatmul.bf16.vlgmr.msra.gmra.mxu0 %v598_v25 }
  0x2d   : > { %441 = vmatmul.bf16.vlgmr.msra.gmra.mxu1 %v602_v26 }
  0x97   : > { %v456_v30 = vpop.f32.mrf.mxu2 }
  0x9f   : > { %v458_v38 = vpop.f32.mrf.mxu2 }
  0xa9   : > { %v428_v28 = vpop.f32.mrf.mxu0 }
  0xaa   : > { %v442_v29 = vpop.f32.mrf.mxu1  ;;  %v429_v31 = vadd.f32 %v733_v27, %v428_v28 }
  0xac   : > { %v443_v32 = vadd.f32 %v442_v29, %v429_v31 }
  0xae   : > { %v457_v36 = vadd.f32 %v456_v30, %v443_v32 }
  0xb0   : > { %v461_v40 = vmax.f32 %v457_v36, 0.0 }
  0xb1   : > { %v430_v33 = vpop.f32.mrf.mxu0 }
  0xb2   : > { %v431_v34 = vadd.f32 %v733_v27, %v430_v33  ;;  %v444_v35 = vpop.f32.mrf.mxu1 }
  0xb4   : > { %v445_v37 = vadd.f32 %v444_v35, %v431_v34 }
  0xb6   : > { %v459_v39 = vadd.f32 %v458_v38, %v445_v37 }
  0xb8   : > { %v462_v41 = vmax.f32 %v459_v39, 0.0 }
  0xba   : > { %v706_v42 = vpack.c.bf16 %v462_v41, %v461_v40 }
  0xbc   : > { %707 = vst [vmem:[%s245_s12] sm:$0xff] %v706_v42  }
  0xbd PF: > { %s13_s14 = sadd.s32 1, %s756_s14   ;;  %s876_s12 = smov %s752_s13 }
  0xbe   : > { %p10_p5 = scmp.ge.s32.totalorder %s13_s14, 4   ;;  %s877_s13 = smov %s879_s15 }
  0xc0   :  { %12 = sbr.rel (!%p10_p5) target bundleno = 2 (0x2), region = 68 }

// kernel: yolact_forward.18
= control target key start
LH: loop header
LB: loop body
LE: loop exit
PB: predicated region body
PF: predicated region fallthrough
CT: control target
= control target key end

     0   :  { %s1046_s12 = smov 0   ;;  %s1048_s13 = smov 0   ;;  %s1206_s0 = inlined_call_operand.vmem [shape: bf16[3,512,64], index: 0, kind: input, shape index: {}]   ;;  %s1207_s1 = inlined_call_operand.vmem [shape: bf16[3,64,128], index: 1, kind: input, shape index: {}]   ;;  %s1208_s2 = inlined_call_operand.vmem [shape: f32[3,1,128], index: 2, kind: input, shape index: {}]   ;;  %s1209_s3 = inlined_call_operand.vmem [shape: bf16[3,512,128], index: 3, kind: output, shape index: {}]  }
   0x1   :  { %s1050_s14 = smov 0   ;;  %s1052_s15 = smov 0  }
   0x2   :  { %s1054_s16 = smov 0  }
   0x3 LB: > { %s22_s17 = sadd.s32 1, %s1016_s14  ;;  %s25_s18 = sadd.s32 1, %s1020_s15  ;;  %s1024_s16 = sphi %s1054_s16, %s13_s16   ;;  %s1020_s15 = sphi %s1052_s15, %s1213_s15   ;;  %s1016_s14 = sphi %s1050_s14, %s1212_s14   ;;  %s1012_s13 = sphi %s1048_s13, %s1211_s13   ;;  %s1008_s12 = sphi %s1046_s12, %s1210_s12  }
   0x4   : > { %p23_p0 = scmp.ge.s32.totalorder %s22_s17, 2  ;;  %p710_p1 = scmp.ge.s32.totalorder %s1024_s16, 1 }
   0x5   : > { %p176_p2 = scmp.lt.s32.totalorder %s1024_s16, 7 }
   0x6   : > { %s1215_s17 = smov (%p23_p0, %s22_s17), 0  ;;  %s1217_s18 = smov (!%p23_p0, %s25_s18), %s1020_s15 }
   0x7   : > { %p177_p3 = pnand %p710_p1, %p176_p2  ;;  %p27_p4 = scmp.ge.s32.totalorder %s1217_s18, 3 }
   0x8   : > { %s711_s19 = sshll.u32 (!%p177_p3), %s1008_s12, 5  ;;  %p217_p5 = scmp.lt.s32.totalorder (!%p177_p3), %s1012_s13, 2 }
   0x9   : > { %s1219_s18 = smov (%p27_p4, %s1217_s18), 0  ;;  %180 = sbr.rel (%p177_p3) target bundleno = 228 (0xe4), region = 32 }
   0xa   : > { %p219_p6 = scmp.lt.s32.totalorder (!%p177_p3), %s711_s19, 63 }
   0xe   : > { %s1221_s13 = smov (!%p217_p5, %s1012_s13), 2  ;;  %s1223_s19 = smov (!%p219_p6, %s711_s19), 63  ;;  %vm393_vm0 = vcmask 523264  }
   0xf   : > { %s817_s20 = sshll.u32 %s1221_s13, 5  ;;  %s233_s26 = scalar_lea.vmem %s1208_s2, %s1221_s13 }
  0x10   : > { %s230_s23 = scalar_lea.vmem %s1207_s1, %s817_s20  ;;  %s712_s27 = sshll.u32 %s1221_s13, 6  ;;  %v1134_v22 = vld [vmem:[%s233_s26] ss:$0 sm:$0xff] }
  0x11   : > { %v837_v0 = vld [vmem:[%s230_s23 + $0x18] sm:$0xff]  ;;  %v836_v1 = vld [vmem:[%s230_s23 + $0x10] sm:$0xff]  ;;  %s1087_s28 = sadd.s32 %s712_s27, %s1223_s19  ;;  %v835_v2 = vld [vmem:[%s230_s23 + $0x8] sm:$0xff] }
  0x12   : > { %446 = vmatpush.bf16.msra.mxu0 %v837_v0  ;;  %933 = vmatpush.bf16.msra.mxu1 %v837_v0  ;;  %s713_s29 = sshll.u32 %s1087_s28, 2  ;;  %v834_v3 = vld [vmem:[%s230_s23] sm:$0xff] }
  0x13   : > { %934 = vmatpush.bf16.msra.mxu2 %v837_v0  ;;  %935 = vmatpush.bf16.msra.mxu3 %v837_v0  ;;  %s1095_s5 = scalar_lea.vmem %s1206_s0, %s713_s29  ;;  %s1145_s10 = scalar_lea.vmem %s1209_s3, %s713_s29 }
  0x14   : > { %v818_v4 = vld [vmem:[%s1095_s5] sm:$0xff]  ;;  %v819_v8 = vld [vmem:[%s1095_s5 + $0x8] sm:$0xff]  ;;  %v820_v12 = vld [vmem:[%s1095_s5 + $0x10] sm:$0xff] }
  0x15   : > { %v822_v5 = vld [vmem:[%s1095_s5 + $0x20] sm:$0xff]  ;;  %v823_v9 = vld [vmem:[%s1095_s5 + $0x28] sm:$0xff]  ;;  %v824_v13 = vld [vmem:[%s1095_s5 + $0x30] sm:$0xff] }
  0x16   : > { %447 = vmatpush.bf16.msra.mxu0 %v836_v1  ;;  %936 = vmatpush.bf16.msra.mxu1 %v836_v1  ;;  %v826_v6 = vld [vmem:[%s1095_s5 + $0x40] sm:$0xff]  ;;  %v827_v10 = vld [vmem:[%s1095_s5 + $0x48] sm:$0xff]  ;;  %v828_v14 = vld [vmem:[%s1095_s5 + $0x50] sm:$0xff] }
  0x17   : > { %937 = vmatpush.bf16.msra.mxu2 %v836_v1  ;;  %938 = vmatpush.bf16.msra.mxu3 %v836_v1  ;;  %v830_v7 = vld [vmem:[%s1095_s5 + $0x60] sm:$0xff]  ;;  %v831_v11 = vld [vmem:[%s1095_s5 + $0x68] sm:$0xff]  ;;  %v832_v15 = vld [vmem:[%s1095_s5 + $0x70] sm:$0xff] }
  0x18   : > { %v821_v16 = vld [vmem:[%s1095_s5 + $0x18] sm:$0xff] }
  0x19   : > { %v825_v17 = vld [vmem:[%s1095_s5 + $0x38] sm:$0xff] }
  0x1a   : > { %448 = vmatpush.bf16.msra.mxu0 %v835_v2  ;;  %939 = vmatpush.bf16.msra.mxu1 %v835_v2  ;;  %v829_v18 = vld [vmem:[%s1095_s5 + $0x58] sm:$0xff] }
  0x1b   : > { %940 = vmatpush.bf16.msra.mxu2 %v835_v2  ;;  %941 = vmatpush.bf16.msra.mxu3 %v835_v2  ;;  %v833_v19 = vld [vmem:[%s1095_s5 + $0x78] sm:$0xff] }
  0x1e   : > { %449 = vmatpush.bf16.msra.mxu0 %v834_v3  ;;  %942 = vmatpush.bf16.msra.mxu1 %v834_v3 }
  0x1f   : > { %943 = vmatpush.bf16.msra.mxu2 %v834_v3  ;;  %944 = vmatpush.bf16.msra.mxu3 %v834_v3 }
  0x21   : > { %799 = vmatmul.msk.bf16.vlgmr.msra.gmra.mxu0 %vm393_vm0, %v818_v4  ;;  %803 = vmatmul.msk.bf16.vlgmr.msra.gmra.mxu1 %vm393_vm0, %v822_v5 }
  0x22   : > { %807 = vmatmul.msk.bf16.vlgmr.msra.gmra.mxu2 %vm393_vm0, %v826_v6  ;;  %811 = vmatmul.msk.bf16.vlgmr.msra.gmra.mxu3 %vm393_vm0, %v830_v7 }
  0x31   : > { %800 = vmatmul.msk.bf16.gmra.mxu0 %vm393_vm0, %v819_v8  ;;  %804 = vmatmul.msk.bf16.gmra.mxu1 %vm393_vm0, %v823_v9 }
  0x32   : > { %808 = vmatmul.msk.bf16.gmra.mxu2 %vm393_vm0, %v827_v10  ;;  %812 = vmatmul.msk.bf16.gmra.mxu3 %vm393_vm0, %v831_v11 }
  0x41   : > { %801 = vmatmul.msk.bf16.gmra.mxu0 %vm393_vm0, %v820_v12  ;;  %805 = vmatmul.msk.bf16.gmra.mxu1 %vm393_vm0, %v824_v13 }
  0x42   : > { %809 = vmatmul.msk.bf16.gmra.mxu2 %vm393_vm0, %v828_v14  ;;  %813 = vmatmul.msk.bf16.gmra.mxu3 %vm393_vm0, %v832_v15 }
  0x51   : > { %802 = vmatmul.msk.bf16.gmra.mxu0 %vm393_vm0, %v821_v16  ;;  %806 = vmatmul.msk.bf16.gmra.mxu1 %vm393_vm0, %v825_v17 }
  0x52   : > { %810 = vmatmul.msk.bf16.gmra.mxu2 %vm393_vm0, %v829_v18  ;;  %814 = vmatmul.msk.bf16.gmra.mxu3 %vm393_vm0, %v833_v19 }
  0x9e   : > { %v451_v20 = vpop.f32.mrf.mxu0  ;;  %v471_v21 = vpop.f32.mrf.mxu1 }
  0x9f   : > { %v452_v27 = vadd.f32 %v1134_v22, %v451_v20  ;;  %v472_v28 = vadd.f32 %v1134_v22, %v471_v21 }
  0xa5   : > { %v491_v23 = vpop.f32.mrf.mxu2  ;;  %v511_v24 = vpop.f32.mrf.mxu3 }
  0xa6   : > { %v453_v25 = vpop.f32.mrf.mxu0  ;;  %v473_v26 = vpop.f32.mrf.mxu1  ;;  %v492_v35 = vadd.f32 %v1134_v22, %v491_v23  ;;  %v512_v36 = vadd.f32 %v1134_v22, %v511_v24 }
  0xa7   : > { %v454_v29 = vadd.f32 %v1134_v22, %v453_v25  ;;  %v474_v30 = vadd.f32 %v1134_v22, %v473_v26 }
  0xa9   : > { %v841_v31 = vpack.c.bf16 %v454_v29, %v452_v27  ;;  %v861_v32 = vpack.c.bf16 %v474_v30, %v472_v28 }
  0xab   : > { %842 = vst [vmem:[%s1145_s10] sm:$0xff] %v841_v31  }
  0xac   : > { %921 = vst [vmem:[%s1145_s10 + $0x20] sm:$0xff] %v861_v32  }
  0xad   : > { %v493_v33 = vpop.f32.mrf.mxu2  ;;  %v513_v34 = vpop.f32.mrf.mxu3 }
  0xae   : > { %v494_v37 = vadd.f32 %v1134_v22, %v493_v33  ;;  %v514_v38 = vadd.f32 %v1134_v22, %v513_v34  ;;  %v456_v39 = vpop.f32.mrf.mxu0  ;;  %v476_v40 = vpop.f32.mrf.mxu1 }
  0xaf   : > { %v457_v47 = vadd.f32 %v1134_v22, %v456_v39  ;;  %v477_v48 = vadd.f32 %v1134_v22, %v476_v40 }
  0xb0   : > { %v881_v41 = vpack.c.bf16 %v494_v37, %v492_v35  ;;  %v901_v42 = vpack.c.bf16 %v514_v38, %v512_v36 }
  0xb2   : > { %925 = vst [vmem:[%s1145_s10 + $0x40] sm:$0xff] %v881_v41  }
  0xb3   : > { %929 = vst [vmem:[%s1145_s10 + $0x60] sm:$0xff] %v901_v42  }
  0xb5   : > { %v496_v43 = vpop.f32.mrf.mxu2  ;;  %v516_v44 = vpop.f32.mrf.mxu3 }
  0xb6   : > { %v458_v45 = vpop.f32.mrf.mxu0  ;;  %v478_v46 = vpop.f32.mrf.mxu1  ;;  %v497_v55 = vadd.f32 %v1134_v22, %v496_v43  ;;  %v517_v56 = vadd.f32 %v1134_v22, %v516_v44 }
  0xb7   : > { %v459_v49 = vadd.f32 %v1134_v22, %v458_v45  ;;  %v479_v50 = vadd.f32 %v1134_v22, %v478_v46 }
  0xb9   : > { %v846_v51 = vpack.c.bf16 %v459_v49, %v457_v47  ;;  %v866_v52 = vpack.c.bf16 %v479_v50, %v477_v48 }
  0xbb   : > { %918 = vst [vmem:[%s1145_s10 + $0x8] sm:$0xff] %v846_v51  }
  0xbc   : > { %922 = vst [vmem:[%s1145_s10 + $0x28] sm:$0xff] %v866_v52  }
  0xbd   : > { %v498_v53 = vpop.f32.mrf.mxu2  ;;  %v518_v54 = vpop.f32.mrf.mxu3 }
  0xbe   : > { %v499_v57 = vadd.f32 %v1134_v22, %v498_v53  ;;  %v519_v58 = vadd.f32 %v1134_v22, %v518_v54  ;;  %v461_v59 = vpop.f32.mrf.mxu0  ;;  %v481_v60 = vpop.f32.mrf.mxu1 }
  0xbf   : > { %v462_v3 = vadd.f32 %v1134_v22, %v461_v59  ;;  %v482_v4 = vadd.f32 %v1134_v22, %v481_v60 }
  0xc0   : > { %v886_v61 = vpack.c.bf16 %v499_v57, %v497_v55  ;;  %v906_v62 = vpack.c.bf16 %v519_v58, %v517_v56 }
  0xc2   : > { %926 = vst [vmem:[%s1145_s10 + $0x48] sm:$0xff] %v886_v61  }
  0xc3   : > { %930 = vst [vmem:[%s1145_s10 + $0x68] sm:$0xff] %v906_v62  }
  0xc5   : > { %v501_v63 = vpop.f32.mrf.mxu2  ;;  %v521_v0 = vpop.f32.mrf.mxu3 }
  0xc6   : > { %v463_v1 = vpop.f32.mrf.mxu0  ;;  %v483_v2 = vpop.f32.mrf.mxu1  ;;  %v502_v11 = vadd.f32 %v1134_v22, %v501_v63  ;;  %v522_v12 = vadd.f32 %v1134_v22, %v521_v0 }
  0xc7   : > { %v464_v5 = vadd.f32 %v1134_v22, %v463_v1  ;;  %v484_v6 = vadd.f32 %v1134_v22, %v483_v2 }
  0xc9   : > { %v851_v7 = vpack.c.bf16 %v464_v5, %v462_v3  ;;  %v871_v8 = vpack.c.bf16 %v484_v6, %v482_v4 }
  0xcb   : > { %919 = vst [vmem:[%s1145_s10 + $0x10] sm:$0xff] %v851_v7  }
  0xcc   : > { %923 = vst [vmem:[%s1145_s10 + $0x30] sm:$0xff] %v871_v8  }
  0xcd   : > { %v503_v9 = vpop.f32.mrf.mxu2  ;;  %v523_v10 = vpop.f32.mrf.mxu3 }
  0xce   : > { %v504_v13 = vadd.f32 %v1134_v22, %v503_v9  ;;  %v524_v14 = vadd.f32 %v1134_v22, %v523_v10  ;;  %v466_v15 = vpop.f32.mrf.mxu0  ;;  %v486_v16 = vpop.f32.mrf.mxu1 }
  0xcf   : > { %v467_v24 = vadd.f32 %v1134_v22, %v466_v15  ;;  %v487_v25 = vadd.f32 %v1134_v22, %v486_v16 }
  0xd0   : > { %v891_v17 = vpack.c.bf16 %v504_v13, %v502_v11  ;;  %v911_v18 = vpack.c.bf16 %v524_v14, %v522_v12 }
  0xd2   : > { %927 = vst [vmem:[%s1145_s10 + $0x50] sm:$0xff] %v891_v17  }
  0xd3   : > { %931 = vst [vmem:[%s1145_s10 + $0x70] sm:$0xff] %v911_v18  }
  0xd5   : > { %v506_v19 = vpop.f32.mrf.mxu2  ;;  %v526_v20 = vpop.f32.mrf.mxu3 }
  0xd6   : > { %v468_v21 = vpop.f32.mrf.mxu0  ;;  %v488_v23 = vpop.f32.mrf.mxu1  ;;  %v507_v32 = vadd.f32 %v1134_v22, %v506_v19  ;;  %v527_v33 = vadd.f32 %v1134_v22, %v526_v20 }
  0xd7   : > { %v469_v26 = vadd.f32 %v1134_v22, %v468_v21  ;;  %v489_v27 = vadd.f32 %v1134_v22, %v488_v23 }
  0xd9   : > { %v856_v28 = vpack.c.bf16 %v469_v26, %v467_v24  ;;  %v876_v29 = vpack.c.bf16 %v489_v27, %v487_v25 }
  0xdb   : > { %920 = vst [vmem:[%s1145_s10 + $0x18] sm:$0xff] %v856_v28  }
  0xdc   : > { %924 = vst [vmem:[%s1145_s10 + $0x38] sm:$0xff] %v876_v29  }
  0xdd   : > { %v508_v30 = vpop.f32.mrf.mxu2  ;;  %v528_v31 = vpop.f32.mrf.mxu3 }
  0xde   : > { %v509_v34 = vadd.f32 %v1134_v22, %v508_v30  ;;  %v529_v35 = vadd.f32 %v1134_v22, %v528_v31 }
  0xe0   : > { %v896_v36 = vpack.c.bf16 %v509_v34, %v507_v32  ;;  %v916_v37 = vpack.c.bf16 %v529_v35, %v527_v33 }
  0xe2   : > { %928 = vst [vmem:[%s1145_s10 + $0x58] sm:$0xff] %v896_v36  }
  0xe3   : > { %932 = vst [vmem:[%s1145_s10 + $0x78] sm:$0xff] %v916_v37  }
  0xe4 PF: > { %s13_s16 = sadd.s32 1, %s1024_s16   ;;  %s1210_s12 = smov %s1016_s14 }
  0xe5   : > { %p10_p7 = scmp.ge.s32.totalorder %s13_s16, 8   ;;  %s1211_s13 = smov %s1020_s15 }
  0xe6   : > { %s1212_s14 = smov %s1215_s17  ;;  %s1213_s15 = smov %s1219_s18 }
  0xe7   :  { %12 = sbr.rel (!%p10_p7) target bundleno = 3 (0x3), region = 68 }

// kernel: yolact_forward.19
= control target key start
LH: loop header
LB: loop body
LE: loop exit
PB: predicated region body
PF: predicated region fallthrough
CT: control target
= control target key end

     0   :  { %s1802_s12 = smov 0   ;;  %s1804_s13 = smov 0   ;;  %s2107_s0 = inlined_call_operand.vmem [shape: bf16[3,512,288], index: 0, kind: input, shape index: {}]   ;;  %s2108_s1 = inlined_call_operand.vmem [shape: bf16[3,288,128], index: 1, kind: input, shape index: {}]   ;;  %s2109_s2 = inlined_call_operand.vmem [shape: f32[3,1,128], index: 2, kind: input, shape index: {}]   ;;  %s2110_s3 = inlined_call_operand.vmem [shape: bf16[3,512,128], index: 3, kind: output, shape index: {}]  }
   0x1   :  { %s1806_s14 = smov 0   ;;  %s1808_s15 = smov 0  }
   0x2   :  { %s1810_s16 = smov 0  }
   0x3 LB: > { %s22_s17 = sadd.s32 1, %s1772_s14  ;;  %s25_s18 = sadd.s32 1, %s1776_s15  ;;  %s1780_s16 = sphi %s1810_s16, %s13_s16   ;;  %s1776_s15 = sphi %s1808_s15, %s2114_s15   ;;  %s1772_s14 = sphi %s1806_s14, %s2113_s14   ;;  %s1768_s13 = sphi %s1804_s13, %s2112_s13   ;;  %s1764_s12 = sphi %s1802_s12, %s2111_s12  }
   0x4   : > { %p23_p0 = scmp.ge.s32.totalorder %s22_s17, 2  ;;  %p1230_p1 = scmp.ge.s32.totalorder %s1780_s16, 1 }
   0x5   : > { %p177_p2 = scmp.lt.s32.totalorder %s1780_s16, 7 }
   0x6   : > { %s2116_s17 = smov (%p23_p0, %s22_s17), 0  ;;  %s2118_s18 = smov (!%p23_p0, %s25_s18), %s1776_s15 }
   0x7   : > { %p178_p3 = pnand %p1230_p1, %p177_p2  ;;  %p27_p4 = scmp.ge.s32.totalorder %s2118_s18, 3 }
   0x8   : > { %s1231_s19 = sshll.u32 (!%p178_p3), %s1764_s12, 5  ;;  %p219_p5 = scmp.lt.s32.totalorder (!%p178_p3), %s1768_s13, 2 }
   0x9   : > { %s2120_s18 = smov (%p27_p4, %s2118_s18), 0  ;;  %181 = sbr.rel (%p178_p3) target bundleno = 384 (0x180), region = 32 }
   0xa   : > { %p221_p6 = scmp.lt.s32.totalorder (!%p178_p3), %s1231_s19, 63 }
   0xe   : > { %s2122_s13 = smov (!%p219_p5, %s1768_s13), 2  ;;  %s2124_s19 = smov (!%p221_p6, %s1231_s19), 63  ;;  %vm700_vm0 = vcmask 261120  }
   0xf   : > { %s1699_s20 = smul.u32 192, %s2122_s13  ;;  %s236_s23 = scalar_lea.vmem %s2109_s2, %s2122_s13 }
  0x10   : > { %s1698_s24 = smul.u32 3, %s2124_s19  ;;  %s1235_s7 = sshll.u32 %s2122_s13, 6 }
  0x11   : > { %s1700_s25 = smul.u32 144, %s2122_s13  ;;  %s1893_s8 = sadd.s32 %s1235_s7, %s2124_s19 }
  0x12   : > { %s225_s26 = sadd.s32 %s1699_s20, %s1698_s24  ;;  %s1236_s11 = sshll.u32 %s1893_s8, 2 }
  0x13   : > { %s1232_s27 = sshll.u32 %s225_s26, 2  ;;  %s1846_s30 = scalar_lea.vmem %s2108_s1, %s1700_s25 }
  0x14   : > { %s1851_s6 = scalar_lea.vmem %s2107_s0, %s1232_s27  ;;  %v1574_v0 = vld [vmem:[%s1846_s30 + $0x38] sm:$0xff]  ;;  %v1855_v1 = vld [vmem:[%s1846_s30 + $0x88] sm:$0xff]  ;;  %v1573_v3 = vld [vmem:[%s1846_s30 + $0x30] sm:$0xff]  ;;  %s1994_s19 = scalar_lea.vmem %s2110_s3, %s1236_s11 }
  0x15   : > { %v1582_v2 = vld [vmem:[%s1846_s30 + $0x78] sm:$0xff]  ;;  %749 = vmatpush.bf16.msra.mxu0 %v1574_v0  ;;  %1680 = vmatpush.bf16.msra.mxu3 %v1574_v0  ;;  %v1860_v4 = vld [vmem:[%s1846_s30 + $0x80] sm:$0xff]  ;;  %v1581_v5 = vld [vmem:[%s1846_s30 + $0x70] sm:$0xff] }
  0x16   : > { %933 = vmatpush.bf16.msra.mxu2 %v1855_v1  ;;  %838 = vmatpush.bf16.msra.mxu1 %v1582_v2  ;;  %v1247_v6 = vld [vmem:[%s1851_s6 + $0x8] sm:$0xf]  ;;  %v1521_v7 = vld [vmem:[%s1851_s6 + $0x10] sm:$0xf0]  ;;  %v1571_v11 = vld [vmem:[%s1846_s30 + $0x20] sm:$0xff] }
  0x17   : > { %v1248_v8 = vor.u32 %v1521_v7, %v1247_v6  ;;  %v1572_v9 = vld [vmem:[%s1846_s30 + $0x28] sm:$0xff]  ;;  %v1579_v12 = vld [vmem:[%s1846_s30 + $0x60] sm:$0xff]  ;;  %v1570_v13 = vld [vmem:[%s1846_s30 + $0x18] sm:$0xff] }
  0x18   : > { %v1580_v10 = vld [vmem:[%s1846_s30 + $0x68] sm:$0xff]  ;;  %v1578_v14 = vld [vmem:[%s1846_s30 + $0x58] sm:$0xff]  ;;  %v1569_v15 = vld [vmem:[%s1846_s30 + $0x10] sm:$0xff] }
  0x19   : > { %750 = vmatpush.bf16.msra.mxu0 %v1573_v3  ;;  %1681 = vmatpush.bf16.msra.mxu3 %v1573_v3  ;;  %v1577_v16 = vld [vmem:[%s1846_s30 + $0x50] sm:$0xff]  ;;  %v1259_v17 = vld [vmem:[%s1851_s6 + $0x20] sm:$0xf]  ;;  %v1524_v18 = vld [vmem:[%s1851_s6 + $0x28] sm:$0xf0] }
  0x1a   : > { %934 = vmatpush.bf16.msra.mxu2 %v1860_v4  ;;  %839 = vmatpush.bf16.msra.mxu1 %v1581_v5  ;;  %v1260_v19 = vor.u32 %v1524_v18, %v1259_v17  ;;  %v1568_v20 = vld [vmem:[%s1846_s30 + $0x8] sm:$0xff]  ;;  %v1567_v22 = vld [vmem:[%s1846_s30] sm:$0xff]  ;;  %v1241_v29 = vld [vmem:[%s1851_s6 + $0xc] sm:$0xf0] }
  0x1b   : > { %v1576_v21 = vld [vmem:[%s1846_s30 + $0x48] sm:$0xff]  ;;  %v1575_v23 = vld [vmem:[%s1846_s30 + $0x40] sm:$0xff]  ;;  %v1271_v33 = vld [vmem:[%s1851_s6 + $0x38] sm:$0xf] }
  0x1c   : > { %v1239_v24 = vld [vmem:[%s1851_s6] sm:$0xf]  ;;  %v1520_v25 = vld [vmem:[%s1851_s6 + $0x8] sm:$0xf0]  ;;  %v1519_v28 = vld [vmem:[%s1851_s6 + $0x4] sm:$0xf] }
  0x1d   : > { %1501 = vmatmul.msk.bf16.vlgmr.msra.gmra.mxu2 %vm700_vm0, %v1248_v8  ;;  %751 = vmatpush.bf16.msra.mxu0 %v1572_v9  ;;  %v1383_v26 = vld [vmem:[%s1851_s6 + $0x120] sm:$0xf]  ;;  %v1556_v27 = vld [vmem:[%s1851_s6 + $0x128] sm:$0xf0]  ;;  %v1240_v30 = vor.u32 %v1520_v25, %v1239_v24  ;;  %v1244_v32 = vor.u32 %v1519_v28, %v1241_v29  ;;  %v1527_v34 = vld [vmem:[%s1851_s6 + $0x40] sm:$0xf0] }
  0x1e   : > { %1682 = vmatpush.bf16.msra.mxu3 %v1572_v9  ;;  %840 = vmatpush.bf16.msra.mxu1 %v1580_v10  ;;  %v1384_v31 = vor.u32 %v1556_v27, %v1383_v26  ;;  %v1272_v35 = vor.u32 %v1527_v34, %v1271_v33  ;;  %v1251_v36 = vld [vmem:[%s1851_s6 + $0x18] sm:$0xf]  ;;  %v1523_v37 = vld [vmem:[%s1851_s6 + $0x20] sm:$0xf0]  ;;  %v1522_v40 = vld [vmem:[%s1851_s6 + $0x1c] sm:$0xf] }
  0x1f   : > { %v1395_v38 = vld [vmem:[%s1851_s6 + $0x138] sm:$0xf]  ;;  %v1559_v39 = vld [vmem:[%s1851_s6 + $0x140] sm:$0xf0]  ;;  %v1253_v41 = vld [vmem:[%s1851_s6 + $0x24] sm:$0xf0]  ;;  %v1252_v42 = vor.u32 %v1523_v37, %v1251_v36 }
  0x20   : > { %v1396_v43 = vor.u32 %v1559_v39, %v1395_v38  ;;  %v1256_v44 = vor.u32 %v1522_v40, %v1253_v41  ;;  %v1283_v45 = vld [vmem:[%s1851_s6 + $0x50] sm:$0xf]  ;;  %v1530_v46 = vld [vmem:[%s1851_s6 + $0x58] sm:$0xf0]  ;;  %v1525_v52 = vld [vmem:[%s1851_s6 + $0x34] sm:$0xf] }
  0x21   : > { %752 = vmatpush.bf16.msra.mxu0 %v1571_v11  ;;  %v1284_v47 = vor.u32 %v1530_v46, %v1283_v45  ;;  %v1263_v48 = vld [vmem:[%s1851_s6 + $0x30] sm:$0xf]  ;;  %v1526_v49 = vld [vmem:[%s1851_s6 + $0x38] sm:$0xf0]  ;;  %v1265_v53 = vld [vmem:[%s1851_s6 + $0x3c] sm:$0xf0] }
  0x22   : > { %1683 = vmatpush.bf16.msra.mxu3 %v1571_v11  ;;  %841 = vmatpush.bf16.msra.mxu1 %v1579_v12  ;;  %v1407_v50 = vld [vmem:[%s1851_s6 + $0x150] sm:$0xf]  ;;  %v1562_v51 = vld [vmem:[%s1851_s6 + $0x158] sm:$0xf0]  ;;  %v1264_v54 = vor.u32 %v1526_v49, %v1263_v48  ;;  %v1268_v56 = vor.u32 %v1525_v52, %v1265_v53  ;;  %v1295_v57 = vld [vmem:[%s1851_s6 + $0x68] sm:$0xf] }
  0x23   : > { %v1408_v55 = vor.u32 %v1562_v51, %v1407_v50  ;;  %v1533_v58 = vld [vmem:[%s1851_s6 + $0x70] sm:$0xf0]  ;;  %v1275_v60 = vld [vmem:[%s1851_s6 + $0x48] sm:$0xf]  ;;  %v1528_v0 = vld [vmem:[%s1851_s6 + $0x4c] sm:$0xf] }
  0x24   : > { %v1296_v59 = vor.u32 %v1533_v58, %v1295_v57  ;;  %v1529_v61 = vld [vmem:[%s1851_s6 + $0x50] sm:$0xf0]  ;;  %v1419_v62 = vld [vmem:[%s1851_s6 + $0x168] sm:$0xf]  ;;  %v1536_v6 = vld [vmem:[%s1851_s6 + $0x88] sm:$0xf0] }
  0x25   : > { %753 = vmatpush.bf16.msra.mxu0 %v1570_v13  ;;  %v1565_v63 = vld [vmem:[%s1851_s6 + $0x170] sm:$0xf0]  ;;  %v1287_v8 = vld [vmem:[%s1851_s6 + $0x60] sm:$0xf]  ;;  %v1532_v9 = vld [vmem:[%s1851_s6 + $0x68] sm:$0xf0] }
  0x26   : > { %1684 = vmatpush.bf16.msra.mxu3 %v1570_v13  ;;  %842 = vmatpush.bf16.msra.mxu1 %v1578_v14  ;;  %v1420_v3 = vor.u32 %v1565_v63, %v1419_v62  ;;  %v1385_v11 = vld [vmem:[%s1851_s6 + $0x12c] sm:$0xf0]  ;;  %v1319_v17 = vld [vmem:[%s1851_s6 + $0x98] sm:$0xf]  ;;  %v1539_v18 = vld [vmem:[%s1851_s6 + $0xa0] sm:$0xf0] }
  0x27   : > { %v1289_v13 = vld [vmem:[%s1851_s6 + $0x6c] sm:$0xf0]  ;;  %v1534_v24 = vld [vmem:[%s1851_s6 + $0x7c] sm:$0xf]  ;;  %v1301_v25 = vld [vmem:[%s1851_s6 + $0x84] sm:$0xf0] }
  0x28   : > { %v1304_v28 = vor.u32 %v1534_v24, %v1301_v25  ;;  %v1331_v29 = vld [vmem:[%s1851_s6 + $0xb0] sm:$0xf]  ;;  %v1538_v33 = vld [vmem:[%s1851_s6 + $0x98] sm:$0xf0]  ;;  %v1561_v34 = vld [vmem:[%s1851_s6 + $0x154] sm:$0xf] }
  0x29   : > { %754 = vmatpush.bf16.msra.mxu0 %v1569_v15  ;;  %v1537_v36 = vld [vmem:[%s1851_s6 + $0x94] sm:$0xf]  ;;  %v1313_v37 = vld [vmem:[%s1851_s6 + $0x9c] sm:$0xf0]  ;;  %v1343_v41 = vld [vmem:[%s1851_s6 + $0xc8] sm:$0xf] }
  0x2a   : > { %1685 = vmatpush.bf16.msra.mxu3 %v1569_v15  ;;  %843 = vmatpush.bf16.msra.mxu1 %v1577_v16  ;;  %v1316_v40 = vor.u32 %v1537_v36, %v1313_v37  ;;  %v1541_v45 = vld [vmem:[%s1851_s6 + $0xb0] sm:$0xf0]  ;;  %v1564_v46 = vld [vmem:[%s1851_s6 + $0x16c] sm:$0xf]  ;;  %v1325_v49 = vld [vmem:[%s1851_s6 + $0xb4] sm:$0xf0] }
  0x2b   : > { %v1540_v48 = vld [vmem:[%s1851_s6 + $0xac] sm:$0xf]  ;;  %v1335_v58 = vld [vmem:[%s1851_s6 + $0xc0] sm:$0xf]  ;;  %v1543_v62 = vld [vmem:[%s1851_s6 + $0xc4] sm:$0xf] }
  0x2c   : > { %v1328_v53 = vor.u32 %v1540_v48, %v1325_v49  ;;  %v1337_v63 = vld [vmem:[%s1851_s6 + $0xcc] sm:$0xf0]  ;;  %v1546_v24 = vld [vmem:[%s1851_s6 + $0xdc] sm:$0xf]  ;;  %v1349_v25 = vld [vmem:[%s1851_s6 + $0xe4] sm:$0xf0] }
  0x2d   : > { %1502 = vmatmul.msk.bf16.gmra.mxu2 %vm700_vm0, %v1260_v19  ;;  %755 = vmatpush.bf16.msra.mxu0 %v1568_v20  ;;  %v1320_v19 = vor.u32 %v1539_v18, %v1319_v17  ;;  %v1379_v37 = vld [vmem:[%s1851_s6 + $0x110] sm:$0xf]  ;;  %v1550_v49 = vld [vmem:[%s1851_s6 + $0xf8] sm:$0xf0] }
  0x2e   : > { %1686 = vmatpush.bf16.msra.mxu3 %v1568_v20  ;;  %844 = vmatpush.bf16.msra.mxu1 %v1576_v21  ;;  %v1299_v20 = vld [vmem:[%s1851_s6 + $0x78] sm:$0xf]  ;;  %v1359_v48 = vld [vmem:[%s1851_s6 + $0xf0] sm:$0xf] }
  0x31   : > { %756 = vmatpush.bf16.msra.mxu0 %v1567_v22 }
  0x32   : > { %1687 = vmatpush.bf16.msra.mxu3 %v1567_v22  ;;  %845 = vmatpush.bf16.msra.mxu1 %v1575_v23  ;;  %v1558_v22 = vld [vmem:[%s1851_s6 + $0x13c] sm:$0xf] }
  0x34   : > { %757 = vmatmul.bf16.vlgmr.msra.gmra.mxu0 %v1240_v30  ;;  %v1542_v30 = vld [vmem:[%s1851_s6 + $0xb8] sm:$0xf0] }
  0x35   : > { %817 = vmatmul.bf16.vlgmr.msra.gmra.mxu3 %v1384_v31  ;;  %846 = vmatmul.bf16.vlgmr.msra.gmra.mxu1 %v1244_v32  ;;  %v1332_v31 = vor.u32 %v1542_v30, %v1331_v29  ;;  %v1311_v32 = vld [vmem:[%s1851_s6 + $0x90] sm:$0xf] }
  0x36   : > { %1688 = vmatpush.bf16.msrb.mxu3 %v1582_v2  ;;  %v1276_v2 = vor.u32 %v1529_v61, %v1275_v60  ;;  %v1312_v38 = vor.u32 %v1538_v33, %v1311_v32  ;;  %v1415_v60 = vld [vmem:[%s1851_s6 + $0x158] sm:$0xf]  ;;  %v1563_v61 = vld [vmem:[%s1851_s6 + $0x160] sm:$0xf0]  ;;  %v1352_v33 = vor.u32 %v1546_v24, %v1349_v25 }
  0x3a   : > { %1689 = vmatpush.bf16.msrb.mxu3 %v1581_v5  ;;  %v1307_v5 = vld [vmem:[%s1851_s6 + $0x80] sm:$0xf] }
  0x3b   : > { %v1308_v7 = vor.u32 %v1536_v6, %v1307_v5  ;;  %v1340_v5 = vor.u32 %v1543_v62, %v1337_v63  ;;  %v1391_v63 = vld [vmem:[%s1851_s6 + $0x128] sm:$0xf] }
  0x3d   : > { %1503 = vmatmul.msk.bf16.gmra.mxu2 %vm700_vm0, %v1272_v35  ;;  %v1409_v35 = vld [vmem:[%s1851_s6 + $0x15c] sm:$0xf0] }
  0x3e   : > { %1690 = vmatpush.bf16.msrb.mxu3 %v1580_v10  ;;  %v1555_v10 = vld [vmem:[%s1851_s6 + $0x124] sm:$0xf]  ;;  %v1412_v39 = vor.u32 %v1561_v34, %v1409_v35 }
  0x3f   : > { %v1388_v15 = vor.u32 %v1555_v10, %v1385_v11 }
  0x42   : > { %1691 = vmatpush.bf16.msrb.mxu3 %v1579_v12  ;;  %v1531_v12 = vld [vmem:[%s1851_s6 + $0x64] sm:$0xf] }
  0x44   : > { %762 = vmatmul.bf16.gmra.mxu0 %v1252_v42  ;;  %v1545_v42 = vld [vmem:[%s1851_s6 + $0xd0] sm:$0xf0] }
  0x45   : > { %822 = vmatmul.bf16.gmra.mxu3 %v1396_v43  ;;  %851 = vmatmul.bf16.gmra.mxu1 %v1256_v44  ;;  %v1344_v43 = vor.u32 %v1545_v42, %v1343_v41  ;;  %v1323_v44 = vld [vmem:[%s1851_s6 + $0xa8] sm:$0xf] }
  0x46   : > { %1692 = vmatpush.bf16.msrb.mxu3 %v1578_v14  ;;  %v1288_v14 = vor.u32 %v1532_v9, %v1287_v8  ;;  %v1324_v51 = vor.u32 %v1541_v45, %v1323_v44  ;;  %v1367_v8 = vld [vmem:[%s1851_s6 + $0xf8] sm:$0xf]  ;;  %v1551_v9 = vld [vmem:[%s1851_s6 + $0x100] sm:$0xf0] }
  0x4a   : > { %1693 = vmatpush.bf16.msrb.mxu3 %v1577_v16  ;;  %v1292_v16 = vor.u32 %v1531_v12, %v1289_v13 }
  0x4d   : > { %1504 = vmatmul.msk.bf16.gmra.mxu2 %vm700_vm0, %v1284_v47  ;;  %v1421_v47 = vld [vmem:[%s1851_s6 + $0x174] sm:$0xf0] }
  0x4e   : > { %1694 = vmatpush.bf16.msrb.mxu3 %v1576_v21  ;;  %v1535_v21 = vld [vmem:[%s1851_s6 + $0x80] sm:$0xf0]  ;;  %v1424_v52 = vor.u32 %v1564_v46, %v1421_v47 }
  0x4f   : > { %v1300_v26 = vor.u32 %v1535_v21, %v1299_v20  ;;  %v1547_v20 = vld [vmem:[%s1851_s6 + $0xe0] sm:$0xf0]  ;;  %v1427_v21 = vld [vmem:[%s1851_s6 + $0x170] sm:$0xf] }
  0x52   : > { %1695 = vmatpush.bf16.msrb.mxu3 %v1575_v23  ;;  %v1397_v23 = vld [vmem:[%s1851_s6 + $0x144] sm:$0xf0] }
  0x53   : > { %v1400_v27 = vor.u32 %v1558_v22, %v1397_v23  ;;  %v1566_v23 = vld [vmem:[%s1851_s6 + $0x178] sm:$0xf0] }
  0x54   : > { %767 = vmatmul.bf16.gmra.mxu0 %v1264_v54  ;;  %v1355_v54 = vld [vmem:[%s1851_s6 + $0xe0] sm:$0xf]  ;;  %v1428_v32 = vor.u32 %v1566_v23, %v1427_v21 }
  0x55   : > { %827 = vmatmul.bf16.gmra.mxu3 %v1408_v55  ;;  %856 = vmatmul.bf16.gmra.mxu1 %v1268_v56  ;;  %v1548_v55 = vld [vmem:[%s1851_s6 + $0xe8] sm:$0xf0] }
  0x56   : > { %1696 = vmatpush.bf16.msra.mxu3 %v1855_v1  ;;  %v1277_v1 = vld [vmem:[%s1851_s6 + $0x54] sm:$0xf0]  ;;  %v1356_v57 = vor.u32 %v1548_v55, %v1355_v54 }
  0x5a   : > { %1697 = vmatpush.bf16.msra.mxu3 %v1860_v4  ;;  %v1280_v4 = vor.u32 %v1528_v0, %v1277_v1  ;;  %v1972_v0 = vld [vmem:[%s236_s23] ss:$0 sm:$0xff] }
  0x5d   : > { %1505 = vmatmul.msk.bf16.gmra.mxu2 %vm700_vm0, %v1296_v59  ;;  %v1544_v59 = vld [vmem:[%s1851_s6 + $0xc8] sm:$0xf0] }
  0x64   : > { %772 = vmatmul.bf16.gmra.mxu0 %v1276_v2  ;;  %v1336_v2 = vor.u32 %v1544_v59, %v1335_v58 }
  0x65   : > { %832 = vmatmul.bf16.gmra.mxu3 %v1420_v3  ;;  %861 = vmatmul.bf16.gmra.mxu1 %v1280_v4  ;;  %v1416_v4 = vor.u32 %v1563_v61, %v1415_v60 }
  0x6d   : > { %1506 = vmatmul.msk.bf16.gmra.mxu2 %vm700_vm0, %v1308_v7 }
  0x74   : > { %777 = vmatmul.bf16.gmra.mxu0 %v1288_v14  ;;  %v1368_v14 = vor.u32 %v1551_v9, %v1367_v8 }
  0x75   : > { %906 = vmatmul.bf16.vlgmr.msrb.gmra.mxu3 %v1388_v15  ;;  %866 = vmatmul.bf16.gmra.mxu1 %v1292_v16 }
  0x7d   : > { %1507 = vmatmul.msk.bf16.gmra.mxu2 %vm700_vm0, %v1320_v19  ;;  %v1347_v19 = vld [vmem:[%s1851_s6 + $0xd8] sm:$0xf] }
  0x7e   : > { %v1348_v30 = vor.u32 %v1547_v20, %v1347_v19 }
  0x84   : > { %782 = vmatmul.bf16.gmra.mxu0 %v1300_v26 }
  0x85   : > { %911 = vmatmul.bf16.gmra.mxu3 %v1400_v27  ;;  %871 = vmatmul.bf16.gmra.mxu1 %v1304_v28 }
  0x8d   : > { %1508 = vmatmul.msk.bf16.gmra.mxu2 %vm700_vm0, %v1332_v31 }
  0x94   : > { %787 = vmatmul.bf16.gmra.mxu0 %v1312_v38  ;;  %v1554_v38 = vld [vmem:[%s1851_s6 + $0x118] sm:$0xf0] }
  0x95   : > { %916 = vmatmul.bf16.gmra.mxu3 %v1412_v39  ;;  %876 = vmatmul.bf16.gmra.mxu1 %v1316_v40 }
  0x9d   : > { %1509 = vmatmul.msk.bf16.gmra.mxu2 %vm700_vm0, %v1344_v43  ;;  %v1380_v43 = vor.u32 %v1554_v38, %v1379_v37 }
  0xa0   : > { %v936_v50 = vpop.f32.mrf.mxu2 }
  0xa4   : > { %792 = vmatmul.bf16.gmra.mxu0 %v1324_v51  ;;  %v1549_v51 = vld [vmem:[%s1851_s6 + $0xf4] sm:$0xf] }
  0xa5   : > { %921 = vmatmul.bf16.gmra.mxu3 %v1424_v52  ;;  %881 = vmatmul.bf16.gmra.mxu1 %v1328_v53  ;;  %v1361_v52 = vld [vmem:[%s1851_s6 + $0xfc] sm:$0xf0] }
  0xa6   : > { %v1364_v59 = vor.u32 %v1549_v51, %v1361_v52 }
  0xa8   : > { %v938_v56 = vpop.f32.mrf.mxu2 }
  0xad   : > { %1510 = vmatmul.msk.bf16.gmra.mxu2 %vm700_vm0, %v1356_v57  ;;  %v1360_v57 = vor.u32 %v1550_v49, %v1359_v48 }
  0xb0   : > { %v941_v1 = vpop.f32.mrf.mxu2 }
  0xb1   : > { %v758_v3 = vpop.f32.mrf.mxu0 }
  0xb2   : > { %v847_v6 = vpop.f32.mrf.mxu1  ;;  %v759_v7 = vadd.f32 %v1972_v0, %v758_v3 }
  0xb4   : > { %797 = vmatmul.bf16.gmra.mxu0 %v1336_v2  ;;  %v848_v10 = vadd.f32 %v847_v6, %v759_v7 }
  0xb5   : > { %1515 = vmatmul.msk.bf16.vlgmr.msra.gmra.mxu3 %vm700_vm0, %v1416_v4  ;;  %886 = vmatmul.bf16.gmra.mxu1 %v1340_v5 }
  0xb6   : > { %v937_v17 = vadd.f32 %v936_v50, %v848_v10 }
  0xb8   : > { %v1978_v11 = vpop.f32.mrf.mxu3  ;;  %v943_v12 = vpop.f32.mrf.mxu2  ;;  %v1016_v26 = vmax.f32 %v937_v17, 0.0 }
  0xb9   : > { %v760_v13 = vpop.f32.mrf.mxu0  ;;  %v819_v49 = vadd.f32 %v1972_v0, %v1978_v11 }
  0xba   : > { %v761_v15 = vadd.f32 %v1972_v0, %v760_v13  ;;  %v849_v16 = vpop.f32.mrf.mxu1  ;;  %v1553_v13 = vld [vmem:[%s1851_s6 + $0x110] sm:$0xf0] }
  0xbc   : > { %v850_v18 = vadd.f32 %v849_v16, %v761_v15  ;;  %v1552_v15 = vld [vmem:[%s1851_s6 + $0x10c] sm:$0xf]  ;;  %v1373_v16 = vld [vmem:[%s1851_s6 + $0x114] sm:$0xf0] }
  0xbd   : > { %1511 = vmatmul.msk.bf16.gmra.mxu2 %vm700_vm0, %v1368_v14  ;;  %v1376_v23 = vor.u32 %v1552_v15, %v1373_v16 }
  0xbe   : > { %v939_v22 = vadd.f32 %v938_v56, %v850_v18 }
  0xc0   : > { %v1017_v27 = vmax.f32 %v939_v22, 0.0  ;;  %v1989_v28 = vpop.f32.mrf.mxu3  ;;  %v946_v29 = vpop.f32.mrf.mxu2 }
  0xc1   : > { %v763_v31 = vpop.f32.mrf.mxu0 }
  0xc2   : > { %v1588_v34 = vpack.c.bf16 %v1017_v27, %v1016_v26  ;;  %v852_v35 = vpop.f32.mrf.mxu1  ;;  %v764_v36 = vadd.f32 %v1972_v0, %v763_v31  ;;  %v1403_v27 = vld [vmem:[%s1851_s6 + $0x140] sm:$0xf] }
  0xc4   : > { %1589 = vst [vmem:[%s1994_s19] sm:$0xff] %v1588_v34   ;;  %802 = vmatmul.bf16.gmra.mxu0 %v1348_v30  ;;  %v853_v39 = vadd.f32 %v852_v35, %v764_v36 }
  0xc5   : > { %1516 = vmatmul.msk.bf16.gmra.mxu3 %vm700_vm0, %v1428_v32  ;;  %891 = vmatmul.bf16.gmra.mxu1 %v1352_v33 }
  0xc6   : > { %v942_v46 = vadd.f32 %v941_v1, %v853_v39  ;;  %v1557_v1 = vld [vmem:[%s1851_s6 + $0x130] sm:$0xf0] }
  0xc7   : > { %v1392_v6 = vor.u32 %v1557_v1, %v1391_v63 }
  0xc8   : > { %v2001_v40 = vpop.f32.mrf.mxu3  ;;  %v948_v41 = vpop.f32.mrf.mxu2  ;;  %v1018_v53 = vmax.f32 %v942_v46, 0.0 }
  0xc9   : > { %v765_v42 = vpop.f32.mrf.mxu0 }
  0xca   : > { %v766_v44 = vadd.f32 %v1972_v0, %v765_v42  ;;  %v854_v45 = vpop.f32.mrf.mxu1 }
  0xcc   : > { %v855_v47 = vadd.f32 %v854_v45, %v766_v44 }
  0xcd   : > { %1512 = vmatmul.msk.bf16.gmra.mxu2 %vm700_vm0, %v1380_v43 }
  0xce   : > { %v944_v50 = vadd.f32 %v943_v12, %v855_v47  ;;  %v1371_v12 = vld [vmem:[%s1851_s6 + $0x108] sm:$0xf] }
  0xcf   : > { %v1372_v21 = vor.u32 %v1553_v13, %v1371_v12 }
  0xd0   : > { %v1019_v54 = vmax.f32 %v944_v50, 0.0  ;;  %v2009_v55 = vpop.f32.mrf.mxu3  ;;  %v951_v56 = vpop.f32.mrf.mxu2 }
  0xd1   : > { %v768_v58 = vpop.f32.mrf.mxu0 }
  0xd2   : > { %v1593_v60 = vpack.c.bf16 %v1019_v54, %v1018_v53  ;;  %v857_v61 = vpop.f32.mrf.mxu1  ;;  %v769_v62 = vadd.f32 %v1972_v0, %v768_v58 }
  0xd4   : > { %1665 = vst [vmem:[%s1994_s19 + $0x8] sm:$0xff] %v1593_v60   ;;  %807 = vmatmul.bf16.gmra.mxu0 %v1360_v57  ;;  %v858_v2 = vadd.f32 %v857_v61, %v769_v62  ;;  %v821_v61 = vadd.f32 %v1972_v0, %v1989_v28 }
  0xd5   : > { %896 = vmatmul.bf16.gmra.mxu1 %v1364_v59 }
  0xd6   : > { %v947_v9 = vadd.f32 %v946_v29, %v858_v2  ;;  %v1560_v29 = vld [vmem:[%s1851_s6 + $0x148] sm:$0xf0] }
  0xd7   : > { %v1404_v34 = vor.u32 %v1560_v29, %v1403_v27 }
  0xd8   : > { %v2015_v3 = vpop.f32.mrf.mxu3  ;;  %v953_v4 = vpop.f32.mrf.mxu2  ;;  %v1020_v17 = vmax.f32 %v947_v9, 0.0 }
  0xd9   : > { %v770_v5 = vpop.f32.mrf.mxu0 }
  0xda   : > { %v771_v7 = vadd.f32 %v1972_v0, %v770_v5  ;;  %v859_v8 = vpop.f32.mrf.mxu1 }
  0xdc   : > { %v860_v10 = vadd.f32 %v859_v8, %v771_v7  ;;  %v824_v8 = vadd.f32 %v1972_v0, %v2001_v40 }
  0xdd   : > { %1513 = vmatmul.msk.bf16.gmra.mxu2 %vm700_vm0, %v1392_v6 }
  0xde   : > { %v949_v14 = vadd.f32 %v948_v41, %v860_v10 }
  0xe0   : > { %v1021_v18 = vmax.f32 %v949_v14, 0.0  ;;  %v2023_v19 = vpop.f32.mrf.mxu3  ;;  %v956_v20 = vpop.f32.mrf.mxu2 }
  0xe1   : > { %v773_v22 = vpop.f32.mrf.mxu0 }
  0xe2   : > { %v1598_v24 = vpack.c.bf16 %v1021_v18, %v1020_v17  ;;  %v862_v25 = vpop.f32.mrf.mxu1  ;;  %v774_v26 = vadd.f32 %v1972_v0, %v773_v22 }
  0xe4   : > { %1666 = vst [vmem:[%s1994_s19 + $0x10] sm:$0xff] %v1598_v24   ;;  %812 = vmatmul.bf16.gmra.mxu0 %v1372_v21  ;;  %v863_v30 = vadd.f32 %v862_v25, %v774_v26 }
  0xe5   : > { %901 = vmatmul.bf16.gmra.mxu1 %v1376_v23 }
  0xe6   : > { %v952_v37 = vadd.f32 %v951_v56, %v863_v30 }
  0xe8   : > { %v2029_v31 = vpop.f32.mrf.mxu3  ;;  %v958_v32 = vpop.f32.mrf.mxu2  ;;  %v1022_v41 = vmax.f32 %v952_v37, 0.0 }
  0xe9   : > { %v775_v33 = vpop.f32.mrf.mxu0 }
  0xea   : > { %v776_v35 = vadd.f32 %v1972_v0, %v775_v33  ;;  %v864_v36 = vpop.f32.mrf.mxu1 }
  0xec   : > { %v865_v38 = vadd.f32 %v864_v36, %v776_v35 }
  0xed   : > { %1514 = vmatmul.msk.bf16.gmra.mxu2 %vm700_vm0, %v1404_v34 }
  0xee   : > { %v954_v39 = vadd.f32 %v953_v4, %v865_v38 }
  0xf0   : > { %v1023_v42 = vmax.f32 %v954_v39, 0.0  ;;  %v2033_v43 = vpop.f32.mrf.mxu3  ;;  %v961_v44 = vpop.f32.mrf.mxu2 }
  0xf1   : > { %v778_v45 = vpop.f32.mrf.mxu0 }
  0xf2   : > { %v1603_v46 = vpack.c.bf16 %v1023_v42, %v1022_v41  ;;  %v867_v47 = vpop.f32.mrf.mxu1  ;;  %v779_v48 = vadd.f32 %v1972_v0, %v778_v45 }
  0xf4   : > { %1667 = vst [vmem:[%s1994_s19 + $0x18] sm:$0xff] %v1603_v46   ;;  %v868_v50 = vadd.f32 %v867_v47, %v779_v48 }
  0xf6   : > { %v957_v58 = vadd.f32 %v956_v20, %v868_v50  ;;  %v826_v20 = vadd.f32 %v1972_v0, %v2009_v55 }
  0xf8   : > { %v907_v51 = vpop.f32.mrf.mxu3  ;;  %v963_v52 = vpop.f32.mrf.mxu2  ;;  %v1024_v62 = vmax.f32 %v957_v58, 0.0 }
  0xf9   : > { %v2039_v53 = vadd.f32 %v907_v51, %v819_v49  ;;  %v780_v54 = vpop.f32.mrf.mxu0 }
  0xfa   : > { %v781_v56 = vadd.f32 %v1972_v0, %v780_v54  ;;  %v869_v57 = vpop.f32.mrf.mxu1 }
  0xfc   : > { %v870_v59 = vadd.f32 %v869_v57, %v781_v56 }
  0xfe   : > { %v959_v60 = vadd.f32 %v958_v32, %v870_v59 }
 0x100   : > { %v1025_v63 = vmax.f32 %v959_v60, 0.0  ;;  %v909_v1 = vpop.f32.mrf.mxu3  ;;  %v966_v11 = vpop.f32.mrf.mxu2 }
 0x101   : > { %v2044_v2 = vadd.f32 %v909_v1, %v821_v61  ;;  %v783_v4 = vpop.f32.mrf.mxu0 }
 0x102   : > { %v1608_v5 = vpack.c.bf16 %v1025_v63, %v1024_v62  ;;  %v872_v6 = vpop.f32.mrf.mxu1  ;;  %v784_v7 = vadd.f32 %v1972_v0, %v783_v4 }
 0x104   : > { %1668 = vst [vmem:[%s1994_s19 + $0x20] sm:$0xff] %v1608_v5   ;;  %v873_v9 = vadd.f32 %v872_v6, %v784_v7 }
 0x106   : > { %v962_v16 = vadd.f32 %v961_v44, %v873_v9 }
 0x108   : > { %v912_v10 = vpop.f32.mrf.mxu3  ;;  %v968_v12 = vpop.f32.mrf.mxu2  ;;  %v1026_v21 = vmax.f32 %v962_v16, 0.0  ;;  %v831_v16 = vadd.f32 %v1972_v0, %v2023_v19 }
 0x109   : > { %v2050_v13 = vadd.f32 %v912_v10, %v824_v8  ;;  %v785_v28 = vpop.f32.mrf.mxu0 }
 0x10a   : > { %v786_v14 = vadd.f32 %v1972_v0, %v785_v28  ;;  %v874_v15 = vpop.f32.mrf.mxu1  ;;  %v829_v28 = vadd.f32 %v1972_v0, %v2015_v3 }
 0x10c   : > { %v875_v17 = vadd.f32 %v874_v15, %v786_v14 }
 0x10e   : > { %v964_v18 = vadd.f32 %v963_v52, %v875_v17 }
 0x110   : > { %v1027_v22 = vmax.f32 %v964_v18, 0.0  ;;  %v914_v23 = vpop.f32.mrf.mxu3  ;;  %v971_v40 = vpop.f32.mrf.mxu2 }
 0x111   : > { %v2055_v24 = vadd.f32 %v914_v23, %v826_v20  ;;  %v788_v25 = vpop.f32.mrf.mxu0 }
 0x112   : > { %v1613_v26 = vpack.c.bf16 %v1027_v22, %v1026_v21  ;;  %v877_v27 = vpop.f32.mrf.mxu1  ;;  %v789_v29 = vadd.f32 %v1972_v0, %v788_v25 }
 0x114   : > { %1669 = vst [vmem:[%s1994_s19 + $0x28] sm:$0xff] %v1613_v26   ;;  %v878_v30 = vadd.f32 %v877_v27, %v789_v29 }
 0x116   : > { %v967_v36 = vadd.f32 %v966_v11, %v878_v30 }
 0x118   : > { %v917_v32 = vpop.f32.mrf.mxu3  ;;  %v973_v33 = vpop.f32.mrf.mxu2  ;;  %v1028_v39 = vmax.f32 %v967_v36, 0.0 }
 0x119   : > { %v790_v34 = vpop.f32.mrf.mxu0  ;;  %v918_v17 = vadd.f32 %v917_v32, %v829_v28 }
 0x11a   : > { %v791_v35 = vadd.f32 %v1972_v0, %v790_v34  ;;  %v879_v55 = vpop.f32.mrf.mxu1 }
 0x11c   : > { %v880_v37 = vadd.f32 %v879_v55, %v791_v35 }
 0x11e   : > { %v969_v38 = vadd.f32 %v968_v12, %v880_v37 }
 0x120   : > { %v1029_v41 = vmax.f32 %v969_v38, 0.0  ;;  %v919_v42 = vpop.f32.mrf.mxu3  ;;  %v976_v44 = vpop.f32.mrf.mxu2 }
 0x121   : > { %v793_v45 = vpop.f32.mrf.mxu0  ;;  %v920_v20 = vadd.f32 %v919_v42, %v831_v16 }
 0x122   : > { %v1618_v46 = vpack.c.bf16 %v1029_v41, %v1028_v39  ;;  %v882_v47 = vpop.f32.mrf.mxu1  ;;  %v794_v48 = vadd.f32 %v1972_v0, %v793_v45  ;;  %v834_v39 = vadd.f32 %v1972_v0, %v2029_v31 }
 0x124   : > { %1670 = vst [vmem:[%s1994_s19 + $0x30] sm:$0xff] %v1618_v46   ;;  %v883_v49 = vadd.f32 %v882_v47, %v794_v48 }
 0x126   : > { %v972_v57 = vadd.f32 %v971_v40, %v883_v49 }
 0x128   : > { %v922_v50 = vpop.f32.mrf.mxu3  ;;  %v978_v51 = vpop.f32.mrf.mxu2  ;;  %v1030_v60 = vmax.f32 %v972_v57, 0.0 }
 0x129   : > { %v795_v52 = vpop.f32.mrf.mxu0  ;;  %v923_v45 = vadd.f32 %v922_v50, %v834_v39 }
 0x12a   : > { %v796_v54 = vadd.f32 %v1972_v0, %v795_v52  ;;  %v884_v56 = vpop.f32.mrf.mxu1 }
 0x12c   : > { %v885_v58 = vadd.f32 %v884_v56, %v796_v54 }
 0x12e   : > { %v974_v59 = vadd.f32 %v973_v33, %v885_v58 }
 0x130   : > { %v1031_v61 = vmax.f32 %v974_v59, 0.0  ;;  %v924_v62 = vpop.f32.mrf.mxu3  ;;  %v981_v63 = vpop.f32.mrf.mxu2 }
 0x131   : > { %v798_v1 = vpop.f32.mrf.mxu0 }
 0x132   : > { %v1623_v11 = vpack.c.bf16 %v1031_v61, %v1030_v60  ;;  %v887_v4 = vpop.f32.mrf.mxu1  ;;  %v799_v5 = vadd.f32 %v1972_v0, %v798_v1 }
 0x134   : > { %1671 = vst [vmem:[%s1994_s19 + $0x38] sm:$0xff] %v1623_v11   ;;  %v888_v6 = vadd.f32 %v887_v4, %v799_v5 }
 0x136   : > { %v977_v14 = vadd.f32 %v976_v44, %v888_v6  ;;  %v836_v44 = vadd.f32 %v1972_v0, %v2033_v43 }
 0x138   : > { %v983_v7 = vpop.f32.mrf.mxu2  ;;  %v1006_v8 = vpop.f32.mrf.mxu3  ;;  %v1032_v22 = vmax.f32 %v977_v14, 0.0  ;;  %v925_v47 = vadd.f32 %v924_v62, %v836_v44 }
 0x139   : > { %v800_v9 = vpop.f32.mrf.mxu0  ;;  %v1007_v21 = vadd.f32 %v1006_v8, %v918_v17 }
 0x13a   : > { %v801_v10 = vadd.f32 %v1972_v0, %v800_v9  ;;  %v889_v12 = vpop.f32.mrf.mxu1 }
 0x13b   : > { %v1044_v3 = vmax.f32 %v1007_v21, 0.0 }
 0x13c   : > { %v890_v15 = vadd.f32 %v889_v12, %v801_v10 }
 0x13e   : > { %v979_v18 = vadd.f32 %v978_v51, %v890_v15 }
 0x140   : > { %v1033_v23 = vmax.f32 %v979_v18, 0.0  ;;  %v986_v40 = vpop.f32.mrf.mxu2  ;;  %v1008_v25 = vpop.f32.mrf.mxu3 }
 0x141   : > { %v1009_v26 = vadd.f32 %v1008_v25, %v920_v20  ;;  %v803_v27 = vpop.f32.mrf.mxu0 }
 0x142   : > { %v1628_v29 = vpack.c.bf16 %v1033_v23, %v1032_v22  ;;  %v892_v30 = vpop.f32.mrf.mxu1  ;;  %v804_v34 = vadd.f32 %v1972_v0, %v803_v27 }
 0x143   : > { %v1045_v33 = vmax.f32 %v1009_v26, 0.0 }
 0x144   : > { %1672 = vst [vmem:[%s1994_s19 + $0x40] sm:$0xff] %v1628_v29   ;;  %v893_v19 = vadd.f32 %v892_v30, %v804_v34 }
 0x145   : > { %v1658_v35 = vpack.c.bf16 %v1045_v33, %v1044_v3 }
 0x146   : > { %v982_v41 = vadd.f32 %v981_v63, %v893_v19 }
 0x147   : > { %1678 = vst [vmem:[%s1994_s19 + $0x70] sm:$0xff] %v1658_v35  }
 0x148   : > { %v988_v32 = vpop.f32.mrf.mxu2  ;;  %v1011_v55 = vpop.f32.mrf.mxu3  ;;  %v1034_v49 = vmax.f32 %v982_v41, 0.0 }
 0x149   : > { %v805_v36 = vpop.f32.mrf.mxu0  ;;  %v1012_v48 = vadd.f32 %v1011_v55, %v923_v45 }
 0x14a   : > { %v806_v37 = vadd.f32 %v1972_v0, %v805_v36  ;;  %v894_v38 = vpop.f32.mrf.mxu1 }
 0x14b   : > { %v1046_v31 = vmax.f32 %v1012_v48, 0.0 }
 0x14c   : > { %v895_v42 = vadd.f32 %v894_v38, %v806_v37 }
 0x14e   : > { %v984_v46 = vadd.f32 %v983_v7, %v895_v42 }
 0x150   : > { %v1035_v51 = vmax.f32 %v984_v46, 0.0  ;;  %v991_v52 = vpop.f32.mrf.mxu2  ;;  %v1013_v54 = vpop.f32.mrf.mxu3 }
 0x151   : > { %v1014_v56 = vadd.f32 %v1013_v54, %v925_v47  ;;  %v808_v57 = vpop.f32.mrf.mxu0 }
 0x152   : > { %v1633_v58 = vpack.c.bf16 %v1035_v51, %v1034_v49  ;;  %v897_v59 = vpop.f32.mrf.mxu1  ;;  %v809_v61 = vadd.f32 %v1972_v0, %v808_v57 }
 0x153   : > { %v1047_v60 = vmax.f32 %v1014_v56, 0.0 }
 0x154   : > { %1673 = vst [vmem:[%s1994_s19 + $0x48] sm:$0xff] %v1633_v58   ;;  %v898_v43 = vadd.f32 %v897_v59, %v809_v61 }
 0x155   : > { %v1663_v63 = vpack.c.bf16 %v1047_v60, %v1046_v31 }
 0x156   : > { %v987_v4 = vadd.f32 %v986_v40, %v898_v43 }
 0x157   : > { %1679 = vst [vmem:[%s1994_s19 + $0x78] sm:$0xff] %v1663_v63  }
 0x158   : > { %v993_v50 = vpop.f32.mrf.mxu2  ;;  %v1036_v7 = vmax.f32 %v987_v4, 0.0 }
 0x159   : > { %v810_v62 = vpop.f32.mrf.mxu0 }
 0x15a   : > { %v811_v1 = vadd.f32 %v1972_v0, %v810_v62  ;;  %v899_v11 = vpop.f32.mrf.mxu1 }
 0x15c   : > { %v900_v5 = vadd.f32 %v899_v11, %v811_v1 }
 0x15e   : > { %v989_v6 = vadd.f32 %v988_v32, %v900_v5 }
 0x160   : > { %v1037_v8 = vmax.f32 %v989_v6, 0.0  ;;  %v996_v9 = vpop.f32.mrf.mxu2 }
 0x161   : > { %v813_v10 = vpop.f32.mrf.mxu0  ;;  %v997_v15 = vadd.f32 %v996_v9, %v2039_v53 }
 0x162   : > { %v1638_v12 = vpack.c.bf16 %v1037_v8, %v1036_v7  ;;  %v902_v28 = vpop.f32.mrf.mxu1  ;;  %v814_v14 = vadd.f32 %v1972_v0, %v813_v10 }
 0x163   : > { %v1040_v23 = vmax.f32 %v997_v15, 0.0 }
 0x164   : > { %1674 = vst [vmem:[%s1994_s19 + $0x50] sm:$0xff] %v1638_v12   ;;  %v903_v16 = vadd.f32 %v902_v28, %v814_v14 }
 0x166   : > { %v992_v25 = vadd.f32 %v991_v52, %v903_v16 }
 0x168   : > { %v998_v17 = vpop.f32.mrf.mxu2  ;;  %v1038_v30 = vmax.f32 %v992_v25, 0.0 }
 0x169   : > { %v999_v18 = vadd.f32 %v998_v17, %v2044_v2  ;;  %v815_v20 = vpop.f32.mrf.mxu0 }
 0x16a   : > { %v816_v21 = vadd.f32 %v1972_v0, %v815_v20  ;;  %v904_v22 = vpop.f32.mrf.mxu1 }
 0x16b   : > { %v1041_v40 = vmax.f32 %v999_v18, 0.0 }
 0x16c   : > { %v905_v26 = vadd.f32 %v904_v22, %v816_v21 }
 0x16d   : > { %v1648_v27 = vpack.c.bf16 %v1041_v40, %v1040_v23 }
 0x16e   : > { %v994_v29 = vadd.f32 %v993_v50, %v905_v26 }
 0x16f   : > { %1676 = vst [vmem:[%s1994_s19 + $0x60] sm:$0xff] %v1648_v27  }
 0x170   : > { %v1039_v3 = vmax.f32 %v994_v29, 0.0  ;;  %v1001_v53 = vpop.f32.mrf.mxu2 }
 0x171   : > { %v1002_v34 = vadd.f32 %v1001_v53, %v2050_v13 }
 0x172   : > { %v1643_v33 = vpack.c.bf16 %v1039_v3, %v1038_v30 }
 0x173   : > { %v1042_v0 = vmax.f32 %v1002_v34, 0.0 }
 0x174   : > { %1675 = vst [vmem:[%s1994_s19 + $0x58] sm:$0xff] %v1643_v33  }
 0x178   : > { %v1003_v2 = vpop.f32.mrf.mxu2 }
 0x179   : > { %v1004_v35 = vadd.f32 %v1003_v2, %v2055_v24 }
 0x17b   : > { %v1043_v19 = vmax.f32 %v1004_v35, 0.0 }
 0x17d   : > { %v1653_v32 = vpack.c.bf16 %v1043_v19, %v1042_v0 }
 0x17f   : > { %1677 = vst [vmem:[%s1994_s19 + $0x68] sm:$0xff] %v1653_v32  }
 0x180 PF: > { %s13_s16 = sadd.s32 1, %s1780_s16   ;;  %s2111_s12 = smov %s1772_s14 }
 0x181   : > { %p10_p7 = scmp.ge.s32.totalorder %s13_s16, 8   ;;  %s2112_s13 = smov %s1776_s15 }
 0x182   : > { %s2113_s14 = smov %s2116_s17  ;;  %s2114_s15 = smov %s2120_s18 }
 0x183   :  { %12 = sbr.rel (!%p10_p7) target bundleno = 3 (0x3), region = 68 }

// kernel: yolact_forward.20
= control target key start
LH: loop header
LB: loop body
LE: loop exit
PB: predicated region body
PF: predicated region fallthrough
CT: control target
= control target key end

     0   :  { %vm175_vm0 = vcmask 261120   ;;  %s402_s1 = inlined_call_operand.vmem [shape: bf16[1,288,128], index: 1, kind: input, shape index: {}]   ;;  %s403_s0 = inlined_call_operand.vmem [shape: bf16[1,8,288], index: 0, kind: input, shape index: {}]   ;;  %s404_s2 = inlined_call_operand.vmem [shape: f32[1,1,128], index: 2, kind: input, shape index: {}]   ;;  %s405_s3 = inlined_call_operand.vmem [shape: bf16[1,8,128], index: 3, kind: output, shape index: {}]  }
   0x1   :  { %v304_v0 = vld [vmem:[%s402_s1 + $0x38] sm:$0xff]  ;;  %v303_v2 = vld [vmem:[%s402_s1 + $0x30] sm:$0xff]  ;;  %v314_v4 = vld [vmem:[%s402_s1 + $0x88] sm:$0xff] }
   0x2   :  { %v312_v1 = vld [vmem:[%s402_s1 + $0x78] sm:$0xff]  ;;  %179 = vmatpush.bf16.msra.mxu0 %v304_v0  ;;  %v311_v3 = vld [vmem:[%s402_s1 + $0x70] sm:$0xff]  ;;  %211 = vmatpush.bf16.msra.mxu2 %v314_v4  ;;  %v313_v5 = vld [vmem:[%s402_s1 + $0x80] sm:$0xff] }
   0x3   :  { %192 = vmatpush.bf16.msra.mxu1 %v312_v1  ;;  %v16_v6 = vld [vmem:[%s403_s0 + $0x8] sm:$0xf]  ;;  %v301_v11 = vld [vmem:[%s402_s1 + $0x20] sm:$0xff]  ;;  %v300_v13 = vld [vmem:[%s402_s1 + $0x18] sm:$0xff] }
   0x4   :  { %v61_v7 = vunpack.c.l.b16 %v16_v6  ;;  %v302_v8 = vld [vmem:[%s402_s1 + $0x28] sm:$0xff]  ;;  %v309_v12 = vld [vmem:[%s402_s1 + $0x60] sm:$0xff]  ;;  %v308_v14 = vld [vmem:[%s402_s1 + $0x58] sm:$0xff] }
   0x5   :  { %v310_v9 = vld [vmem:[%s402_s1 + $0x68] sm:$0xff]  ;;  %v299_v15 = vld [vmem:[%s402_s1 + $0x10] sm:$0xff]  ;;  %v15_v19 = vld [vmem:[%s403_s0] sm:$0xff] }
   0x6   :  { %180 = vmatpush.bf16.msra.mxu0 %v303_v2  ;;  %v64_v10 = vpack.c.b16 %v61_v7, %v61_v7  ;;  %212 = vmatpush.bf16.msra.mxu2 %v313_v5  ;;  %v307_v16 = vld [vmem:[%s402_s1 + $0x50] sm:$0xff]  ;;  %v298_v17 = vld [vmem:[%s402_s1 + $0x8] sm:$0xff]  ;;  %v59_v20 = vunpack.c.l.b16 %v15_v19  ;;  %v60_v21 = vunpack.c.h.b16 %v15_v19  ;;  %v297_v22 = vld [vmem:[%s402_s1] sm:$0xff] }
   0x7   :  { %193 = vmatpush.bf16.msra.mxu1 %v311_v3  ;;  %v306_v18 = vld [vmem:[%s402_s1 + $0x48] sm:$0xff]  ;;  %v305_v23 = vld [vmem:[%s402_s1 + $0x40] sm:$0xff] }
   0x8   :  { %v62_v24 = vpack.c.b16 %v59_v20, %v59_v20  ;;  %v63_v25 = vpack.c.b16 %v60_v21, %v60_v21  ;;  %v315_v28 = vld [vmem:[%s404_s2] ss:$0 sm:$0xff] }
   0x9   :  { %296 = vmatmul.msk.bf16.vlgmr.msra.gmra.mxu2 %vm175_vm0, %v64_v10 }
   0xa   :  { %181 = vmatpush.bf16.msra.mxu0 %v302_v8 }
   0xb   :  { %194 = vmatpush.bf16.msra.mxu1 %v310_v9 }
   0xe   :  { %182 = vmatpush.bf16.msra.mxu0 %v301_v11 }
   0xf   :  { %195 = vmatpush.bf16.msra.mxu1 %v309_v12 }
  0x12   :  { %183 = vmatpush.bf16.msra.mxu0 %v300_v13 }
  0x13   :  { %196 = vmatpush.bf16.msra.mxu1 %v308_v14 }
  0x16   :  { %184 = vmatpush.bf16.msra.mxu0 %v299_v15 }
  0x17   :  { %197 = vmatpush.bf16.msra.mxu1 %v307_v16 }
  0x1a   :  { %185 = vmatpush.bf16.msra.mxu0 %v298_v17 }
  0x1b   :  { %198 = vmatpush.bf16.msra.mxu1 %v306_v18 }
  0x1e   :  { %186 = vmatpush.bf16.msra.mxu0 %v297_v22 }
  0x1f   :  { %199 = vmatpush.bf16.msra.mxu1 %v305_v23 }
  0x21   :  { %187 = vmatmul.bf16.vlgmr.msra.gmra.mxu0 %v62_v24 }
  0x22   :  { %200 = vmatmul.bf16.vlgmr.msra.gmra.mxu1 %v63_v25 }
  0x8c   :  { %v214_v26 = vpop.f32.mrf.mxu2 }
  0x94   :  { %v216_v27 = vpop.f32.mrf.mxu2 }
  0x9e   :  { %v188_v29 = vpop.f32.mrf.mxu0 }
  0x9f   :  { %v201_v30 = vpop.f32.mrf.mxu1  ;;  %v189_v31 = vadd.f32 %v315_v28, %v188_v29 }
  0xa1   :  { %v202_v32 = vadd.f32 %v201_v30, %v189_v31 }
  0xa3   :  { %v215_v33 = vadd.f32 %v214_v26, %v202_v32 }
  0xa5   :  { %v218_v34 = vpack.c.bf16 %v215_v33, %v215_v33 }
  0xa6   :  { %v190_v35 = vpop.f32.mrf.mxu0 }
  0xa7   :  { %v203_v36 = vpop.f32.mrf.mxu1  ;;  %219 = vst [vmem:[%s405_s3] sm:$0xf] %v218_v34 }

// kernel: yolact_forward.22
= control target key start
LH: loop header
LB: loop body
LE: loop exit
PB: predicated region body
PF: predicated region fallthrough
CT: control target
= control target key end

     0   :  { %s1771_s12 = smov 0   ;;  %s1773_s13 = smov 0   ;;  %s2079_s0 = inlined_call_operand.vmem [shape: bf16[1,512,288], index: 0, kind: input, shape index: {}]   ;;  %s2080_s1 = inlined_call_operand.vmem [shape: bf16[1,288,128], index: 1, kind: input, shape index: {}]   ;;  %s2081_s2 = inlined_call_operand.vmem [shape: f32[1,1,128], index: 2, kind: input, shape index: {}]   ;;  %s2082_s3 = inlined_call_operand.vmem [shape: bf16[1,512,128], index: 3, kind: output, shape index: {}]  }
   0x1   :  { %s1775_s14 = smov 0  }
   0x2 LB: > { %s22_s15 = sadd.s32 1, %s1745_s13  ;;  %p1235_p0 = scmp.ge.s32.totalorder %s1749_s14, 1  ;;  %s1749_s14 = sphi %s1775_s14, %s13_s14   ;;  %s1745_s13 = sphi %s1773_s13, %s2084_s13   ;;  %s1741_s12 = sphi %s1771_s12, %s2083_s12  }
   0x3   : > { %p23_p1 = scmp.ge.s32.totalorder %s22_s15, 2  ;;  %p177_p2 = scmp.lt.s32.totalorder %s1749_s14, 3 }
   0x5   : > { %s2086_s15 = smov (%p23_p1, %s22_s15), 0  ;;  %p178_p3 = pnand %p1235_p0, %p177_p2 }
   0x6   : > { %s1236_s22 = sshll.u32 (!%p178_p3), %s1741_s12, 5 }
   0x7   : > { %181 = sbr.rel (%p178_p3) target bundleno = 377 (0x179), region = 32  ;;  %p221_p4 = scmp.lt.s32.totalorder (!%p178_p3), %s1236_s22, 63 }
   0xc   : > { %v1577_v0 = vld [vmem:[%s2080_s1 + $0x38] sm:$0xff]  ;;  %v1795_v1 = vld [vmem:[%s2080_s1 + $0x88] sm:$0xff]  ;;  %v1576_v3 = vld [vmem:[%s2080_s1 + $0x30] sm:$0xff]  ;;  %s2088_s22 = smov (!%p221_p4, %s1236_s22), 63  ;;  %vm700_vm0 = vcmask 261120  }
   0xd   : > { %v1800_v2 = vld [vmem:[%s2080_s1 + $0x78] sm:$0xff]  ;;  %749 = vmatpush.bf16.msra.mxu0 %v1577_v0  ;;  %1683 = vmatpush.bf16.msra.mxu3 %v1577_v0  ;;  %v1810_v4 = vld [vmem:[%s2080_s1 + $0x80] sm:$0xff]  ;;  %v1584_v5 = vld [vmem:[%s2080_s1 + $0x70] sm:$0xff]  ;;  %s1701_s29 = smul.u32 12, %s2088_s22  ;;  %s1239_s10 = sshll.u32 %s2088_s22, 2 }
   0xe   : > { %933 = vmatpush.bf16.msra.mxu2 %v1795_v1  ;;  %838 = vmatpush.bf16.msra.mxu1 %v1800_v2  ;;  %v1575_v6 = vld [vmem:[%s2080_s1 + $0x28] sm:$0xff]  ;;  %v1574_v11 = vld [vmem:[%s2080_s1 + $0x20] sm:$0xff]  ;;  %v1573_v13 = vld [vmem:[%s2080_s1 + $0x18] sm:$0xff]  ;;  %s1972_s16 = scalar_lea.vmem %s2082_s3, %s1239_s10 }
   0xf   : > { %s1825_s7 = scalar_lea.vmem %s2079_s0, %s1701_s29  ;;  %v1583_v7 = vld [vmem:[%s2080_s1 + $0x68] sm:$0xff]  ;;  %v1582_v12 = vld [vmem:[%s2080_s1 + $0x60] sm:$0xff]  ;;  %v1581_v14 = vld [vmem:[%s2080_s1 + $0x58] sm:$0xff] }
  0x10   : > { %v1250_v8 = vld [vmem:[%s1825_s7 + $0x8] sm:$0xf]  ;;  %v1524_v9 = vld [vmem:[%s1825_s7 + $0x10] sm:$0xf0]  ;;  %v1262_v17 = vld [vmem:[%s1825_s7 + $0x20] sm:$0xf] }
  0x11   : > { %750 = vmatpush.bf16.msra.mxu0 %v1576_v3  ;;  %1684 = vmatpush.bf16.msra.mxu3 %v1576_v3  ;;  %v1251_v10 = vor.u32 %v1524_v9, %v1250_v8  ;;  %v1572_v15 = vld [vmem:[%s2080_s1 + $0x10] sm:$0xff]  ;;  %v1527_v18 = vld [vmem:[%s1825_s7 + $0x28] sm:$0xf0]  ;;  %v1570_v22 = vld [vmem:[%s2080_s1] sm:$0xff] }
  0x12   : > { %934 = vmatpush.bf16.msra.mxu2 %v1810_v4  ;;  %839 = vmatpush.bf16.msra.mxu1 %v1584_v5  ;;  %v1580_v16 = vld [vmem:[%s2080_s1 + $0x50] sm:$0xff]  ;;  %v1571_v19 = vld [vmem:[%s2080_s1 + $0x8] sm:$0xff]  ;;  %v1263_v20 = vor.u32 %v1527_v18, %v1262_v17  ;;  %v1242_v23 = vld [vmem:[%s1825_s7] sm:$0xf] }
  0x13   : > { %v1579_v21 = vld [vmem:[%s2080_s1 + $0x48] sm:$0xff]  ;;  %v1386_v25 = vld [vmem:[%s1825_s7 + $0x120] sm:$0xf]  ;;  %v1522_v28 = vld [vmem:[%s1825_s7 + $0x4] sm:$0xf] }
  0x14   : > { %v1523_v24 = vld [vmem:[%s1825_s7 + $0x8] sm:$0xf0]  ;;  %v1578_v27 = vld [vmem:[%s2080_s1 + $0x40] sm:$0xff]  ;;  %v1244_v29 = vld [vmem:[%s1825_s7 + $0xc] sm:$0xf0] }
  0x15   : > { %751 = vmatpush.bf16.msra.mxu0 %v1575_v6  ;;  %1685 = vmatpush.bf16.msra.mxu3 %v1575_v6  ;;  %v1559_v26 = vld [vmem:[%s1825_s7 + $0x128] sm:$0xf0]  ;;  %v1243_v30 = vor.u32 %v1523_v24, %v1242_v23  ;;  %v1247_v32 = vor.u32 %v1522_v28, %v1244_v29  ;;  %v1274_v33 = vld [vmem:[%s1825_s7 + $0x38] sm:$0xf]  ;;  %v1530_v34 = vld [vmem:[%s1825_s7 + $0x40] sm:$0xf0] }
  0x16   : > { %1504 = vmatmul.msk.bf16.vlgmr.msra.gmra.mxu2 %vm700_vm0, %v1251_v10  ;;  %840 = vmatpush.bf16.msra.mxu1 %v1583_v7  ;;  %v1387_v31 = vor.u32 %v1559_v26, %v1386_v25  ;;  %v1275_v35 = vor.u32 %v1530_v34, %v1274_v33  ;;  %v1254_v36 = vld [vmem:[%s1825_s7 + $0x18] sm:$0xf]  ;;  %v1526_v37 = vld [vmem:[%s1825_s7 + $0x20] sm:$0xf0]  ;;  %v1525_v40 = vld [vmem:[%s1825_s7 + $0x1c] sm:$0xf] }
  0x17   : > { %v1398_v38 = vld [vmem:[%s1825_s7 + $0x138] sm:$0xf]  ;;  %v1562_v39 = vld [vmem:[%s1825_s7 + $0x140] sm:$0xf0]  ;;  %v1256_v41 = vld [vmem:[%s1825_s7 + $0x24] sm:$0xf0]  ;;  %v1255_v42 = vor.u32 %v1526_v37, %v1254_v36 }
  0x18   : > { %v1399_v43 = vor.u32 %v1562_v39, %v1398_v38  ;;  %v1259_v44 = vor.u32 %v1525_v40, %v1256_v41  ;;  %v1286_v45 = vld [vmem:[%s1825_s7 + $0x50] sm:$0xf]  ;;  %v1533_v46 = vld [vmem:[%s1825_s7 + $0x58] sm:$0xf0]  ;;  %v1528_v52 = vld [vmem:[%s1825_s7 + $0x34] sm:$0xf] }
  0x19   : > { %752 = vmatpush.bf16.msra.mxu0 %v1574_v11  ;;  %1686 = vmatpush.bf16.msra.mxu3 %v1574_v11  ;;  %v1287_v47 = vor.u32 %v1533_v46, %v1286_v45  ;;  %v1266_v48 = vld [vmem:[%s1825_s7 + $0x30] sm:$0xf]  ;;  %v1529_v49 = vld [vmem:[%s1825_s7 + $0x38] sm:$0xf0]  ;;  %v1268_v53 = vld [vmem:[%s1825_s7 + $0x3c] sm:$0xf0] }
  0x1a   : > { %841 = vmatpush.bf16.msra.mxu1 %v1582_v12  ;;  %v1410_v50 = vld [vmem:[%s1825_s7 + $0x150] sm:$0xf]  ;;  %v1565_v51 = vld [vmem:[%s1825_s7 + $0x158] sm:$0xf0]  ;;  %v1267_v54 = vor.u32 %v1529_v49, %v1266_v48  ;;  %v1271_v56 = vor.u32 %v1528_v52, %v1268_v53  ;;  %v1298_v57 = vld [vmem:[%s1825_s7 + $0x68] sm:$0xf] }
  0x1b   : > { %v1411_v55 = vor.u32 %v1565_v51, %v1410_v50  ;;  %v1536_v58 = vld [vmem:[%s1825_s7 + $0x70] sm:$0xf0]  ;;  %v1278_v60 = vld [vmem:[%s1825_s7 + $0x48] sm:$0xf]  ;;  %v1531_v0 = vld [vmem:[%s1825_s7 + $0x4c] sm:$0xf] }
  0x1c   : > { %v1299_v59 = vor.u32 %v1536_v58, %v1298_v57  ;;  %v1532_v61 = vld [vmem:[%s1825_s7 + $0x50] sm:$0xf0]  ;;  %v1422_v62 = vld [vmem:[%s1825_s7 + $0x168] sm:$0xf]  ;;  %v1539_v6 = vld [vmem:[%s1825_s7 + $0x88] sm:$0xf0] }
  0x1d   : > { %753 = vmatpush.bf16.msra.mxu0 %v1573_v13  ;;  %1687 = vmatpush.bf16.msra.mxu3 %v1573_v13  ;;  %v1568_v63 = vld [vmem:[%s1825_s7 + $0x170] sm:$0xf0]  ;;  %v1290_v8 = vld [vmem:[%s1825_s7 + $0x60] sm:$0xf]  ;;  %v1535_v9 = vld [vmem:[%s1825_s7 + $0x68] sm:$0xf0] }
  0x1e   : > { %842 = vmatpush.bf16.msra.mxu1 %v1581_v14  ;;  %v1423_v3 = vor.u32 %v1568_v63, %v1422_v62  ;;  %v1558_v10 = vld [vmem:[%s1825_s7 + $0x124] sm:$0xf]  ;;  %v1388_v11 = vld [vmem:[%s1825_s7 + $0x12c] sm:$0xf0]  ;;  %v1322_v17 = vld [vmem:[%s1825_s7 + $0x98] sm:$0xf] }
  0x1f   : > { %v1292_v13 = vld [vmem:[%s1825_s7 + $0x6c] sm:$0xf0]  ;;  %v1542_v18 = vld [vmem:[%s1825_s7 + $0xa0] sm:$0xf0]  ;;  %v1400_v23 = vld [vmem:[%s1825_s7 + $0x144] sm:$0xf0] }
  0x20   : > { %v1537_v24 = vld [vmem:[%s1825_s7 + $0x7c] sm:$0xf]  ;;  %v1304_v25 = vld [vmem:[%s1825_s7 + $0x84] sm:$0xf0]  ;;  %v1334_v29 = vld [vmem:[%s1825_s7 + $0xb0] sm:$0xf] }
  0x21   : > { %754 = vmatpush.bf16.msra.mxu0 %v1572_v15  ;;  %1688 = vmatpush.bf16.msra.mxu3 %v1572_v15  ;;  %v1391_v15 = vor.u32 %v1558_v10, %v1388_v11  ;;  %v1307_v28 = vor.u32 %v1537_v24, %v1304_v25  ;;  %v1541_v33 = vld [vmem:[%s1825_s7 + $0x98] sm:$0xf0]  ;;  %v1564_v34 = vld [vmem:[%s1825_s7 + $0x154] sm:$0xf]  ;;  %v1316_v37 = vld [vmem:[%s1825_s7 + $0x9c] sm:$0xf0] }
  0x22   : > { %843 = vmatpush.bf16.msra.mxu1 %v1580_v16  ;;  %v1540_v36 = vld [vmem:[%s1825_s7 + $0x94] sm:$0xf]  ;;  %v1346_v41 = vld [vmem:[%s1825_s7 + $0xc8] sm:$0xf]  ;;  %v1567_v46 = vld [vmem:[%s1825_s7 + $0x16c] sm:$0xf] }
  0x23   : > { %v1319_v40 = vor.u32 %v1540_v36, %v1316_v37  ;;  %v1544_v45 = vld [vmem:[%s1825_s7 + $0xb0] sm:$0xf0]  ;;  %v1543_v48 = vld [vmem:[%s1825_s7 + $0xac] sm:$0xf]  ;;  %v1328_v49 = vld [vmem:[%s1825_s7 + $0xb4] sm:$0xf0] }
  0x24   : > { %v1331_v53 = vor.u32 %v1543_v48, %v1328_v49  ;;  %v1338_v58 = vld [vmem:[%s1825_s7 + $0xc0] sm:$0xf]  ;;  %v1546_v62 = vld [vmem:[%s1825_s7 + $0xc4] sm:$0xf]  ;;  %v1340_v63 = vld [vmem:[%s1825_s7 + $0xcc] sm:$0xf0] }
  0x25   : > { %755 = vmatpush.bf16.msra.mxu0 %v1571_v19  ;;  %1689 = vmatpush.bf16.msra.mxu3 %v1571_v19  ;;  %v1323_v19 = vor.u32 %v1542_v18, %v1322_v17  ;;  %v1554_v10 = vld [vmem:[%s1825_s7 + $0x100] sm:$0xf0]  ;;  %v1549_v24 = vld [vmem:[%s1825_s7 + $0xdc] sm:$0xf]  ;;  %v1352_v25 = vld [vmem:[%s1825_s7 + $0xe4] sm:$0xf0] }
  0x26   : > { %1505 = vmatmul.msk.bf16.gmra.mxu2 %vm700_vm0, %v1263_v20  ;;  %844 = vmatpush.bf16.msra.mxu1 %v1579_v21  ;;  %v1302_v20 = vld [vmem:[%s1825_s7 + $0x78] sm:$0xf]  ;;  %v1362_v48 = vld [vmem:[%s1825_s7 + $0xf0] sm:$0xf]  ;;  %v1553_v49 = vld [vmem:[%s1825_s7 + $0xf8] sm:$0xf0] }
  0x29   : > { %756 = vmatpush.bf16.msra.mxu0 %v1570_v22  ;;  %1690 = vmatpush.bf16.msra.mxu3 %v1570_v22  ;;  %v1561_v22 = vld [vmem:[%s1825_s7 + $0x13c] sm:$0xf] }
  0x2a   : > { %845 = vmatpush.bf16.msra.mxu1 %v1578_v27 }
  0x2c   : > { %757 = vmatmul.bf16.vlgmr.msra.gmra.mxu0 %v1243_v30  ;;  %817 = vmatmul.bf16.vlgmr.msra.gmra.mxu3 %v1387_v31  ;;  %v1545_v30 = vld [vmem:[%s1825_s7 + $0xb8] sm:$0xf0] }
  0x2d   : > { %1691 = vmatpush.bf16.msrb.mxu3 %v1800_v2  ;;  %846 = vmatmul.bf16.vlgmr.msra.gmra.mxu1 %v1247_v32  ;;  %v1279_v2 = vor.u32 %v1532_v61, %v1278_v60  ;;  %v1335_v31 = vor.u32 %v1545_v30, %v1334_v29  ;;  %v1314_v32 = vld [vmem:[%s1825_s7 + $0x90] sm:$0xf]  ;;  %v1418_v60 = vld [vmem:[%s1825_s7 + $0x158] sm:$0xf]  ;;  %v1566_v61 = vld [vmem:[%s1825_s7 + $0x160] sm:$0xf0] }
  0x2e   : > { %v1315_v38 = vor.u32 %v1541_v33, %v1314_v32  ;;  %v1355_v33 = vor.u32 %v1549_v24, %v1352_v25 }
  0x31   : > { %1692 = vmatpush.bf16.msrb.mxu3 %v1584_v5  ;;  %v1310_v5 = vld [vmem:[%s1825_s7 + $0x80] sm:$0xf] }
  0x35   : > { %1693 = vmatpush.bf16.msrb.mxu3 %v1583_v7  ;;  %v1311_v7 = vor.u32 %v1539_v6, %v1310_v5  ;;  %v1343_v5 = vor.u32 %v1546_v62, %v1340_v63 }
  0x36   : > { %1506 = vmatmul.msk.bf16.gmra.mxu2 %vm700_vm0, %v1275_v35  ;;  %v1412_v35 = vld [vmem:[%s1825_s7 + $0x15c] sm:$0xf0] }
  0x37   : > { %v1415_v39 = vor.u32 %v1564_v34, %v1412_v35 }
  0x39   : > { %1694 = vmatpush.bf16.msrb.mxu3 %v1582_v12  ;;  %v1534_v12 = vld [vmem:[%s1825_s7 + $0x64] sm:$0xf] }
  0x3c   : > { %762 = vmatmul.bf16.gmra.mxu0 %v1255_v42  ;;  %822 = vmatmul.bf16.gmra.mxu3 %v1399_v43  ;;  %v1548_v42 = vld [vmem:[%s1825_s7 + $0xd0] sm:$0xf0] }
  0x3d   : > { %1695 = vmatpush.bf16.msrb.mxu3 %v1581_v14  ;;  %851 = vmatmul.bf16.gmra.mxu1 %v1259_v44  ;;  %v1291_v14 = vor.u32 %v1535_v9, %v1290_v8  ;;  %v1347_v43 = vor.u32 %v1548_v42, %v1346_v41  ;;  %v1326_v44 = vld [vmem:[%s1825_s7 + $0xa8] sm:$0xf]  ;;  %v1370_v9 = vld [vmem:[%s1825_s7 + $0xf8] sm:$0xf] }
  0x3e   : > { %v1327_v50 = vor.u32 %v1544_v45, %v1326_v44 }
  0x41   : > { %1696 = vmatpush.bf16.msrb.mxu3 %v1580_v16  ;;  %v1295_v16 = vor.u32 %v1534_v12, %v1292_v13 }
  0x45   : > { %1697 = vmatpush.bf16.msrb.mxu3 %v1579_v21  ;;  %v1538_v21 = vld [vmem:[%s1825_s7 + $0x80] sm:$0xf0] }
  0x46   : > { %1507 = vmatmul.msk.bf16.gmra.mxu2 %vm700_vm0, %v1287_v47  ;;  %v1303_v26 = vor.u32 %v1538_v21, %v1302_v20  ;;  %v1424_v47 = vld [vmem:[%s1825_s7 + $0x174] sm:$0xf0]  ;;  %v1550_v20 = vld [vmem:[%s1825_s7 + $0xe0] sm:$0xf0]  ;;  %v1430_v21 = vld [vmem:[%s1825_s7 + $0x170] sm:$0xf] }
  0x47   : > { %v1427_v51 = vor.u32 %v1567_v46, %v1424_v47 }
  0x49   : > { %1698 = vmatpush.bf16.msrb.mxu3 %v1578_v27  ;;  %v1403_v27 = vor.u32 %v1561_v22, %v1400_v23  ;;  %v1569_v22 = vld [vmem:[%s1825_s7 + $0x178] sm:$0xf0] }
  0x4a   : > { %v1431_v30 = vor.u32 %v1569_v22, %v1430_v21 }
  0x4c   : > { %767 = vmatmul.bf16.gmra.mxu0 %v1267_v54  ;;  %827 = vmatmul.bf16.gmra.mxu3 %v1411_v55  ;;  %v1358_v54 = vld [vmem:[%s1825_s7 + $0xe0] sm:$0xf]  ;;  %v1551_v55 = vld [vmem:[%s1825_s7 + $0xe8] sm:$0xf0] }
  0x4d   : > { %1699 = vmatpush.bf16.msra.mxu3 %v1795_v1  ;;  %856 = vmatmul.bf16.gmra.mxu1 %v1271_v56  ;;  %v1280_v1 = vld [vmem:[%s1825_s7 + $0x54] sm:$0xf0]  ;;  %v1359_v57 = vor.u32 %v1551_v55, %v1358_v54 }
  0x51   : > { %1700 = vmatpush.bf16.msra.mxu3 %v1810_v4  ;;  %v1283_v4 = vor.u32 %v1531_v0, %v1280_v1  ;;  %v1950_v0 = vld [vmem:[%s2081_s2] ss:$0 sm:$0xff] }
  0x56   : > { %1508 = vmatmul.msk.bf16.gmra.mxu2 %vm700_vm0, %v1299_v59  ;;  %v1547_v59 = vld [vmem:[%s1825_s7 + $0xc8] sm:$0xf0] }
  0x57   : > { %v1339_v1 = vor.u32 %v1547_v59, %v1338_v58 }
  0x5c   : > { %772 = vmatmul.bf16.gmra.mxu0 %v1279_v2  ;;  %832 = vmatmul.bf16.gmra.mxu3 %v1423_v3  ;;  %v1419_v2 = vor.u32 %v1566_v61, %v1418_v60 }
  0x5d   : > { %861 = vmatmul.bf16.gmra.mxu1 %v1283_v4 }
  0x66   : > { %1509 = vmatmul.msk.bf16.gmra.mxu2 %vm700_vm0, %v1311_v7 }
  0x6c   : > { %777 = vmatmul.bf16.gmra.mxu0 %v1291_v14  ;;  %906 = vmatmul.bf16.vlgmr.msrb.gmra.mxu3 %v1391_v15 }
  0x6d   : > { %866 = vmatmul.bf16.gmra.mxu1 %v1295_v16  ;;  %v1371_v16 = vor.u32 %v1554_v10, %v1370_v9 }
  0x76   : > { %1510 = vmatmul.msk.bf16.gmra.mxu2 %vm700_vm0, %v1323_v19  ;;  %v1350_v19 = vld [vmem:[%s1825_s7 + $0xd8] sm:$0xf] }
  0x77   : > { %v1351_v29 = vor.u32 %v1550_v20, %v1350_v19 }
  0x7c   : > { %782 = vmatmul.bf16.gmra.mxu0 %v1303_v26  ;;  %911 = vmatmul.bf16.gmra.mxu3 %v1403_v27 }
  0x7d   : > { %871 = vmatmul.bf16.gmra.mxu1 %v1307_v28 }
  0x86   : > { %1511 = vmatmul.msk.bf16.gmra.mxu2 %vm700_vm0, %v1335_v31 }
  0x8c   : > { %787 = vmatmul.bf16.gmra.mxu0 %v1315_v38  ;;  %916 = vmatmul.bf16.gmra.mxu3 %v1415_v39  ;;  %v1382_v38 = vld [vmem:[%s1825_s7 + $0x110] sm:$0xf]  ;;  %v1557_v39 = vld [vmem:[%s1825_s7 + $0x118] sm:$0xf0] }
  0x8d   : > { %876 = vmatmul.bf16.gmra.mxu1 %v1319_v40  ;;  %v1383_v45 = vor.u32 %v1557_v39, %v1382_v38 }
  0x96   : > { %1512 = vmatmul.msk.bf16.gmra.mxu2 %vm700_vm0, %v1347_v43 }
  0x99   : > { %v936_v52 = vpop.f32.mrf.mxu2 }
  0x9c   : > { %792 = vmatmul.bf16.gmra.mxu0 %v1327_v50  ;;  %921 = vmatmul.bf16.gmra.mxu3 %v1427_v51  ;;  %v1552_v51 = vld [vmem:[%s1825_s7 + $0xf4] sm:$0xf] }
  0x9d   : > { %881 = vmatmul.bf16.gmra.mxu1 %v1331_v53 }
  0xa1   : > { %v938_v56 = vpop.f32.mrf.mxu2 }
  0xa6   : > { %1513 = vmatmul.msk.bf16.gmra.mxu2 %vm700_vm0, %v1359_v57 }
  0xa9   : > { %v941_v3 = vpop.f32.mrf.mxu2  ;;  %v758_v4 = vpop.f32.mrf.mxu0 }
  0xaa   : > { %v847_v6 = vpop.f32.mrf.mxu1  ;;  %v759_v7 = vadd.f32 %v1950_v0, %v758_v4 }
  0xac   : > { %797 = vmatmul.bf16.gmra.mxu0 %v1339_v1  ;;  %1518 = vmatmul.msk.bf16.vlgmr.msra.gmra.mxu3 %vm700_vm0, %v1419_v2  ;;  %v848_v11 = vadd.f32 %v847_v6, %v759_v7  ;;  %v1394_v1 = vld [vmem:[%s1825_s7 + $0x128] sm:$0xf]  ;;  %v1560_v2 = vld [vmem:[%s1825_s7 + $0x130] sm:$0xf0] }
  0xad   : > { %886 = vmatmul.bf16.gmra.mxu1 %v1343_v5  ;;  %v1395_v9 = vor.u32 %v1560_v2, %v1394_v1 }
  0xae   : > { %v937_v17 = vadd.f32 %v936_v52, %v848_v11  ;;  %v1364_v52 = vld [vmem:[%s1825_s7 + $0xfc] sm:$0xf0] }
  0xaf   : > { %v1954_v8 = vpop.f32.mrf.mxu3  ;;  %v1367_v59 = vor.u32 %v1552_v51, %v1364_v52 }
  0xb0   : > { %v1016_v27 = vmax.f32 %v937_v17, 0.0 }
  0xb1   : > { %v943_v12 = vpop.f32.mrf.mxu2  ;;  %v760_v13 = vpop.f32.mrf.mxu0 }
  0xb2   : > { %v761_v14 = vadd.f32 %v1950_v0, %v760_v13  ;;  %v849_v15 = vpop.f32.mrf.mxu1  ;;  %v1556_v13 = vld [vmem:[%s1825_s7 + $0x110] sm:$0xf0] }
  0xb4   : > { %v850_v18 = vadd.f32 %v849_v15, %v761_v14  ;;  %v1555_v15 = vld [vmem:[%s1825_s7 + $0x10c] sm:$0xf] }
  0xb6   : > { %v939_v23 = vadd.f32 %v938_v56, %v850_v18  ;;  %1514 = vmatmul.msk.bf16.gmra.mxu2 %vm700_vm0, %v1371_v16  ;;  %v1363_v56 = vor.u32 %v1553_v49, %v1362_v48  ;;  %v1376_v16 = vld [vmem:[%s1825_s7 + $0x114] sm:$0xf0]  ;;  %v819_v49 = vadd.f32 %v1950_v0, %v1954_v8 }
  0xb7   : > { %v1967_v26 = vpop.f32.mrf.mxu3 }
  0xb8   : > { %v1017_v28 = vmax.f32 %v939_v23, 0.0  ;;  %v1379_v23 = vor.u32 %v1555_v15, %v1376_v16 }
  0xb9   : > { %v946_v31 = vpop.f32.mrf.mxu2  ;;  %v763_v32 = vpop.f32.mrf.mxu0 }
  0xba   : > { %v1591_v34 = vpack.c.bf16 %v1017_v28, %v1016_v27  ;;  %v852_v35 = vpop.f32.mrf.mxu1  ;;  %v764_v36 = vadd.f32 %v1950_v0, %v763_v32 }
  0xbc   : > { %1592 = vst [vmem:[%s1972_s16] sm:$0xff] %v1591_v34   ;;  %802 = vmatmul.bf16.gmra.mxu0 %v1351_v29  ;;  %1519 = vmatmul.msk.bf16.gmra.mxu3 %vm700_vm0, %v1431_v30  ;;  %v853_v40 = vadd.f32 %v852_v35, %v764_v36  ;;  %v1406_v29 = vld [vmem:[%s1825_s7 + $0x140] sm:$0xf]  ;;  %v1563_v30 = vld [vmem:[%s1825_s7 + $0x148] sm:$0xf0] }
  0xbd   : > { %891 = vmatmul.bf16.gmra.mxu1 %v1355_v33  ;;  %v1407_v36 = vor.u32 %v1563_v30, %v1406_v29 }
  0xbe   : > { %v942_v46 = vadd.f32 %v941_v3, %v853_v40 }
  0xbf   : > { %v1977_v37 = vpop.f32.mrf.mxu3 }
  0xc0   : > { %v1018_v54 = vmax.f32 %v942_v46, 0.0 }
  0xc1   : > { %v948_v41 = vpop.f32.mrf.mxu2  ;;  %v765_v42 = vpop.f32.mrf.mxu0 }
  0xc2   : > { %v766_v43 = vadd.f32 %v1950_v0, %v765_v42  ;;  %v854_v44 = vpop.f32.mrf.mxu1 }
  0xc4   : > { %v855_v47 = vadd.f32 %v854_v44, %v766_v43 }
  0xc6   : > { %v944_v50 = vadd.f32 %v943_v12, %v855_v47  ;;  %1515 = vmatmul.msk.bf16.gmra.mxu2 %vm700_vm0, %v1383_v45  ;;  %v1374_v12 = vld [vmem:[%s1825_s7 + $0x108] sm:$0xf] }
  0xc7   : > { %v1987_v53 = vpop.f32.mrf.mxu3  ;;  %v1375_v20 = vor.u32 %v1556_v13, %v1374_v12 }
  0xc8   : > { %v1019_v55 = vmax.f32 %v944_v50, 0.0 }
  0xc9   : > { %v951_v57 = vpop.f32.mrf.mxu2  ;;  %v768_v58 = vpop.f32.mrf.mxu0 }
  0xca   : > { %v1596_v60 = vpack.c.bf16 %v1019_v55, %v1018_v54  ;;  %v857_v61 = vpop.f32.mrf.mxu1  ;;  %v769_v62 = vadd.f32 %v1950_v0, %v768_v58 }
  0xcc   : > { %1668 = vst [vmem:[%s1972_s16 + $0x8] sm:$0xff] %v1596_v60   ;;  %807 = vmatmul.bf16.gmra.mxu0 %v1363_v56  ;;  %v858_v3 = vadd.f32 %v857_v61, %v769_v62  ;;  %v821_v60 = vadd.f32 %v1950_v0, %v1967_v26 }
  0xcd   : > { %896 = vmatmul.bf16.gmra.mxu1 %v1367_v59 }
  0xce   : > { %v947_v10 = vadd.f32 %v946_v31, %v858_v3 }
  0xcf   : > { %v1991_v63 = vpop.f32.mrf.mxu3 }
  0xd0   : > { %v1020_v18 = vmax.f32 %v947_v10, 0.0 }
  0xd1   : > { %v953_v4 = vpop.f32.mrf.mxu2  ;;  %v770_v5 = vpop.f32.mrf.mxu0 }
  0xd2   : > { %v771_v6 = vadd.f32 %v1950_v0, %v770_v5  ;;  %v859_v7 = vpop.f32.mrf.mxu1 }
  0xd4   : > { %v860_v11 = vadd.f32 %v859_v7, %v771_v6 }
  0xd6   : > { %v949_v14 = vadd.f32 %v948_v41, %v860_v11  ;;  %1516 = vmatmul.msk.bf16.gmra.mxu2 %vm700_vm0, %v1395_v9  ;;  %v824_v9 = vadd.f32 %v1950_v0, %v1977_v37 }
  0xd7   : > { %v2001_v17 = vpop.f32.mrf.mxu3 }
  0xd8   : > { %v1021_v19 = vmax.f32 %v949_v14, 0.0 }
  0xd9   : > { %v956_v21 = vpop.f32.mrf.mxu2  ;;  %v773_v22 = vpop.f32.mrf.mxu0 }
  0xda   : > { %v1601_v24 = vpack.c.bf16 %v1021_v19, %v1020_v18  ;;  %v862_v25 = vpop.f32.mrf.mxu1  ;;  %v774_v27 = vadd.f32 %v1950_v0, %v773_v22  ;;  %v826_v19 = vadd.f32 %v1950_v0, %v1987_v53 }
  0xdc   : > { %1669 = vst [vmem:[%s1972_s16 + $0x10] sm:$0xff] %v1601_v24   ;;  %812 = vmatmul.bf16.gmra.mxu0 %v1375_v20  ;;  %v863_v31 = vadd.f32 %v862_v25, %v774_v27 }
  0xdd   : > { %901 = vmatmul.bf16.gmra.mxu1 %v1379_v23 }
  0xde   : > { %v952_v38 = vadd.f32 %v951_v57, %v863_v31 }
  0xdf   : > { %v2005_v28 = vpop.f32.mrf.mxu3 }
  0xe0   : > { %v1022_v42 = vmax.f32 %v952_v38, 0.0 }
  0xe1   : > { %v958_v32 = vpop.f32.mrf.mxu2  ;;  %v775_v33 = vpop.f32.mrf.mxu0 }
  0xe2   : > { %v776_v34 = vadd.f32 %v1950_v0, %v775_v33  ;;  %v864_v35 = vpop.f32.mrf.mxu1 }
  0xe4   : > { %v865_v39 = vadd.f32 %v864_v35, %v776_v34 }
  0xe6   : > { %v954_v40 = vadd.f32 %v953_v4, %v865_v39  ;;  %1517 = vmatmul.msk.bf16.gmra.mxu2 %vm700_vm0, %v1407_v36 }
  0xe7   : > { %v2011_v41 = vpop.f32.mrf.mxu3 }
  0xe8   : > { %v1023_v43 = vmax.f32 %v954_v40, 0.0 }
  0xe9   : > { %v961_v44 = vpop.f32.mrf.mxu2  ;;  %v778_v45 = vpop.f32.mrf.mxu0 }
  0xea   : > { %v1606_v46 = vpack.c.bf16 %v1023_v43, %v1022_v42  ;;  %v867_v47 = vpop.f32.mrf.mxu1  ;;  %v779_v48 = vadd.f32 %v1950_v0, %v778_v45 }
  0xec   : > { %1670 = vst [vmem:[%s1972_s16 + $0x18] sm:$0xff] %v1606_v46   ;;  %v868_v51 = vadd.f32 %v867_v47, %v779_v48 }
  0xee   : > { %v957_v58 = vadd.f32 %v956_v21, %v868_v51 }
  0xef   : > { %v907_v50 = vpop.f32.mrf.mxu3 }
  0xf0   : > { %v2017_v52 = vadd.f32 %v907_v50, %v819_v49  ;;  %v1024_v1 = vmax.f32 %v957_v58, 0.0 }
  0xf1   : > { %v963_v54 = vpop.f32.mrf.mxu2  ;;  %v780_v55 = vpop.f32.mrf.mxu0 }
  0xf2   : > { %v781_v56 = vadd.f32 %v1950_v0, %v780_v55  ;;  %v869_v57 = vpop.f32.mrf.mxu1 }
  0xf4   : > { %v870_v59 = vadd.f32 %v869_v57, %v781_v56 }
  0xf6   : > { %v959_v61 = vadd.f32 %v958_v32, %v870_v59 }
  0xf7   : > { %v909_v62 = vpop.f32.mrf.mxu3 }
  0xf8   : > { %v1025_v2 = vmax.f32 %v959_v61, 0.0  ;;  %v2022_v8 = vadd.f32 %v909_v62, %v821_v60 }
  0xf9   : > { %v966_v3 = vpop.f32.mrf.mxu2  ;;  %v783_v4 = vpop.f32.mrf.mxu0 }
  0xfa   : > { %v1611_v5 = vpack.c.bf16 %v1025_v2, %v1024_v1  ;;  %v872_v6 = vpop.f32.mrf.mxu1  ;;  %v784_v7 = vadd.f32 %v1950_v0, %v783_v4 }
  0xfc   : > { %1671 = vst [vmem:[%s1972_s16 + $0x20] sm:$0xff] %v1611_v5   ;;  %v873_v11 = vadd.f32 %v872_v6, %v784_v7 }
  0xfe   : > { %v962_v16 = vadd.f32 %v961_v44, %v873_v11  ;;  %v829_v11 = vadd.f32 %v1950_v0, %v1991_v63 }
  0xff   : > { %v912_v10 = vpop.f32.mrf.mxu3 }
 0x100   : > { %v2028_v12 = vadd.f32 %v912_v10, %v824_v9  ;;  %v1026_v22 = vmax.f32 %v962_v16, 0.0 }
 0x101   : > { %v968_v26 = vpop.f32.mrf.mxu2  ;;  %v785_v13 = vpop.f32.mrf.mxu0 }
 0x102   : > { %v786_v14 = vadd.f32 %v1950_v0, %v785_v13  ;;  %v874_v15 = vpop.f32.mrf.mxu1 }
 0x104   : > { %v875_v18 = vadd.f32 %v874_v15, %v786_v14  ;;  %v831_v14 = vadd.f32 %v1950_v0, %v2001_v17 }
 0x106   : > { %v964_v20 = vadd.f32 %v963_v54, %v875_v18 }
 0x107   : > { %v914_v21 = vpop.f32.mrf.mxu3 }
 0x108   : > { %v1027_v23 = vmax.f32 %v964_v20, 0.0  ;;  %v2033_v37 = vadd.f32 %v914_v21, %v826_v19 }
 0x109   : > { %v971_v24 = vpop.f32.mrf.mxu2  ;;  %v788_v25 = vpop.f32.mrf.mxu0 }
 0x10a   : > { %v1616_v27 = vpack.c.bf16 %v1027_v23, %v1026_v22  ;;  %v877_v29 = vpop.f32.mrf.mxu1  ;;  %v789_v30 = vadd.f32 %v1950_v0, %v788_v25 }
 0x10c   : > { %1672 = vst [vmem:[%s1972_s16 + $0x28] sm:$0xff] %v1616_v27   ;;  %v878_v32 = vadd.f32 %v877_v29, %v789_v30 }
 0x10e   : > { %v967_v36 = vadd.f32 %v966_v3, %v878_v32 }
 0x10f   : > { %v917_v31 = vpop.f32.mrf.mxu3 }
 0x110   : > { %v1028_v42 = vmax.f32 %v967_v36, 0.0  ;;  %v918_v15 = vadd.f32 %v917_v31, %v829_v11 }
 0x111   : > { %v973_v33 = vpop.f32.mrf.mxu2  ;;  %v790_v34 = vpop.f32.mrf.mxu0 }
 0x112   : > { %v791_v53 = vadd.f32 %v1950_v0, %v790_v34  ;;  %v879_v35 = vpop.f32.mrf.mxu1 }
 0x114   : > { %v880_v38 = vadd.f32 %v879_v35, %v791_v53 }
 0x116   : > { %v969_v39 = vadd.f32 %v968_v26, %v880_v38  ;;  %v834_v38 = vadd.f32 %v1950_v0, %v2005_v28 }
 0x117   : > { %v919_v40 = vpop.f32.mrf.mxu3 }
 0x118   : > { %v1029_v43 = vmax.f32 %v969_v39, 0.0  ;;  %v920_v19 = vadd.f32 %v919_v40, %v831_v14 }
 0x119   : > { %v976_v44 = vpop.f32.mrf.mxu2  ;;  %v793_v45 = vpop.f32.mrf.mxu0 }
 0x11a   : > { %v1621_v46 = vpack.c.bf16 %v1029_v43, %v1028_v42  ;;  %v882_v47 = vpop.f32.mrf.mxu1  ;;  %v794_v48 = vadd.f32 %v1950_v0, %v793_v45  ;;  %v836_v42 = vadd.f32 %v1950_v0, %v2011_v41 }
 0x11c   : > { %1673 = vst [vmem:[%s1972_s16 + $0x30] sm:$0xff] %v1621_v46   ;;  %v883_v50 = vadd.f32 %v882_v47, %v794_v48 }
 0x11e   : > { %v972_v57 = vadd.f32 %v971_v24, %v883_v50 }
 0x11f   : > { %v922_v49 = vpop.f32.mrf.mxu3 }
 0x120   : > { %v1030_v61 = vmax.f32 %v972_v57, 0.0  ;;  %v923_v43 = vadd.f32 %v922_v49, %v834_v38 }
 0x121   : > { %v978_v51 = vpop.f32.mrf.mxu2  ;;  %v795_v54 = vpop.f32.mrf.mxu0 }
 0x122   : > { %v796_v55 = vadd.f32 %v1950_v0, %v795_v54  ;;  %v884_v56 = vpop.f32.mrf.mxu1 }
 0x124   : > { %v885_v58 = vadd.f32 %v884_v56, %v796_v55 }
 0x126   : > { %v974_v59 = vadd.f32 %v973_v33, %v885_v58 }
 0x127   : > { %v924_v60 = vpop.f32.mrf.mxu3 }
 0x128   : > { %v1031_v62 = vmax.f32 %v974_v59, 0.0  ;;  %v925_v46 = vadd.f32 %v924_v60, %v836_v42 }
 0x129   : > { %v981_v1 = vpop.f32.mrf.mxu2  ;;  %v798_v2 = vpop.f32.mrf.mxu0 }
 0x12a   : > { %v1626_v3 = vpack.c.bf16 %v1031_v62, %v1030_v61  ;;  %v887_v4 = vpop.f32.mrf.mxu1  ;;  %v799_v5 = vadd.f32 %v1950_v0, %v798_v2 }
 0x12c   : > { %1674 = vst [vmem:[%s1972_s16 + $0x38] sm:$0xff] %v1626_v3   ;;  %v888_v7 = vadd.f32 %v887_v4, %v799_v5 }
 0x12e   : > { %v977_v16 = vadd.f32 %v976_v44, %v888_v7 }
 0x12f   : > { %v1006_v6 = vpop.f32.mrf.mxu3 }
 0x130   : > { %v1007_v20 = vadd.f32 %v1006_v6, %v918_v15  ;;  %v1032_v23 = vmax.f32 %v977_v16, 0.0 }
 0x131   : > { %v983_v9 = vpop.f32.mrf.mxu2  ;;  %v800_v10 = vpop.f32.mrf.mxu0 }
 0x132   : > { %v801_v26 = vadd.f32 %v1950_v0, %v800_v10  ;;  %v889_v13 = vpop.f32.mrf.mxu1  ;;  %v1044_v29 = vmax.f32 %v1007_v20, 0.0 }
 0x134   : > { %v890_v18 = vadd.f32 %v889_v13, %v801_v26 }
 0x136   : > { %v979_v21 = vadd.f32 %v978_v51, %v890_v18 }
 0x137   : > { %v1008_v22 = vpop.f32.mrf.mxu3 }
 0x138   : > { %v1033_v24 = vmax.f32 %v979_v21, 0.0  ;;  %v1009_v25 = vadd.f32 %v1008_v22, %v920_v19 }
 0x139   : > { %v986_v27 = vpop.f32.mrf.mxu2  ;;  %v803_v63 = vpop.f32.mrf.mxu0 }
 0x13a   : > { %v1631_v30 = vpack.c.bf16 %v1033_v24, %v1032_v23  ;;  %v1045_v32 = vmax.f32 %v1009_v25, 0.0  ;;  %v892_v33 = vpop.f32.mrf.mxu1  ;;  %v804_v31 = vadd.f32 %v1950_v0, %v803_v63 }
 0x13c   : > { %1675 = vst [vmem:[%s1972_s16 + $0x40] sm:$0xff] %v1631_v30   ;;  %v1661_v17 = vpack.c.bf16 %v1045_v32, %v1044_v29  ;;  %v893_v53 = vadd.f32 %v892_v33, %v804_v31 }
 0x13e   : > { %1681 = vst [vmem:[%s1972_s16 + $0x70] sm:$0xff] %v1661_v17   ;;  %v982_v44 = vadd.f32 %v981_v1, %v893_v53 }
 0x13f   : > { %v1011_v34 = vpop.f32.mrf.mxu3 }
 0x140   : > { %v1012_v47 = vadd.f32 %v1011_v34, %v923_v43  ;;  %v1034_v51 = vmax.f32 %v982_v44, 0.0 }
 0x141   : > { %v988_v35 = vpop.f32.mrf.mxu2  ;;  %v805_v36 = vpop.f32.mrf.mxu0 }
 0x142   : > { %v806_v39 = vadd.f32 %v1950_v0, %v805_v36  ;;  %v894_v40 = vpop.f32.mrf.mxu1  ;;  %v1046_v57 = vmax.f32 %v1012_v47, 0.0 }
 0x144   : > { %v895_v45 = vadd.f32 %v894_v40, %v806_v39 }
 0x146   : > { %v984_v48 = vadd.f32 %v983_v9, %v895_v45 }
 0x147   : > { %v1013_v50 = vpop.f32.mrf.mxu3 }
 0x148   : > { %v1035_v54 = vmax.f32 %v984_v48, 0.0  ;;  %v1014_v55 = vadd.f32 %v1013_v50, %v925_v46 }
 0x149   : > { %v991_v56 = vpop.f32.mrf.mxu2  ;;  %v808_v28 = vpop.f32.mrf.mxu0 }
 0x14a   : > { %v1636_v58 = vpack.c.bf16 %v1035_v54, %v1034_v51  ;;  %v1047_v59 = vmax.f32 %v1014_v55, 0.0  ;;  %v897_v61 = vpop.f32.mrf.mxu1  ;;  %v809_v49 = vadd.f32 %v1950_v0, %v808_v28 }
 0x14c   : > { %1676 = vst [vmem:[%s1972_s16 + $0x48] sm:$0xff] %v1636_v58   ;;  %v1666_v41 = vpack.c.bf16 %v1047_v59, %v1046_v57  ;;  %v898_v60 = vadd.f32 %v897_v61, %v809_v49 }
 0x14e   : > { %1682 = vst [vmem:[%s1972_s16 + $0x78] sm:$0xff] %v1666_v41   ;;  %v987_v4 = vadd.f32 %v986_v27, %v898_v60 }
 0x150   : > { %v1036_v7 = vmax.f32 %v987_v4, 0.0 }
 0x151   : > { %v993_v62 = vpop.f32.mrf.mxu2  ;;  %v810_v1 = vpop.f32.mrf.mxu0 }
 0x152   : > { %v811_v2 = vadd.f32 %v1950_v0, %v810_v1  ;;  %v899_v3 = vpop.f32.mrf.mxu1 }
 0x154   : > { %v900_v5 = vadd.f32 %v899_v3, %v811_v2 }
 0x156   : > { %v989_v6 = vadd.f32 %v988_v35, %v900_v5 }
 0x158   : > { %v1037_v9 = vmax.f32 %v989_v6, 0.0 }
 0x159   : > { %v996_v10 = vpop.f32.mrf.mxu2  ;;  %v813_v11 = vpop.f32.mrf.mxu0 }
 0x15a   : > { %v1641_v26 = vpack.c.bf16 %v1037_v9, %v1036_v7  ;;  %v902_v13 = vpop.f32.mrf.mxu1  ;;  %v814_v14 = vadd.f32 %v1950_v0, %v813_v11  ;;  %v997_v15 = vadd.f32 %v996_v10, %v2017_v52 }
 0x15c   : > { %1677 = vst [vmem:[%s1972_s16 + $0x50] sm:$0xff] %v1641_v26   ;;  %v903_v16 = vadd.f32 %v902_v13, %v814_v14  ;;  %v1040_v23 = vmax.f32 %v997_v15, 0.0 }
 0x15e   : > { %v992_v24 = vadd.f32 %v991_v56, %v903_v16 }
 0x160   : > { %v1038_v30 = vmax.f32 %v992_v24, 0.0 }
 0x161   : > { %v998_v18 = vpop.f32.mrf.mxu2  ;;  %v815_v19 = vpop.f32.mrf.mxu0 }
 0x162   : > { %v999_v20 = vadd.f32 %v998_v18, %v2022_v8  ;;  %v816_v21 = vadd.f32 %v1950_v0, %v815_v19  ;;  %v904_v22 = vpop.f32.mrf.mxu1 }
 0x164   : > { %v1041_v25 = vmax.f32 %v999_v20, 0.0  ;;  %v905_v27 = vadd.f32 %v904_v22, %v816_v21 }
 0x166   : > { %v1651_v63 = vpack.c.bf16 %v1041_v25, %v1040_v23  ;;  %v994_v29 = vadd.f32 %v993_v62, %v905_v27 }
 0x168   : > { %1679 = vst [vmem:[%s1972_s16 + $0x60] sm:$0xff] %v1651_v63   ;;  %v1039_v32 = vmax.f32 %v994_v29, 0.0 }
 0x169   : > { %v1001_v52 = vpop.f32.mrf.mxu2 }
 0x16a   : > { %v1646_v33 = vpack.c.bf16 %v1039_v32, %v1038_v30  ;;  %v1002_v17 = vadd.f32 %v1001_v52, %v2028_v12 }
 0x16c   : > { %1678 = vst [vmem:[%s1972_s16 + $0x58] sm:$0xff] %v1646_v33   ;;  %v1042_v0 = vmax.f32 %v1002_v17, 0.0 }
 0x171   : > { %v1003_v31 = vpop.f32.mrf.mxu2 }
 0x172   : > { %v1004_v8 = vadd.f32 %v1003_v31, %v2033_v37 }
 0x174   : > { %v1043_v34 = vmax.f32 %v1004_v8, 0.0 }
 0x176   : > { %v1656_v53 = vpack.c.bf16 %v1043_v34, %v1042_v0 }
 0x178   : > { %1680 = vst [vmem:[%s1972_s16 + $0x68] sm:$0xff] %v1656_v53  }
 0x179 PF: > { %s13_s14 = sadd.s32 1, %s1749_s14   ;;  %s2083_s12 = smov %s1745_s13 }
 0x17a   : > { %p10_p5 = scmp.ge.s32.totalorder %s13_s14, 4   ;;  %s2084_s13 = smov %s2086_s15 }
 0x17c   :  { %12 = sbr.rel (!%p10_p5) target bundleno = 2 (0x2), region = 68 }

// kernel: yolact_forward.26
= control target key start
LH: loop header
LB: loop body
LE: loop exit
PB: predicated region body
PF: predicated region fallthrough
CT: control target
= control target key end

     0   :  { %s2159_s12 = smov 0   ;;  %s2161_s13 = smov 0   ;;  %s2551_s0 = inlined_call_operand.vmem [shape: bf16[1,704,288], index: 0, kind: input, shape index: {}]   ;;  %s2552_s1 = inlined_call_operand.vmem [shape: bf16[1,288,128], index: 1, kind: input, shape index: {}]   ;;  %s2553_s2 = inlined_call_operand.vmem [shape: f32[1,1,128], index: 2, kind: input, shape index: {}]   ;;  %s2554_s3 = inlined_call_operand.vmem [shape: bf16[1,704,128], index: 3, kind: output, shape index: {}]  }
   0x1   :  { %s2163_s14 = smov 0  }
   0x2 LB: > { %s22_s15 = sadd.s32 1, %s2133_s13  ;;  %p1493_p0 = scmp.ge.s32.totalorder %s2137_s14, 1  ;;  %s2137_s14 = sphi %s2163_s14, %s13_s14   ;;  %s2133_s13 = sphi %s2161_s13, %s2556_s13   ;;  %s2129_s12 = sphi %s2159_s12, %s2555_s12  }
   0x3   : > { %p23_p1 = scmp.ge.s32.totalorder %s22_s15, 2  ;;  %p177_p2 = scmp.lt.s32.totalorder %s2137_s14, 3 }
   0x5   : > { %s2558_s15 = smov (%p23_p1, %s22_s15), 0  ;;  %p178_p3 = pnand %p1493_p0, %p177_p2 }
   0x6   : > { %s218_s22 = smul.u32 (!%p178_p3), 44, %s2129_s12 }
   0x7   : > { %181 = sbr.rel (%p178_p3) target bundleno = 445 (0x1bd), region = 32 }
   0x8   : > { %p221_p4 = scmp.lt.s32.totalorder (!%p178_p3), %s218_s22, 87 }
   0xc   : > { %v1929_v0 = vld [vmem:[%s2552_s1 + $0x38] sm:$0xff]  ;;  %v2188_v2 = vld [vmem:[%s2552_s1 + $0x88] sm:$0xff]  ;;  %v1928_v3 = vld [vmem:[%s2552_s1 + $0x30] sm:$0xff]  ;;  %s2560_s22 = smov (!%p221_p4, %s218_s22), 87  ;;  %vm814_vm0 = vcmask 261120  }
   0xd   : > { %v2183_v1 = vld [vmem:[%s2552_s1 + $0x78] sm:$0xff]  ;;  %881 = vmatpush.bf16.msra.mxu0 %v1929_v0  ;;  %2071 = vmatpush.bf16.msra.mxu3 %v1929_v0  ;;  %v1936_v4 = vld [vmem:[%s2552_s1 + $0x70] sm:$0xff]  ;;  %v2201_v5 = vld [vmem:[%s2552_s1 + $0x80] sm:$0xff]  ;;  %s2089_s4 = smul.u32 12, %s2560_s22  ;;  %s1495_s10 = sshll.u32 %s2560_s22, 2 }
   0xe   : > { %1000 = vmatpush.bf16.msra.mxu1 %v2183_v1  ;;  %1125 = vmatpush.bf16.msra.mxu2 %v2188_v2  ;;  %v1927_v6 = vld [vmem:[%s2552_s1 + $0x28] sm:$0xff]  ;;  %v1926_v11 = vld [vmem:[%s2552_s1 + $0x20] sm:$0xff]  ;;  %v1925_v13 = vld [vmem:[%s2552_s1 + $0x18] sm:$0xff]  ;;  %s2359_s16 = scalar_lea.vmem %s2554_s3, %s1495_s10 }
   0xf   : > { %v1935_v7 = vld [vmem:[%s2552_s1 + $0x68] sm:$0xff]  ;;  %s2216_s9 = scalar_lea.vmem %s2551_s0, %s2089_s4  ;;  %v1934_v12 = vld [vmem:[%s2552_s1 + $0x60] sm:$0xff]  ;;  %v1933_v14 = vld [vmem:[%s2552_s1 + $0x58] sm:$0xff] }
  0x10   : > { %v1506_v8 = vld [vmem:[%s2216_s9 + $0x8] sm:$0xf]  ;;  %v1858_v9 = vld [vmem:[%s2216_s9 + $0x10] sm:$0xf0]  ;;  %v1518_v17 = vld [vmem:[%s2216_s9 + $0x20] sm:$0xf] }
  0x11   : > { %882 = vmatpush.bf16.msra.mxu0 %v1928_v3  ;;  %2072 = vmatpush.bf16.msra.mxu3 %v1928_v3  ;;  %v1507_v10 = vor.u32 %v1858_v9, %v1506_v8  ;;  %v1924_v15 = vld [vmem:[%s2552_s1 + $0x10] sm:$0xff]  ;;  %v1861_v18 = vld [vmem:[%s2216_s9 + $0x28] sm:$0xf0]  ;;  %v1922_v22 = vld [vmem:[%s2552_s1] sm:$0xff] }
  0x12   : > { %1001 = vmatpush.bf16.msra.mxu1 %v1936_v4  ;;  %1126 = vmatpush.bf16.msra.mxu2 %v2201_v5  ;;  %v1932_v16 = vld [vmem:[%s2552_s1 + $0x50] sm:$0xff]  ;;  %v1923_v19 = vld [vmem:[%s2552_s1 + $0x8] sm:$0xff]  ;;  %v1519_v21 = vor.u32 %v1861_v18, %v1518_v17  ;;  %v1498_v23 = vld [vmem:[%s2216_s9] sm:$0xf] }
  0x13   : > { %v1931_v20 = vld [vmem:[%s2552_s1 + $0x48] sm:$0xff]  ;;  %v1702_v25 = vld [vmem:[%s2216_s9 + $0x198] sm:$0xf]  ;;  %v1908_v26 = vld [vmem:[%s2216_s9 + $0x1a0] sm:$0xf0] }
  0x14   : > { %v1857_v24 = vld [vmem:[%s2216_s9 + $0x8] sm:$0xf0]  ;;  %v1930_v27 = vld [vmem:[%s2552_s1 + $0x40] sm:$0xff]  ;;  %v1500_v29 = vld [vmem:[%s2216_s9 + $0xc] sm:$0xf0]  ;;  %v1703_v31 = vor.u32 %v1908_v26, %v1702_v25 }
  0x15   : > { %883 = vmatpush.bf16.msra.mxu0 %v1927_v6  ;;  %2073 = vmatpush.bf16.msra.mxu3 %v1927_v6  ;;  %v1856_v28 = vld [vmem:[%s2216_s9 + $0x4] sm:$0xf]  ;;  %v1499_v30 = vor.u32 %v1857_v24, %v1498_v23  ;;  %v1530_v33 = vld [vmem:[%s2216_s9 + $0x38] sm:$0xf]  ;;  %v1714_v38 = vld [vmem:[%s2216_s9 + $0x1b0] sm:$0xf] }
  0x16   : > { %1002 = vmatpush.bf16.msra.mxu1 %v1935_v7  ;;  %1832 = vmatmul.msk.bf16.vlgmr.msra.gmra.mxu2 %vm814_vm0, %v1507_v10  ;;  %v1503_v32 = vor.u32 %v1856_v28, %v1500_v29  ;;  %v1864_v34 = vld [vmem:[%s2216_s9 + $0x40] sm:$0xf0]  ;;  %v1510_v36 = vld [vmem:[%s2216_s9 + $0x18] sm:$0xf]  ;;  %v1911_v39 = vld [vmem:[%s2216_s9 + $0x1b8] sm:$0xf0] }
  0x17   : > { %v1531_v35 = vor.u32 %v1864_v34, %v1530_v33  ;;  %v1860_v37 = vld [vmem:[%s2216_s9 + $0x20] sm:$0xf0]  ;;  %v1859_v40 = vld [vmem:[%s2216_s9 + $0x1c] sm:$0xf]  ;;  %v1512_v41 = vld [vmem:[%s2216_s9 + $0x24] sm:$0xf0]  ;;  %v1715_v43 = vor.u32 %v1911_v39, %v1714_v38 }
  0x18   : > { %v1511_v42 = vor.u32 %v1860_v37, %v1510_v36  ;;  %v1515_v44 = vor.u32 %v1859_v40, %v1512_v41  ;;  %v1542_v45 = vld [vmem:[%s2216_s9 + $0x50] sm:$0xf]  ;;  %v1867_v46 = vld [vmem:[%s2216_s9 + $0x58] sm:$0xf0]  ;;  %v1726_v50 = vld [vmem:[%s2216_s9 + $0x1c8] sm:$0xf] }
  0x19   : > { %884 = vmatpush.bf16.msra.mxu0 %v1926_v11  ;;  %2074 = vmatpush.bf16.msra.mxu3 %v1926_v11  ;;  %v1543_v47 = vor.u32 %v1867_v46, %v1542_v45  ;;  %v1522_v48 = vld [vmem:[%s2216_s9 + $0x30] sm:$0xf]  ;;  %v1863_v49 = vld [vmem:[%s2216_s9 + $0x38] sm:$0xf0]  ;;  %v1914_v51 = vld [vmem:[%s2216_s9 + $0x1d0] sm:$0xf0] }
  0x1a   : > { %1003 = vmatpush.bf16.msra.mxu1 %v1934_v12  ;;  %v1862_v52 = vld [vmem:[%s2216_s9 + $0x34] sm:$0xf]  ;;  %v1524_v53 = vld [vmem:[%s2216_s9 + $0x3c] sm:$0xf0]  ;;  %v1523_v54 = vor.u32 %v1863_v49, %v1522_v48  ;;  %v1727_v55 = vor.u32 %v1914_v51, %v1726_v50  ;;  %v1554_v57 = vld [vmem:[%s2216_s9 + $0x68] sm:$0xf] }
  0x1b   : > { %v1527_v56 = vor.u32 %v1862_v52, %v1524_v53  ;;  %v1870_v58 = vld [vmem:[%s2216_s9 + $0x70] sm:$0xf0]  ;;  %v1534_v60 = vld [vmem:[%s2216_s9 + $0x48] sm:$0xf]  ;;  %v1738_v62 = vld [vmem:[%s2216_s9 + $0x1e0] sm:$0xf] }
  0x1c   : > { %v1555_v59 = vor.u32 %v1870_v58, %v1554_v57  ;;  %v1866_v61 = vld [vmem:[%s2216_s9 + $0x50] sm:$0xf0]  ;;  %v1917_v63 = vld [vmem:[%s2216_s9 + $0x1e8] sm:$0xf0]  ;;  %v1546_v8 = vld [vmem:[%s2216_s9 + $0x60] sm:$0xf] }
  0x1d   : > { %885 = vmatpush.bf16.msra.mxu0 %v1925_v13  ;;  %2075 = vmatpush.bf16.msra.mxu3 %v1925_v13  ;;  %v1865_v0 = vld [vmem:[%s2216_s9 + $0x4c] sm:$0xf]  ;;  %v1739_v3 = vor.u32 %v1917_v63, %v1738_v62  ;;  %v1750_v10 = vld [vmem:[%s2216_s9 + $0x1f8] sm:$0xf]  ;;  %v1920_v11 = vld [vmem:[%s2216_s9 + $0x200] sm:$0xf0] }
  0x1e   : > { %1004 = vmatpush.bf16.msra.mxu1 %v1933_v14  ;;  %v1873_v6 = vld [vmem:[%s2216_s9 + $0x88] sm:$0xf0]  ;;  %v1548_v13 = vld [vmem:[%s2216_s9 + $0x6c] sm:$0xf0]  ;;  %v1578_v17 = vld [vmem:[%s2216_s9 + $0x98] sm:$0xf] }
  0x1f   : > { %v1869_v9 = vld [vmem:[%s2216_s9 + $0x68] sm:$0xf0]  ;;  %v1876_v18 = vld [vmem:[%s2216_s9 + $0xa0] sm:$0xf0]  ;;  %v1704_v23 = vld [vmem:[%s2216_s9 + $0x1a4] sm:$0xf0] }
  0x20   : > { %v1871_v24 = vld [vmem:[%s2216_s9 + $0x7c] sm:$0xf]  ;;  %v1560_v25 = vld [vmem:[%s2216_s9 + $0x84] sm:$0xf0]  ;;  %v1590_v29 = vld [vmem:[%s2216_s9 + $0xb0] sm:$0xf] }
  0x21   : > { %886 = vmatpush.bf16.msra.mxu0 %v1924_v15  ;;  %2076 = vmatpush.bf16.msra.mxu3 %v1924_v15  ;;  %v1751_v15 = vor.u32 %v1920_v11, %v1750_v10  ;;  %v1563_v28 = vor.u32 %v1871_v24, %v1560_v25  ;;  %v1875_v33 = vld [vmem:[%s2216_s9 + $0x98] sm:$0xf0]  ;;  %v1910_v34 = vld [vmem:[%s2216_s9 + $0x1b4] sm:$0xf]  ;;  %v1572_v37 = vld [vmem:[%s2216_s9 + $0x9c] sm:$0xf0] }
  0x22   : > { %1005 = vmatpush.bf16.msra.mxu1 %v1932_v16  ;;  %v1874_v36 = vld [vmem:[%s2216_s9 + $0x94] sm:$0xf]  ;;  %v1602_v41 = vld [vmem:[%s2216_s9 + $0xc8] sm:$0xf]  ;;  %v1913_v46 = vld [vmem:[%s2216_s9 + $0x1cc] sm:$0xf] }
  0x23   : > { %v1575_v40 = vor.u32 %v1874_v36, %v1572_v37  ;;  %v1878_v45 = vld [vmem:[%s2216_s9 + $0xb0] sm:$0xf0]  ;;  %v1877_v48 = vld [vmem:[%s2216_s9 + $0xac] sm:$0xf]  ;;  %v1584_v49 = vld [vmem:[%s2216_s9 + $0xb4] sm:$0xf0] }
  0x24   : > { %v1587_v52 = vor.u32 %v1877_v48, %v1584_v49  ;;  %v1594_v58 = vld [vmem:[%s2216_s9 + $0xc0] sm:$0xf]  ;;  %v1880_v62 = vld [vmem:[%s2216_s9 + $0xc4] sm:$0xf]  ;;  %v1596_v63 = vld [vmem:[%s2216_s9 + $0xcc] sm:$0xf0] }
  0x25   : > { %887 = vmatpush.bf16.msra.mxu0 %v1923_v19  ;;  %2077 = vmatpush.bf16.msra.mxu3 %v1923_v19  ;;  %v1579_v19 = vor.u32 %v1876_v18, %v1578_v17  ;;  %v1626_v10 = vld [vmem:[%s2216_s9 + $0xf8] sm:$0xf]  ;;  %v1888_v11 = vld [vmem:[%s2216_s9 + $0x100] sm:$0xf0]  ;;  %v1883_v24 = vld [vmem:[%s2216_s9 + $0xdc] sm:$0xf] }
  0x26   : > { %1006 = vmatpush.bf16.msra.mxu1 %v1931_v20  ;;  %1833 = vmatmul.msk.bf16.gmra.mxu2 %vm814_vm0, %v1519_v21  ;;  %v1872_v21 = vld [vmem:[%s2216_s9 + $0x80] sm:$0xf0]  ;;  %v1608_v25 = vld [vmem:[%s2216_s9 + $0xe4] sm:$0xf0]  ;;  %v1618_v48 = vld [vmem:[%s2216_s9 + $0xf0] sm:$0xf] }
  0x27   : > { %v1887_v49 = vld [vmem:[%s2216_s9 + $0xf8] sm:$0xf0] }
  0x29   : > { %888 = vmatpush.bf16.msra.mxu0 %v1922_v22  ;;  %2078 = vmatpush.bf16.msra.mxu3 %v1922_v22  ;;  %v1907_v22 = vld [vmem:[%s2216_s9 + $0x19c] sm:$0xf] }
  0x2a   : > { %1007 = vmatpush.bf16.msra.mxu1 %v1930_v27 }
  0x2c   : > { %889 = vmatmul.bf16.vlgmr.msra.gmra.mxu0 %v1499_v30  ;;  %974 = vmatmul.bf16.vlgmr.msra.gmra.mxu3 %v1703_v31  ;;  %v1879_v30 = vld [vmem:[%s2216_s9 + $0xb8] sm:$0xf0] }
  0x2d   : > { %2079 = vmatpush.bf16.msrb.mxu3 %v2183_v1  ;;  %1008 = vmatmul.bf16.vlgmr.msra.gmra.mxu1 %v1503_v32  ;;  %v1536_v1 = vld [vmem:[%s2216_s9 + $0x54] sm:$0xf0]  ;;  %v1591_v31 = vor.u32 %v1879_v30, %v1590_v29  ;;  %v1570_v32 = vld [vmem:[%s2216_s9 + $0x90] sm:$0xf] }
  0x2e   : > { %v1571_v38 = vor.u32 %v1875_v33, %v1570_v32  ;;  %v1611_v32 = vor.u32 %v1883_v24, %v1608_v25 }
  0x31   : > { %2080 = vmatpush.bf16.msrb.mxu3 %v1936_v4  ;;  %v1539_v4 = vor.u32 %v1865_v0, %v1536_v1  ;;  %v2338_v0 = vld [vmem:[%s2553_s2] ss:$0 sm:$0xff] }
  0x35   : > { %2081 = vmatpush.bf16.msrb.mxu3 %v1935_v7 }
  0x36   : > { %1834 = vmatmul.msk.bf16.gmra.mxu2 %vm814_vm0, %v1531_v35  ;;  %v1716_v35 = vld [vmem:[%s2216_s9 + $0x1bc] sm:$0xf0] }
  0x37   : > { %v1719_v39 = vor.u32 %v1910_v34, %v1716_v35 }
  0x39   : > { %2082 = vmatpush.bf16.msrb.mxu3 %v1934_v12  ;;  %v1868_v12 = vld [vmem:[%s2216_s9 + $0x64] sm:$0xf] }
  0x3c   : > { %894 = vmatmul.bf16.gmra.mxu0 %v1511_v42  ;;  %979 = vmatmul.bf16.gmra.mxu3 %v1715_v43  ;;  %v1882_v42 = vld [vmem:[%s2216_s9 + $0xd0] sm:$0xf0] }
  0x3d   : > { %2083 = vmatpush.bf16.msrb.mxu3 %v1933_v14  ;;  %1013 = vmatmul.bf16.gmra.mxu1 %v1515_v44  ;;  %v1547_v14 = vor.u32 %v1869_v9, %v1546_v8  ;;  %v1603_v43 = vor.u32 %v1882_v42, %v1602_v41  ;;  %v1582_v44 = vld [vmem:[%s2216_s9 + $0xa8] sm:$0xf] }
  0x3e   : > { %v1583_v50 = vor.u32 %v1878_v45, %v1582_v44 }
  0x41   : > { %2084 = vmatpush.bf16.msrb.mxu3 %v1932_v16  ;;  %v1551_v16 = vor.u32 %v1868_v12, %v1548_v13 }
  0x45   : > { %2085 = vmatpush.bf16.msrb.mxu3 %v1931_v20  ;;  %v1558_v20 = vld [vmem:[%s2216_s9 + $0x78] sm:$0xf] }
  0x46   : > { %1835 = vmatmul.msk.bf16.gmra.mxu2 %vm814_vm0, %v1543_v47  ;;  %v1559_v26 = vor.u32 %v1872_v21, %v1558_v20  ;;  %v1728_v47 = vld [vmem:[%s2216_s9 + $0x1d4] sm:$0xf0]  ;;  %v1884_v20 = vld [vmem:[%s2216_s9 + $0xe0] sm:$0xf0]  ;;  %v1919_v21 = vld [vmem:[%s2216_s9 + $0x1fc] sm:$0xf] }
  0x47   : > { %v1731_v51 = vor.u32 %v1913_v46, %v1728_v47 }
  0x49   : > { %2086 = vmatpush.bf16.msrb.mxu3 %v1930_v27  ;;  %v1707_v27 = vor.u32 %v1907_v22, %v1704_v23  ;;  %v1752_v22 = vld [vmem:[%s2216_s9 + $0x204] sm:$0xf0] }
  0x4a   : > { %v1755_v30 = vor.u32 %v1919_v21, %v1752_v22  ;;  %v1632_v21 = vld [vmem:[%s2216_s9 + $0x114] sm:$0xf0] }
  0x4c   : > { %899 = vmatmul.bf16.gmra.mxu0 %v1523_v54  ;;  %984 = vmatmul.bf16.gmra.mxu3 %v1727_v55  ;;  %v1614_v54 = vld [vmem:[%s2216_s9 + $0xe0] sm:$0xf]  ;;  %v1885_v55 = vld [vmem:[%s2216_s9 + $0xe8] sm:$0xf0] }
  0x4d   : > { %2087 = vmatpush.bf16.msra.mxu3 %v2188_v2  ;;  %1018 = vmatmul.bf16.gmra.mxu1 %v1527_v56  ;;  %v1535_v2 = vor.u32 %v1866_v61, %v1534_v60  ;;  %v1615_v57 = vor.u32 %v1885_v55, %v1614_v54  ;;  %v1916_v60 = vld [vmem:[%s2216_s9 + $0x1e4] sm:$0xf]  ;;  %v1740_v61 = vld [vmem:[%s2216_s9 + $0x1ec] sm:$0xf0]  ;;  %v1620_v54 = vld [vmem:[%s2216_s9 + $0xfc] sm:$0xf0] }
  0x51   : > { %2088 = vmatpush.bf16.msra.mxu3 %v2201_v5  ;;  %v1566_v5 = vld [vmem:[%s2216_s9 + $0x80] sm:$0xf] }
  0x52   : > { %v1567_v7 = vor.u32 %v1873_v6, %v1566_v5 }
  0x56   : > { %1836 = vmatmul.msk.bf16.gmra.mxu2 %vm814_vm0, %v1555_v59  ;;  %v1881_v59 = vld [vmem:[%s2216_s9 + $0xc8] sm:$0xf0] }
  0x57   : > { %v1595_v1 = vor.u32 %v1881_v59, %v1594_v58  ;;  %v1619_v58 = vor.u32 %v1887_v49, %v1618_v48  ;;  %v1746_v48 = vld [vmem:[%s2216_s9 + $0x1e8] sm:$0xf]  ;;  %v1918_v49 = vld [vmem:[%s2216_s9 + $0x1f0] sm:$0xf0] }
  0x5c   : > { %904 = vmatmul.bf16.gmra.mxu0 %v1535_v2  ;;  %989 = vmatmul.bf16.gmra.mxu3 %v1739_v3  ;;  %v1743_v2 = vor.u32 %v1916_v60, %v1740_v61 }
  0x5d   : > { %1023 = vmatmul.bf16.gmra.mxu1 %v1539_v4  ;;  %v1599_v4 = vor.u32 %v1880_v62, %v1596_v63 }
  0x66   : > { %1837 = vmatmul.msk.bf16.gmra.mxu2 %vm814_vm0, %v1567_v7 }
  0x6c   : > { %909 = vmatmul.bf16.gmra.mxu0 %v1547_v14  ;;  %994 = vmatmul.bf16.gmra.mxu3 %v1751_v15 }
  0x6d   : > { %1028 = vmatmul.bf16.gmra.mxu1 %v1551_v16  ;;  %v1627_v16 = vor.u32 %v1888_v11, %v1626_v10 }
  0x76   : > { %1838 = vmatmul.msk.bf16.gmra.mxu2 %vm814_vm0, %v1579_v19  ;;  %v1606_v19 = vld [vmem:[%s2216_s9 + $0xd8] sm:$0xf] }
  0x77   : > { %v1607_v29 = vor.u32 %v1884_v20, %v1606_v19  ;;  %v1889_v20 = vld [vmem:[%s2216_s9 + $0x10c] sm:$0xf] }
  0x7c   : > { %914 = vmatmul.bf16.gmra.mxu0 %v1559_v26  ;;  %1093 = vmatmul.bf16.vlgmr.msrb.gmra.mxu3 %v1707_v27 }
  0x7d   : > { %1033 = vmatmul.bf16.gmra.mxu1 %v1563_v28 }
  0x86   : > { %1839 = vmatmul.msk.bf16.gmra.mxu2 %vm814_vm0, %v1591_v31 }
  0x8c   : > { %919 = vmatmul.bf16.gmra.mxu0 %v1571_v38  ;;  %1098 = vmatmul.bf16.gmra.mxu3 %v1719_v39  ;;  %v1638_v39 = vld [vmem:[%s2216_s9 + $0x110] sm:$0xf] }
  0x8d   : > { %1038 = vmatmul.bf16.gmra.mxu1 %v1575_v40  ;;  %v1891_v40 = vld [vmem:[%s2216_s9 + $0x118] sm:$0xf0] }
  0x8e   : > { %v1639_v45 = vor.u32 %v1891_v40, %v1638_v39 }
  0x96   : > { %1840 = vmatmul.msk.bf16.gmra.mxu2 %vm814_vm0, %v1603_v43 }
  0x99   : > { %v1128_v53 = vpop.f32.mrf.mxu2 }
  0x9c   : > { %924 = vmatmul.bf16.gmra.mxu0 %v1583_v50  ;;  %1103 = vmatmul.bf16.gmra.mxu3 %v1731_v51  ;;  %v1722_v50 = vld [vmem:[%s2216_s9 + $0x1b8] sm:$0xf]  ;;  %v1912_v51 = vld [vmem:[%s2216_s9 + $0x1c0] sm:$0xf0] }
  0x9d   : > { %1043 = vmatmul.bf16.gmra.mxu1 %v1587_v52  ;;  %v1723_v59 = vor.u32 %v1912_v51, %v1722_v50  ;;  %v1892_v51 = vld [vmem:[%s2216_s9 + $0x124] sm:$0xf] }
  0xa1   : > { %v1130_v56 = vpop.f32.mrf.mxu2 }
  0xa6   : > { %1841 = vmatmul.msk.bf16.gmra.mxu2 %vm814_vm0, %v1615_v57 }
  0xa9   : > { %v890_v3 = vpop.f32.mrf.mxu0  ;;  %v1133_v6 = vpop.f32.mrf.mxu2 }
  0xaa   : > { %v1009_v5 = vpop.f32.mrf.mxu1  ;;  %v891_v7 = vadd.f32 %v2338_v0, %v890_v3 }
  0xac   : > { %929 = vmatmul.bf16.gmra.mxu0 %v1595_v1  ;;  %1108 = vmatmul.bf16.gmra.mxu3 %v1743_v2  ;;  %v1010_v9 = vadd.f32 %v1009_v5, %v891_v7  ;;  %v1650_v5 = vld [vmem:[%s2216_s9 + $0x128] sm:$0xf] }
  0xad   : > { %1048 = vmatmul.bf16.gmra.mxu1 %v1599_v4 }
  0xae   : > { %v1129_v17 = vadd.f32 %v1128_v53, %v1010_v9  ;;  %v1886_v53 = vld [vmem:[%s2216_s9 + $0xf4] sm:$0xf] }
  0xaf   : > { %v2341_v8 = vpop.f32.mrf.mxu3  ;;  %v1623_v61 = vor.u32 %v1886_v53, %v1620_v54 }
  0xb0   : > { %v1238_v27 = vmax.f32 %v1129_v17, 0.0  ;;  %v1734_v17 = vld [vmem:[%s2216_s9 + $0x1d0] sm:$0xf] }
  0xb1   : > { %v892_v12 = vpop.f32.mrf.mxu0  ;;  %v1135_v15 = vpop.f32.mrf.mxu2 }
  0xb2   : > { %v893_v13 = vadd.f32 %v2338_v0, %v892_v12  ;;  %v1011_v14 = vpop.f32.mrf.mxu1 }
  0xb4   : > { %v1012_v18 = vadd.f32 %v1011_v14, %v893_v13 }
  0xb6   : > { %v1131_v23 = vadd.f32 %v1130_v56, %v1012_v18  ;;  %1842 = vmatmul.msk.bf16.gmra.mxu2 %vm814_vm0, %v1627_v16  ;;  %v1890_v16 = vld [vmem:[%s2216_s9 + $0x110] sm:$0xf0]  ;;  %v1915_v18 = vld [vmem:[%s2216_s9 + $0x1d8] sm:$0xf0] }
  0xb7   : > { %v2354_v26 = vpop.f32.mrf.mxu3 }
  0xb8   : > { %v1239_v28 = vmax.f32 %v1131_v23, 0.0 }
  0xb9   : > { %v895_v31 = vpop.f32.mrf.mxu0  ;;  %v1138_v35 = vpop.f32.mrf.mxu2 }
  0xba   : > { %v1943_v33 = vpack.c.bf16 %v1239_v28, %v1238_v27  ;;  %v1014_v34 = vpop.f32.mrf.mxu1  ;;  %v896_v36 = vadd.f32 %v2338_v0, %v895_v31  ;;  %v1735_v27 = vor.u32 %v1915_v18, %v1734_v17  ;;  %v1758_v17 = vld [vmem:[%s2216_s9 + $0x200] sm:$0xf]  ;;  %v1921_v18 = vld [vmem:[%s2216_s9 + $0x208] sm:$0xf0] }
  0xbc   : > { %1944 = vst [vmem:[%s2359_s16] sm:$0xff] %v1943_v33   ;;  %934 = vmatmul.bf16.gmra.mxu0 %v1607_v29  ;;  %1113 = vmatmul.bf16.gmra.mxu3 %v1755_v30  ;;  %v1015_v38 = vadd.f32 %v1014_v34, %v896_v36  ;;  %v1635_v29 = vor.u32 %v1889_v20, %v1632_v21  ;;  %v1662_v36 = vld [vmem:[%s2216_s9 + $0x140] sm:$0xf]  ;;  %v1895_v20 = vld [vmem:[%s2216_s9 + $0x13c] sm:$0xf]  ;;  %v1656_v21 = vld [vmem:[%s2216_s9 + $0x144] sm:$0xf0] }
  0xbd   : > { %1053 = vmatmul.bf16.gmra.mxu1 %v1611_v32 }
  0xbe   : > { %v1134_v46 = vadd.f32 %v1133_v6, %v1015_v38  ;;  %v1894_v6 = vld [vmem:[%s2216_s9 + $0x130] sm:$0xf0]  ;;  %v1897_v38 = vld [vmem:[%s2216_s9 + $0x148] sm:$0xf0] }
  0xbf   : > { %v2363_v37 = vpop.f32.mrf.mxu3  ;;  %v1651_v12 = vor.u32 %v1894_v6, %v1650_v5  ;;  %v1674_v5 = vld [vmem:[%s2216_s9 + $0x158] sm:$0xf]  ;;  %v1900_v6 = vld [vmem:[%s2216_s9 + $0x160] sm:$0xf0] }
  0xc0   : > { %v1240_v56 = vmax.f32 %v1134_v46, 0.0  ;;  %v1642_v46 = vld [vmem:[%s2216_s9 + $0x120] sm:$0xf] }
  0xc1   : > { %v897_v41 = vpop.f32.mrf.mxu0  ;;  %v1140_v44 = vpop.f32.mrf.mxu2 }
  0xc2   : > { %v898_v42 = vadd.f32 %v2338_v0, %v897_v41  ;;  %v1016_v43 = vpop.f32.mrf.mxu1 }
  0xc4   : > { %v1017_v47 = vadd.f32 %v1016_v43, %v898_v42  ;;  %v1663_v43 = vor.u32 %v1897_v38, %v1662_v36  ;;  %v976_v36 = vadd.f32 %v2338_v0, %v2341_v8  ;;  %v978_v8 = vadd.f32 %v2338_v0, %v2354_v26 }
  0xc6   : > { %v1136_v52 = vadd.f32 %v1135_v15, %v1017_v47  ;;  %1843 = vmatmul.msk.bf16.gmra.mxu2 %vm814_vm0, %v1639_v45  ;;  %v1630_v15 = vld [vmem:[%s2216_s9 + $0x108] sm:$0xf]  ;;  %v1893_v47 = vld [vmem:[%s2216_s9 + $0x128] sm:$0xf0] }
  0xc7   : > { %v2375_v55 = vpop.f32.mrf.mxu3  ;;  %v1631_v25 = vor.u32 %v1890_v16, %v1630_v15  ;;  %v1654_v15 = vld [vmem:[%s2216_s9 + $0x138] sm:$0xf]  ;;  %v1896_v16 = vld [vmem:[%s2216_s9 + $0x140] sm:$0xf0] }
  0xc8   : > { %v1241_v57 = vmax.f32 %v1136_v52, 0.0  ;;  %v1644_v52 = vld [vmem:[%s2216_s9 + $0x12c] sm:$0xf0] }
  0xc9   : > { %v900_v60 = vpop.f32.mrf.mxu0  ;;  %v1143_v1 = vpop.f32.mrf.mxu2 }
  0xca   : > { %v1948_v62 = vpack.c.bf16 %v1241_v57, %v1240_v56  ;;  %v1019_v63 = vpop.f32.mrf.mxu1  ;;  %v901_v2 = vadd.f32 %v2338_v0, %v900_v60  ;;  %v1643_v57 = vor.u32 %v1893_v47, %v1642_v46  ;;  %v1647_v60 = vor.u32 %v1892_v51, %v1644_v52  ;;  %v1899_v51 = vld [vmem:[%s2216_s9 + $0x158] sm:$0xf0] }
  0xcc   : > { %2050 = vst [vmem:[%s2359_s16 + $0x8] sm:$0xff] %v1948_v62   ;;  %939 = vmatmul.bf16.gmra.mxu0 %v1619_v58  ;;  %1850 = vmatmul.msk.bf16.vlgmr.msra.gmra.mxu3 %vm814_vm0, %v1723_v59  ;;  %v1020_v4 = vadd.f32 %v1019_v63, %v901_v2  ;;  %v1747_v58 = vor.u32 %v1918_v49, %v1746_v48 }
  0xcd   : > { %1058 = vmatmul.bf16.gmra.mxu1 %v1623_v61 }
  0xce   : > { %v1139_v13 = vadd.f32 %v1138_v35, %v1020_v4 }
  0xcf   : > { %v2380_v3 = vpop.f32.mrf.mxu3 }
  0xd0   : > { %v1242_v23 = vmax.f32 %v1139_v13, 0.0 }
  0xd1   : > { %v902_v7 = vpop.f32.mrf.mxu0  ;;  %v1145_v11 = vpop.f32.mrf.mxu2 }
  0xd2   : > { %v903_v9 = vadd.f32 %v2338_v0, %v902_v7  ;;  %v1021_v10 = vpop.f32.mrf.mxu1 }
  0xd4   : > { %v1022_v14 = vadd.f32 %v1021_v10, %v903_v9 }
  0xd6   : > { %v1141_v19 = vadd.f32 %v1140_v44, %v1022_v14  ;;  %1844 = vmatmul.msk.bf16.gmra.mxu2 %vm814_vm0, %v1651_v12  ;;  %v1675_v12 = vor.u32 %v1900_v6, %v1674_v5  ;;  %v981_v6 = vadd.f32 %v2338_v0, %v2363_v37 }
  0xd7   : > { %v2392_v22 = vpop.f32.mrf.mxu3 }
  0xd8   : > { %v1243_v24 = vmax.f32 %v1141_v19, 0.0 }
  0xd9   : > { %v905_v28 = vpop.f32.mrf.mxu0  ;;  %v1148_v32 = vpop.f32.mrf.mxu2 }
  0xda   : > { %v1953_v30 = vpack.c.bf16 %v1243_v24, %v1242_v23  ;;  %v1024_v31 = vpop.f32.mrf.mxu1  ;;  %v906_v33 = vadd.f32 %v2338_v0, %v905_v28  ;;  %v1759_v28 = vor.u32 %v1921_v18, %v1758_v17 }
  0xdc   : > { %2051 = vst [vmem:[%s2359_s16 + $0x10] sm:$0xff] %v1953_v30   ;;  %944 = vmatmul.bf16.gmra.mxu0 %v1631_v25  ;;  %1851 = vmatmul.msk.bf16.gmra.mxu3 %vm814_vm0, %v1735_v27  ;;  %v1025_v35 = vadd.f32 %v1024_v31, %v906_v33  ;;  %v1655_v27 = vor.u32 %v1896_v16, %v1654_v15 }
  0xdd   : > { %1063 = vmatmul.bf16.gmra.mxu1 %v1635_v29  ;;  %v1659_v30 = vor.u32 %v1895_v20, %v1656_v21  ;;  %v1678_v20 = vld [vmem:[%s2216_s9 + $0x168] sm:$0xf]  ;;  %v1902_v21 = vld [vmem:[%s2216_s9 + $0x170] sm:$0xf0] }
  0xde   : > { %v1144_v44 = vadd.f32 %v1143_v1, %v1025_v35 }
  0xdf   : > { %v2397_v34 = vpop.f32.mrf.mxu3 }
  0xe0   : > { %v1244_v54 = vmax.f32 %v1144_v44, 0.0 }
  0xe1   : > { %v907_v39 = vpop.f32.mrf.mxu0  ;;  %v1150_v42 = vpop.f32.mrf.mxu2 }
  0xe2   : > { %v908_v40 = vadd.f32 %v2338_v0, %v907_v39  ;;  %v1026_v41 = vpop.f32.mrf.mxu1 }
  0xe4   : > { %v1027_v45 = vadd.f32 %v1026_v41, %v908_v40  ;;  %v1686_v41 = vld [vmem:[%s2216_s9 + $0x170] sm:$0xf] }
  0xe6   : > { %v1146_v50 = vadd.f32 %v1145_v11, %v1027_v45  ;;  %1845 = vmatmul.msk.bf16.gmra.mxu2 %vm814_vm0, %v1663_v43 }
  0xe7   : > { %v2409_v53 = vpop.f32.mrf.mxu3 }
  0xe8   : > { %v1245_v56 = vmax.f32 %v1146_v50, 0.0  ;;  %v1666_v50 = vld [vmem:[%s2216_s9 + $0x150] sm:$0xf] }
  0xe9   : > { %v910_v59 = vpop.f32.mrf.mxu0  ;;  %v1153_v63 = vpop.f32.mrf.mxu2 }
  0xea   : > { %v1958_v61 = vpack.c.bf16 %v1245_v56, %v1244_v54  ;;  %v1029_v62 = vpop.f32.mrf.mxu1  ;;  %v911_v1 = vadd.f32 %v2338_v0, %v910_v59  ;;  %v1898_v54 = vld [vmem:[%s2216_s9 + $0x154] sm:$0xf]  ;;  %v1668_v56 = vld [vmem:[%s2216_s9 + $0x15c] sm:$0xf0] }
  0xec   : > { %2052 = vst [vmem:[%s2359_s16 + $0x18] sm:$0xff] %v1958_v61   ;;  %949 = vmatmul.bf16.gmra.mxu0 %v1643_v57  ;;  %1852 = vmatmul.msk.bf16.gmra.mxu3 %vm814_vm0, %v1747_v58  ;;  %v1030_v4 = vadd.f32 %v1029_v62, %v911_v1  ;;  %v1667_v61 = vor.u32 %v1899_v51, %v1666_v50 }
  0xed   : > { %1068 = vmatmul.bf16.gmra.mxu1 %v1647_v60 }
  0xee   : > { %v1149_v13 = vadd.f32 %v1148_v32, %v1030_v4 }
  0xef   : > { %v2414_v2 = vpop.f32.mrf.mxu3 }
  0xf0   : > { %v1246_v24 = vmax.f32 %v1149_v13, 0.0 }
  0xf1   : > { %v912_v7 = vpop.f32.mrf.mxu0  ;;  %v1155_v11 = vpop.f32.mrf.mxu2 }
  0xf2   : > { %v913_v9 = vadd.f32 %v2338_v0, %v912_v7  ;;  %v1031_v10 = vpop.f32.mrf.mxu1 }
  0xf4   : > { %v1032_v14 = vadd.f32 %v1031_v10, %v913_v9 }
  0xf6   : > { %v1151_v19 = vadd.f32 %v1150_v42, %v1032_v14  ;;  %1846 = vmatmul.msk.bf16.gmra.mxu2 %vm814_vm0, %v1675_v12  ;;  %v1903_v42 = vld [vmem:[%s2216_s9 + $0x178] sm:$0xf0]  ;;  %v1906_v12 = vld [vmem:[%s2216_s9 + $0x190] sm:$0xf0] }
  0xf7   : > { %v2426_v23 = vpop.f32.mrf.mxu3  ;;  %v1687_v47 = vor.u32 %v1903_v42, %v1686_v41 }
  0xf8   : > { %v1247_v25 = vmax.f32 %v1151_v19, 0.0 }
  0xf9   : > { %v915_v29 = vpop.f32.mrf.mxu0  ;;  %v1158_v33 = vpop.f32.mrf.mxu2 }
  0xfa   : > { %v1963_v31 = vpack.c.bf16 %v1247_v25, %v1246_v24  ;;  %v1034_v32 = vpop.f32.mrf.mxu1  ;;  %v916_v35 = vadd.f32 %v2338_v0, %v915_v29  ;;  %v1901_v24 = vld [vmem:[%s2216_s9 + $0x16c] sm:$0xf]  ;;  %v1680_v25 = vld [vmem:[%s2216_s9 + $0x174] sm:$0xf0] }
  0xfc   : > { %2053 = vst [vmem:[%s2359_s16 + $0x20] sm:$0xff] %v1963_v31   ;;  %954 = vmatmul.bf16.gmra.mxu0 %v1655_v27  ;;  %1853 = vmatmul.msk.bf16.gmra.mxu3 %vm814_vm0, %v1759_v28  ;;  %v1035_v39 = vadd.f32 %v1034_v32, %v916_v35  ;;  %v1683_v32 = vor.u32 %v1901_v24, %v1680_v25 }
  0xfd   : > { %1073 = vmatmul.bf16.gmra.mxu1 %v1659_v30  ;;  %v1679_v30 = vor.u32 %v1902_v21, %v1678_v20 }
  0xfe   : > { %v1154_v48 = vadd.f32 %v1153_v63, %v1035_v39  ;;  %v1671_v63 = vor.u32 %v1898_v54, %v1668_v56  ;;  %v986_v39 = vadd.f32 %v2338_v0, %v2380_v3  ;;  %v1905_v54 = vld [vmem:[%s2216_s9 + $0x188] sm:$0xf0]  ;;  %v1904_v56 = vld [vmem:[%s2216_s9 + $0x184] sm:$0xf] }
  0xff   : > { %v1094_v38 = vpop.f32.mrf.mxu3 }
 0x100   : > { %v2433_v40 = vadd.f32 %v1094_v38, %v976_v36  ;;  %v1248_v58 = vmax.f32 %v1154_v48, 0.0 }
 0x101   : > { %v917_v43 = vpop.f32.mrf.mxu0  ;;  %v1160_v46 = vpop.f32.mrf.mxu2 }
 0x102   : > { %v918_v44 = vadd.f32 %v2338_v0, %v917_v43  ;;  %v1036_v45 = vpop.f32.mrf.mxu1 }
 0x104   : > { %v1037_v49 = vadd.f32 %v1036_v45, %v918_v44  ;;  %v1710_v44 = vld [vmem:[%s2216_s9 + $0x1a0] sm:$0xf]  ;;  %v1909_v45 = vld [vmem:[%s2216_s9 + $0x1a8] sm:$0xf0] }
 0x105   : > { %v1711_v50 = vor.u32 %v1909_v45, %v1710_v44 }
 0x106   : > { %v1156_v52 = vadd.f32 %v1155_v11, %v1037_v49  ;;  %1847 = vmatmul.msk.bf16.gmra.mxu2 %vm814_vm0, %v1687_v47  ;;  %v1698_v11 = vld [vmem:[%s2216_s9 + $0x188] sm:$0xf] }
 0x107   : > { %v1096_v57 = vpop.f32.mrf.mxu3  ;;  %v1699_v17 = vor.u32 %v1906_v12, %v1698_v11 }
 0x108   : > { %v1249_v59 = vmax.f32 %v1156_v52, 0.0  ;;  %v2445_v60 = vadd.f32 %v1096_v57, %v978_v8  ;;  %v1690_v52 = vld [vmem:[%s2216_s9 + $0x180] sm:$0xf]  ;;  %v1692_v57 = vld [vmem:[%s2216_s9 + $0x18c] sm:$0xf0] }
 0x109   : > { %v920_v62 = vpop.f32.mrf.mxu0  ;;  %v1163_v5 = vpop.f32.mrf.mxu2 }
 0x10a   : > { %v1968_v1 = vpack.c.bf16 %v1249_v59, %v1248_v58  ;;  %v1039_v4 = vpop.f32.mrf.mxu1  ;;  %v921_v26 = vadd.f32 %v2338_v0, %v920_v62  ;;  %v1691_v62 = vor.u32 %v1905_v54, %v1690_v52 }
 0x10c   : > { %2054 = vst [vmem:[%s2359_s16 + $0x28] sm:$0xff] %v1968_v1   ;;  %959 = vmatmul.bf16.gmra.mxu0 %v1667_v61  ;;  %v1040_v9 = vadd.f32 %v1039_v4, %v921_v26  ;;  %v1695_v1 = vor.u32 %v1904_v56, %v1692_v57 }
 0x10d   : > { %1078 = vmatmul.bf16.gmra.mxu1 %v1671_v63 }
 0x10e   : > { %v1159_v18 = vadd.f32 %v1158_v33, %v1040_v9 }
 0x10f   : > { %v1099_v7 = vpop.f32.mrf.mxu3 }
 0x110   : > { %v2451_v10 = vadd.f32 %v1099_v7, %v981_v6  ;;  %v1250_v28 = vmax.f32 %v1159_v18, 0.0  ;;  %v991_v7 = vadd.f32 %v2338_v0, %v2397_v34 }
 0x111   : > { %v922_v13 = vpop.f32.mrf.mxu0  ;;  %v1165_v16 = vpop.f32.mrf.mxu2 }
 0x112   : > { %v923_v14 = vadd.f32 %v2338_v0, %v922_v13  ;;  %v1041_v15 = vpop.f32.mrf.mxu1 }
 0x114   : > { %v1042_v19 = vadd.f32 %v1041_v15, %v923_v14 }
 0x116   : > { %v1161_v37 = vadd.f32 %v1160_v46, %v1042_v19  ;;  %1848 = vmatmul.msk.bf16.gmra.mxu2 %vm814_vm0, %v1699_v17 }
 0x117   : > { %v2461_v27 = vpop.f32.mrf.mxu3 }
 0x118   : > { %v1251_v29 = vmax.f32 %v1161_v37, 0.0 }
 0x119   : > { %v925_v31 = vpop.f32.mrf.mxu0  ;;  %v1168_v36 = vpop.f32.mrf.mxu2 }
 0x11a   : > { %v1973_v35 = vpack.c.bf16 %v1251_v29, %v1250_v28  ;;  %v1044_v33 = vpop.f32.mrf.mxu1  ;;  %v926_v38 = vadd.f32 %v2338_v0, %v925_v31 }
 0x11c   : > { %2055 = vst [vmem:[%s2359_s16 + $0x30] sm:$0xff] %v1973_v35   ;;  %964 = vmatmul.bf16.gmra.mxu0 %v1679_v30  ;;  %v1045_v42 = vadd.f32 %v1044_v33, %v926_v38  ;;  %v996_v30 = vadd.f32 %v2338_v0, %v2414_v2 }
 0x11d   : > { %1083 = vmatmul.bf16.gmra.mxu1 %v1683_v32 }
 0x11e   : > { %v1164_v51 = vadd.f32 %v1163_v5, %v1045_v42 }
 0x11f   : > { %v1104_v41 = vpop.f32.mrf.mxu3 }
 0x120   : > { %v2467_v43 = vadd.f32 %v1104_v41, %v986_v39  ;;  %v1252_v59 = vmax.f32 %v1164_v51, 0.0 }
 0x121   : > { %v927_v46 = vpop.f32.mrf.mxu0  ;;  %v1170_v49 = vpop.f32.mrf.mxu2 }
 0x122   : > { %v928_v47 = vadd.f32 %v2338_v0, %v927_v46  ;;  %v1046_v48 = vpop.f32.mrf.mxu1 }
 0x124   : > { %v1047_v8 = vadd.f32 %v1046_v48, %v928_v47 }
 0x126   : > { %v1166_v3 = vadd.f32 %v1165_v16, %v1047_v8  ;;  %1849 = vmatmul.msk.bf16.gmra.mxu2 %vm814_vm0, %v1711_v50 }
 0x127   : > { %v2477_v58 = vpop.f32.mrf.mxu3 }
 0x128   : > { %v1253_v61 = vmax.f32 %v1166_v3, 0.0 }
 0x129   : > { %v930_v63 = vpop.f32.mrf.mxu0  ;;  %v1173_v6 = vpop.f32.mrf.mxu2 }
 0x12a   : > { %v1978_v4 = vpack.c.bf16 %v1253_v61, %v1252_v59  ;;  %v1049_v26 = vpop.f32.mrf.mxu1  ;;  %v931_v5 = vadd.f32 %v2338_v0, %v930_v63  ;;  %v983_v59 = vadd.f32 %v2338_v0, %v2375_v55 }
 0x12c   : > { %2056 = vst [vmem:[%s2359_s16 + $0x38] sm:$0xff] %v1978_v4   ;;  %969 = vmatmul.bf16.gmra.mxu0 %v1691_v62  ;;  %v1050_v11 = vadd.f32 %v1049_v26, %v931_v5  ;;  %v1102_v63 = vadd.f32 %v2461_v27, %v983_v59 }
 0x12d   : > { %1088 = vmatmul.bf16.gmra.mxu1 %v1695_v1 }
 0x12e   : > { %v1169_v17 = vadd.f32 %v1168_v36, %v1050_v11 }
 0x12f   : > { %v1109_v9 = vpop.f32.mrf.mxu3 }
 0x130   : > { %v2483_v12 = vadd.f32 %v1109_v9, %v991_v7  ;;  %v1254_v21 = vmax.f32 %v1169_v17, 0.0 }
 0x131   : > { %v932_v13 = vpop.f32.mrf.mxu0  ;;  %v1175_v16 = vpop.f32.mrf.mxu2 }
 0x132   : > { %v933_v14 = vadd.f32 %v2338_v0, %v932_v13  ;;  %v1051_v15 = vpop.f32.mrf.mxu1 }
 0x134   : > { %v1052_v18 = vadd.f32 %v1051_v15, %v933_v14 }
 0x136   : > { %v1171_v19 = vadd.f32 %v1170_v49, %v1052_v18 }
 0x137   : > { %v2486_v20 = vpop.f32.mrf.mxu3 }
 0x138   : > { %v1255_v37 = vmax.f32 %v1171_v19, 0.0 }
 0x139   : > { %v935_v24 = vpop.f32.mrf.mxu0  ;;  %v1178_v28 = vpop.f32.mrf.mxu2 }
 0x13a   : > { %v1983_v25 = vpack.c.bf16 %v1255_v37, %v1254_v21  ;;  %v1054_v34 = vpop.f32.mrf.mxu1  ;;  %v936_v29 = vadd.f32 %v2338_v0, %v935_v24  ;;  %v988_v24 = vadd.f32 %v2338_v0, %v2392_v22 }
 0x13c   : > { %2057 = vst [vmem:[%s2359_s16 + $0x40] sm:$0xff] %v1983_v25   ;;  %v1055_v32 = vadd.f32 %v1054_v34, %v936_v29 }
 0x13e   : > { %v1174_v41 = vadd.f32 %v1173_v6, %v1055_v32 }
 0x13f   : > { %v1114_v31 = vpop.f32.mrf.mxu3 }
 0x140   : > { %v2492_v35 = vadd.f32 %v1114_v31, %v996_v30  ;;  %v1256_v46 = vmax.f32 %v1174_v41, 0.0 }
 0x141   : > { %v937_v33 = vpop.f32.mrf.mxu0  ;;  %v1180_v39 = vpop.f32.mrf.mxu2 }
 0x142   : > { %v938_v36 = vadd.f32 %v2338_v0, %v937_v33  ;;  %v1056_v38 = vpop.f32.mrf.mxu1 }
 0x144   : > { %v1057_v42 = vadd.f32 %v1056_v38, %v938_v36 }
 0x146   : > { %v1176_v44 = vadd.f32 %v1175_v16, %v1057_v42 }
 0x147   : > { %v2495_v45 = vpop.f32.mrf.mxu3 }
 0x148   : > { %v1257_v47 = vmax.f32 %v1176_v44, 0.0 }
 0x149   : > { %v940_v48 = vpop.f32.mrf.mxu0  ;;  %v1183_v50 = vpop.f32.mrf.mxu2 }
 0x14a   : > { %v1988_v49 = vpack.c.bf16 %v1257_v47, %v1256_v46  ;;  %v1059_v2 = vpop.f32.mrf.mxu1  ;;  %v941_v51 = vadd.f32 %v2338_v0, %v940_v48 }
 0x14c   : > { %2058 = vst [vmem:[%s2359_s16 + $0x48] sm:$0xff] %v1988_v49   ;;  %v1060_v52 = vadd.f32 %v1059_v2, %v941_v51  ;;  %v993_v51 = vadd.f32 %v2338_v0, %v2409_v53 }
 0x14e   : > { %v1179_v61 = vadd.f32 %v1178_v28, %v1060_v52  ;;  %v1107_v28 = vadd.f32 %v2477_v58, %v988_v24 }
 0x14f   : > { %v1218_v8 = vpop.f32.mrf.mxu3 }
 0x150   : > { %v1219_v1 = vadd.f32 %v1218_v8, %v2451_v10  ;;  %v1258_v6 = vmax.f32 %v1179_v61, 0.0 }
 0x151   : > { %v942_v54 = vpop.f32.mrf.mxu0  ;;  %v1185_v57 = vpop.f32.mrf.mxu2 }
 0x152   : > { %v943_v3 = vadd.f32 %v2338_v0, %v942_v54  ;;  %v1061_v56 = vpop.f32.mrf.mxu1  ;;  %v1274_v11 = vmax.f32 %v1219_v1, 0.0  ;;  %v1112_v54 = vadd.f32 %v2486_v20, %v993_v51 }
 0x154   : > { %v1062_v62 = vadd.f32 %v1061_v56, %v943_v3 }
 0x156   : > { %v1181_v4 = vadd.f32 %v1180_v39, %v1062_v62 }
 0x157   : > { %v1220_v26 = vpop.f32.mrf.mxu3 }
 0x158   : > { %v1259_v5 = vmax.f32 %v1181_v4, 0.0  ;;  %v1221_v7 = vadd.f32 %v1220_v26, %v1102_v63 }
 0x159   : > { %v945_v9 = vpop.f32.mrf.mxu0  ;;  %v1188_v16 = vpop.f32.mrf.mxu2 }
 0x15a   : > { %v1993_v13 = vpack.c.bf16 %v1259_v5, %v1258_v6  ;;  %v1275_v14 = vmax.f32 %v1221_v7, 0.0  ;;  %v1064_v15 = vpop.f32.mrf.mxu1  ;;  %v946_v17 = vadd.f32 %v2338_v0, %v945_v9 }
 0x15c   : > { %2059 = vst [vmem:[%s2359_s16 + $0x50] sm:$0xff] %v1993_v13   ;;  %v2033_v55 = vpack.c.bf16 %v1275_v14, %v1274_v11  ;;  %v1065_v18 = vadd.f32 %v1064_v15, %v946_v17  ;;  %v998_v15 = vadd.f32 %v2338_v0, %v2426_v23 }
 0x15e   : > { %2067 = vst [vmem:[%s2359_s16 + $0x90] sm:$0xff] %v2033_v55   ;;  %v1184_v25 = vadd.f32 %v1183_v50, %v1065_v18  ;;  %v1117_v17 = vadd.f32 %v2495_v45, %v998_v15 }
 0x15f   : > { %v1223_v27 = vpop.f32.mrf.mxu3 }
 0x160   : > { %v1224_v29 = vadd.f32 %v1223_v27, %v2467_v43  ;;  %v1260_v32 = vmax.f32 %v1184_v25, 0.0 }
 0x161   : > { %v947_v19 = vpop.f32.mrf.mxu0  ;;  %v1190_v37 = vpop.f32.mrf.mxu2 }
 0x162   : > { %v948_v10 = vadd.f32 %v2338_v0, %v947_v19  ;;  %v1066_v21 = vpop.f32.mrf.mxu1  ;;  %v1276_v39 = vmax.f32 %v1224_v29, 0.0 }
 0x164   : > { %v1067_v34 = vadd.f32 %v1066_v21, %v948_v10 }
 0x166   : > { %v1186_v30 = vadd.f32 %v1185_v57, %v1067_v34 }
 0x167   : > { %v1225_v31 = vpop.f32.mrf.mxu3 }
 0x168   : > { %v1261_v33 = vmax.f32 %v1186_v30, 0.0  ;;  %v1226_v36 = vadd.f32 %v1225_v31, %v1107_v28 }
 0x169   : > { %v950_v38 = vpop.f32.mrf.mxu0  ;;  %v1193_v46 = vpop.f32.mrf.mxu2 }
 0x16a   : > { %v1998_v41 = vpack.c.bf16 %v1261_v33, %v1260_v32  ;;  %v1277_v42 = vmax.f32 %v1226_v36, 0.0  ;;  %v1069_v44 = vpop.f32.mrf.mxu1  ;;  %v951_v47 = vadd.f32 %v2338_v0, %v950_v38 }
 0x16c   : > { %2060 = vst [vmem:[%s2359_s16 + $0x58] sm:$0xff] %v1998_v41   ;;  %v2038_v22 = vpack.c.bf16 %v1277_v42, %v1276_v39  ;;  %v1070_v48 = vadd.f32 %v1069_v44, %v951_v47 }
 0x16e   : > { %2068 = vst [vmem:[%s2359_s16 + $0x98] sm:$0xff] %v2038_v22   ;;  %v1189_v8 = vadd.f32 %v1188_v16, %v1070_v48 }
 0x16f   : > { %v1228_v58 = vpop.f32.mrf.mxu3 }
 0x170   : > { %v1229_v3 = vadd.f32 %v1228_v58, %v2483_v12  ;;  %v1262_v59 = vmax.f32 %v1189_v8, 0.0 }
 0x171   : > { %v952_v49 = vpop.f32.mrf.mxu0  ;;  %v1195_v50 = vpop.f32.mrf.mxu2 }
 0x172   : > { %v953_v43 = vadd.f32 %v2338_v0, %v952_v49  ;;  %v1071_v2 = vpop.f32.mrf.mxu1  ;;  %v1278_v1 = vmax.f32 %v1229_v3, 0.0 }
 0x174   : > { %v1072_v52 = vadd.f32 %v1071_v2, %v953_v43 }
 0x176   : > { %v1191_v56 = vadd.f32 %v1190_v37, %v1072_v52 }
 0x177   : > { %v1230_v57 = vpop.f32.mrf.mxu3 }
 0x178   : > { %v1263_v61 = vmax.f32 %v1191_v56, 0.0  ;;  %v1231_v62 = vadd.f32 %v1230_v57, %v1112_v54 }
 0x179   : > { %v955_v63 = vpop.f32.mrf.mxu0  ;;  %v1198_v5 = vpop.f32.mrf.mxu2 }
 0x17a   : > { %v2003_v4 = vpack.c.bf16 %v1263_v61, %v1262_v59  ;;  %v1279_v26 = vmax.f32 %v1231_v62, 0.0  ;;  %v1074_v6 = vpop.f32.mrf.mxu1  ;;  %v956_v7 = vadd.f32 %v2338_v0, %v955_v63 }
 0x17c   : > { %2061 = vst [vmem:[%s2359_s16 + $0x60] sm:$0xff] %v2003_v4   ;;  %v2043_v53 = vpack.c.bf16 %v1279_v26, %v1278_v1  ;;  %v1075_v9 = vadd.f32 %v1074_v6, %v956_v7 }
 0x17e   : > { %2069 = vst [vmem:[%s2359_s16 + $0xa0] sm:$0xff] %v2043_v53   ;;  %v1194_v16 = vadd.f32 %v1193_v46, %v1075_v9 }
 0x17f   : > { %v1233_v20 = vpop.f32.mrf.mxu3 }
 0x180   : > { %v1234_v27 = vadd.f32 %v1233_v20, %v2492_v35  ;;  %v1264_v10 = vmax.f32 %v1194_v16, 0.0 }
 0x181   : > { %v957_v11 = vpop.f32.mrf.mxu0  ;;  %v1200_v14 = vpop.f32.mrf.mxu2 }
 0x182   : > { %v958_v12 = vadd.f32 %v2338_v0, %v957_v11  ;;  %v1076_v13 = vpop.f32.mrf.mxu1  ;;  %v1280_v25 = vmax.f32 %v1234_v27, 0.0 }
 0x184   : > { %v1077_v55 = vadd.f32 %v1076_v13, %v958_v12 }
 0x186   : > { %v1196_v18 = vadd.f32 %v1195_v50, %v1077_v55 }
 0x187   : > { %v1235_v19 = vpop.f32.mrf.mxu3 }
 0x188   : > { %v1265_v21 = vmax.f32 %v1196_v18, 0.0  ;;  %v1236_v37 = vadd.f32 %v1235_v19, %v1117_v17 }
 0x189   : > { %v960_v24 = vpop.f32.mrf.mxu0  ;;  %v1203_v30 = vpop.f32.mrf.mxu2 }
 0x18a   : > { %v2008_v34 = vpack.c.bf16 %v1265_v21, %v1264_v10  ;;  %v1281_v28 = vmax.f32 %v1236_v37, 0.0  ;;  %v1079_v29 = vpop.f32.mrf.mxu1  ;;  %v961_v31 = vadd.f32 %v2338_v0, %v960_v24 }
 0x18c   : > { %2062 = vst [vmem:[%s2359_s16 + $0x68] sm:$0xff] %v2008_v34   ;;  %v2048_v23 = vpack.c.bf16 %v1281_v28, %v1280_v25  ;;  %v1080_v45 = vadd.f32 %v1079_v29, %v961_v31 }
 0x18e   : > { %2070 = vst [vmem:[%s2359_s16 + $0xa8] sm:$0xff] %v2048_v23   ;;  %v1199_v38 = vadd.f32 %v1198_v5, %v1080_v45 }
 0x190   : > { %v1266_v42 = vmax.f32 %v1199_v38, 0.0 }
 0x191   : > { %v962_v32 = vpop.f32.mrf.mxu0  ;;  %v1205_v36 = vpop.f32.mrf.mxu2 }
 0x192   : > { %v963_v35 = vadd.f32 %v2338_v0, %v962_v32  ;;  %v1081_v33 = vpop.f32.mrf.mxu1 }
 0x194   : > { %v1082_v39 = vadd.f32 %v1081_v33, %v963_v35 }
 0x196   : > { %v1201_v41 = vadd.f32 %v1200_v14, %v1082_v39 }
 0x198   : > { %v1267_v44 = vmax.f32 %v1201_v41, 0.0 }
 0x199   : > { %v965_v46 = vpop.f32.mrf.mxu0  ;;  %v1208_v58 = vpop.f32.mrf.mxu2 }
 0x19a   : > { %v2013_v22 = vpack.c.bf16 %v1267_v44, %v1266_v42  ;;  %v1084_v47 = vpop.f32.mrf.mxu1  ;;  %v966_v48 = vadd.f32 %v2338_v0, %v965_v46 }
 0x19c   : > { %2063 = vst [vmem:[%s2359_s16 + $0x70] sm:$0xff] %v2013_v22   ;;  %v1085_v49 = vadd.f32 %v1084_v47, %v966_v48 }
 0x19e   : > { %v1204_v8 = vadd.f32 %v1203_v30, %v1085_v49 }
 0x1a0   : > { %v1268_v3 = vmax.f32 %v1204_v8, 0.0 }
 0x1a1   : > { %v967_v43 = vpop.f32.mrf.mxu0  ;;  %v1210_v51 = vpop.f32.mrf.mxu2 }
 0x1a2   : > { %v968_v2 = vadd.f32 %v2338_v0, %v967_v43  ;;  %v1086_v50 = vpop.f32.mrf.mxu1 }
 0x1a4   : > { %v1087_v52 = vadd.f32 %v1086_v50, %v968_v2 }
 0x1a6   : > { %v1206_v54 = vadd.f32 %v1205_v36, %v1087_v52 }
 0x1a8   : > { %v1269_v56 = vmax.f32 %v1206_v54, 0.0 }
 0x1a9   : > { %v970_v57 = vpop.f32.mrf.mxu0  ;;  %v1213_v62 = vpop.f32.mrf.mxu2 }
 0x1aa   : > { %v2018_v59 = vpack.c.bf16 %v1269_v56, %v1268_v3  ;;  %v1089_v61 = vpop.f32.mrf.mxu1  ;;  %v971_v63 = vadd.f32 %v2338_v0, %v970_v57  ;;  %v1214_v4 = vadd.f32 %v1213_v62, %v2433_v40 }
 0x1ac   : > { %2064 = vst [vmem:[%s2359_s16 + $0x78] sm:$0xff] %v2018_v59   ;;  %v1090_v1 = vadd.f32 %v1089_v61, %v971_v63  ;;  %v1272_v11 = vmax.f32 %v1214_v4, 0.0 }
 0x1ae   : > { %v1209_v20 = vadd.f32 %v1208_v58, %v1090_v1 }
 0x1b0   : > { %v1270_v15 = vmax.f32 %v1209_v20, 0.0 }
 0x1b1   : > { %v972_v26 = vpop.f32.mrf.mxu0  ;;  %v1215_v5 = vpop.f32.mrf.mxu2 }
 0x1b2   : > { %v973_v6 = vadd.f32 %v2338_v0, %v972_v26  ;;  %v1091_v53 = vpop.f32.mrf.mxu1  ;;  %v1216_v7 = vadd.f32 %v1215_v5, %v2445_v60 }
 0x1b4   : > { %v1092_v9 = vadd.f32 %v1091_v53, %v973_v6  ;;  %v1273_v12 = vmax.f32 %v1216_v7, 0.0 }
 0x1b6   : > { %v1211_v13 = vadd.f32 %v1210_v51, %v1092_v9  ;;  %v2028_v14 = vpack.c.bf16 %v1273_v12, %v1272_v11 }
 0x1b8   : > { %v1271_v16 = vmax.f32 %v1211_v13, 0.0  ;;  %2066 = vst [vmem:[%s2359_s16 + $0x88] sm:$0xff] %v2028_v14  }
 0x1ba   : > { %v2023_v55 = vpack.c.bf16 %v1271_v16, %v1270_v15 }
 0x1bc   : > { %2065 = vst [vmem:[%s2359_s16 + $0x80] sm:$0xff] %v2023_v55  }
 0x1bd PF: > { %s13_s14 = sadd.s32 1, %s2137_s14   ;;  %s2555_s12 = smov %s2133_s13 }
 0x1be   : > { %p10_p5 = scmp.ge.s32.totalorder %s13_s14, 4   ;;  %s2556_s13 = smov %s2558_s15 }
 0x1c0   :  { %12 = sbr.rel (!%p10_p5) target bundleno = 2 (0x2), region = 68 }

// kernel: yolact_forward.27
= control target key start
LH: loop header
LB: loop body
LE: loop exit
PB: predicated region body
PF: predicated region fallthrough
CT: control target
= control target key end

     0   :  { %s4111_s12 = smov 0   ;;  %s4113_s13 = smov 0   ;;  %s7004_s0 = inlined_call_operand.vmem [shape: bf16[1,704,288], index: 0, kind: input, shape index: {}]   ;;  %s7005_s1 = inlined_call_operand.vmem [shape: bf16[1,288,128], index: 1, kind: input, shape index: {}]   ;;  %s7006_s2 = inlined_call_operand.vmem [shape: f32[1,1,128], index: 2, kind: input, shape index: {}]   ;;  %s7007_s3 = inlined_call_operand.vmem [shape: f32[1,704,128], index: 3, kind: output, shape index: {}]  }
   0x1   :  { %s4115_s14 = smov 0  }
   0x2 LB: > { %s22_s15 = sadd.s32 1, %s4085_s13  ;;  %p2959_p0 = scmp.ge.s32.totalorder %s4089_s14, 1  ;;  %s4089_s14 = sphi %s4115_s14, %s13_s14   ;;  %s4085_s13 = sphi %s4113_s13, %s7717_s13   ;;  %s4081_s12 = sphi %s4111_s12, %s7716_s12  }
   0x3   : > { %p23_p1 = scmp.ge.s32.totalorder %s22_s15, 2  ;;  %p177_p2 = scmp.lt.s32.totalorder %s4089_s14, 3 }
   0x5   : > { %s7719_s15 = smov (%p23_p1, %s22_s15), 0  ;;  %p178_p3 = pnand %p2959_p0, %p177_p2 }
   0x7   : > { %181 = sbr.rel (%p178_p3) target bundleno = 1025 (0x401), region = 32 }
   0xc   : > { %v3395_v0 = vld [vmem:[%s7005_s1 + $0x38] sm:$0xff]  ;;  %v4140_v2 = vld [vmem:[%s7005_s1 + $0x88] sm:$0xff]  ;;  %s218_s22 = smul.u32 44, %s4081_s12  ;;  %v3394_v3 = vld [vmem:[%s7005_s1 + $0x30] sm:$0xff]  ;;  %vm814_vm0 = vcmask 261120  }
   0xd   : > { %v4135_v1 = vld [vmem:[%s7005_s1 + $0x78] sm:$0xff]  ;;  %881 = vmatpush.bf16.msra.mxu0 %v3395_v0  ;;  %3406 = vmatpush.bf16.msra.mxu3 %v3395_v0  ;;  %v3402_v4 = vld [vmem:[%s7005_s1 + $0x70] sm:$0xff]  ;;  %v4153_v5 = vld [vmem:[%s7005_s1 + $0x80] sm:$0xff] }
   0xe   : > { %p221_p4 = scmp.lt.s32.totalorder %s218_s22, 87  ;;  %1000 = vmatpush.bf16.msra.mxu1 %v4135_v1  ;;  %1125 = vmatpush.bf16.msra.mxu2 %v4140_v2  ;;  %v3393_v6 = vld [vmem:[%s7005_s1 + $0x28] sm:$0xff]  ;;  %v3392_v11 = vld [vmem:[%s7005_s1 + $0x20] sm:$0xff]  ;;  %v3391_v13 = vld [vmem:[%s7005_s1 + $0x18] sm:$0xff] }
   0xf   : > { %v3401_v7 = vld [vmem:[%s7005_s1 + $0x68] sm:$0xff]  ;;  %v3400_v12 = vld [vmem:[%s7005_s1 + $0x60] sm:$0xff]  ;;  %v3399_v14 = vld [vmem:[%s7005_s1 + $0x58] sm:$0xff] }
  0x10   : > { %s7721_s22 = smov (!%p221_p4, %s218_s22), 87  ;;  %v3390_v15 = vld [vmem:[%s7005_s1 + $0x10] sm:$0xff]  ;;  %v3389_v19 = vld [vmem:[%s7005_s1 + $0x8] sm:$0xff]  ;;  %v3388_v22 = vld [vmem:[%s7005_s1] sm:$0xff] }
  0x11   : > { %882 = vmatpush.bf16.msra.mxu0 %v3394_v3  ;;  %3407 = vmatpush.bf16.msra.mxu3 %v3394_v3  ;;  %s3424_s4 = smul.u32 12, %s7721_s22  ;;  %v3398_v16 = vld [vmem:[%s7005_s1 + $0x50] sm:$0xff]  ;;  %v3397_v20 = vld [vmem:[%s7005_s1 + $0x48] sm:$0xff]  ;;  %v3396_v27 = vld [vmem:[%s7005_s1 + $0x40] sm:$0xff] }
  0x12   : > { %1001 = vmatpush.bf16.msra.mxu1 %v3402_v4  ;;  %1126 = vmatpush.bf16.msra.mxu2 %v4153_v5 }
  0x13   : > { %s4168_s9 = scalar_lea.vmem %s7004_s0, %s3424_s4 }
  0x14   : > { %v2972_v8 = vld [vmem:[%s4168_s9 + $0x8] sm:$0xf]  ;;  %v3324_v9 = vld [vmem:[%s4168_s9 + $0x10] sm:$0xf0]  ;;  %v2984_v17 = vld [vmem:[%s4168_s9 + $0x20] sm:$0xf] }
  0x15   : > { %883 = vmatpush.bf16.msra.mxu0 %v3393_v6  ;;  %3408 = vmatpush.bf16.msra.mxu3 %v3393_v6  ;;  %v2973_v10 = vor.u32 %v3324_v9, %v2972_v8  ;;  %v3327_v18 = vld [vmem:[%s4168_s9 + $0x28] sm:$0xf0]  ;;  %v2964_v23 = vld [vmem:[%s4168_s9] sm:$0xf]  ;;  %v3168_v25 = vld [vmem:[%s4168_s9 + $0x198] sm:$0xf] }
  0x16   : > { %1002 = vmatpush.bf16.msra.mxu1 %v3401_v7  ;;  %v2985_v21 = vor.u32 %v3327_v18, %v2984_v17  ;;  %v3323_v24 = vld [vmem:[%s4168_s9 + $0x8] sm:$0xf0]  ;;  %v3374_v26 = vld [vmem:[%s4168_s9 + $0x1a0] sm:$0xf0]  ;;  %v2966_v29 = vld [vmem:[%s4168_s9 + $0xc] sm:$0xf0] }
  0x17   : > { %3298 = vmatmul.msk.bf16.vlgmr.msra.gmra.mxu2 %vm814_vm0, %v2973_v10  ;;  %v3322_v28 = vld [vmem:[%s4168_s9 + $0x4] sm:$0xf]  ;;  %v2965_v30 = vor.u32 %v3323_v24, %v2964_v23  ;;  %v3169_v31 = vor.u32 %v3374_v26, %v3168_v25  ;;  %v2996_v33 = vld [vmem:[%s4168_s9 + $0x38] sm:$0xf]  ;;  %v3180_v38 = vld [vmem:[%s4168_s9 + $0x1b0] sm:$0xf] }
  0x18   : > { %v2969_v32 = vor.u32 %v3322_v28, %v2966_v29  ;;  %v3330_v34 = vld [vmem:[%s4168_s9 + $0x40] sm:$0xf0]  ;;  %v2976_v36 = vld [vmem:[%s4168_s9 + $0x18] sm:$0xf]  ;;  %v3377_v39 = vld [vmem:[%s4168_s9 + $0x1b8] sm:$0xf0] }
  0x19   : > { %884 = vmatpush.bf16.msra.mxu0 %v3392_v11  ;;  %3409 = vmatpush.bf16.msra.mxu3 %v3392_v11  ;;  %v2997_v35 = vor.u32 %v3330_v34, %v2996_v33  ;;  %v3326_v37 = vld [vmem:[%s4168_s9 + $0x20] sm:$0xf0]  ;;  %v3325_v40 = vld [vmem:[%s4168_s9 + $0x1c] sm:$0xf]  ;;  %v2978_v41 = vld [vmem:[%s4168_s9 + $0x24] sm:$0xf0]  ;;  %v3181_v43 = vor.u32 %v3377_v39, %v3180_v38 }
  0x1a   : > { %1003 = vmatpush.bf16.msra.mxu1 %v3400_v12  ;;  %v2977_v42 = vor.u32 %v3326_v37, %v2976_v36  ;;  %v2981_v44 = vor.u32 %v3325_v40, %v2978_v41  ;;  %v3008_v45 = vld [vmem:[%s4168_s9 + $0x50] sm:$0xf]  ;;  %v3333_v46 = vld [vmem:[%s4168_s9 + $0x58] sm:$0xf0]  ;;  %v3192_v50 = vld [vmem:[%s4168_s9 + $0x1c8] sm:$0xf] }
  0x1b   : > { %v3009_v47 = vor.u32 %v3333_v46, %v3008_v45  ;;  %v2988_v48 = vld [vmem:[%s4168_s9 + $0x30] sm:$0xf]  ;;  %v3329_v49 = vld [vmem:[%s4168_s9 + $0x38] sm:$0xf0]  ;;  %v3380_v51 = vld [vmem:[%s4168_s9 + $0x1d0] sm:$0xf0] }
  0x1c   : > { %v3328_v52 = vld [vmem:[%s4168_s9 + $0x34] sm:$0xf]  ;;  %v2990_v53 = vld [vmem:[%s4168_s9 + $0x3c] sm:$0xf0]  ;;  %v2989_v54 = vor.u32 %v3329_v49, %v2988_v48  ;;  %v3193_v55 = vor.u32 %v3380_v51, %v3192_v50  ;;  %v3020_v57 = vld [vmem:[%s4168_s9 + $0x68] sm:$0xf] }
  0x1d   : > { %885 = vmatpush.bf16.msra.mxu0 %v3391_v13  ;;  %3410 = vmatpush.bf16.msra.mxu3 %v3391_v13  ;;  %v2993_v56 = vor.u32 %v3328_v52, %v2990_v53  ;;  %v3336_v58 = vld [vmem:[%s4168_s9 + $0x70] sm:$0xf0]  ;;  %v3000_v60 = vld [vmem:[%s4168_s9 + $0x48] sm:$0xf]  ;;  %v3204_v62 = vld [vmem:[%s4168_s9 + $0x1e0] sm:$0xf] }
  0x1e   : > { %1004 = vmatpush.bf16.msra.mxu1 %v3399_v14  ;;  %v3021_v59 = vor.u32 %v3336_v58, %v3020_v57  ;;  %v3332_v61 = vld [vmem:[%s4168_s9 + $0x50] sm:$0xf0]  ;;  %v3383_v63 = vld [vmem:[%s4168_s9 + $0x1e8] sm:$0xf0]  ;;  %v3012_v8 = vld [vmem:[%s4168_s9 + $0x60] sm:$0xf] }
  0x1f   : > { %v3331_v0 = vld [vmem:[%s4168_s9 + $0x4c] sm:$0xf]  ;;  %v3205_v3 = vor.u32 %v3383_v63, %v3204_v62  ;;  %v3216_v10 = vld [vmem:[%s4168_s9 + $0x1f8] sm:$0xf]  ;;  %v3386_v11 = vld [vmem:[%s4168_s9 + $0x200] sm:$0xf0] }
  0x20   : > { %v3339_v6 = vld [vmem:[%s4168_s9 + $0x88] sm:$0xf0]  ;;  %v3014_v13 = vld [vmem:[%s4168_s9 + $0x6c] sm:$0xf0]  ;;  %v3044_v17 = vld [vmem:[%s4168_s9 + $0x98] sm:$0xf] }
  0x21   : > { %886 = vmatpush.bf16.msra.mxu0 %v3390_v15  ;;  %3411 = vmatpush.bf16.msra.mxu3 %v3390_v15  ;;  %v3335_v9 = vld [vmem:[%s4168_s9 + $0x68] sm:$0xf0]  ;;  %v3217_v15 = vor.u32 %v3386_v11, %v3216_v10  ;;  %v3342_v18 = vld [vmem:[%s4168_s9 + $0xa0] sm:$0xf0]  ;;  %v3170_v23 = vld [vmem:[%s4168_s9 + $0x1a4] sm:$0xf0] }
  0x22   : > { %1005 = vmatpush.bf16.msra.mxu1 %v3398_v16  ;;  %v3337_v24 = vld [vmem:[%s4168_s9 + $0x7c] sm:$0xf]  ;;  %v3026_v25 = vld [vmem:[%s4168_s9 + $0x84] sm:$0xf0]  ;;  %v3056_v29 = vld [vmem:[%s4168_s9 + $0xb0] sm:$0xf] }
  0x23   : > { %v3029_v28 = vor.u32 %v3337_v24, %v3026_v25  ;;  %v3341_v33 = vld [vmem:[%s4168_s9 + $0x98] sm:$0xf0]  ;;  %v3376_v34 = vld [vmem:[%s4168_s9 + $0x1b4] sm:$0xf]  ;;  %v3038_v37 = vld [vmem:[%s4168_s9 + $0x9c] sm:$0xf0] }
  0x24   : > { %v3340_v36 = vld [vmem:[%s4168_s9 + $0x94] sm:$0xf]  ;;  %v3068_v41 = vld [vmem:[%s4168_s9 + $0xc8] sm:$0xf]  ;;  %v3379_v46 = vld [vmem:[%s4168_s9 + $0x1cc] sm:$0xf] }
  0x25   : > { %887 = vmatpush.bf16.msra.mxu0 %v3389_v19  ;;  %3412 = vmatpush.bf16.msra.mxu3 %v3389_v19  ;;  %v3045_v19 = vor.u32 %v3342_v18, %v3044_v17  ;;  %v3041_v40 = vor.u32 %v3340_v36, %v3038_v37  ;;  %v3344_v45 = vld [vmem:[%s4168_s9 + $0xb0] sm:$0xf0]  ;;  %v3343_v48 = vld [vmem:[%s4168_s9 + $0xac] sm:$0xf]  ;;  %v3050_v49 = vld [vmem:[%s4168_s9 + $0xb4] sm:$0xf0] }
  0x26   : > { %1006 = vmatpush.bf16.msra.mxu1 %v3397_v20  ;;  %v3053_v52 = vor.u32 %v3343_v48, %v3050_v49  ;;  %v3060_v58 = vld [vmem:[%s4168_s9 + $0xc0] sm:$0xf]  ;;  %v3346_v63 = vld [vmem:[%s4168_s9 + $0xc4] sm:$0xf]  ;;  %v3218_v24 = vld [vmem:[%s4168_s9 + $0x204] sm:$0xf0] }
  0x27   : > { %3299 = vmatmul.msk.bf16.gmra.mxu2 %vm814_vm0, %v2985_v21  ;;  %v3338_v21 = vld [vmem:[%s4168_s9 + $0x80] sm:$0xf0]  ;;  %v4287_v62 = vld [vmem:[%s7006_s2] ss:$0 sm:$0xff]  ;;  %v7194_v25 = vmov 0 }
  0x29   : > { %888 = vmatpush.bf16.msra.mxu0 %v3388_v22  ;;  %3413 = vmatpush.bf16.msra.mxu3 %v3388_v22  ;;  %v3373_v22 = vld [vmem:[%s4168_s9 + $0x19c] sm:$0xf] }
  0x2a   : > { %1007 = vmatpush.bf16.msra.mxu1 %v3396_v27 }
  0x2c   : > { %889 = vmatmul.bf16.vlgmr.msra.gmra.mxu0 %v2965_v30  ;;  %974 = vmatmul.bf16.vlgmr.msra.gmra.mxu3 %v3169_v31  ;;  %v3345_v30 = vld [vmem:[%s4168_s9 + $0xb8] sm:$0xf0] }
  0x2d   : > { %3414 = vmatpush.bf16.msrb.mxu3 %v4135_v1  ;;  %1008 = vmatmul.bf16.vlgmr.msra.gmra.mxu1 %v2969_v32  ;;  %v3002_v1 = vld [vmem:[%s4168_s9 + $0x54] sm:$0xf0]  ;;  %v3057_v31 = vor.u32 %v3345_v30, %v3056_v29  ;;  %v3036_v32 = vld [vmem:[%s4168_s9 + $0x90] sm:$0xf] }
  0x2e   : > { %v3037_v38 = vor.u32 %v3341_v33, %v3036_v32  ;;  %v3074_v32 = vld [vmem:[%s4168_s9 + $0xe4] sm:$0xf0] }
  0x31   : > { %3415 = vmatpush.bf16.msrb.mxu3 %v3402_v4  ;;  %v3005_v4 = vor.u32 %v3331_v0, %v3002_v1  ;;  %v3062_v0 = vld [vmem:[%s4168_s9 + $0xcc] sm:$0xf0] }
  0x35   : > { %3416 = vmatpush.bf16.msrb.mxu3 %v3401_v7 }
  0x37   : > { %3300 = vmatmul.msk.bf16.gmra.mxu2 %vm814_vm0, %v2997_v35  ;;  %v3182_v35 = vld [vmem:[%s4168_s9 + $0x1bc] sm:$0xf0] }
  0x38   : > { %v3185_v39 = vor.u32 %v3376_v34, %v3182_v35 }
  0x39   : > { %3417 = vmatpush.bf16.msrb.mxu3 %v3400_v12  ;;  %v3334_v12 = vld [vmem:[%s4168_s9 + $0x64] sm:$0xf] }
  0x3c   : > { %894 = vmatmul.bf16.gmra.mxu0 %v2977_v42  ;;  %979 = vmatmul.bf16.gmra.mxu3 %v3181_v43  ;;  %v3348_v42 = vld [vmem:[%s4168_s9 + $0xd0] sm:$0xf0] }
  0x3d   : > { %3418 = vmatpush.bf16.msrb.mxu3 %v3399_v14  ;;  %1013 = vmatmul.bf16.gmra.mxu1 %v2981_v44  ;;  %v3013_v14 = vor.u32 %v3335_v9, %v3012_v8  ;;  %v3069_v43 = vor.u32 %v3348_v42, %v3068_v41  ;;  %v3048_v44 = vld [vmem:[%s4168_s9 + $0xa8] sm:$0xf] }
  0x3e   : > { %v3049_v50 = vor.u32 %v3344_v45, %v3048_v44 }
  0x41   : > { %3419 = vmatpush.bf16.msrb.mxu3 %v3398_v16  ;;  %v3017_v16 = vor.u32 %v3334_v12, %v3014_v13  ;;  %v3092_v13 = vld [vmem:[%s4168_s9 + $0xf8] sm:$0xf] }
  0x45   : > { %3420 = vmatpush.bf16.msrb.mxu3 %v3397_v20  ;;  %v3024_v20 = vld [vmem:[%s4168_s9 + $0x78] sm:$0xf] }
  0x46   : > { %v3025_v26 = vor.u32 %v3338_v21, %v3024_v20 }
  0x47   : > { %3301 = vmatmul.msk.bf16.gmra.mxu2 %vm814_vm0, %v3009_v47  ;;  %v3194_v47 = vld [vmem:[%s4168_s9 + $0x1d4] sm:$0xf0] }
  0x48   : > { %v3197_v51 = vor.u32 %v3379_v46, %v3194_v47 }
  0x49   : > { %3421 = vmatpush.bf16.msrb.mxu3 %v3396_v27  ;;  %v3173_v27 = vor.u32 %v3373_v22, %v3170_v23  ;;  %v3385_v23 = vld [vmem:[%s4168_s9 + $0x1fc] sm:$0xf] }
  0x4a   : > { %v3221_v35 = vor.u32 %v3385_v23, %v3218_v24  ;;  %v3116_v24 = vld [vmem:[%s4168_s9 + $0x128] sm:$0xf] }
  0x4c   : > { %899 = vmatmul.bf16.gmra.mxu0 %v2989_v54  ;;  %984 = vmatmul.bf16.gmra.mxu3 %v3193_v55  ;;  %v3080_v54 = vld [vmem:[%s4168_s9 + $0xe0] sm:$0xf]  ;;  %v3351_v55 = vld [vmem:[%s4168_s9 + $0xe8] sm:$0xf0] }
  0x4d   : > { %3422 = vmatpush.bf16.msra.mxu3 %v4140_v2  ;;  %1018 = vmatmul.bf16.gmra.mxu1 %v2993_v56  ;;  %v3001_v2 = vor.u32 %v3332_v61, %v3000_v60  ;;  %v3081_v57 = vor.u32 %v3351_v55, %v3080_v54  ;;  %v3382_v60 = vld [vmem:[%s4168_s9 + $0x1e4] sm:$0xf]  ;;  %v3206_v61 = vld [vmem:[%s4168_s9 + $0x1ec] sm:$0xf0] }
  0x51   : > { %3423 = vmatpush.bf16.msra.mxu3 %v4153_v5  ;;  %v3032_v5 = vld [vmem:[%s4168_s9 + $0x80] sm:$0xf] }
  0x52   : > { %v3033_v7 = vor.u32 %v3339_v6, %v3032_v5  ;;  %v3065_v5 = vor.u32 %v3346_v63, %v3062_v0  ;;  %v3084_v63 = vld [vmem:[%s4168_s9 + $0xf0] sm:$0xf]  ;;  %v3353_v0 = vld [vmem:[%s4168_s9 + $0xf8] sm:$0xf0] }
  0x57   : > { %3302 = vmatmul.msk.bf16.gmra.mxu2 %vm814_vm0, %v3021_v59  ;;  %v3347_v59 = vld [vmem:[%s4168_s9 + $0xc8] sm:$0xf0] }
  0x58   : > { %v3061_v1 = vor.u32 %v3347_v59, %v3060_v58 }
  0x5c   : > { %904 = vmatmul.bf16.gmra.mxu0 %v3001_v2  ;;  %989 = vmatmul.bf16.gmra.mxu3 %v3205_v3  ;;  %v3209_v2 = vor.u32 %v3382_v60, %v3206_v61  ;;  %v1238_v3 = vlaneseq  ;;  %v3188_v60 = vld [vmem:[%s4168_s9 + $0x1b8] sm:$0xf]  ;;  %v3378_v61 = vld [vmem:[%s4168_s9 + $0x1c0] sm:$0xf0] }
  0x5d   : > { %1023 = vmatmul.bf16.gmra.mxu1 %v3005_v4 }
  0x5e   : > { %v1239_v10 = vand.u32 127, %v1238_v3  ;;  %v3352_v3 = vld [vmem:[%s4168_s9 + $0xf4] sm:$0xf] }
  0x60   : > { %vm1240_vm1 = vcmp.ge.s32.totalorder %v1239_v10, 27  ;;  %vm1241_vm2 = vcmp.lt.s32.totalorder %v1239_v10, 51  ;;  %vm1818_vm3 = vcmp.ge.s32.totalorder %v1239_v10, 17  ;;  %vm1819_vm4 = vcmp.lt.s32.totalorder %v1239_v10, 22 }
  0x61   : > { %vm2305_vm5 = vcmp.ge.s32.totalorder %v1239_v10, 22  ;;  %vm2306_vm6 = vcmp.lt.s32.totalorder %v1239_v10, 27  ;;  %vm4298_vm7 = vmand %vm1240_vm1, %vm1241_vm2  ;;  %vm1331_vm8 = vcmp.ge.s32.totalorder %v1239_v10, 12  ;;  %vm1332_vm9 = vcmp.lt.s32.totalorder %v1239_v10, 17 }
  0x62   : > { %vm4302_vm10 = vmand %vm1818_vm3, %vm1819_vm4 }
  0x63   : > { %vm4308_vm11 = vmand %vm2305_vm5, %vm2306_vm6 }
  0x64   : > { %v7195_v25 = vsel %vm4308_vm11, 4294967295, %v7194_v25  ;;  %vm4314_vm12 = vmand %vm1331_vm8, %vm1332_vm9 }
  0x65   : > { %7196 = vst [vmem:[#allocation2_spill] sm:$0xff] %v7195_v25 }
  0x67   : > { %3303 = vmatmul.msk.bf16.gmra.mxu2 %vm814_vm0, %v3033_v7 }
  0x6c   : > { %909 = vmatmul.bf16.gmra.mxu0 %v3013_v14  ;;  %994 = vmatmul.bf16.gmra.mxu3 %v3217_v15  ;;  %v3354_v14 = vld [vmem:[%s4168_s9 + $0x100] sm:$0xf0] }
  0x6d   : > { %1028 = vmatmul.bf16.gmra.mxu1 %v3017_v16 }
  0x77   : > { %3304 = vmatmul.msk.bf16.gmra.mxu2 %vm814_vm0, %v3045_v19  ;;  %v3093_v19 = vor.u32 %v3354_v14, %v3092_v13 }
  0x7c   : > { %914 = vmatmul.bf16.gmra.mxu0 %v3025_v26  ;;  %1093 = vmatmul.bf16.vlgmr.msrb.gmra.mxu3 %v3173_v27  ;;  %v3072_v26 = vld [vmem:[%s4168_s9 + $0xd8] sm:$0xf]  ;;  %v3350_v27 = vld [vmem:[%s4168_s9 + $0xe0] sm:$0xf0] }
  0x7d   : > { %1033 = vmatmul.bf16.gmra.mxu1 %v3029_v28 }
  0x87   : > { %3305 = vmatmul.msk.bf16.gmra.mxu2 %vm814_vm0, %v3057_v31  ;;  %v3349_v31 = vld [vmem:[%s4168_s9 + $0xdc] sm:$0xf] }
  0x88   : > { %v3077_v41 = vor.u32 %v3349_v31, %v3074_v32 }
  0x8c   : > { %919 = vmatmul.bf16.gmra.mxu0 %v3037_v38  ;;  %1098 = vmatmul.bf16.gmra.mxu3 %v3185_v39  ;;  %v3073_v38 = vor.u32 %v3350_v27, %v3072_v26 }
  0x8d   : > { %1038 = vmatmul.bf16.gmra.mxu1 %v3041_v40 }
  0x97   : > { %3306 = vmatmul.msk.bf16.gmra.mxu2 %vm814_vm0, %v3069_v43 }
  0x9a   : > { %v1128_v53 = vpop.f32.mrf.mxu2 }
  0x9c   : > { %924 = vmatmul.bf16.gmra.mxu0 %v3049_v50  ;;  %1103 = vmatmul.bf16.gmra.mxu3 %v3197_v51  ;;  %v3104_v50 = vld [vmem:[%s4168_s9 + $0x110] sm:$0xf] }
  0x9d   : > { %1043 = vmatmul.bf16.gmra.mxu1 %v3053_v52 }
  0xa2   : > { %v1130_v56 = vpop.f32.mrf.mxu2 }
  0xa7   : > { %3307 = vmatmul.msk.bf16.gmra.mxu2 %vm814_vm0, %v3081_v57 }
  0xa9   : > { %v890_v4 = vpop.f32.mrf.mxu0 }
  0xaa   : > { %v891_v6 = vadd.f32 %v4287_v62, %v890_v4  ;;  %v1009_v7 = vpop.f32.mrf.mxu1  ;;  %v1133_v8 = vpop.f32.mrf.mxu2  ;;  %v3086_v4 = vld [vmem:[%s4168_s9 + $0xfc] sm:$0xf0] }
  0xab   : > { %v3089_v13 = vor.u32 %v3352_v3, %v3086_v4 }
  0xac   : > { %v1010_v9 = vadd.f32 %v1009_v7, %v891_v6  ;;  %929 = vmatmul.bf16.gmra.mxu0 %v3061_v1  ;;  %1108 = vmatmul.bf16.gmra.mxu3 %v3209_v2 }
  0xad   : > { %1048 = vmatmul.bf16.gmra.mxu1 %v3065_v5 }
  0xae   : > { %v1129_v11 = vadd.f32 %v1128_v53, %v1010_v9  ;;  %v3357_v53 = vld [vmem:[%s4168_s9 + $0x118] sm:$0xf0]  ;;  %v3085_v9 = vor.u32 %v3353_v0, %v3084_v63  ;;  %v3355_v0 = vld [vmem:[%s4168_s9 + $0x10c] sm:$0xf] }
  0xaf   : > { %v4293_v12 = vpop.f32.mrf.mxu3  ;;  %v3105_v58 = vor.u32 %v3357_v53, %v3104_v50 }
  0xb0   : > { %3450 = vtanh.f32 %v1129_v11 }
  0xb1   : > { %v892_v15 = vpop.f32.mrf.mxu0 }
  0xb2   : > { %v893_v16 = vadd.f32 %v4287_v62, %v892_v15  ;;  %v1011_v17 = vpop.f32.mrf.mxu1  ;;  %v1135_v18 = vpop.f32.mrf.mxu2 }
  0xb4   : > { %v1012_v21 = vadd.f32 %v1011_v17, %v893_v16 }
  0xb6   : > { %v3451_v28 = vpop.eup %3450  ;;  %v1131_v29 = vadd.f32 %v1130_v56, %v1012_v21 }
  0xb7   : > { %3308 = vmatmul.msk.bf16.gmra.mxu2 %vm814_vm0, %v3093_v19  ;;  %v4321_v33 = vpop.f32.mrf.mxu3  ;;  %v4325_v34 = vsel %vm4298_vm7, %v3451_v28, %v1129_v11  ;;  %v3360_v28 = vld [vmem:[%s4168_s9 + $0x130] sm:$0xf0] }
  0xb8   : > { %7199 = vst [vmem:[#allocation3_spill] sm:$0xff] %v4325_v34  ;;  %3452 = vtanh.f32 %v1131_v29  ;;  %v4330_v36 = vsel %vm4308_vm11, %v4325_v34, -1e+30  ;;  %v4335_v37 = vsel %vm4302_vm10, %v4325_v34, -1e+30 }
  0xb9   : > { %7200 = vst [vmem:[#allocation4_spill] sm:$0xff] %v4330_v36  ;;  %v895_v39 = vpop.f32.mrf.mxu0  ;;  %2352 = vmax.xlane.f32.xlu2 %v4330_v36  ;;  %1865 = vmax.xlane.f32.xlu1 %v4335_v37  ;;  %v4342_v40 = vsel %vm4314_vm12, %v4325_v34, -1e+30  ;;  %v3122_v36 = vld [vmem:[%s4168_s9 + $0x144] sm:$0xf0] }
  0xba   : > { %v896_v42 = vadd.f32 %v4287_v62, %v895_v39  ;;  %v1014_v43 = vpop.f32.mrf.mxu1  ;;  %v1138_v44 = vpop.f32.mrf.mxu2  ;;  %1378 = vmax.xlane.f32.xlu0 %v4342_v40 }
  0xbc   : > { %v1015_v45 = vadd.f32 %v1014_v43, %v896_v42  ;;  %1113 = vmatmul.bf16.gmra.mxu3 %v3221_v35  ;;  %934 = vmatmul.bf16.gmra.mxu0 %v3073_v38  ;;  %v3117_v38 = vor.u32 %v3360_v28, %v3116_v24  ;;  %v3381_v42 = vld [vmem:[%s4168_s9 + $0x1d8] sm:$0xf0] }
  0xbd   : > { %1053 = vmatmul.bf16.gmra.mxu1 %v3077_v41  ;;  %v3200_v41 = vld [vmem:[%s4168_s9 + $0x1d0] sm:$0xf] }
  0xbe   : > { %v3453_v46 = vpop.eup %3452  ;;  %v1134_v47 = vadd.f32 %v1133_v8, %v1015_v45  ;;  %v3189_v8 = vor.u32 %v3378_v61, %v3188_v60  ;;  %v3201_v50 = vor.u32 %v3381_v42, %v3200_v41  ;;  %v3356_v60 = vld [vmem:[%s4168_s9 + $0x110] sm:$0xf0] }
  0xbf   : > { %v4346_v48 = vpop.f32.mrf.mxu3  ;;  %v4350_v49 = vsel %vm4298_vm7, %v3453_v46, %v1131_v29 }
  0xc0   : > { %7201 = vst [vmem:[#allocation5_spill] sm:$0xff] %v4350_v49  ;;  %3454 = vtanh.f32 %v1134_v47  ;;  %v4356_v51 = vsel %vm4302_vm10, %v4350_v49, -1e+30  ;;  %v4361_v52 = vsel %vm4314_vm12, %v4350_v49, -1e+30 }
  0xc1   : > { %v897_v54 = vpop.f32.mrf.mxu0  ;;  %1867 = vmax.xlane.f32.xlu2 %v4356_v51  ;;  %v4389_v11 = vsel %vm4308_vm11, %v4350_v49, -1e+30 }
  0xc2   : > { %v898_v55 = vadd.f32 %v4287_v62, %v897_v54  ;;  %v1016_v56 = vpop.f32.mrf.mxu1  ;;  %v1140_v57 = vpop.f32.mrf.mxu2  ;;  %1380 = vmax.xlane.f32.xlu0 %v4361_v52  ;;  %7203 = vst [vmem:[#allocation7_spill] sm:$0xff] %v4389_v11 }
  0xc4   : > { %v1017_v59 = vadd.f32 %v1016_v56, %v898_v55 }
  0xc6   : > { %v3455_v1 = vpop.eup %3454  ;;  %v1136_v2 = vadd.f32 %v1135_v18, %v1017_v59  ;;  %v3096_v59 = vld [vmem:[%s4168_s9 + $0x108] sm:$0xf] }
  0xc7   : > { %3309 = vmatmul.msk.bf16.gmra.mxu2 %vm814_vm0, %v3105_v58  ;;  %v4374_v5 = vpop.f32.mrf.mxu3  ;;  %v4378_v6 = vsel %vm4298_vm7, %v3455_v1, %v1134_v47  ;;  %v3097_v63 = vor.u32 %v3356_v60, %v3096_v59  ;;  %v3098_v1 = vld [vmem:[%s4168_s9 + $0x114] sm:$0xf0] }
  0xc8   : > { %7202 = vst [vmem:[#allocation6_spill] sm:$0xff] %v4378_v6  ;;  %3456 = vtanh.f32 %v1136_v2  ;;  %v4383_v7 = vsel %vm4314_vm12, %v4378_v6, -1e+30  ;;  %v4409_v27 = vsel %vm4308_vm11, %v4378_v6, -1e+30  ;;  %v3101_v4 = vor.u32 %v3355_v0, %v3098_v1 }
  0xc9   : > { %v900_v10 = vpop.f32.mrf.mxu0  ;;  %1382 = vmax.xlane.f32.xlu1 %v4383_v7  ;;  %7206 = vst [vmem:[#allocation10_spill] sm:$0xff] %v4409_v27  ;;  %v4417_v31 = vsel %vm4302_vm10, %v4378_v6, -1e+30 }
  0xca   : > { %v901_v14 = vadd.f32 %v4287_v62, %v900_v10  ;;  %v1019_v15 = vpop.f32.mrf.mxu1  ;;  %2354 = vmax.xlane.f32.xlu0 %v4389_v11  ;;  %v1143_v16 = vpop.f32.mrf.mxu2  ;;  %v3361_v11 = vld [vmem:[%s4168_s9 + $0x13c] sm:$0xf] }
  0xcc   : > { %v1020_v17 = vadd.f32 %v1019_v15, %v901_v14  ;;  %3316 = vmatmul.msk.bf16.vlgmr.msra.gmra.mxu3 %vm814_vm0, %v3189_v8  ;;  %939 = vmatmul.bf16.gmra.mxu0 %v3085_v9  ;;  %v3363_v14 = vld [vmem:[%s4168_s9 + $0x148] sm:$0xf0] }
  0xcd   : > { %1058 = vmatmul.bf16.gmra.mxu1 %v3089_v13  ;;  %v3128_v13 = vld [vmem:[%s4168_s9 + $0x140] sm:$0xf] }
  0xce   : > { %v3457_v18 = vpop.eup %3456  ;;  %v1139_v19 = vadd.f32 %v1138_v44, %v1020_v17  ;;  %v3129_v28 = vor.u32 %v3363_v14, %v3128_v13 }
  0xcf   : > { %v4394_v21 = vpop.f32.mrf.mxu3  ;;  %v4398_v23 = vsel %vm4298_vm7, %v3457_v18, %v1136_v2 }
  0xd0   : > { %7204 = vst [vmem:[#allocation8_spill] sm:$0xff] %v4398_v23  ;;  %3458 = vtanh.f32 %v1139_v19  ;;  %v4404_v26 = vsel %vm4308_vm11, %v4398_v23, -1e+30  ;;  %v4438_v54 = vsel %vm4314_vm12, %v4398_v23, -1e+30 }
  0xd1   : > { %7205 = vst [vmem:[#allocation9_spill] sm:$0xff] %v4404_v26  ;;  %v902_v29 = vpop.f32.mrf.mxu0  ;;  %2358 = vmax.xlane.f32.xlu2 %v4404_v26  ;;  %2356 = vmax.xlane.f32.xlu1 %v4409_v27 }
  0xd2   : > { %v903_v32 = vadd.f32 %v4287_v62, %v902_v29  ;;  %v1021_v35 = vpop.f32.mrf.mxu1  ;;  %1869 = vmax.xlane.f32.xlu0 %v4417_v31  ;;  %v1145_v43 = vpop.f32.mrf.mxu2 }
  0xd4   : > { %v1022_v39 = vadd.f32 %v1021_v35, %v903_v32  ;;  %v3212_v32 = vld [vmem:[%s4168_s9 + $0x1e8] sm:$0xf]  ;;  %v3384_v35 = vld [vmem:[%s4168_s9 + $0x1f0] sm:$0xf0] }
  0xd6   : > { %v3459_v44 = vpop.eup %3458  ;;  %v1141_v45 = vadd.f32 %v1140_v57, %v1022_v39 }
  0xd7   : > { %3310 = vmatmul.msk.bf16.gmra.mxu2 %vm814_vm0, %v3117_v38  ;;  %v4424_v46 = vpop.f32.mrf.mxu3  ;;  %v4428_v47 = vsel %vm4298_vm7, %v3459_v44, %v1139_v19  ;;  %v3213_v44 = vor.u32 %v3384_v35, %v3212_v32  ;;  %v3224_v32 = vld [vmem:[%s4168_s9 + $0x200] sm:$0xf]  ;;  %v3387_v35 = vld [vmem:[%s4168_s9 + $0x208] sm:$0xf0] }
  0xd8   : > { %7207 = vst [vmem:[#allocation11_spill] sm:$0xff] %v4428_v47  ;;  %3460 = vtanh.f32 %v1141_v45  ;;  %v4433_v53 = vsel %vm4314_vm12, %v4428_v47, -1e+30  ;;  %v4443_v55 = vsel %vm4308_vm11, %v4428_v47, -1e+30 }
  0xd9   : > { %7208 = vst [vmem:[#allocation12_spill] sm:$0xff] %v4443_v55  ;;  %v905_v56 = vpop.f32.mrf.mxu0  ;;  %1386 = vmax.xlane.f32.xlu2 %v4433_v53  ;;  %1384 = vmax.xlane.f32.xlu1 %v4438_v54  ;;  %v4465_v15 = vsel %vm4302_vm10, %v4428_v47, -1e+30 }
  0xda   : > { %v906_v57 = vadd.f32 %v4287_v62, %v905_v56  ;;  %v1024_v58 = vpop.f32.mrf.mxu1  ;;  %2360 = vmax.xlane.f32.xlu0 %v4443_v55  ;;  %v1148_v8 = vpop.f32.mrf.mxu2 }
  0xdc   : > { %v1025_v61 = vadd.f32 %v1024_v58, %v906_v57  ;;  %3317 = vmatmul.msk.bf16.gmra.mxu3 %vm814_vm0, %v3201_v50  ;;  %944 = vmatmul.bf16.gmra.mxu0 %v3097_v63 }
  0xdd   : > { %1063 = vmatmul.bf16.gmra.mxu1 %v3101_v4 }
  0xde   : > { %v3461_v2 = vpop.eup %3460  ;;  %v1144_v3 = vadd.f32 %v1143_v16, %v1025_v61  ;;  %v4470_v16 = vsel %vm4302_vm10, %v4398_v23, -1e+30  ;;  %v3110_v23 = vld [vmem:[%s4168_s9 + $0x12c] sm:$0xf0] }
  0xdf   : > { %v4454_v9 = vpop.f32.mrf.mxu3  ;;  %v4458_v10 = vsel %vm4298_vm7, %v3461_v2, %v1141_v45  ;;  %v3140_v2 = vld [vmem:[%s4168_s9 + $0x158] sm:$0xf] }
  0xe0   : > { %7209 = vst [vmem:[#allocation13_spill] sm:$0xff] %v4458_v10  ;;  %3462 = vtanh.f32 %v1144_v3  ;;  %v4475_v17 = vsel %vm4302_vm10, %v4458_v10, -1e+30  ;;  %v4493_v45 = vsel %vm4314_vm12, %v4458_v10, -1e+30  ;;  %v991_v27 = vadd.f32 %v4287_v62, %v4454_v9 }
  0xe1   : > { %v907_v18 = vpop.f32.mrf.mxu0  ;;  %1873 = vmax.xlane.f32.xlu2 %v4465_v15  ;;  %1871 = vmax.xlane.f32.xlu1 %v4470_v16 }
  0xe2   : > { %v908_v19 = vadd.f32 %v4287_v62, %v907_v18  ;;  %v1026_v24 = vpop.f32.mrf.mxu1  ;;  %1875 = vmax.xlane.f32.xlu0 %v4475_v17  ;;  %v1150_v56 = vpop.f32.mrf.mxu2 }
  0xe4   : > { %v1027_v29 = vadd.f32 %v1026_v24, %v908_v19 }
  0xe6   : > { %v3463_v38 = vpop.eup %3462  ;;  %v1146_v39 = vadd.f32 %v1145_v43, %v1027_v29  ;;  %v4498_v43 = vsel %vm4308_vm11, %v4458_v10, -1e+30  ;;  %v978_v10 = vadd.f32 %v4287_v62, %v4321_v33 }
  0xe7   : > { %3311 = vmatmul.msk.bf16.gmra.mxu2 %vm814_vm0, %v3129_v28  ;;  %v4484_v41 = vpop.f32.mrf.mxu3  ;;  %v4488_v42 = vsel %vm4298_vm7, %v3463_v38, %v1144_v3  ;;  %7211 = vst [vmem:[#allocation15_spill] sm:$0xff] %v4498_v43  ;;  %v3366_v3 = vld [vmem:[%s4168_s9 + $0x160] sm:$0xf0] }
  0xe8   : > { %7210 = vst [vmem:[#allocation14_spill] sm:$0xff] %v4488_v42  ;;  %3464 = vtanh.f32 %v1146_v39  ;;  %v4503_v50 = vsel %vm4314_vm12, %v4488_v42, -1e+30  ;;  %v4521_v4 = vsel %vm4308_vm11, %v4488_v42, -1e+30  ;;  %v3141_v28 = vor.u32 %v3366_v3, %v3140_v2 }
  0xe9   : > { %v910_v57 = vpop.f32.mrf.mxu0  ;;  %1388 = vmax.xlane.f32.xlu2 %v4493_v45  ;;  %2362 = vmax.xlane.f32.xlu1 %v4498_v43  ;;  %7213 = vst [vmem:[#allocation17_spill] sm:$0xff] %v4521_v4 }
  0xea   : > { %v911_v58 = vadd.f32 %v4287_v62, %v910_v57  ;;  %v1029_v59 = vpop.f32.mrf.mxu1  ;;  %1390 = vmax.xlane.f32.xlu0 %v4503_v50  ;;  %v1153_v24 = vpop.f32.mrf.mxu2 }
  0xec   : > { %v1030_v60 = vadd.f32 %v1029_v59, %v911_v58  ;;  %3318 = vmatmul.msk.bf16.gmra.mxu3 %vm814_vm0, %v3213_v44  ;;  %v3225_v58 = vor.u32 %v3387_v35, %v3224_v32 }
  0xee   : > { %v3465_v61 = vpop.eup %3464  ;;  %v1149_v63 = vadd.f32 %v1148_v8, %v1030_v60  ;;  %v4526_v8 = vsel %vm4302_vm10, %v4488_v42, -1e+30 }
  0xef   : > { %v4510_v0 = vpop.f32.mrf.mxu3  ;;  %v4514_v1 = vsel %vm4298_vm7, %v3465_v61, %v1146_v39 }
  0xf0   : > { %7212 = vst [vmem:[#allocation16_spill] sm:$0xff] %v4514_v1  ;;  %3466 = vtanh.f32 %v1149_v63  ;;  %v4531_v13 = vsel %vm4308_vm11, %v4514_v1, -1e+30  ;;  %v4549_v59 = vsel %vm4302_vm10, %v4514_v1, -1e+30 }
  0xf1   : > { %7214 = vst [vmem:[#allocation18_spill] sm:$0xff] %v4531_v13  ;;  %v912_v14 = vpop.f32.mrf.mxu0  ;;  %2364 = vmax.xlane.f32.xlu2 %v4521_v4  ;;  %1877 = vmax.xlane.f32.xlu1 %v4526_v8  ;;  %v4554_v60 = vsel %vm4314_vm12, %v4514_v1, -1e+30  ;;  %v3358_v1 = vld [vmem:[%s4168_s9 + $0x124] sm:$0xf] }
  0xf2   : > { %v913_v18 = vadd.f32 %v4287_v62, %v912_v14  ;;  %v1031_v19 = vpop.f32.mrf.mxu1  ;;  %2366 = vmax.xlane.f32.xlu0 %v4531_v13  ;;  %v1155_v14 = vpop.f32.mrf.mxu2  ;;  %v988_v13 = vadd.f32 %v4287_v62, %v4424_v46 }
  0xf4   : > { %v1032_v29 = vadd.f32 %v1031_v19, %v913_v18  ;;  %v976_v19 = vadd.f32 %v4287_v62, %v4293_v12 }
  0xf6   : > { %v3467_v38 = vpop.eup %3466  ;;  %v1151_v39 = vadd.f32 %v1150_v56, %v1032_v29 }
  0xf7   : > { %3312 = vmatmul.msk.bf16.gmra.mxu2 %vm814_vm0, %v3141_v28  ;;  %v4540_v44 = vpop.f32.mrf.mxu3  ;;  %v4544_v57 = vsel %vm4298_vm7, %v3467_v38, %v1149_v63  ;;  %v3152_v38 = vld [vmem:[%s4168_s9 + $0x170] sm:$0xf] }
  0xf8   : > { %7215 = vst [vmem:[#allocation19_spill] sm:$0xff] %v4544_v57  ;;  %3468 = vtanh.f32 %v1151_v39  ;;  %v4559_v56 = vsel %vm4302_vm10, %v4544_v57, -1e+30  ;;  %v4571_v32 = vsel %vm4314_vm12, %v4544_v57, -1e+30 }
  0xf9   : > { %v915_v61 = vpop.f32.mrf.mxu0  ;;  %1879 = vmax.xlane.f32.xlu2 %v4549_v59  ;;  %1392 = vmax.xlane.f32.xlu1 %v4554_v60  ;;  %v4583_v12 = vsel %vm4308_vm11, %v4544_v57, -1e+30 }
  0xfa   : > { %v916_v63 = vadd.f32 %v4287_v62, %v915_v61  ;;  %v1034_v2 = vpop.f32.mrf.mxu1  ;;  %1881 = vmax.xlane.f32.xlu0 %v4559_v56  ;;  %7217 = vst [vmem:[#allocation21_spill] sm:$0xff] %v4583_v12  ;;  %v3369_v61 = vld [vmem:[%s4168_s9 + $0x178] sm:$0xf0]  ;;  %v1158_v6 = vpop.f32.mrf.mxu2 }
  0xfc   : > { %v1035_v3 = vadd.f32 %v1034_v2, %v916_v63  ;;  %3319 = vmatmul.msk.bf16.gmra.mxu3 %vm814_vm0, %v3225_v58 }
  0xfe   : > { %v3469_v18 = vpop.eup %3468  ;;  %v1154_v28 = vadd.f32 %v1153_v24, %v1035_v3  ;;  %v3153_v3 = vor.u32 %v3369_v61, %v3152_v38 }
  0xff   : > { %v1094_v29 = vpop.f32.mrf.mxu3  ;;  %v4575_v35 = vsel %vm4298_vm7, %v3469_v18, %v1151_v39  ;;  %v3108_v18 = vld [vmem:[%s4168_s9 + $0x120] sm:$0xf] }
 0x100   : > { %7216 = vst [vmem:[#allocation20_spill] sm:$0xff] %v4575_v35  ;;  %3470 = vtanh.f32 %v1154_v28  ;;  %v4578_v58 = vadd.f32 %v1094_v29, %v976_v19  ;;  %v4588_v24 = vsel %vm4314_vm12, %v4575_v35, -1e+30  ;;  %v3359_v19 = vld [vmem:[%s4168_s9 + $0x128] sm:$0xf0] }
 0x101   : > { %v917_v63 = vpop.f32.mrf.mxu0  ;;  %1394 = vmax.xlane.f32.xlu2 %v4571_v32  ;;  %2368 = vmax.xlane.f32.xlu1 %v4583_v12  ;;  %v3109_v57 = vor.u32 %v3359_v19, %v3108_v18  ;;  %v4605_v38 = vsel %vm4308_vm11, %v4575_v35, -1e+30  ;;  %v3164_v19 = vld [vmem:[%s4168_s9 + $0x188] sm:$0xf] }
 0x102   : > { %v918_v39 = vadd.f32 %v4287_v62, %v917_v63  ;;  %v1036_v2 = vpop.f32.mrf.mxu1  ;;  %1396 = vmax.xlane.f32.xlu0 %v4588_v24  ;;  %7218 = vst [vmem:[#allocation22_spill] sm:$0xff] %v4605_v38 }
 0x103   : > { %949 = vmatmul.bf16.gmra.mxu0 %v3109_v57  ;;  %v4616_v57 = vsel %vm4302_vm10, %v4575_v35, -1e+30  ;;  %v983_v35 = vadd.f32 %v4287_v62, %v4374_v5 }
 0x104   : > { %v1037_v29 = vadd.f32 %v1036_v2, %v918_v39  ;;  %v3113_v39 = vor.u32 %v3358_v1, %v3110_v23 }
 0x106   : > { %v3471_v42 = vpop.eup %3470  ;;  %v1156_v47 = vadd.f32 %v1155_v14, %v1037_v29  ;;  %1068 = vmatmul.bf16.gmra.mxu1 %v3113_v39  ;;  %v3372_v29 = vld [vmem:[%s4168_s9 + $0x190] sm:$0xf0] }
 0x107   : > { %3313 = vmatmul.msk.bf16.gmra.mxu2 %vm814_vm0, %v3153_v3  ;;  %v1096_v63 = vpop.f32.mrf.mxu3  ;;  %v4609_v61 = vsel %vm4298_vm7, %v3471_v42, %v1154_v28 }
 0x108   : > { %7219 = vst [vmem:[#allocation23_spill] sm:$0xff] %v4609_v61  ;;  %3472 = vtanh.f32 %v1156_v47  ;;  %v4611_v33 = vadd.f32 %v1096_v63, %v978_v10  ;;  %v4621_v14 = vsel %vm4308_vm11, %v4609_v61, -1e+30  ;;  %v4638_v63 = vsel %vm4302_vm10, %v4609_v61, -1e+30 }
 0x109   : > { %7220 = vst [vmem:[#allocation24_spill] sm:$0xff] %v4621_v14  ;;  %v920_v2 = vpop.f32.mrf.mxu0  ;;  %2370 = vmax.xlane.f32.xlu2 %v4605_v38  ;;  %1883 = vmax.xlane.f32.xlu1 %v4616_v57  ;;  %v4643_v39 = vsel %vm4314_vm12, %v4609_v61, -1e+30 }
 0x10a   : > { %v921_v23 = vadd.f32 %v4287_v62, %v920_v2  ;;  %v1039_v10 = vpop.f32.mrf.mxu1  ;;  %2372 = vmax.xlane.f32.xlu0 %v4621_v14 }
 0x10c   : > { %v1040_v42 = vadd.f32 %v1039_v10, %v921_v23 }
 0x10e   : > { %v3473_v1 = vpop.eup %3472  ;;  %v1159_v28 = vadd.f32 %v1158_v6, %v1040_v42  ;;  %v3165_v42 = vor.u32 %v3372_v29, %v3164_v19 }
 0x10f   : > { %v4627_v3 = vpop.f32.mrf.mxu3  ;;  %v4631_v18 = vsel %vm4298_vm7, %v3473_v1, %v1156_v47  ;;  %v1160_v47 = vpop.f32.mrf.mxu2 }
 0x110   : > { %7221 = vst [vmem:[#allocation25_spill] sm:$0xff] %v4631_v18  ;;  %3474 = vtanh.f32 %v1159_v28  ;;  %v4648_v6 = vsel %vm4302_vm10, %v4631_v18, -1e+30  ;;  %v4660_v14 = vsel %vm4314_vm12, %v4631_v18, -1e+30 }
 0x111   : > { %v922_v2 = vpop.f32.mrf.mxu0  ;;  %1885 = vmax.xlane.f32.xlu2 %v4638_v63  ;;  %1398 = vmax.xlane.f32.xlu1 %v4643_v39  ;;  %v4671_v5 = vsel %vm4308_vm11, %v4631_v18, -1e+30 }
 0x112   : > { %v923_v23 = vadd.f32 %v4287_v62, %v922_v2  ;;  %v1041_v10 = vpop.f32.mrf.mxu1  ;;  %1887 = vmax.xlane.f32.xlu0 %v4648_v6  ;;  %7223 = vst [vmem:[#allocation27_spill] sm:$0xff] %v4671_v5 }
 0x114   : > { %v1042_v1 = vadd.f32 %v1041_v10, %v923_v23  ;;  %v986_v10 = vadd.f32 %v4287_v62, %v4394_v21 }
 0x116   : > { %v3475_v61 = vpop.eup %3474  ;;  %v1161_v49 = vadd.f32 %v1160_v47, %v1042_v1 }
 0x117   : > { %3314 = vmatmul.msk.bf16.gmra.mxu2 %vm814_vm0, %v3165_v42  ;;  %v1101_v34 = vpop.f32.mrf.mxu3  ;;  %v4664_v2 = vsel %vm4298_vm7, %v3475_v61, %v1159_v28 }
 0x118   : > { %7222 = vst [vmem:[#allocation26_spill] sm:$0xff] %v4664_v2  ;;  %3476 = vtanh.f32 %v1161_v49  ;;  %v4666_v19 = vadd.f32 %v1101_v34, %v983_v35  ;;  %v4676_v29 = vsel %vm4314_vm12, %v4664_v2, -1e+30  ;;  %v1163_v35 = vpop.f32.mrf.mxu2  ;;  %v4687_v18 = vsel %vm4308_vm11, %v4664_v2, -1e+30 }
 0x119   : > { %v925_v47 = vpop.f32.mrf.mxu0  ;;  %1400 = vmax.xlane.f32.xlu2 %v4660_v14  ;;  %2374 = vmax.xlane.f32.xlu1 %v4671_v5  ;;  %7224 = vst [vmem:[#allocation28_spill] sm:$0xff] %v4687_v18  ;;  %v3176_v5 = vld [vmem:[%s4168_s9 + $0x1a0] sm:$0xf] }
 0x11a   : > { %v926_v61 = vadd.f32 %v4287_v62, %v925_v47  ;;  %v1044_v34 = vpop.f32.mrf.mxu1  ;;  %1402 = vmax.xlane.f32.xlu0 %v4676_v29 }
 0x11c   : > { %v1045_v28 = vadd.f32 %v1044_v34, %v926_v61  ;;  %v4699_v61 = vsel %vm4302_vm10, %v4664_v2, -1e+30  ;;  %v3375_v34 = vld [vmem:[%s4168_s9 + $0x1a8] sm:$0xf0] }
 0x11e   : > { %v3477_v23 = vpop.eup %3476  ;;  %v1164_v42 = vadd.f32 %v1163_v35, %v1045_v28 }
 0x11f   : > { %v1104_v1 = vpop.f32.mrf.mxu3  ;;  %v4691_v47 = vsel %vm4298_vm7, %v3477_v23, %v1161_v49  ;;  %v3177_v23 = vor.u32 %v3375_v34, %v3176_v5 }
 0x120   : > { %7225 = vst [vmem:[#allocation29_spill] sm:$0xff] %v4691_v47  ;;  %3478 = vtanh.f32 %v1164_v42  ;;  %v4694_v38 = vadd.f32 %v1104_v1, %v986_v10  ;;  %v4704_v21 = vsel %vm4308_vm11, %v4691_v47, -1e+30  ;;  %v1165_v1 = vpop.f32.mrf.mxu2  ;;  %v4728_v46 = vsel %vm4314_vm12, %v4691_v47, -1e+30 }
 0x121   : > { %7226 = vst [vmem:[#allocation30_spill] sm:$0xff] %v4704_v21  ;;  %v927_v35 = vpop.f32.mrf.mxu0  ;;  %2376 = vmax.xlane.f32.xlu2 %v4687_v18  ;;  %1889 = vmax.xlane.f32.xlu1 %v4699_v61 }
 0x122   : > { %v928_v49 = vadd.f32 %v4287_v62, %v927_v35  ;;  %v1046_v28 = vpop.f32.mrf.mxu1  ;;  %2378 = vmax.xlane.f32.xlu0 %v4704_v21  ;;  %v4717_v35 = vsel %vm4302_vm10, %v4691_v47, -1e+30 }
 0x124   : > { %v1047_v10 = vadd.f32 %v1046_v28, %v928_v49 }
 0x126   : > { %v3479_v12 = vpop.eup %3478  ;;  %v1166_v4 = vadd.f32 %v1165_v1, %v1047_v10  ;;  %v3362_v10 = vld [vmem:[%s4168_s9 + $0x140] sm:$0xf0] }
 0x127   : > { %3315 = vmatmul.msk.bf16.gmra.mxu2 %vm814_vm0, %v3177_v23  ;;  %v1106_v43 = vpop.f32.mrf.mxu3  ;;  %v4721_v5 = vsel %vm4298_vm7, %v3479_v12, %v1164_v42  ;;  %v3120_v23 = vld [vmem:[%s4168_s9 + $0x138] sm:$0xf] }
 0x128   : > { %7227 = vst [vmem:[#allocation31_spill] sm:$0xff] %v4721_v5  ;;  %3480 = vtanh.f32 %v1166_v4  ;;  %v4723_v34 = vadd.f32 %v1106_v43, %v988_v13  ;;  %v4733_v49 = vsel %vm4302_vm10, %v4721_v5, -1e+30  ;;  %v3121_v55 = vor.u32 %v3362_v10, %v3120_v23 }
 0x129   : > { %v930_v28 = vpop.f32.mrf.mxu0  ;;  %1891 = vmax.xlane.f32.xlu2 %v4717_v35  ;;  %1404 = vmax.xlane.f32.xlu1 %v4728_v46  ;;  %v4762_v9 = vsel %vm4308_vm11, %v4721_v5, -1e+30 }
 0x12a   : > { %v931_v43 = vadd.f32 %v4287_v62, %v930_v28  ;;  %1893 = vmax.xlane.f32.xlu0 %v4733_v49  ;;  %v1049_v13 = vpop.f32.mrf.mxu1  ;;  %v1168_v28 = vpop.f32.mrf.mxu2  ;;  %954 = vmatmul.bf16.gmra.mxu0 %v3121_v55  ;;  %7230 = vst [vmem:[#allocation34_spill] sm:$0xff] %v4762_v9 }
 0x12c   : > { %v1050_v12 = vadd.f32 %v1049_v13, %v931_v43  ;;  %v1866_v42 = vpop.xlane.xlu1 %1865  ;;  %v4741_v1 = vpop.xlane.xlu2 %2352  ;;  %v4751_v43 = vsel %vm4314_vm12, %v4721_v5, -1e+30 }
 0x12d   : > { %7228 = vst [vmem:[#allocation32_spill] sm:$0xff] %v4741_v1  ;;  %v1953_v21 = vsub.f32 %v4335_v37, %v1866_v42  ;;  %v1379_v18 = vpop.xlane.xlu0 %1378  ;;  %v3125_v37 = vor.u32 %v3361_v11, %v3122_v36 }
 0x12e   : > { %v3481_v26 = vpop.eup %3480  ;;  %v1169_v42 = vadd.f32 %v1168_v28, %v1050_v12  ;;  %v1466_v36 = vsub.f32 %v4342_v40, %v1379_v18 }
 0x12f   : > { %v1997_v47 = vmul.f32 1.442695, %v1953_v21  ;;  %v1109_v2 = vpop.f32.mrf.mxu3  ;;  %v4755_v13 = vsel %vm4298_vm7, %v3481_v26, %v1166_v4  ;;  %1073 = vmatmul.bf16.gmra.mxu1 %v3125_v37 }
 0x130   : > { %7229 = vst [vmem:[#allocation33_spill] sm:$0xff] %v4755_v13  ;;  %v4757_v23 = vadd.f32 %v1109_v2, %v991_v27  ;;  %v4767_v21 = vsel %vm4314_vm12, %v4755_v13, -1e+30  ;;  %v993_v27 = vadd.f32 %v4287_v62, %v4484_v41  ;;  %v1510_v55 = vmul.f32 1.442695, %v1466_v36 }
 0x131   : > { %1406 = vmax.xlane.f32.xlu2 %v4751_v43  ;;  %2380 = vmax.xlane.f32.xlu1 %v4762_v9  ;;  %3482 = vpow2.f32 %v1997_v47  ;;  %v932_v11 = vpop.f32.mrf.mxu0  ;;  %v4783_v40 = vsel %vm4308_vm11, %v4755_v13, -1e+30  ;;  %v4788_v18 = vsel %vm4302_vm10, %v4755_v13, -1e+30 }
 0x132   : > { %1408 = vmax.xlane.f32.xlu0 %v4767_v21  ;;  %3484 = vtanh.f32 %v1169_v42  ;;  %v933_v10 = vadd.f32 %v4287_v62, %v932_v11  ;;  %7232 = vst [vmem:[#allocation36_spill] sm:$0xff] %v4783_v40  ;;  %v1051_v41 = vpop.f32.mrf.mxu1  ;;  %v1170_v1 = vpop.f32.mrf.mxu2 }
 0x133   : > { %3486 = vpow2.f32 %v1510_v55 }
 0x134   : > { %v1868_v4 = vpop.xlane.xlu2 %1867  ;;  %v1052_v11 = vadd.f32 %v1051_v41, %v933_v10  ;;  %v998_v41 = vadd.f32 %v4287_v62, %v4540_v44 }
 0x135   : > { %v1381_v26 = vpop.xlane.xlu0 %1380  ;;  %v1954_v37 = vsub.f32 %v4356_v51, %v1868_v4 }
 0x136   : > { %v1467_v36 = vsub.f32 %v4361_v52, %v1381_v26  ;;  %v1171_v4 = vadd.f32 %v1170_v1, %v1052_v11 }
 0x137   : > { %v1111_v2 = vpop.f32.mrf.mxu3  ;;  %v4775_v12 = vpop.eup %3482  ;;  %v1999_v13 = vmul.f32 1.442695, %v1954_v37 }
 0x138   : > { %7231 = vst [vmem:[#allocation35_spill] sm:$0xff] %v4775_v12  ;;  %v4778_v28 = vadd.f32 %v1111_v2, %v993_v27  ;;  %v3485_v47 = vpop.eup %3484  ;;  %v1512_v55 = vmul.f32 1.442695, %v1467_v36 }
 0x139   : > { %2382 = vmax.xlane.f32.xlu2 %v4783_v40  ;;  %1895 = vmax.xlane.f32.xlu1 %v4788_v18  ;;  %v4799_v9 = vsel %vm4298_vm7, %v3485_v47, %v1169_v42  ;;  %v996_v40 = vadd.f32 %v4287_v62, %v4510_v0  ;;  %v4803_v51 = vpop.eup %3486  ;;  %3488 = vpow2.f32 %v1999_v13 }
 0x13a   : > { %2085 = vadd.xlane.f32.xlu0 %v4775_v12  ;;  %7234 = vst [vmem:[#allocation38_spill] sm:$0xff] %v4799_v9  ;;  %v935_v12 = vpop.f32.mrf.mxu0  ;;  %v4810_v26 = vsel %vm4314_vm12, %v4799_v9, -1e+30  ;;  %v4817_v0 = vsel %vm4308_vm11, %v4799_v9, -1e+30  ;;  %3490 = vpow2.f32 %v1512_v55  ;;  %v1173_v13 = vpop.f32.mrf.mxu2 }
 0x13b   : > { %7235 = vst [vmem:[#allocation39_spill] sm:$0xff] %v4803_v51  ;;  %v936_v42 = vadd.f32 %v4287_v62, %v935_v12  ;;  %3492 = vtanh.f32 %v1171_v4  ;;  %v4834_v11 = vsel %vm4302_vm10, %v4799_v9, -1e+30 }
 0x13c   : > { %v1383_v27 = vpop.xlane.xlu1 %1382  ;;  %7236 = vst [vmem:[#allocation40_spill] sm:$0xff] %v4817_v0 }
 0x13d   : > { %v4795_v2 = vpop.xlane.xlu0 %2354 }
 0x13e   : > { %7233 = vst [vmem:[#allocation37_spill] sm:$0xff] %v4795_v2  ;;  %v3364_v2 = vld [vmem:[%s4168_s9 + $0x154] sm:$0xf] }
 0x13f   : > { %v1114_v5 = vpop.f32.mrf.mxu3  ;;  %v4827_v37 = vpop.eup %3488 }
 0x140   : > { %v4805_v52 = vadd.f32 %v1114_v5, %v996_v40  ;;  %v1054_v5 = vpop.f32.mrf.mxu1  ;;  %7239 = vst [vmem:[#allocation43_spill] sm:$0xff] %v4827_v37  ;;  %v4836_v55 = vpop.eup %3490 }
 0x141   : > { %1410 = vmax.xlane.f32.xlu1 %v4810_v26  ;;  %1598 = vadd.xlane.f32.xlu2 %v4803_v51  ;;  %v1055_v12 = vadd.f32 %v1054_v5, %v936_v42  ;;  %7240 = vst [vmem:[#allocation44_spill] sm:$0xff] %v4836_v55  ;;  %v1468_v5 = vsub.f32 %v4383_v7, %v1383_v27  ;;  %v3493_v44 = vpop.eup %3492 }
 0x142   : > { %2384 = vmax.xlane.f32.xlu0 %v4817_v0  ;;  %v3132_v0 = vld [vmem:[%s4168_s9 + $0x150] sm:$0xf]  ;;  %v4851_v27 = vsel %vm4298_vm7, %v3493_v44, %v1171_v4 }
 0x143   : > { %v1174_v42 = vadd.f32 %v1173_v13, %v1055_v12  ;;  %v1514_v12 = vmul.f32 1.442695, %v1468_v5  ;;  %v937_v13 = vpop.f32.mrf.mxu0  ;;  %7242 = vst [vmem:[#allocation46_spill] sm:$0xff] %v4851_v27  ;;  %v4859_v9 = vsel %vm4308_vm11, %v4851_v27, -1e+30 }
 0x144   : > { %v4821_v1 = vpop.xlane.xlu2 %2358  ;;  %v4823_v10 = vpop.xlane.xlu1 %2356  ;;  %7243 = vst [vmem:[#allocation47_spill] sm:$0xff] %v4859_v9  ;;  %v4864_v5 = vsel %vm4314_vm12, %v4851_v27, -1e+30 }
 0x145   : > { %7237 = vst [vmem:[#allocation41_spill] sm:$0xff] %v4821_v1  ;;  %v1870_v40 = vpop.xlane.xlu0 %1869  ;;  %v3365_v1 = vld [vmem:[%s4168_s9 + $0x158] sm:$0xf0]  ;;  %3494 = vtanh.f32 %v1174_v42 }
 0x146   : > { %7238 = vst [vmem:[#allocation42_spill] sm:$0xff] %v4823_v10  ;;  %3496 = vpow2.f32 %v1514_v12 }
 0x147   : > { %v1116_v47 = vpop.f32.mrf.mxu3 }
 0x148   : > { %v4829_v36 = vadd.f32 %v1116_v47, %v998_v41  ;;  %v1955_v41 = vsub.f32 %v4417_v31, %v1870_v40  ;;  %v3134_v31 = vld [vmem:[%s4168_s9 + $0x15c] sm:$0xf0]  ;;  %v1056_v4 = vpop.f32.mrf.mxu1 }
 0x149   : > { %2087 = vadd.xlane.f32.xlu1 %v4827_v37  ;;  %1897 = vmax.xlane.f32.xlu2 %v4834_v11  ;;  %v3133_v37 = vor.u32 %v3365_v1, %v3132_v0  ;;  %v3137_v40 = vor.u32 %v3364_v2, %v3134_v31  ;;  %v4871_v2 = vsel %vm4302_vm10, %v4851_v27, -1e+30 }
 0x14a   : > { %1600 = vadd.xlane.f32.xlu0 %v4836_v55  ;;  %v2001_v10 = vmul.f32 1.442695, %v1955_v41  ;;  %v938_v55 = vadd.f32 %v4287_v62, %v937_v13 }
 0x14b   : > { %959 = vmatmul.bf16.gmra.mxu0 %v3133_v37  ;;  %1078 = vmatmul.bf16.gmra.mxu1 %v3137_v40  ;;  %v3495_v0 = vpop.eup %3494 }
 0x14c   : > { %v4843_v47 = vpop.xlane.xlu2 %1386  ;;  %v1385_v51 = vpop.xlane.xlu1 %1384  ;;  %3498 = vpow2.f32 %v2001_v10  ;;  %v1057_v1 = vadd.f32 %v1056_v4, %v938_v55  ;;  %v4879_v13 = vsel %vm4298_vm7, %v3495_v0, %v1174_v42 }
 0x14d   : > { %v4847_v7 = vpop.xlane.xlu0 %2360  ;;  %7244 = vst [vmem:[#allocation48_spill] sm:$0xff] %v4879_v13  ;;  %v4881_v31 = vpop.eup %3496  ;;  %v4889_v55 = vsel %vm4314_vm12, %v4879_v13, -1e+30 }
 0x14e   : > { %7241 = vst [vmem:[#allocation45_spill] sm:$0xff] %v4847_v7  ;;  %v940_v0 = vpop.f32.mrf.mxu0 }
 0x14f   : > { %7245 = vst [vmem:[#allocation49_spill] sm:$0xff] %v4881_v31 }
 0x150   : > { %7247 = vst [vmem:[#allocation51_spill] sm:$0xff] %v4889_v55 }
 0x151   : > { %2386 = vmax.xlane.f32.xlu1 %v4859_v9  ;;  %1412 = vmax.xlane.f32.xlu2 %v4864_v5  ;;  %v1175_v9 = vpop.f32.mrf.mxu2 }
 0x152   : > { %1899 = vmax.xlane.f32.xlu0 %v4871_v2  ;;  %v4883_v10 = vpop.eup %3498  ;;  %v1176_v27 = vadd.f32 %v1175_v9, %v1057_v1 }
 0x153   : > { %7246 = vst [vmem:[#allocation50_spill] sm:$0xff] %v4883_v10 }
 0x154   : > { %v1874_v37 = vpop.xlane.xlu2 %1873  ;;  %v1872_v44 = vpop.xlane.xlu1 %1871 }
 0x155   : > { %v1956_v41 = vsub.f32 %v4470_v16, %v1872_v44  ;;  %v4875_v12 = vpop.xlane.xlu0 %1875  ;;  %v1469_v16 = vsub.f32 %v4438_v54, %v1385_v51  ;;  %v941_v44 = vadd.f32 %v4287_v62, %v940_v0  ;;  %v4906_v54 = vsel %vm4302_vm10, %v4879_v13, -1e+30 }
 0x156   : > { %7250 = vst [vmem:[#allocation54_spill] sm:$0xff] %v4906_v54  ;;  %v4911_v51 = vsel %vm4308_vm11, %v4879_v13, -1e+30  ;;  %v1957_v62 = vsub.f32 %v4465_v15, %v1874_v37  ;;  %v3368_v13 = vld [vmem:[%s4168_s9 + $0x170] sm:$0xf0] }
 0x157   : > { %v2003_v7 = vmul.f32 1.442695, %v1956_v41  ;;  %v1516_v4 = vmul.f32 1.442695, %v1469_v16  ;;  %7251 = vst [vmem:[#allocation55_spill] sm:$0xff] %v4911_v51  ;;  %v1470_v41 = vsub.f32 %v4433_v53, %v4843_v47  ;;  %v1059_v16 = vpop.f32.mrf.mxu1 }
 0x158   : > { %v1060_v0 = vadd.f32 %v1059_v16, %v941_v44  ;;  %v2005_v37 = vmul.f32 1.442695, %v1957_v62 }
 0x159   : > { %1602 = vadd.xlane.f32.xlu1 %v4881_v31  ;;  %2089 = vadd.xlane.f32.xlu2 %v4883_v10  ;;  %3500 = vpow2.f32 %v2003_v7  ;;  %v1518_v53 = vmul.f32 1.442695, %v1470_v41 }
 0x15a   : > { %1414 = vmax.xlane.f32.xlu0 %v4889_v55  ;;  %3502 = vtanh.f32 %v1176_v27  ;;  %v3146_v55 = vld [vmem:[%s4168_s9 + $0x174] sm:$0xf0] }
 0x15b   : > { %3504 = vpow2.f32 %v1516_v4 }
 0x15c   : > { %v4894_v42 = vpop.xlane.xlu2 %1388  ;;  %v4896_v40 = vpop.xlane.xlu1 %2362  ;;  %3506 = vpow2.f32 %v2005_v37 }
 0x15d   : > { %7248 = vst [vmem:[#allocation52_spill] sm:$0xff] %v4896_v40  ;;  %v4898_v9 = vpop.xlane.xlu0 %1390  ;;  %v3144_v40 = vld [vmem:[%s4168_s9 + $0x168] sm:$0xf]  ;;  %3508 = vpow2.f32 %v1518_v53 }
 0x15e   : > { %v3145_v15 = vor.u32 %v3368_v13, %v3144_v40  ;;  %v1218_v13 = vpop.f32.mrf.mxu3 }
 0x15f   : > { %v4900_v1 = vpop.eup %3500 }
 0x160   : > { %7249 = vst [vmem:[#allocation53_spill] sm:$0xff] %v4900_v1  ;;  %v3503_v7 = vpop.eup %3502  ;;  %964 = vmatmul.bf16.gmra.mxu0 %v3145_v15 }
 0x161   : > { %1901 = vmax.xlane.f32.xlu1 %v4906_v54  ;;  %2388 = vmax.xlane.f32.xlu2 %v4911_v51  ;;  %v4929_v4 = vsel %vm4298_vm7, %v3503_v7, %v1176_v27  ;;  %v1178_v54 = vpop.f32.mrf.mxu2  ;;  %v4933_v44 = vpop.eup %3504 }
 0x162   : > { %2091 = vadd.xlane.f32.xlu0 %v4900_v1  ;;  %7254 = vst [vmem:[#allocation58_spill] sm:$0xff] %v4929_v4  ;;  %v3367_v1 = vld [vmem:[%s4168_s9 + $0x16c] sm:$0xf]  ;;  %v1179_v16 = vadd.f32 %v1178_v54, %v1060_v0  ;;  %v4944_v27 = vsel %vm4308_vm11, %v4929_v4, -1e+30  ;;  %v942_v7 = vpop.f32.mrf.mxu0  ;;  %v4962_v0 = vpop.eup %3506 }
 0x163   : > { %v3149_v47 = vor.u32 %v3367_v1, %v3146_v55  ;;  %7255 = vst [vmem:[#allocation59_spill] sm:$0xff] %v4933_v44  ;;  %v4951_v55 = vld [vmem:[%s7006_s2] ss:$0 sm:$0xff]  ;;  %v4970_v53 = vpop.eup %3508 }
 0x164   : > { %v4919_v10 = vpop.xlane.xlu2 %2364  ;;  %v4921_v31 = vpop.xlane.xlu1 %1877  ;;  %7257 = vst [vmem:[#allocation61_spill] sm:$0xff] %v4944_v27  ;;  %v981_v40 = vadd.f32 %v4951_v55, %v4346_v48  ;;  %3510 = vtanh.f32 %v1179_v16  ;;  %v943_v37 = vadd.f32 %v4951_v55, %v942_v7  ;;  %v4968_v48 = vsel %vm4302_vm10, %v4929_v4, -1e+30 }
 0x165   : > { %7252 = vst [vmem:[#allocation56_spill] sm:$0xff] %v4919_v10  ;;  %v4925_v51 = vpop.xlane.xlu0 %2366  ;;  %v4938_v10 = vsel %vm4314_vm12, %v4929_v4, -1e+30  ;;  %1083 = vmatmul.bf16.gmra.mxu1 %v3149_v47  ;;  %v1061_v47 = vpop.f32.mrf.mxu1 }
 0x166   : > { %7253 = vst [vmem:[#allocation57_spill] sm:$0xff] %v4925_v51  ;;  %v1100_v41 = vadd.f32 %v4627_v3, %v981_v40  ;;  %v1062_v40 = vadd.f32 %v1061_v47, %v943_v37 }
 0x167   : > { %7256 = vst [vmem:[#allocation60_spill] sm:$0xff] %v4938_v10 }
 0x168   : > { %7258 = vst [vmem:[#allocation62_spill] sm:$0xff] %v4962_v0  ;;  %v1219_v15 = vadd.f32 %v1218_v13, %v1100_v41  ;;  %v1958_v13 = vsub.f32 %v4475_v17, %v4875_v12  ;;  %v3158_v17 = vld [vmem:[%s4168_s9 + $0x18c] sm:$0xf0] }
 0x169   : > { %1416 = vmax.xlane.f32.xlu1 %v4938_v10  ;;  %1604 = vadd.xlane.f32.xlu2 %v4933_v44  ;;  %7259 = vst [vmem:[#allocation63_spill] sm:$0xff] %v4968_v48  ;;  %v3156_v44 = vld [vmem:[%s4168_s9 + $0x180] sm:$0xf]  ;;  %v3370_v10 = vld [vmem:[%s4168_s9 + $0x184] sm:$0xf]  ;;  %v1180_v12 = vpop.f32.mrf.mxu2 }
 0x16a   : > { %2390 = vmax.xlane.f32.xlu0 %v4944_v27  ;;  %7260 = vst [vmem:[#allocation64_spill] sm:$0xff] %v4970_v53  ;;  %v3511_v3 = vpop.eup %3510  ;;  %3512 = vtanh.f32 %v1219_v15  ;;  %v3371_v27 = vld [vmem:[%s4168_s9 + $0x188] sm:$0xf0]  ;;  %v1181_v37 = vadd.f32 %v1180_v12, %v1062_v40  ;;  %s2961_s9 = sshll.u32 %s7721_s22, 3 }
 0x16b   : > { %v3157_v4 = vor.u32 %v3371_v27, %v3156_v44  ;;  %s6708_s16 = scalar_lea.vmem %s7007_s3, %s2961_s9 }
 0x16c   : > { %v4955_v1 = vpop.xlane.xlu2 %1879  ;;  %v4957_v54 = vpop.xlane.xlu1 %1392 }
 0x16d   : > { %v4959_v62 = vpop.xlane.xlu0 %1881 }
 0x170   : > { %969 = vmatmul.bf16.gmra.mxu0 %v3157_v4  ;;  %v1471_v4 = vsub.f32 %v4493_v45, %v4894_v42  ;;  %v945_v42 = vpop.f32.mrf.mxu0 }
 0x171   : > { %2093 = vadd.xlane.f32.xlu1 %v4962_v0  ;;  %1903 = vmax.xlane.f32.xlu2 %v4968_v48  ;;  %v4987_v0 = vsel %vm4298_vm7, %v3511_v3, %v1179_v16  ;;  %v2007_v48 = vmul.f32 1.442695, %v1958_v13  ;;  %v1220_v3 = vpop.f32.mrf.mxu3  ;;  %v946_v12 = vadd.f32 %v4951_v55, %v945_v42 }
 0x172   : > { %1606 = vadd.xlane.f32.xlu0 %v4970_v53  ;;  %7262 = vst [vmem:[#allocation66_spill] sm:$0xff] %v4987_v0  ;;  %v3161_v53 = vor.u32 %v3370_v10, %v3158_v17  ;;  %v4994_v47 = vsel %vm4308_vm11, %v4987_v0, -1e+30  ;;  %v5005_v44 = vsel %vm4302_vm10, %v4987_v0, -1e+30  ;;  %v3513_v10 = vpop.eup %3512  ;;  %v1221_v45 = vadd.f32 %v1220_v3, %v4666_v19 }
 0x173   : > { %7263 = vst [vmem:[#allocation67_spill] sm:$0xff] %v4994_v47  ;;  %3514 = vpow2.f32 %v2007_v48  ;;  %v5019_v40 = vsel %vm4298_vm7, %v3513_v10, %v1219_v15  ;;  %v1520_v17 = vmul.f32 1.442695, %v1471_v4  ;;  %v1959_v19 = vsub.f32 %v4526_v8, %v4921_v31  ;;  %v1064_v4 = vpop.f32.mrf.mxu1 }
 0x174   : > { %v4977_v7 = vpop.xlane.xlu2 %1394  ;;  %v4979_v41 = vpop.xlane.xlu1 %2368  ;;  %3516 = vtanh.f32 %v1181_v37  ;;  %7266 = vst [vmem:[#allocation70_spill] sm:$0xff] %v5019_v40  ;;  %v5034_v15 = vsel %vm4314_vm12, %v5019_v40, -1e+30 }
 0x175   : > { %7261 = vst [vmem:[#allocation65_spill] sm:$0xff] %v4979_v41  ;;  %v4983_v51 = vpop.xlane.xlu0 %1396  ;;  %v4999_v41 = vsel %vm4314_vm12, %v4987_v0, -1e+30  ;;  %1088 = vmatmul.bf16.gmra.mxu1 %v3161_v53  ;;  %v5027_v53 = vsel %vm4302_vm10, %v5019_v40, -1e+30  ;;  %3518 = vpow2.f32 %v1520_v17  ;;  %v1183_v0 = vpop.f32.mrf.mxu2 }
 0x176   : > { %7268 = vst [vmem:[#allocation72_spill] sm:$0xff] %v5034_v15  ;;  %3520 = vtanh.f32 %v1221_v45 }
 0x179   : > { %2392 = vmax.xlane.f32.xlu1 %v4994_v47  ;;  %1418 = vmax.xlane.f32.xlu2 %v4999_v41  ;;  %v5021_v48 = vpop.eup %3514  ;;  %v1065_v47 = vadd.f32 %v1064_v4, %v946_v12 }
 0x17a   : > { %1905 = vmax.xlane.f32.xlu0 %v5005_v44  ;;  %7267 = vst [vmem:[#allocation71_spill] sm:$0xff] %v5021_v48  ;;  %v3517_v10 = vpop.eup %3516 }
 0x17b   : > { %v5050_v17 = vpop.eup %3518  ;;  %v1184_v31 = vadd.f32 %v1183_v0, %v1065_v47 }
 0x17c   : > { %v5011_v16 = vpop.xlane.xlu2 %2370  ;;  %v5013_v27 = vpop.xlane.xlu1 %1883  ;;  %7270 = vst [vmem:[#allocation74_spill] sm:$0xff] %v5050_v17 }
 0x17d   : > { %7264 = vst [vmem:[#allocation68_spill] sm:$0xff] %v5011_v16  ;;  %v5015_v13 = vpop.xlane.xlu0 %2372  ;;  %v5048_v16 = vsel %vm4298_vm7, %v3517_v10, %v1181_v37  ;;  %v3521_v37 = vpop.eup %3520  ;;  %v1472_v10 = vsub.f32 %v4503_v50, %v4898_v9 }
 0x17e   : > { %7265 = vst [vmem:[#allocation69_spill] sm:$0xff] %v5015_v13  ;;  %v5055_v8 = vsel %vm4308_vm11, %v5048_v16, -1e+30  ;;  %v5061_v12 = vsel %vm4314_vm12, %v5048_v16, -1e+30  ;;  %v5075_v47 = vsel %vm4298_vm7, %v3521_v37, %v1221_v45 }
 0x17f   : > { %7269 = vst [vmem:[#allocation73_spill] sm:$0xff] %v5048_v16  ;;  %v5080_v50 = vsel %vm4302_vm10, %v5048_v16, -1e+30  ;;  %v5085_v9 = vsel %vm4302_vm10, %v5075_v47, -1e+30  ;;  %v947_v16 = vpop.f32.mrf.mxu0 }
 0x180   : > { %7271 = vst [vmem:[#allocation75_spill] sm:$0xff] %v5055_v8 }
 0x181   : > { %1937 = vmax.xlane.f32.xlu1 %v5027_v53  ;;  %2095 = vadd.xlane.f32.xlu2 %v5021_v48  ;;  %v2009_v48 = vmul.f32 1.442695, %v1959_v19  ;;  %7272 = vst [vmem:[#allocation76_spill] sm:$0xff] %v5061_v12 }
 0x182   : > { %1450 = vmax.xlane.f32.xlu0 %v5034_v15  ;;  %7274 = vst [vmem:[#allocation78_spill] sm:$0xff] %v5075_v47 }
 0x183   : > { %3522 = vpow2.f32 %v2009_v48  ;;  %7275 = vst [vmem:[#allocation79_spill] sm:$0xff] %v5080_v50 }
 0x184   : > { %v5040_v3 = vpop.xlane.xlu2 %1885  ;;  %v5042_v42 = vpop.xlane.xlu1 %1398  ;;  %3524 = vtanh.f32 %v1184_v31  ;;  %7276 = vst [vmem:[#allocation80_spill] sm:$0xff] %v5085_v9 }
 0x185   : > { %v5044_v13 = vpop.xlane.xlu0 %1887 }
 0x189   : > { %1608 = vadd.xlane.f32.xlu1 %v5050_v17  ;;  %2394 = vmax.xlane.f32.xlu2 %v5055_v8  ;;  %v1522_v17 = vmul.f32 1.442695, %v1472_v10  ;;  %v1223_v8 = vpop.f32.mrf.mxu3  ;;  %v5087_v48 = vpop.eup %3522 }
 0x18a   : > { %1420 = vmax.xlane.f32.xlu0 %v5061_v12  ;;  %7277 = vst [vmem:[#allocation81_spill] sm:$0xff] %v5087_v48  ;;  %v3525_v45 = vpop.eup %3524 }
 0x18b   : > { %3526 = vpow2.f32 %v1522_v17  ;;  %v5101_v12 = vsel %vm4298_vm7, %v3525_v45, %v1184_v31  ;;  %v5109_v17 = vsel %vm4314_vm12, %v5075_v47, -1e+30  ;;  %v1960_v31 = vsub.f32 %v4549_v59, %v4955_v1 }
 0x18c   : > { %v5067_v19 = vpop.xlane.xlu2 %1400  ;;  %v5069_v4 = vpop.xlane.xlu1 %2374  ;;  %7280 = vst [vmem:[#allocation84_spill] sm:$0xff] %v5101_v12  ;;  %v1473_v45 = vsub.f32 %v4554_v60, %v4957_v54  ;;  %v5141_v60 = vsel %vm4302_vm10, %v5101_v12, -1e+30 }
 0x18d   : > { %7273 = vst [vmem:[#allocation77_spill] sm:$0xff] %v5069_v4  ;;  %v5071_v0 = vpop.xlane.xlu0 %1402  ;;  %v1224_v4 = vadd.f32 %v1223_v8, %v4694_v38  ;;  %v948_v8 = vadd.f32 %v4951_v55, %v947_v16  ;;  %v2011_v15 = vmul.f32 1.442695, %v1960_v31 }
 0x18e   : > { %7282 = vst [vmem:[#allocation86_spill] sm:$0xff] %v5109_v17  ;;  %v1524_v59 = vmul.f32 1.442695, %v1473_v45 }
 0x18f   : > { %3528 = vtanh.f32 %v1224_v4  ;;  %7286 = vst [vmem:[#allocation90_spill] sm:$0xff] %v5141_v60 }
 0x190   : > { %3530 = vpow2.f32 %v2011_v15 }
 0x191   : > { %1907 = vmax.xlane.f32.xlu1 %v5080_v50  ;;  %1939 = vmax.xlane.f32.xlu2 %v5085_v9  ;;  %v5103_v38 = vpop.eup %3526  ;;  %v1185_v50 = vpop.f32.mrf.mxu2  ;;  %3532 = vpow2.f32 %v1524_v59 }
 0x192   : > { %2097 = vadd.xlane.f32.xlu0 %v5087_v48  ;;  %7281 = vst [vmem:[#allocation85_spill] sm:$0xff] %v5103_v38  ;;  %v1066_v48 = vpop.f32.mrf.mxu1 }
 0x194   : > { %v5093_v37 = vpop.xlane.xlu2 %2376  ;;  %v5095_v10 = vpop.xlane.xlu1 %1889 }
 0x195   : > { %7278 = vst [vmem:[#allocation82_spill] sm:$0xff] %v5093_v37  ;;  %v5097_v40 = vpop.xlane.xlu0 %2378  ;;  %v3529_v16 = vpop.eup %3528  ;;  %v1067_v37 = vadd.f32 %v1066_v48, %v948_v8 }
 0x196   : > { %7279 = vst [vmem:[#allocation83_spill] sm:$0xff] %v5097_v40  ;;  %v5115_v40 = vsel %vm4308_vm11, %v5101_v12, -1e+30  ;;  %v1225_v48 = vpop.f32.mrf.mxu3  ;;  %v950_v8 = vpop.f32.mrf.mxu0 }
 0x197   : > { %7283 = vst [vmem:[#allocation87_spill] sm:$0xff] %v5115_v40  ;;  %v1186_v1 = vadd.f32 %v1185_v50, %v1067_v37  ;;  %v5157_v31 = vpop.eup %3530  ;;  %v951_v45 = vadd.f32 %v4951_v55, %v950_v8 }
 0x198   : > { %7289 = vst [vmem:[#allocation93_spill] sm:$0xff] %v5157_v31  ;;  %v5166_v59 = vpop.eup %3532 }
 0x199   : > { %1452 = vmax.xlane.f32.xlu1 %v5109_v17  ;;  %1610 = vadd.xlane.f32.xlu2 %v5103_v38  ;;  %v5131_v38 = vsel %vm4298_vm7, %v3529_v16, %v1224_v4  ;;  %3534 = vtanh.f32 %v1186_v1  ;;  %v1226_v16 = vadd.f32 %v1225_v48, %v4723_v34  ;;  %7291 = vst [vmem:[#allocation95_spill] sm:$0xff] %v5166_v59 }
 0x19a   : > { %2396 = vmax.xlane.f32.xlu0 %v5115_v40  ;;  %7284 = vst [vmem:[#allocation88_spill] sm:$0xff] %v5131_v38  ;;  %v5136_v40 = vsel %vm4314_vm12, %v5101_v12, -1e+30  ;;  %v5147_v54 = vsel %vm4302_vm10, %v5131_v38, -1e+30  ;;  %v1961_v12 = vsub.f32 %v4559_v56, %v4959_v62  ;;  %v1069_v34 = vpop.f32.mrf.mxu1 }
 0x19b   : > { %7285 = vst [vmem:[#allocation89_spill] sm:$0xff] %v5136_v40  ;;  %v5164_v15 = vsel %vm4314_vm12, %v5131_v38, -1e+30  ;;  %3536 = vtanh.f32 %v1226_v16  ;;  %v1070_v48 = vadd.f32 %v1069_v34, %v951_v45 }
 0x19c   : > { %v5123_v47 = vpop.xlane.xlu2 %1891  ;;  %v5125_v17 = vpop.xlane.xlu1 %1404  ;;  %7287 = vst [vmem:[#allocation91_spill] sm:$0xff] %v5147_v54 }
 0x19d   : > { %v5127_v9 = vpop.xlane.xlu0 %1893  ;;  %7290 = vst [vmem:[#allocation94_spill] sm:$0xff] %v5164_v15 }
 0x19e   : > { %v1228_v34 = vpop.f32.mrf.mxu3 }
 0x1a1   : > { %1422 = vmax.xlane.f32.xlu1 %v5136_v40  ;;  %1909 = vmax.xlane.f32.xlu2 %v5141_v60  ;;  %v1188_v40 = vpop.f32.mrf.mxu2 }
 0x1a2   : > { %1941 = vmax.xlane.f32.xlu0 %v5147_v54  ;;  %v1189_v60 = vadd.f32 %v1188_v40, %v1070_v48 }
 0x1a4   : > { %v5151_v4 = vpop.xlane.xlu2 %1406  ;;  %v5153_v50 = vpop.xlane.xlu1 %2380 }
 0x1a5   : > { %7288 = vst [vmem:[#allocation92_spill] sm:$0xff] %v5153_v50  ;;  %v5155_v37 = vpop.xlane.xlu0 %1408  ;;  %v3535_v50 = vpop.eup %3534 }
 0x1a6   : > { %v3537_v40 = vpop.eup %3536 }
 0x1a9   : > { %2099 = vadd.xlane.f32.xlu1 %v5157_v31  ;;  %1454 = vmax.xlane.f32.xlu2 %v5164_v15  ;;  %v5181_v31 = vsel %vm4298_vm7, %v3535_v50, %v1186_v1  ;;  %v2013_v15 = vmul.f32 1.442695, %v1961_v12  ;;  %v1474_v12 = vsub.f32 %v4571_v32, %v4977_v7  ;;  %v1229_v32 = vadd.f32 %v1228_v34, %v4757_v23 }
 0x1aa   : > { %1612 = vadd.xlane.f32.xlu0 %v5166_v59  ;;  %7294 = vst [vmem:[#allocation98_spill] sm:$0xff] %v5181_v31  ;;  %v5186_v56 = vsel %vm4308_vm11, %v5181_v31, -1e+30  ;;  %v5191_v62 = vsel %vm4314_vm12, %v5181_v31, -1e+30  ;;  %v5211_v59 = vsel %vm4298_vm7, %v3537_v40, %v1226_v16  ;;  %v1962_v23 = vsub.f32 %v4616_v57, %v5013_v27 }
 0x1ab   : > { %7295 = vst [vmem:[#allocation99_spill] sm:$0xff] %v5186_v56  ;;  %v5197_v1 = vsel %vm4302_vm10, %v5181_v31, -1e+30  ;;  %3538 = vpow2.f32 %v2013_v15  ;;  %v5219_v7 = vsel %vm4302_vm10, %v5211_v59, -1e+30 }
 0x1ac   : > { %v5173_v8 = vpop.xlane.xlu2 %2382  ;;  %v5175_v54 = vpop.xlane.xlu1 %1895  ;;  %3540 = vtanh.f32 %v1189_v60  ;;  %7298 = vst [vmem:[#allocation102_spill] sm:$0xff] %v5211_v59  ;;  %v5226_v16 = vsel %vm4314_vm12, %v5211_v59, -1e+30 }
 0x1ad   : > { %7292 = vst [vmem:[#allocation96_spill] sm:$0xff] %v5173_v8  ;;  %v5177_v38 = vpop.xlane.xlu0 %2085  ;;  %v1190_v59 = vpop.f32.mrf.mxu2 }
 0x1ae   : > { %7293 = vst [vmem:[#allocation97_spill] sm:$0xff] %v5177_v38  ;;  %v1526_v38 = vmul.f32 1.442695, %v1474_v12  ;;  %v1071_v12 = vpop.f32.mrf.mxu1 }
 0x1b0   : > { %3542 = vpow2.f32 %v1526_v38 }
 0x1b1   : > { %2398 = vmax.xlane.f32.xlu1 %v5186_v56  ;;  %1424 = vmax.xlane.f32.xlu2 %v5191_v62  ;;  %v952_v56 = vpop.f32.mrf.mxu0  ;;  %v5213_v15 = vpop.eup %3538  ;;  %3544 = vtanh.f32 %v1229_v32 }
 0x1b2   : > { %1911 = vmax.xlane.f32.xlu0 %v5197_v1  ;;  %7299 = vst [vmem:[#allocation103_spill] sm:$0xff] %v5213_v15  ;;  %v3541_v40 = vpop.eup %3540 }
 0x1b3   : > { %v5240_v31 = vsel %vm4298_vm7, %v3541_v40, %v1189_v60  ;;  %v1475_v40 = vsub.f32 %v4588_v24, %v4983_v51 }
 0x1b4   : > { %v5203_v50 = vpop.xlane.xlu1 %1410  ;;  %v5205_v45 = vpop.xlane.xlu2 %1598  ;;  %7302 = vst [vmem:[#allocation106_spill] sm:$0xff] %v5240_v31  ;;  %v5247_v57 = vsel %vm4308_vm11, %v5240_v31, -1e+30  ;;  %v5272_v24 = vsel %vm4302_vm10, %v5240_v31, -1e+30 }
 0x1b5   : > { %7296 = vst [vmem:[#allocation100_spill] sm:$0xff] %v5205_v45  ;;  %v5207_v48 = vpop.xlane.xlu0 %2384  ;;  %v953_v45 = vadd.f32 %v4951_v55, %v952_v56 }
 0x1b6   : > { %7297 = vst [vmem:[#allocation101_spill] sm:$0xff] %v5207_v48  ;;  %v5242_v38 = vpop.eup %3542 }
 0x1b7   : > { %v1072_v48 = vadd.f32 %v1071_v12, %v953_v45  ;;  %7303 = vst [vmem:[#allocation107_spill] sm:$0xff] %v5242_v38  ;;  %v5253_v45 = vsel %vm4314_vm12, %v5240_v31, -1e+30  ;;  %v3545_v60 = vpop.eup %3544 }
 0x1b8   : > { %7304 = vst [vmem:[#allocation108_spill] sm:$0xff] %v5247_v57 }
 0x1b9   : > { %1943 = vmax.xlane.f32.xlu1 %v5219_v7  ;;  %2101 = vadd.xlane.f32.xlu2 %v5213_v15  ;;  %v2015_v15 = vmul.f32 1.442695, %v1962_v23  ;;  %v1191_v27 = vadd.f32 %v1190_v59, %v1072_v48  ;;  %7305 = vst [vmem:[#allocation109_spill] sm:$0xff] %v5253_v45  ;;  %v5267_v48 = vsel %vm4298_vm7, %v3545_v60, %v1229_v32 }
 0x1ba   : > { %1456 = vmax.xlane.f32.xlu0 %v5226_v16  ;;  %7307 = vst [vmem:[#allocation111_spill] sm:$0xff] %v5267_v48  ;;  %v5277_v51 = vsel %vm4302_vm10, %v5267_v48, -1e+30 }
 0x1bb   : > { %3546 = vpow2.f32 %v2015_v15  ;;  %7308 = vst [vmem:[#allocation112_spill] sm:$0xff] %v5277_v51 }
 0x1bc   : > { %v5232_v34 = vpop.xlane.xlu1 %2087  ;;  %v5234_v56 = vpop.xlane.xlu2 %1897  ;;  %3548 = vtanh.f32 %v1191_v27 }
 0x1bd   : > { %7300 = vst [vmem:[#allocation104_spill] sm:$0xff] %v5232_v34  ;;  %v5236_v8 = vpop.xlane.xlu0 %1600 }
 0x1be   : > { %7301 = vst [vmem:[#allocation105_spill] sm:$0xff] %v5236_v8  ;;  %v1230_v8 = vpop.f32.mrf.mxu3 }
 0x1bf   : > { %v1231_v34 = vadd.f32 %v1230_v8, %v4778_v28  ;;  %v955_v28 = vpop.f32.mrf.mxu0 }
 0x1c0   : > { %v956_v31 = vadd.f32 %v4951_v55, %v955_v28  ;;  %v1476_v28 = vsub.f32 %v4643_v39, %v5042_v42 }
 0x1c1   : > { %1614 = vadd.xlane.f32.xlu1 %v5242_v38  ;;  %2400 = vmax.xlane.f32.xlu2 %v5247_v57  ;;  %v1528_v38 = vmul.f32 1.442695, %v1475_v40  ;;  %v5279_v15 = vpop.eup %3546 }
 0x1c2   : > { %1426 = vmax.xlane.f32.xlu0 %v5253_v45  ;;  %7309 = vst [vmem:[#allocation113_spill] sm:$0xff] %v5279_v15  ;;  %v3549_v32 = vpop.eup %3548 }
 0x1c3   : > { %3550 = vpow2.f32 %v1528_v38  ;;  %v5301_v38 = vsel %vm4314_vm12, %v5267_v48, -1e+30 }
 0x1c4   : > { %v5259_v12 = vpop.xlane.xlu1 %2386  ;;  %v5261_v23 = vpop.xlane.xlu2 %1412  ;;  %3552 = vtanh.f32 %v1231_v34  ;;  %7314 = vst [vmem:[#allocation118_spill] sm:$0xff] %v5301_v38 }
 0x1c5   : > { %7306 = vst [vmem:[#allocation110_spill] sm:$0xff] %v5259_v12  ;;  %v5263_v59 = vpop.xlane.xlu0 %1899  ;;  %v5293_v12 = vsel %vm4298_vm7, %v3549_v32, %v1191_v27  ;;  %v1963_v27 = vsub.f32 %v4638_v63, %v5040_v3  ;;  %v1193_v63 = vpop.f32.mrf.mxu2  ;;  %v1530_v3 = vmul.f32 1.442695, %v1476_v28 }
 0x1c6   : > { %7312 = vst [vmem:[#allocation116_spill] sm:$0xff] %v5293_v12  ;;  %v5328_v39 = vsel %vm4314_vm12, %v5293_v12, -1e+30  ;;  %v5333_v42 = vsel %vm4302_vm10, %v5293_v12, -1e+30 }
 0x1c7   : > { %7319 = vst [vmem:[#allocation123_spill] sm:$0xff] %v5328_v39 }
 0x1c8   : > { %7320 = vst [vmem:[#allocation124_spill] sm:$0xff] %v5333_v42 }
 0x1c9   : > { %1913 = vmax.xlane.f32.xlu1 %v5272_v24  ;;  %1945 = vmax.xlane.f32.xlu2 %v5277_v51  ;;  %v5295_v8 = vpop.eup %3550  ;;  %v2017_v51 = vmul.f32 1.442695, %v1963_v27  ;;  %v957_v27 = vpop.f32.mrf.mxu0 }
 0x1ca   : > { %2103 = vadd.xlane.f32.xlu0 %v5279_v15  ;;  %7313 = vst [vmem:[#allocation117_spill] sm:$0xff] %v5295_v8  ;;  %v5307_v15 = vsel %vm4308_vm11, %v5293_v12, -1e+30  ;;  %v3553_v32 = vpop.eup %3552 }
 0x1cb   : > { %7315 = vst [vmem:[#allocation119_spill] sm:$0xff] %v5307_v15  ;;  %3554 = vpow2.f32 %v2017_v51 }
 0x1cc   : > { %v5285_v60 = vpop.xlane.xlu1 %1602  ;;  %v5287_v40 = vpop.xlane.xlu2 %2089  ;;  %3556 = vpow2.f32 %v1530_v3 }
 0x1cd   : > { %7310 = vst [vmem:[#allocation114_spill] sm:$0xff] %v5285_v60  ;;  %v5289_v57 = vpop.xlane.xlu0 %1414  ;;  %v1195_v12 = vpop.f32.mrf.mxu2 }
 0x1ce   : > { %7311 = vst [vmem:[#allocation115_spill] sm:$0xff] %v5287_v40  ;;  %v1074_v40 = vpop.f32.mrf.mxu1 }
 0x1cf   : > { %v1075_v60 = vadd.f32 %v1074_v40, %v956_v31 }
 0x1d1   : > { %1458 = vmax.xlane.f32.xlu1 %v5301_v38  ;;  %1616 = vadd.xlane.f32.xlu2 %v5295_v8  ;;  %v5323_v8 = vsel %vm4298_vm7, %v3553_v32, %v1231_v34  ;;  %v1233_v34 = vpop.f32.mrf.mxu3  ;;  %v5349_v28 = vpop.eup %3554 }
 0x1d2   : > { %2402 = vmax.xlane.f32.xlu0 %v5307_v15  ;;  %7318 = vst [vmem:[#allocation122_spill] sm:$0xff] %v5323_v8  ;;  %v1194_v15 = vadd.f32 %v1193_v63, %v1075_v60  ;;  %v5339_v31 = vsel %vm4302_vm10, %v5323_v8, -1e+30  ;;  %v1234_v63 = vadd.f32 %v1233_v34, %v4805_v52  ;;  %v5356_v51 = vsel %vm4314_vm12, %v5323_v8, -1e+30  ;;  %v5358_v3 = vpop.eup %3556 }
 0x1d3   : > { %7321 = vst [vmem:[#allocation125_spill] sm:$0xff] %v5339_v31 }
 0x1d4   : > { %v5315_v48 = vpop.xlane.xlu1 %1901  ;;  %v5317_v45 = vpop.xlane.xlu2 %2388  ;;  %3558 = vtanh.f32 %v1194_v15  ;;  %7324 = vst [vmem:[#allocation128_spill] sm:$0xff] %v5349_v28 }
 0x1d5   : > { %7316 = vst [vmem:[#allocation120_spill] sm:$0xff] %v5317_v45  ;;  %v5319_v38 = vpop.xlane.xlu0 %2091  ;;  %3560 = vtanh.f32 %v1234_v63 }
 0x1d6   : > { %7317 = vst [vmem:[#allocation121_spill] sm:$0xff] %v5319_v38  ;;  %v958_v38 = vadd.f32 %v4951_v55, %v957_v27  ;;  %v1076_v45 = vpop.f32.mrf.mxu1 }
 0x1d7   : > { %7325 = vst [vmem:[#allocation129_spill] sm:$0xff] %v5356_v51 }
 0x1d8   : > { %7326 = vst [vmem:[#allocation130_spill] sm:$0xff] %v5358_v3  ;;  %v1077_v52 = vadd.f32 %v1076_v45, %v958_v38 }
 0x1d9   : > { %1428 = vmax.xlane.f32.xlu1 %v5328_v39  ;;  %1915 = vmax.xlane.f32.xlu2 %v5333_v42 }
 0x1da   : > { %1947 = vmax.xlane.f32.xlu0 %v5339_v31  ;;  %v1196_v31 = vadd.f32 %v1195_v12, %v1077_v52 }
 0x1dc   : > { %v5343_v60 = vpop.xlane.xlu1 %1416  ;;  %v5345_v40 = vpop.xlane.xlu2 %1604 }
 0x1dd   : > { %7322 = vst [vmem:[#allocation126_spill] sm:$0xff] %v5345_v40  ;;  %v5347_v32 = vpop.xlane.xlu0 %2390  ;;  %v3559_v40 = vpop.eup %3558 }
 0x1de   : > { %7323 = vst [vmem:[#allocation127_spill] sm:$0xff] %v5347_v32  ;;  %v1964_v32 = vsub.f32 %v4648_v6, %v5044_v13  ;;  %v3561_v12 = vpop.eup %3560 }
 0x1e1   : > { %2105 = vadd.xlane.f32.xlu1 %v5349_v28  ;;  %1460 = vmax.xlane.f32.xlu2 %v5356_v51  ;;  %v5373_v28 = vsel %vm4298_vm7, %v3559_v40, %v1194_v15  ;;  %v2019_v51 = vmul.f32 1.442695, %v1964_v32  ;;  %v1477_v15 = vsub.f32 %v4660_v14, %v5067_v19  ;;  %v1235_v32 = vpop.f32.mrf.mxu3  ;;  %v960_v19 = vpop.f32.mrf.mxu0 }
 0x1e2   : > { %1618 = vadd.xlane.f32.xlu0 %v5358_v3  ;;  %7329 = vst [vmem:[#allocation133_spill] sm:$0xff] %v5373_v28  ;;  %v5378_v6 = vsel %vm4308_vm11, %v5373_v28, -1e+30  ;;  %v5383_v13 = vsel %vm4314_vm12, %v5373_v28, -1e+30  ;;  %v5403_v3 = vsel %vm4298_vm7, %v3561_v12, %v1234_v63  ;;  %v1236_v14 = vadd.f32 %v1235_v32, %v4829_v36 }
 0x1e3   : > { %7330 = vst [vmem:[#allocation134_spill] sm:$0xff] %v5378_v6  ;;  %v5389_v45 = vsel %vm4302_vm10, %v5373_v28, -1e+30  ;;  %3562 = vpow2.f32 %v2019_v51  ;;  %v961_v28 = vadd.f32 %v4951_v55, %v960_v19  ;;  %v5418_v63 = vsel %vm4314_vm12, %v5403_v3, -1e+30 }
 0x1e4   : > { %v5365_v34 = vpop.xlane.xlu1 %2093  ;;  %v5367_v27 = vpop.xlane.xlu2 %1903  ;;  %7331 = vst [vmem:[#allocation135_spill] sm:$0xff] %v5383_v13  ;;  %3564 = vtanh.f32 %v1196_v31  ;;  %v1965_v36 = vsub.f32 %v4699_v61, %v5095_v10 }
 0x1e5   : > { %7327 = vst [vmem:[#allocation131_spill] sm:$0xff] %v5365_v34  ;;  %v5369_v8 = vpop.xlane.xlu0 %1606  ;;  %v1198_v34 = vpop.f32.mrf.mxu2 }
 0x1e6   : > { %7328 = vst [vmem:[#allocation132_spill] sm:$0xff] %v5369_v8  ;;  %v1532_v8 = vmul.f32 1.442695, %v1477_v15  ;;  %v1079_v15 = vpop.f32.mrf.mxu1 }
 0x1e7   : > { %7332 = vst [vmem:[#allocation136_spill] sm:$0xff] %v5389_v45 }
 0x1e8   : > { %7334 = vst [vmem:[#allocation138_spill] sm:$0xff] %v5403_v3  ;;  %3566 = vpow2.f32 %v1532_v8 }
 0x1e9   : > { %2404 = vmax.xlane.f32.xlu1 %v5378_v6  ;;  %1430 = vmax.xlane.f32.xlu2 %v5383_v13  ;;  %v5405_v51 = vpop.eup %3562  ;;  %v5411_v6 = vsel %vm4302_vm10, %v5403_v3, -1e+30  ;;  %7337 = vst [vmem:[#allocation141_spill] sm:$0xff] %v5418_v63  ;;  %3568 = vtanh.f32 %v1236_v14 }
 0x1ea   : > { %1917 = vmax.xlane.f32.xlu0 %v5389_v45  ;;  %7335 = vst [vmem:[#allocation139_spill] sm:$0xff] %v5405_v51  ;;  %v3565_v12 = vpop.eup %3564 }
 0x1eb   : > { %7336 = vst [vmem:[#allocation140_spill] sm:$0xff] %v5411_v6  ;;  %v5432_v3 = vsel %vm4298_vm7, %v3565_v12, %v1196_v31  ;;  %v1478_v12 = vsub.f32 %v4676_v29, %v5071_v0 }
 0x1ec   : > { %v5395_v38 = vpop.xlane.xlu1 %2392  ;;  %v5397_v40 = vpop.xlane.xlu2 %1418  ;;  %7339 = vst [vmem:[#allocation143_spill] sm:$0xff] %v5432_v3  ;;  %v5439_v61 = vsel %vm4308_vm11, %v5432_v3, -1e+30  ;;  %v5465_v29 = vsel %vm4302_vm10, %v5432_v3, -1e+30 }
 0x1ed   : > { %7333 = vst [vmem:[#allocation137_spill] sm:$0xff] %v5395_v38  ;;  %v5399_v52 = vpop.xlane.xlu0 %1905  ;;  %v1080_v38 = vadd.f32 %v1079_v15, %v961_v28  ;;  %v1200_v10 = vpop.f32.mrf.mxu2  ;;  %v5445_v28 = vsel %vm4314_vm12, %v5432_v3, -1e+30 }
 0x1ee   : > { %v5434_v8 = vpop.eup %3566  ;;  %7341 = vst [vmem:[#allocation145_spill] sm:$0xff] %v5439_v61 }
 0x1ef   : > { %7340 = vst [vmem:[#allocation144_spill] sm:$0xff] %v5434_v8  ;;  %v3569_v31 = vpop.eup %3568 }
 0x1f0   : > { %7342 = vst [vmem:[#allocation146_spill] sm:$0xff] %v5445_v28 }
 0x1f1   : > { %1949 = vmax.xlane.f32.xlu1 %v5411_v6  ;;  %2107 = vadd.xlane.f32.xlu2 %v5405_v51  ;;  %v2021_v51 = vmul.f32 1.442695, %v1965_v36  ;;  %7346 = vst [vmem:[#allocation150_spill] sm:$0xff] %v5465_v29 }
 0x1f2   : > { %1462 = vmax.xlane.f32.xlu0 %v5418_v63  ;;  %v1199_v63 = vadd.f32 %v1198_v34, %v1080_v38  ;;  %v962_v34 = vpop.f32.mrf.mxu0 }
 0x1f3   : > { %3570 = vpow2.f32 %v2021_v51 }
 0x1f4   : > { %v5424_v32 = vpop.xlane.xlu1 %1937  ;;  %v5426_v19 = vpop.xlane.xlu2 %2095  ;;  %3572 = vtanh.f32 %v1199_v63 }
 0x1f5   : > { %7338 = vst [vmem:[#allocation142_spill] sm:$0xff] %v5426_v19  ;;  %v5428_v45 = vpop.xlane.xlu0 %1450  ;;  %v1534_v19 = vmul.f32 1.442695, %v1478_v12  ;;  %v1479_v12 = vsub.f32 %v4728_v46, %v5125_v17 }
 0x1f7   : > { %3574 = vpow2.f32 %v1534_v19 }
 0x1f9   : > { %1620 = vadd.xlane.f32.xlu1 %v5434_v8  ;;  %2406 = vmax.xlane.f32.xlu2 %v5439_v61  ;;  %v5459_v8 = vsel %vm4298_vm7, %v3569_v31, %v1236_v14  ;;  %v963_v61 = vadd.f32 %v4951_v55, %v962_v34  ;;  %v5472_v51 = vpop.eup %3570  ;;  %v1203_v31 = vpop.f32.mrf.mxu2 }
 0x1fa   : > { %1432 = vmax.xlane.f32.xlu0 %v5445_v28  ;;  %7345 = vst [vmem:[#allocation149_spill] sm:$0xff] %v5459_v8  ;;  %v5470_v0 = vsel %vm4302_vm10, %v5459_v8, -1e+30  ;;  %v3573_v14 = vpop.eup %3572  ;;  %v965_v6 = vpop.f32.mrf.mxu0  ;;  %v5494_v46 = vsel %vm4314_vm12, %v5459_v8, -1e+30 }
 0x1fb   : > { %7347 = vst [vmem:[#allocation151_spill] sm:$0xff] %v5470_v0  ;;  %v966_v17 = vadd.f32 %v4951_v55, %v965_v6 }
 0x1fc   : > { %v5451_v36 = vpop.xlane.xlu1 %1608  ;;  %v5453_v15 = vpop.xlane.xlu2 %2394  ;;  %7350 = vst [vmem:[#allocation154_spill] sm:$0xff] %v5494_v46 }
 0x1fd   : > { %7343 = vst [vmem:[#allocation147_spill] sm:$0xff] %v5451_v36  ;;  %v5455_v38 = vpop.xlane.xlu0 %1420  ;;  %v1081_v36 = vpop.f32.mrf.mxu1 }
 0x1fe   : > { %7344 = vst [vmem:[#allocation148_spill] sm:$0xff] %v5453_v15  ;;  %v1082_v34 = vadd.f32 %v1081_v36, %v963_v61  ;;  %v5489_v19 = vpop.eup %3574 }
 0x200   : > { %v1201_v13 = vadd.f32 %v1200_v10, %v1082_v34 }
 0x201   : > { %1919 = vmax.xlane.f32.xlu1 %v5465_v29  ;;  %1951 = vmax.xlane.f32.xlu2 %v5470_v0  ;;  %v5487_v29 = vsel %vm4298_vm7, %v3573_v14, %v1199_v63  ;;  %v1536_v0 = vmul.f32 1.442695, %v1479_v12  ;;  %v1966_v63 = vsub.f32 %v4717_v35, %v5123_v47  ;;  %v1205_v14 = vpop.f32.mrf.mxu2 }
 0x202   : > { %2109 = vadd.xlane.f32.xlu0 %v5472_v51  ;;  %7349 = vst [vmem:[#allocation153_spill] sm:$0xff] %v5487_v29  ;;  %v5501_v61 = vsel %vm4308_vm11, %v5487_v29, -1e+30  ;;  %v5516_v8 = vsel %vm4314_vm12, %v5487_v29, -1e+30 }
 0x203   : > { %7351 = vst [vmem:[#allocation155_spill] sm:$0xff] %v5501_v61  ;;  %3576 = vpow2.f32 %v1536_v0  ;;  %v5521_v35 = vsel %vm4302_vm10, %v5487_v29, -1e+30 }
 0x204   : > { %v5479_v3 = vpop.xlane.xlu1 %1907  ;;  %v5481_v15 = vpop.xlane.xlu2 %1939  ;;  %3578 = vtanh.f32 %v1201_v13  ;;  %7354 = vst [vmem:[#allocation158_spill] sm:$0xff] %v5516_v8 }
 0x205   : > { %v5483_v28 = vpop.xlane.xlu0 %2097  ;;  %v1084_v10 = vpop.f32.mrf.mxu1  ;;  %7355 = vst [vmem:[#allocation159_spill] sm:$0xff] %v5521_v35 }
 0x206   : > { %7348 = vst [vmem:[#allocation152_spill] sm:$0xff] %v5483_v28  ;;  %v1085_v12 = vadd.f32 %v1084_v10, %v966_v17  ;;  %v2023_v28 = vmul.f32 1.442695, %v1966_v63  ;;  %v1967_v63 = vsub.f32 %v4733_v49, %v5127_v9 }
 0x208   : > { %v1204_v0 = vadd.f32 %v1203_v31, %v1085_v12  ;;  %3580 = vpow2.f32 %v2023_v28  ;;  %v2025_v12 = vmul.f32 1.442695, %v1967_v63 }
 0x209   : > { %1464 = vmax.xlane.f32.xlu1 %v5494_v46  ;;  %1622 = vadd.xlane.f32.xlu2 %v5489_v19  ;;  %v5523_v47 = vpop.eup %3576 }
 0x20a   : > { %2408 = vmax.xlane.f32.xlu0 %v5501_v61  ;;  %v3579_v17 = vpop.eup %3578  ;;  %3582 = vtanh.f32 %v1204_v0  ;;  %v967_v61 = vpop.f32.mrf.mxu0 }
 0x20b   : > { %v5538_v31 = vsel %vm4298_vm7, %v3579_v17, %v1201_v13  ;;  %v968_v9 = vadd.f32 %v4951_v55, %v967_v61  ;;  %3584 = vpow2.f32 %v2025_v12  ;;  %v1480_v13 = vsub.f32 %v4751_v43, %v5151_v4 }
 0x20c   : > { %v5507_v36 = vpop.xlane.xlu1 %1452  ;;  %v5509_v6 = vpop.xlane.xlu2 %1610  ;;  %7356 = vst [vmem:[#allocation160_spill] sm:$0xff] %v5538_v31  ;;  %v5545_v49 = vsel %vm4314_vm12, %v5538_v31, -1e+30  ;;  %v1968_v61 = vsub.f32 %v4788_v18, %v5175_v54 }
 0x20d   : > { %7352 = vst [vmem:[#allocation156_spill] sm:$0xff] %v5509_v6  ;;  %v5511_v34 = vpop.xlane.xlu0 %2396  ;;  %v1086_v17 = vpop.f32.mrf.mxu1  ;;  %v1538_v42 = vmul.f32 1.442695, %v1480_v13 }
 0x20e   : > { %7353 = vst [vmem:[#allocation157_spill] sm:$0xff] %v5511_v34  ;;  %v1208_v34 = vpop.f32.mrf.mxu2  ;;  %v5540_v28 = vpop.eup %3580  ;;  %v2027_v43 = vmul.f32 1.442695, %v1968_v61 }
 0x20f   : > { %7357 = vst [vmem:[#allocation161_spill] sm:$0xff] %v5540_v28  ;;  %3586 = vpow2.f32 %v1538_v42 }
 0x210   : > { %7358 = vst [vmem:[#allocation162_spill] sm:$0xff] %v5545_v49  ;;  %v3583_v63 = vpop.eup %3582  ;;  %3588 = vpow2.f32 %v2027_v43 }
 0x211   : > { %1434 = vmax.xlane.f32.xlu1 %v5516_v8  ;;  %1921 = vmax.xlane.f32.xlu2 %v5521_v35  ;;  %v5552_v35 = vsel %vm4302_vm10, %v5538_v31, -1e+30  ;;  %v5568_v12 = vsel %vm4298_vm7, %v3583_v63, %v1204_v0  ;;  %v5570_v4 = vpop.eup %3584  ;;  %v1481_v0 = vsub.f32 %v4767_v21, %v5155_v37 }
 0x212   : > { %1624 = vadd.xlane.f32.xlu0 %v5523_v47  ;;  %7359 = vst [vmem:[#allocation163_spill] sm:$0xff] %v5552_v35  ;;  %v970_v61 = vpop.f32.mrf.mxu0  ;;  %v5600_v42 = vsel %vm4308_vm11, %v5568_v12, -1e+30 }
 0x213   : > { %7362 = vst [vmem:[#allocation166_spill] sm:$0xff] %v5568_v12  ;;  %v971_v37 = vadd.f32 %v4951_v55, %v970_v61 }
 0x214   : > { %v5530_v10 = vpop.xlane.xlu1 %1422  ;;  %v5532_v6 = vpop.xlane.xlu2 %1909  ;;  %7366 = vst [vmem:[#allocation170_spill] sm:$0xff] %v5600_v42 }
 0x215   : > { %v5534_v29 = vpop.xlane.xlu0 %1941  ;;  %v5595_v63 = vpop.eup %3586 }
 0x216   : > { %v5577_v18 = vpop.f32.mrf.mxu2  ;;  %v5602_v21 = vpop.eup %3588 }
 0x219   : > { %2111 = vadd.xlane.f32.xlu1 %v5540_v28  ;;  %1436 = vmax.xlane.f32.xlu2 %v5545_v49  ;;  %v1087_v28 = vadd.f32 %v1086_v17, %v968_v9  ;;  %v5583_v9 = vsel %vm4314_vm12, %v5568_v12, -1e+30 }
 0x21a   : > { %1923 = vmax.xlane.f32.xlu0 %v5552_v35  ;;  %v5575_v35 = vsel %vm4308_vm11, %v5538_v31, -1e+30  ;;  %7364 = vst [vmem:[#allocation168_spill] sm:$0xff] %v5583_v9 }
 0x21b   : > { %7363 = vst [vmem:[#allocation167_spill] sm:$0xff] %v5575_v35  ;;  %v1206_v54 = vadd.f32 %v1205_v14, %v1087_v28  ;;  %v1540_v28 = vmul.f32 1.442695, %v1481_v0 }
 0x21c   : > { %v5560_v8 = vpop.xlane.xlu1 %2099  ;;  %v5562_v46 = vpop.xlane.xlu2 %1454 }
 0x21d   : > { %7360 = vst [vmem:[#allocation164_spill] sm:$0xff] %v5560_v8  ;;  %v5564_v39 = vpop.xlane.xlu0 %1612  ;;  %3590 = vtanh.f32 %v1206_v54  ;;  %v1482_v8 = vsub.f32 %v4810_v26, %v5203_v50  ;;  %v5626_v26 = vsel %vm4302_vm10, %v5568_v12, -1e+30  ;;  %v1969_v12 = vsub.f32 %v4834_v11, %v5234_v56 }
 0x21e   : > { %7361 = vst [vmem:[#allocation165_spill] sm:$0xff] %v5564_v39  ;;  %3592 = vpow2.f32 %v1540_v28  ;;  %v1213_v0 = vpop.f32.mrf.mxu2  ;;  %v1089_v39 = vpop.f32.mrf.mxu1 }
 0x21f   : > { %v1542_v28 = vmul.f32 1.442695, %v1482_v8  ;;  %v1214_v49 = vadd.f32 %v1213_v0, %v4578_v58  ;;  %7369 = vst [vmem:[#allocation173_spill] sm:$0xff] %v5626_v26 }
 0x221   : > { %2410 = vmax.xlane.f32.xlu1 %v5575_v35  ;;  %2113 = vadd.xlane.f32.xlu2 %v5570_v4  ;;  %3594 = vpow2.f32 %v1542_v28 }
 0x222   : > { %1438 = vmax.xlane.f32.xlu0 %v5583_v9  ;;  %3596 = vtanh.f32 %v1214_v49 }
 0x223   : > { %v3591_v43 = vpop.eup %3590 }
 0x224   : > { %v5589_v13 = vpop.xlane.xlu1 %2398  ;;  %v5591_v17 = vpop.xlane.xlu2 %1424  ;;  %v5618_v61 = vsel %vm4298_vm7, %v3591_v43, %v1206_v54 }
 0x225   : > { %7365 = vst [vmem:[#allocation169_spill] sm:$0xff] %v5589_v13  ;;  %v5593_v14 = vpop.xlane.xlu0 %1911  ;;  %v1090_v13 = vadd.f32 %v1089_v39, %v971_v37  ;;  %v5632_v39 = vsel %vm4308_vm11, %v5618_v61, -1e+30  ;;  %v5645_v37 = vsel %vm4314_vm12, %v5618_v61, -1e+30 }
 0x226   : > { %7368 = vst [vmem:[#allocation172_spill] sm:$0xff] %v5618_v61  ;;  %v5650_v43 = vsel %vm4302_vm10, %v5618_v61, -1e+30 }
 0x227   : > { %v1209_v50 = vadd.f32 %v1208_v34, %v1090_v13  ;;  %7370 = vst [vmem:[#allocation174_spill] sm:$0xff] %v5632_v39  ;;  %v1215_v34 = vpop.f32.mrf.mxu2  ;;  %v972_v13 = vpop.f32.mrf.mxu0 }
 0x228   : > { %7373 = vst [vmem:[#allocation177_spill] sm:$0xff] %v5645_v37  ;;  %v1216_v28 = vadd.f32 %v1215_v34, %v4611_v33 }
 0x229   : > { %1626 = vadd.xlane.f32.xlu1 %v5595_v63  ;;  %2412 = vmax.xlane.f32.xlu2 %v5600_v42  ;;  %v5620_v42 = vpop.eup %3592  ;;  %3598 = vtanh.f32 %v1209_v50  ;;  %7374 = vst [vmem:[#allocation178_spill] sm:$0xff] %v5650_v43 }
 0x22a   : > { %2115 = vadd.xlane.f32.xlu0 %v5602_v21  ;;  %v5652_v0 = vpop.eup %3594  ;;  %3600 = vtanh.f32 %v1216_v28 }
 0x22c   : > { %v5610_v31 = vpop.xlane.xlu1 %1943  ;;  %v5612_v35 = vpop.xlane.xlu2 %2101 }
 0x22d   : > { %7367 = vst [vmem:[#allocation171_spill] sm:$0xff] %v5612_v35  ;;  %v5614_v9 = vpop.xlane.xlu0 %1456  ;;  %v973_v35 = vadd.f32 %v4951_v55, %v972_v13  ;;  %v2029_v13 = vmul.f32 1.442695, %v1969_v12 }
 0x22f   : > { %3602 = vpow2.f32 %v2029_v13 }
 0x231   : > { %1925 = vmax.xlane.f32.xlu1 %v5626_v26  ;;  %1628 = vadd.xlane.f32.xlu2 %v5620_v42 }
 0x232   : > { %2414 = vmax.xlane.f32.xlu0 %v5632_v39  ;;  %v1091_v39 = vpop.f32.mrf.mxu1 }
 0x233   : > { %v1092_v33 = vadd.f32 %v1091_v39, %v973_v35 }
 0x234   : > { %v5636_v58 = vpop.xlane.xlu1 %1614  ;;  %v5638_v8 = vpop.xlane.xlu2 %2400 }
 0x235   : > { %7371 = vst [vmem:[#allocation175_spill] sm:$0xff] %v5636_v58  ;;  %v5640_v54 = vpop.xlane.xlu0 %1426  ;;  %v3597_v58 = vpop.eup %3596  ;;  %v1211_v39 = vadd.f32 %v5577_v18, %v1092_v33 }
 0x236   : > { %7372 = vst [vmem:[#allocation176_spill] sm:$0xff] %v5638_v8  ;;  %v3599_v8 = vpop.eup %3598  ;;  %v5669_v55 = vsel %vm4298_vm7, %v3597_v58, %v1214_v49 }
 0x237   : > { %7376 = vst [vmem:[#allocation180_spill] sm:$0xff] %v5669_v55  ;;  %v5673_v11 = vsel %vm4298_vm7, %v3599_v8, %v1209_v50  ;;  %v5678_v56 = vsel %vm4314_vm12, %v5669_v55, -1e+30  ;;  %v5683_v35 = vsel %vm4302_vm10, %v5669_v55, -1e+30  ;;  %v3601_v12 = vpop.eup %3600  ;;  %3604 = vtanh.f32 %v1211_v39 }
 0x238   : > { %7377 = vst [vmem:[#allocation181_spill] sm:$0xff] %v5673_v11  ;;  %v5690_v49 = vsel %vm4302_vm10, %v5673_v11, -1e+30  ;;  %v5702_v18 = vsel %vm4298_vm7, %v3601_v12, %v1216_v28  ;;  %v5704_v33 = vpop.eup %3602  ;;  %v5709_v13 = vsel %vm4314_vm12, %v5673_v11, -1e+30  ;;  %v1970_v28 = vsub.f32 %v4871_v2, %v5263_v59 }
 0x239   : > { %1440 = vmax.xlane.f32.xlu1 %v5645_v37  ;;  %1927 = vmax.xlane.f32.xlu2 %v5650_v43  ;;  %7378 = vst [vmem:[#allocation182_spill] sm:$0xff] %v5678_v56  ;;  %v5738_v2 = vsel %vm4308_vm11, %v5673_v11, -1e+30  ;;  %v5743_v59 = vsel %vm4314_vm12, %v5702_v18, -1e+30 }
 0x23a   : > { %1630 = vadd.xlane.f32.xlu0 %v5652_v0  ;;  %7379 = vst [vmem:[#allocation183_spill] sm:$0xff] %v5683_v35  ;;  %v2031_v37 = vmul.f32 1.442695, %v1970_v28 }
 0x23b   : > { %7380 = vst [vmem:[#allocation184_spill] sm:$0xff] %v5690_v49 }
 0x23c   : > { %v5661_v61 = vpop.xlane.xlu1 %1913  ;;  %v5663_v26 = vpop.xlane.xlu2 %1945  ;;  %7383 = vst [vmem:[#allocation187_spill] sm:$0xff] %v5702_v18 }
 0x23d   : > { %v5665_v34 = vpop.xlane.xlu0 %2103  ;;  %7384 = vst [vmem:[#allocation188_spill] sm:$0xff] %v5709_v13  ;;  %v3605_v12 = vpop.eup %3604 }
 0x23e   : > { %7375 = vst [vmem:[#allocation179_spill] sm:$0xff] %v5665_v34  ;;  %v1483_v34 = vsub.f32 %v4864_v5, %v5261_v23 }
 0x23f   : > { %7387 = vst [vmem:[#allocation189_spill] sm:$0xff] %v5738_v2 }
 0x240   : > { %v1544_v23 = vmul.f32 1.442695, %v1483_v34  ;;  %7388 = vst [vmem:[#allocation190_spill] sm:$0xff] %v5743_v59 }
 0x241   : > { %1446 = vmax.xlane.f32.xlu1 %v5678_v56  ;;  %1933 = vmax.xlane.f32.xlu2 %v5683_v35 }
 0x242   : > { %1929 = vmax.xlane.f32.xlu0 %v5690_v49  ;;  %3606 = vpow2.f32 %v1544_v23 }
 0x243   : > { %3608 = vpow2.f32 %v2031_v37  ;;  %v7394_v37 = vld [vmem:[#allocation51_spill] sm:$0xff] }
 0x244   : > { %v5694_v50 = vpop.xlane.xlu1 %1458  ;;  %v5696_v58 = vpop.xlane.xlu2 %1616 }
 0x245   : > { %7381 = vst [vmem:[#allocation185_spill] sm:$0xff] %v5696_v58  ;;  %v5698_v8 = vpop.xlane.xlu0 %2402  ;;  %v5717_v58 = vsel %vm4302_vm10, %v5702_v18, -1e+30 }
 0x246   : > { %7382 = vst [vmem:[#allocation186_spill] sm:$0xff] %v5698_v8  ;;  %v7385_v8 = vld [vmem:[#allocation54_spill] sm:$0xff] }
 0x247   : > { %v1971_v56 = vsub.f32 %v7385_v8, %v5315_v48  ;;  %v7390_v48 = vld [vmem:[#allocation60_spill] sm:$0xff] }
 0x248   : > { %v1485_v34 = vsub.f32 %v7390_v48, %v5343_v60  ;;  %v5761_v28 = vpop.eup %3606  ;;  %v7395_v60 = vld [vmem:[#allocation63_spill] sm:$0xff]  ;;  %v1989_v48 = vsub.f32 %v5027_v53, %v5424_v32  ;;  %v1486_v32 = vsub.f32 %v4999_v41, %v5397_v40 }
 0x249   : > { %2117 = vadd.xlane.f32.xlu1 %v5704_v33  ;;  %1442 = vmax.xlane.f32.xlu2 %v5709_v13  ;;  %v5733_v13 = vsel %vm4298_vm7, %v3605_v12, %v1211_v39  ;;  %v2033_v43 = vmul.f32 1.442695, %v1971_v56  ;;  %v5763_v23 = vpop.eup %3608 }
 0x24a   : > { %1935 = vmax.xlane.f32.xlu0 %v5717_v58  ;;  %7386 = vst [vmem:[#allocation54_spill] sm:$0xff] %v5733_v13  ;;  %v5749_v20 = vsel %vm4314_vm12, %v5733_v13, -1e+30  ;;  %v1548_v12 = vmul.f32 1.442695, %v1485_v34 }
 0x24b   : > { %7389 = vst [vmem:[#allocation191_spill] sm:$0xff] %v5749_v20  ;;  %3610 = vpow2.f32 %v2033_v43  ;;  %v1972_v43 = vsub.f32 %v7395_v60, %v5367_v27  ;;  %v5790_v27 = vsel %vm4308_vm11, %v5733_v13, -1e+30 }
 0x24c   : > { %v5725_v49 = vpop.xlane.xlu1 %1428  ;;  %v5727_v5 = vpop.xlane.xlu2 %1915  ;;  %3612 = vpow2.f32 %v1548_v12  ;;  %7397 = vst [vmem:[#allocation63_spill] sm:$0xff] %v5790_v27  ;;  %v7398_v12 = vld [vmem:[#allocation79_spill] sm:$0xff] }
 0x24d   : > { %v5729_v35 = vpop.xlane.xlu0 %1947  ;;  %v1974_v60 = vsub.f32 %v7398_v12, %v5479_v3  ;;  %v7402_v3 = vld [vmem:[#allocation80_spill] sm:$0xff] }
 0x251   : > { %2416 = vmax.xlane.f32.xlu1 %v5738_v2  ;;  %1448 = vmax.xlane.f32.xlu2 %v5743_v59  ;;  %v5765_v11 = vpop.eup %3610  ;;  %v1484_v2 = vsub.f32 %v7394_v37, %v5289_v57  ;;  %v2035_v57 = vmul.f32 1.442695, %v1972_v43  ;;  %v2069_v37 = vmul.f32 1.442695, %v1989_v48  ;;  %v5785_v59 = vsel %vm4302_vm10, %v5733_v13, -1e+30 }
 0x252   : > { %1444 = vmax.xlane.f32.xlu0 %v5749_v20  ;;  %7393 = vst [vmem:[#allocation193_spill] sm:$0xff] %v5765_v11  ;;  %v5792_v53 = vpop.eup %3612  ;;  %v1550_v48 = vmul.f32 1.442695, %v1486_v32  ;;  %v1990_v32 = vsub.f32 %v7402_v3, %v5481_v15 }
 0x254   : > { %v5755_v56 = vpop.xlane.xlu1 %2105  ;;  %v5757_v39 = vpop.xlane.xlu2 %1460 }
 0x255   : > { %7391 = vst [vmem:[#allocation60_spill] sm:$0xff] %v5755_v56  ;;  %v5759_v8 = vpop.xlane.xlu0 %1618 }
 0x256   : > { %7392 = vst [vmem:[#allocation192_spill] sm:$0xff] %v5759_v8  ;;  %v1546_v8 = vmul.f32 1.442695, %v1484_v2  ;;  %v1973_v2 = vsub.f32 %v5005_v44, %v5399_v52  ;;  %v7401_v52 = vld [vmem:[#allocation72_spill] sm:$0xff] }
 0x258   : > { %3614 = vpow2.f32 %v1546_v8  ;;  %v2037_v40 = vmul.f32 1.442695, %v1973_v2  ;;  %v7403_v2 = vld [vmem:[#allocation86_spill] sm:$0xff] }
 0x259   : > { %1632 = vadd.xlane.f32.xlu1 %v5761_v28  ;;  %2119 = vadd.xlane.f32.xlu2 %v5763_v23  ;;  %3616 = vpow2.f32 %v2035_v57  ;;  %v2039_v57 = vmul.f32 1.442695, %v1974_v60  ;;  %v1503_v12 = vsub.f32 %v7403_v2, %v5507_v36  ;;  %v7409_v36 = vld [vmem:[#allocation90_spill] sm:$0xff] }
 0x25a   : > { %2121 = vadd.xlane.f32.xlu0 %v5765_v11  ;;  %3618 = vpow2.f32 %v2069_v37  ;;  %v1502_v37 = vsub.f32 %v7401_v52, %v5428_v45  ;;  %v2071_v52 = vmul.f32 1.442695, %v1990_v32  ;;  %v7410_v32 = vld [vmem:[#allocation89_spill] sm:$0xff] }
 0x25b   : > { %3620 = vpow2.f32 %v1550_v48  ;;  %v1488_v2 = vsub.f32 %v7410_v32, %v5530_v10  ;;  %v7412_v10 = vld [vmem:[#allocation94_spill] sm:$0xff] }
 0x25c   : > { %v5776_v34 = vpop.xlane.xlu1 %2404  ;;  %v5778_v56 = vpop.xlane.xlu2 %1430  ;;  %3622 = vpow2.f32 %v2037_v40  ;;  %v1584_v40 = vmul.f32 1.442695, %v1503_v12 }
 0x25d   : > { %7396 = vst [vmem:[#allocation51_spill] sm:$0xff] %v5776_v34  ;;  %v5780_v20 = vpop.xlane.xlu0 %1917  ;;  %3624 = vpow2.f32 %v2039_v57  ;;  %v7408_v57 = vld [vmem:[#allocation76_spill] sm:$0xff] }
 0x25e   : > { %v5809_v13 = vpop.eup %3614  ;;  %v1487_v3 = vsub.f32 %v7408_v57, %v5455_v38 }
 0x261   : > { %1931 = vmax.xlane.f32.xlu1 %v5785_v59  ;;  %2418 = vmax.xlane.f32.xlu2 %v5790_v27  ;;  %v5811_v27 = vpop.eup %3616 }
 0x262   : > { %1636 = vadd.xlane.f32.xlu0 %v5792_v53  ;;  %v5813_v44 = vpop.eup %3618 }
 0x263   : > { %7400 = vst [vmem:[#allocation194_spill] sm:$0xff] %v5813_v44  ;;  %v5830_v34 = vpop.eup %3620 }
 0x264   : > { %v5803_v43 = vpop.xlane.xlu1 %1949  ;;  %v5805_v8 = vpop.xlane.xlu2 %2107 }
 0x265   : > { %7399 = vst [vmem:[#allocation79_spill] sm:$0xff] %v5805_v8  ;;  %v5807_v41 = vpop.xlane.xlu0 %1462  ;;  %v1582_v8 = vmul.f32 1.442695, %v1502_v37  ;;  %v5832_v11 = vpop.eup %3622  ;;  %v1975_v37 = vsub.f32 %v7409_v36, %v5532_v6  ;;  %v7411_v6 = vld [vmem:[#allocation91_spill] sm:$0xff]  ;;  %v1992_v36 = vsub.f32 %v5219_v7, %v5610_v31  ;;  %v1489_v7 = vsub.f32 %v5191_v62, %v5591_v17 }
 0x266   : > { %7406 = vst [vmem:[#allocation86_spill] sm:$0xff] %v5832_v11  ;;  %v5834_v15 = vpop.eup %3624 }
 0x267   : > { %7407 = vst [vmem:[#allocation195_spill] sm:$0xff] %v5834_v15  ;;  %3626 = vpow2.f32 %v1582_v8  ;;  %v2041_v57 = vmul.f32 1.442695, %v1975_v37  ;;  %v1556_v17 = vmul.f32 1.442695, %v1489_v7  ;;  %v7416_v7 = vld [vmem:[#allocation112_spill] sm:$0xff] }
 0x268   : > { %3628 = vpow2.f32 %v2071_v52 }
 0x269   : > { %2123 = vadd.xlane.f32.xlu1 %v5811_v27  ;;  %1634 = vadd.xlane.f32.xlu2 %v5809_v13  ;;  %3630 = vpow2.f32 %v1584_v40  ;;  %v1991_v40 = vsub.f32 %v7411_v6, %v5534_v29 }
 0x26a   : > { %2157 = vadd.xlane.f32.xlu0 %v5813_v44  ;;  %v1554_v44 = vmul.f32 1.442695, %v1488_v2 }
 0x26b   : > { %v2073_v32 = vmul.f32 1.442695, %v1991_v40  ;;  %v1977_v40 = vsub.f32 %v5272_v24, %v5661_v61 }
 0x26c   : > { %v5824_v60 = vpop.xlane.xlu1 %1620  ;;  %v5826_v48 = vpop.xlane.xlu2 %2406 }
 0x26d   : > { %7404 = vst [vmem:[#allocation72_spill] sm:$0xff] %v5824_v60  ;;  %v5828_v45 = vpop.xlane.xlu0 %1432  ;;  %v1552_v60 = vmul.f32 1.442695, %v1487_v3  ;;  %v1504_v3 = vsub.f32 %v7412_v10, %v5562_v46 }
 0x26e   : > { %7405 = vst [vmem:[#allocation80_spill] sm:$0xff] %v5826_v48  ;;  %v5849_v48 = vpop.eup %3626 }
 0x26f   : > { %v5851_v52 = vpop.eup %3628  ;;  %3632 = vpow2.f32 %v1552_v60  ;;  %v1586_v2 = vmul.f32 1.442695, %v1504_v3 }
 0x270   : > { %3634 = vpow2.f32 %v2041_v57  ;;  %v2075_v57 = vmul.f32 1.442695, %v1992_v36 }
 0x271   : > { %1638 = vadd.xlane.f32.xlu1 %v5830_v34  ;;  %2125 = vadd.xlane.f32.xlu2 %v5832_v11  ;;  %v5853_v11 = vpop.eup %3630  ;;  %3636 = vpow2.f32 %v1554_v44  ;;  %v1976_v44 = vsub.f32 %v5197_v1, %v5593_v14 }
 0x272   : > { %2127 = vadd.xlane.f32.xlu0 %v5834_v15 }
 0x274   : > { %v5845_v12 = vpop.xlane.xlu1 %1919  ;;  %v5847_v8 = vpop.xlane.xlu2 %1951 }
 0x275   : > { %v2110_v38 = vpop.xlane.xlu0 %2109  ;;  %v5868_v6 = vpop.eup %3632 }
 0x276   : > { %3638 = vrcp.f32 %v2110_v38  ;;  %v5870_v15 = vpop.eup %3634 }
 0x277   : > { %v5872_v46 = vpop.eup %3636 }
 0x279   : > { %2159 = vadd.xlane.f32.xlu1 %v5851_v52  ;;  %1670 = vadd.xlane.f32.xlu2 %v5849_v48 }
 0x27a   : > { %1672 = vadd.xlane.f32.xlu0 %v5853_v11 }
 0x27c   : > { %v5864_v37 = vpop.xlane.xlu1 %1464  ;;  %v1623_v60 = vpop.xlane.xlu2 %1622 }
 0x27d   : > { %3640 = vrcp.f32 %v1623_v60  ;;  %v5866_v29 = vpop.xlane.xlu0 %2408  ;;  %v3639_v31 = vpop.eup %3638 }
 0x27e   : > { %7413 = vst [vmem:[#allocation76_spill] sm:$0xff] %v5866_v29  ;;  %3642 = vpow2.f32 %v2073_v32  ;;  %v2229_v36 = vmul.f32 %v3639_v31, %v5472_v51  ;;  %v2043_v32 = vmul.f32 1.442695, %v1976_v44  ;;  %v1505_v51 = vsub.f32 %v5226_v16, %v5614_v9  ;;  %v7417_v44 = vld [vmem:[#allocation118_spill] sm:$0xff] }
 0x27f   : > { %3644 = vpow2.f32 %v1586_v2  ;;  %v7414_v2 = vld [vmem:[#allocation26_spill] sm:$0xff]  ;;  %v1993_v31 = vsub.f32 %v7416_v7, %v5663_v26 }
 0x280   : > { %3646 = vpow2.f32 %v2075_v57  ;;  %v2045_v57 = vmul.f32 1.442695, %v1977_v40 }
 0x281   : > { %2129 = vadd.xlane.f32.xlu1 %v5870_v15  ;;  %1640 = vadd.xlane.f32.xlu2 %v5868_v6 }
 0x282   : > { %1642 = vadd.xlane.f32.xlu0 %v5872_v46 }
 0x283   : > { %v3641_v38 = vpop.eup %3640 }
 0x284   : > { %v1742_v10 = vmul.f32 %v3641_v38, %v5489_v19  ;;  %v5884_v3 = vpop.xlane.xlu1 %1434  ;;  %v5886_v62 = vpop.xlane.xlu2 %1921  ;;  %v1506_v38 = vsub.f32 %v7417_v44, %v5694_v50  ;;  %v7420_v44 = vld [vmem:[#allocation123_spill] sm:$0xff] }
 0x285   : > { %v1625_v60 = vpop.xlane.xlu0 %1624  ;;  %v5892_v14 = vpop.eup %3642 }
 0x286   : > { %v1786_v1 = vsel %vm4314_vm12, %v1742_v10, %v7414_v2  ;;  %v5898_v19 = vpop.eup %3644  ;;  %3648 = vrcp.f32 %v1625_v60 }
 0x287   : > { %v5896_v24 = vsel %vm4302_vm10, %v2229_v36, %v1786_v1  ;;  %v5900_v61 = vpop.eup %3646  ;;  %3650 = vpow2.f32 %v1556_v17  ;;  %v1588_v17 = vmul.f32 1.442695, %v1505_v51  ;;  %v2077_v36 = vmul.f32 1.442695, %v1993_v31  ;;  %v7418_v1 = vld [vmem:[#allocation109_spill] sm:$0xff]  ;;  %v7419_v51 = vld [vmem:[#allocation124_spill] sm:$0xff] }
 0x288   : > { %7415 = vst [vmem:[#allocation90_spill] sm:$0xff] %v5896_v24  ;;  %3652 = vpow2.f32 %v2043_v32  ;;  %v1590_v32 = vmul.f32 1.442695, %v1506_v38  ;;  %v1490_v50 = vsub.f32 %v7418_v1, %v5640_v54  ;;  %v1978_v7 = vsub.f32 %v7419_v51, %v5727_v5  ;;  %v7423_v1 = vld [vmem:[#allocation29_spill] sm:$0xff] }
 0x289   : > { %1674 = vadd.xlane.f32.xlu1 %v5898_v19  ;;  %2161 = vadd.xlane.f32.xlu2 %v5892_v14  ;;  %3654 = vpow2.f32 %v2045_v57  ;;  %v1491_v38 = vsub.f32 %v7420_v44, %v5725_v49 }
 0x28a   : > { %2163 = vadd.xlane.f32.xlu0 %v5900_v61  ;;  %v2047_v5 = vmul.f32 1.442695, %v1978_v7 }
 0x28b   : > { %v1560_v49 = vmul.f32 1.442695, %v1491_v38  ;;  %v7427_v38 = vld [vmem:[#allocation140_spill] sm:$0xff] }
 0x28c   : > { %v2112_v40 = vpop.xlane.xlu1 %2111  ;;  %v5911_v10 = vpop.xlane.xlu2 %1436 }
 0x28d   : > { %3656 = vrcp.f32 %v2112_v40  ;;  %v5913_v16 = vpop.xlane.xlu0 %1923  ;;  %v3649_v9 = vpop.eup %3648  ;;  %v7421_v40 = vld [vmem:[#allocation161_spill] sm:$0xff] }
 0x28e   : > { %v5915_v60 = vpop.eup %3650  ;;  %3658 = vpow2.f32 %v1588_v17  ;;  %v1743_v57 = vmul.f32 %v3649_v9, %v5523_v47  ;;  %v1558_v9 = vmul.f32 1.442695, %v1490_v50  ;;  %v7425_v50 = vld [vmem:[#allocation125_spill] sm:$0xff] }
 0x28f   : > { %v5917_v2 = vpop.eup %3652  ;;  %3660 = vpow2.f32 %v2077_v36 }
 0x290   : > { %v5919_v26 = vpop.eup %3654  ;;  %3662 = vpow2.f32 %v1590_v32  ;;  %v1787_v36 = vsel %vm4314_vm12, %v1743_v57, %v7423_v1  ;;  %v7426_v57 = vld [vmem:[#allocation129_spill] sm:$0xff] }
 0x291   : > { %1644 = vadd.xlane.f32.xlu1 %v5915_v60  ;;  %2131 = vadd.xlane.f32.xlu2 %v5917_v2  ;;  %3664 = vpow2.f32 %v1558_v9  ;;  %v1507_v7 = vsub.f32 %v7426_v57, %v5757_v39 }
 0x292   : > { %2133 = vadd.xlane.f32.xlu0 %v5919_v26  ;;  %3666 = vpow2.f32 %v2047_v5 }
 0x293   : > { %v3657_v31 = vpop.eup %3656  ;;  %3668 = vpow2.f32 %v1560_v49  ;;  %v7429_v49 = vld [vmem:[#allocation135_spill] sm:$0xff] }
 0x294   : > { %v2230_v17 = vmul.f32 %v3657_v31, %v7421_v40  ;;  %v5932_v54 = vpop.xlane.xlu1 %2410  ;;  %v2114_v47 = vpop.xlane.xlu2 %2113  ;;  %v1994_v40 = vsub.f32 %v7425_v50, %v5729_v35  ;;  %v1592_v50 = vmul.f32 1.442695, %v1507_v7  ;;  %v1492_v57 = vsub.f32 %v7429_v49, %v5778_v56 }
 0x295   : > { %7422 = vst [vmem:[#allocation89_spill] sm:$0xff] %v5932_v54  ;;  %v5937_v24 = vpop.xlane.xlu0 %1438  ;;  %v5943_v32 = vpop.eup %3658  ;;  %3670 = vrcp.f32 %v2114_v47  ;;  %v7430_v47 = vld [vmem:[#allocation136_spill] sm:$0xff] }
 0x296   : > { %v5941_v51 = vsel %vm4302_vm10, %v2230_v17, %v1787_v36  ;;  %v5945_v44 = vpop.eup %3660  ;;  %v1995_v17 = vsub.f32 %v7427_v38, %v5803_v43  ;;  %v2079_v36 = vmul.f32 1.442695, %v1994_v40  ;;  %v1979_v40 = vsub.f32 %v7430_v47, %v5780_v20  ;;  %v7431_v38 = vld [vmem:[#allocation150_spill] sm:$0xff]  ;;  %v7433_v47 = vld [vmem:[#allocation31_spill] sm:$0xff] }
 0x297   : > { %7424 = vst [vmem:[#allocation91_spill] sm:$0xff] %v5941_v51  ;;  %v5947_v31 = vpop.eup %3662  ;;  %v1562_v49 = vmul.f32 1.442695, %v1492_v57 }
 0x298   : > { %v5960_v51 = vpop.eup %3664  ;;  %v2081_v5 = vmul.f32 1.442695, %v1995_v17  ;;  %v1980_v17 = vsub.f32 %v7431_v38, %v5845_v12  ;;  %v2049_v20 = vmul.f32 1.442695, %v1979_v40 }
 0x299   : > { %2165 = vadd.xlane.f32.xlu1 %v5945_v44  ;;  %1676 = vadd.xlane.f32.xlu2 %v5943_v32  ;;  %v5962_v54 = vpop.eup %3666 }
 0x29a   : > { %1678 = vadd.xlane.f32.xlu0 %v5947_v31  ;;  %v5964_v39 = vpop.eup %3668  ;;  %v2051_v12 = vmul.f32 1.442695, %v1980_v17  ;;  %v7438_v17 = vld [vmem:[#allocation154_spill] sm:$0xff] }
 0x29b   : > { %v3671_v43 = vpop.eup %3670 }
 0x29c   : > { %v1627_v1 = vpop.xlane.xlu1 %1626  ;;  %v5958_v9 = vpop.xlane.xlu2 %2412 }
 0x29d   : > { %7428 = vst [vmem:[#allocation94_spill] sm:$0xff] %v5958_v9  ;;  %3672 = vrcp.f32 %v1627_v1  ;;  %v2116_v35 = vpop.xlane.xlu0 %2115  ;;  %v2231_v9 = vmul.f32 %v3671_v43, %v5570_v4  ;;  %v7436_v4 = vld [vmem:[#allocation141_spill] sm:$0xff] }
 0x29e   : > { %3674 = vpow2.f32 %v2079_v36  ;;  %v1508_v43 = vsub.f32 %v7436_v4, %v5807_v41 }
 0x29f   : > { %3676 = vpow2.f32 %v1592_v50 }
 0x2a0   : > { %3678 = vpow2.f32 %v2081_v5 }
 0x2a1   : > { %2135 = vadd.xlane.f32.xlu1 %v5962_v54  ;;  %1646 = vadd.xlane.f32.xlu2 %v5960_v51  ;;  %3680 = vrcp.f32 %v2116_v35 }
 0x2a2   : > { %1648 = vadd.xlane.f32.xlu0 %v5964_v39 }
 0x2a3   : > { %v3673_v7 = vpop.eup %3672 }
 0x2a4   : > { %v1744_v1 = vmul.f32 %v3673_v7, %v5595_v63  ;;  %v5976_v56 = vpop.xlane.xlu1 %1925  ;;  %v1629_v36 = vpop.xlane.xlu2 %1628  ;;  %v7437_v7 = vld [vmem:[#allocation151_spill] sm:$0xff] }
 0x2a5   : > { %3682 = vrcp.f32 %v1629_v36  ;;  %v5979_v50 = vpop.xlane.xlu0 %2414  ;;  %v5984_v29 = vpop.eup %3674  ;;  %v1996_v38 = vsub.f32 %v7437_v7, %v5847_v8 }
 0x2a6   : > { %7432 = vst [vmem:[#allocation26_spill] sm:$0xff] %v5979_v50  ;;  %v1788_v5 = vsel %vm4314_vm12, %v1744_v1, %v7433_v47  ;;  %v5990_v35 = vpop.eup %3676  ;;  %3684 = vpow2.f32 %v1562_v49  ;;  %v1509_v1 = vsub.f32 %v7438_v17, %v5864_v37  ;;  %v1594_v47 = vmul.f32 1.442695, %v1508_v43 }
 0x2a7   : > { %v5988_v63 = vsel %vm4302_vm10, %v2231_v9, %v1788_v5  ;;  %v5992_v57 = vpop.eup %3678  ;;  %3686 = vpow2.f32 %v2049_v20  ;;  %v2083_v4 = vmul.f32 1.442695, %v1996_v38 }
 0x2a8   : > { %7434 = vst [vmem:[#allocation112_spill] sm:$0xff] %v5988_v63  ;;  %v3681_v40 = vpop.eup %3680  ;;  %3688 = vpow2.f32 %v2051_v12  ;;  %v7439_v63 = vld [vmem:[#allocation33_spill] sm:$0xff]  ;;  %v1596_v12 = vmul.f32 1.442695, %v1509_v1 }
 0x2a9   : > { %7435 = vst [vmem:[#allocation118_spill] sm:$0xff] %v5992_v57  ;;  %1680 = vadd.xlane.f32.xlu1 %v5990_v35  ;;  %2167 = vadd.xlane.f32.xlu2 %v5984_v29  ;;  %v2232_v5 = vmul.f32 %v3681_v40, %v5602_v21  ;;  %3690 = vpow2.f32 %v1594_v47  ;;  %v7442_v21 = vld [vmem:[#allocation146_spill] sm:$0xff] }
 0x2aa   : > { %2169 = vadd.xlane.f32.xlu0 %v5992_v57  ;;  %v1493_v43 = vsub.f32 %v7442_v21, %v5828_v45  ;;  %3692 = vpow2.f32 %v2083_v4 }
 0x2ab   : > { %v3683_v9 = vpop.eup %3682  ;;  %3694 = vpow2.f32 %v1596_v12 }
 0x2ac   : > { %v1745_v36 = vmul.f32 %v3683_v9, %v5620_v42  ;;  %v6004_v49 = vpop.xlane.xlu1 %1440  ;;  %v6006_v41 = vpop.xlane.xlu2 %1927 }
 0x2ad   : > { %v1631_v20 = vpop.xlane.xlu0 %1630  ;;  %v6012_v7 = vpop.eup %3684 }
 0x2ae   : > { %v1789_v8 = vsel %vm4314_vm12, %v1745_v36, %v7439_v63  ;;  %v6018_v42 = vpop.eup %3686  ;;  %v7443_v63 = vld [vmem:[#allocation158_spill] sm:$0xff]  ;;  %v1564_v36 = vmul.f32 1.442695, %v1493_v43  ;;  %3696 = vrcp.f32 %v1631_v20 }
 0x2af   : > { %v6016_v37 = vsel %vm4302_vm10, %v2232_v5, %v1789_v8  ;;  %v6020_v9 = vpop.eup %3688  ;;  %v1494_v40 = vsub.f32 %v7443_v63, %v5884_v3  ;;  %v7445_v3 = vld [vmem:[#allocation159_spill] sm:$0xff] }
 0x2b0   : > { %7440 = vst [vmem:[#allocation109_spill] sm:$0xff] %v6016_v37  ;;  %v6035_v47 = vpop.eup %3690  ;;  %3698 = vpow2.f32 %v1564_v36  ;;  %v1981_v4 = vsub.f32 %v7445_v3, %v5886_v62  ;;  %v6055_v36 = vsel %vm4308_vm11, %v5702_v18, -1e+30  ;;  %v7447_v62 = vld [vmem:[#allocation162_spill] sm:$0xff]  ;;  %v7449_v18 = vld [vmem:[#allocation173_spill] sm:$0xff] }
 0x2b1   : > { %7441 = vst [vmem:[#allocation124_spill] sm:$0xff] %v6020_v9  ;;  %1650 = vadd.xlane.f32.xlu1 %v6012_v7  ;;  %2137 = vadd.xlane.f32.xlu2 %v6018_v42  ;;  %v1566_v5 = vmul.f32 1.442695, %v1494_v40  ;;  %v6037_v8 = vpop.eup %3692 }
 0x2b2   : > { %2139 = vadd.xlane.f32.xlu0 %v6020_v9  ;;  %v6039_v45 = vpop.eup %3694  ;;  %v2053_v63 = vmul.f32 1.442695, %v1981_v4  ;;  %7446 = vst [vmem:[#allocation161_spill] sm:$0xff] %v6055_v36  ;;  %v7448_v4 = vld [vmem:[#allocation163_spill] sm:$0xff]  ;;  %v1983_v9 = vsub.f32 %v7449_v18, %v5976_v56 }
 0x2b3   : > { %7444 = vst [vmem:[#allocation123_spill] sm:$0xff] %v6039_v45  ;;  %3700 = vpow2.f32 %v1566_v5  ;;  %v1495_v5 = vsub.f32 %v7447_v62, %v5911_v10 }
 0x2b4   : > { %v6029_v38 = vpop.xlane.xlu1 %1446  ;;  %v6031_v17 = vpop.xlane.xlu2 %1933 }
 0x2b5   : > { %v6033_v1 = vpop.xlane.xlu0 %1929  ;;  %v3697_v20 = vpop.eup %3696 }
 0x2b6   : > { %v6050_v40 = vpop.eup %3698  ;;  %v1746_v3 = vmul.f32 %v3697_v20, %v5652_v0  ;;  %v1568_v0 = vmul.f32 1.442695, %v1495_v5  ;;  %v7451_v20 = vld [vmem:[#allocation38_spill] sm:$0xff] }
 0x2b9   : > { %2171 = vadd.xlane.f32.xlu1 %v6037_v8  ;;  %1682 = vadd.xlane.f32.xlu2 %v6035_v47  ;;  %v6057_v37 = vpop.eup %3700 }
 0x2ba   : > { %1684 = vadd.xlane.f32.xlu0 %v6039_v45 }
 0x2bc   : > { %v2118_v12 = vpop.xlane.xlu1 %2117  ;;  %v6046_v21 = vpop.xlane.xlu2 %1442 }
 0x2bd   : > { %3702 = vrcp.f32 %v2118_v12  ;;  %v6048_v43 = vpop.xlane.xlu0 %1935  ;;  %v1982_v12 = vsub.f32 %v7448_v4, %v5913_v16 }
 0x2be   : > { %3704 = vpow2.f32 %v2053_v63  ;;  %v1790_v63 = vsel %vm4314_vm12, %v1746_v3, %v7451_v20  ;;  %v6096_v3 = vsel %vm4308_vm11, %v5669_v55, -1e+30 }
 0x2bf   : > { %v2055_v16 = vmul.f32 1.442695, %v1982_v12  ;;  %3706 = vpow2.f32 %v1568_v0  ;;  %7456 = vst [vmem:[#allocation140_spill] sm:$0xff] %v6096_v3  ;;  %v7458_v12 = vld [vmem:[#allocation177_spill] sm:$0xff] }
 0x2c0   : > { %v1497_v0 = vsub.f32 %v7458_v12, %v6004_v49  ;;  %v7461_v49 = vld [vmem:[#allocation184_spill] sm:$0xff] }
 0x2c1   : > { %2422 = vmax.xlane.f32.xlu1 %v6055_v36  ;;  %1652 = vadd.xlane.f32.xlu2 %v6050_v40  ;;  %v2057_v36 = vmul.f32 1.442695, %v1983_v9  ;;  %3708 = vpow2.f32 %v2055_v16  ;;  %v7457_v9 = vld [vmem:[#allocation178_spill] sm:$0xff] }
 0x2c2   : > { %1654 = vadd.xlane.f32.xlu0 %v6057_v37 }
 0x2c3   : > { %v3703_v50 = vpop.eup %3702  ;;  %3710 = vpow2.f32 %v2057_v36 }
 0x2c4   : > { %v2233_v45 = vmul.f32 %v3703_v50, %v5704_v33  ;;  %v6070_v57 = vpop.xlane.xlu1 %2416  ;;  %v6072_v10 = vpop.xlane.xlu2 %1448  ;;  %v7453_v33 = vld [vmem:[#allocation70_spill] sm:$0xff]  ;;  %v7455_v50 = vld [vmem:[#allocation168_spill] sm:$0xff] }
 0x2c5   : > { %7450 = vst [vmem:[#allocation29_spill] sm:$0xff] %v6070_v57  ;;  %v6077_v62 = vpop.xlane.xlu0 %1444  ;;  %v6083_v18 = vpop.eup %3704  ;;  %v6088_v56 = vsel %vm4308_vm11, %v7453_v33, -1e+30  ;;  %v1496_v5 = vsub.f32 %v7455_v50, %v5937_v24 }
 0x2c6   : > { %v6081_v4 = vsel %vm4302_vm10, %v2233_v45, %v1790_v63  ;;  %7454 = vst [vmem:[#allocation129_spill] sm:$0xff] %v6088_v56  ;;  %v1984_v45 = vsub.f32 %v7457_v9, %v6006_v41  ;;  %v6104_v55 = vpop.eup %3706  ;;  %v7460_v41 = vld [vmem:[#allocation183_spill] sm:$0xff] }
 0x2c7   : > { %7452 = vst [vmem:[#allocation125_spill] sm:$0xff] %v6081_v4  ;;  %v1570_v63 = vmul.f32 1.442695, %v1496_v5  ;;  %v6106_v16 = vpop.eup %3708  ;;  %v1987_v36 = vsub.f32 %v7460_v41, %v6031_v17  ;;  %v1985_v5 = vsub.f32 %v7461_v49, %v6033_v1 }
 0x2c8   : > { %v2059_v4 = vmul.f32 1.442695, %v1984_v45  ;;  %7459 = vst [vmem:[#allocation135_spill] sm:$0xff] %v6106_v16  ;;  %v7462_v45 = vld [vmem:[#allocation182_spill] sm:$0xff] }
 0x2c9   : > { %2141 = vadd.xlane.f32.xlu1 %v6083_v18  ;;  %2424 = vmax.xlane.f32.xlu2 %v6088_v56  ;;  %v1572_v56 = vmul.f32 1.442695, %v1497_v0  ;;  %v6108_v57 = vpop.eup %3710  ;;  %v1500_v12 = vsub.f32 %v7462_v45, %v6029_v38 }
 0x2ca   : > { %2420 = vmax.xlane.f32.xlu0 %v6096_v3  ;;  %v2061_v3 = vmul.f32 1.442695, %v1985_v5 }
 0x2cc   : > { %v1633_v24 = vpop.xlane.xlu1 %1632  ;;  %v2120_v20 = vpop.xlane.xlu2 %2119 }
 0x2cd   : > { %3712 = vrcp.f32 %v1633_v24  ;;  %v2122_v50 = vpop.xlane.xlu0 %2121 }
 0x2ce   : > { %3714 = vrcp.f32 %v2120_v20 }
 0x2cf   : > { %3716 = vpow2.f32 %v1570_v63  ;;  %v2065_v63 = vmul.f32 1.442695, %v1987_v36 }
 0x2d0   : > { %3718 = vpow2.f32 %v2059_v4 }
 0x2d1   : > { %1656 = vadd.xlane.f32.xlu1 %v6104_v55  ;;  %2143 = vadd.xlane.f32.xlu2 %v6106_v16  ;;  %3720 = vpow2.f32 %v1572_v56  ;;  %v7463_v16 = vld [vmem:[#allocation46_spill] sm:$0xff]  ;;  %v1578_v56 = vmul.f32 1.442695, %v1500_v12 }
 0x2d2   : > { %2145 = vadd.xlane.f32.xlu0 %v6108_v57 }
 0x2d3   : > { %v3713_v9 = vpop.eup %3712 }
 0x2d4   : > { %v3715_v0 = vpop.eup %3714  ;;  %v1747_v24 = vmul.f32 %v3713_v9, %v5761_v28  ;;  %v1932_v20 = vpop.xlane.xlu1 %1931 }
 0x2d5   : > { %v6120_v17 = vpop.xlane.xlu2 %2418  ;;  %v2234_v41 = vmul.f32 %v3715_v0, %v5763_v23  ;;  %v1637_v4 = vpop.xlane.xlu0 %1636  ;;  %v7465_v23 = vld [vmem:[#allocation188_spill] sm:$0xff]  ;;  %v1986_v5 = vsub.f32 %v5785_v59, %v1932_v20 }
 0x2d6   : > { %v1791_v1 = vsel %vm4314_vm12, %v1747_v24, %v7463_v16  ;;  %v6126_v49 = vpop.eup %3716  ;;  %3722 = vrcp.f32 %v1637_v4  ;;  %v1498_v36 = vsub.f32 %v7465_v23, %v6046_v21  ;;  %v1988_v16 = vsub.f32 %v5717_v58, %v6048_v43  ;;  %v7466_v43 = vld [vmem:[#allocation190_spill] sm:$0xff] }
 0x2d7   : > { %v6130_v38 = vsel %vm4302_vm10, %v2234_v41, %v1791_v1  ;;  %v6132_v28 = vpop.eup %3718  ;;  %3724 = vpow2.f32 %v2065_v63  ;;  %v1501_v59 = vsub.f32 %v7466_v43, %v6072_v10  ;;  %v7467_v1 = vld [vmem:[#allocation191_spill] sm:$0xff] }
 0x2d8   : > { %7464 = vst [vmem:[#allocation136_spill] sm:$0xff] %v6130_v38  ;;  %v6134_v9 = vpop.eup %3720  ;;  %3726 = vpow2.f32 %v2061_v3  ;;  %v1574_v0 = vmul.f32 1.442695, %v1498_v36  ;;  %v2067_v63 = vmul.f32 1.442695, %v1988_v16 }
 0x2d9   : > { %2147 = vadd.xlane.f32.xlu1 %v6132_v28  ;;  %1658 = vadd.xlane.f32.xlu2 %v6126_v49  ;;  %3728 = vpow2.f32 %v1578_v56  ;;  %v2063_v3 = vmul.f32 1.442695, %v1986_v5  ;;  %v1499_v56 = vsub.f32 %v7467_v1, %v6077_v62  ;;  %v7469_v62 = vld [vmem:[#allocation193_spill] sm:$0xff]  ;;  %v7471_v1 = vld [vmem:[#allocation48_spill] sm:$0xff] }
 0x2da   : > { %1660 = vadd.xlane.f32.xlu0 %v6134_v9  ;;  %3730 = vrcp.f32 %v2122_v50 }
 0x2dc   : > { %v2124_v45 = vpop.xlane.xlu1 %2123  ;;  %v3723_v21 = vpop.eup %3722 }
 0x2dd   : > { %v1635_v12 = vpop.xlane.xlu2 %1634  ;;  %3732 = vrcp.f32 %v2124_v45  ;;  %v2158_v24 = vpop.xlane.xlu0 %2157  ;;  %v1749_v50 = vmul.f32 %v3723_v21, %v5792_v53  ;;  %v1580_v45 = vmul.f32 1.442695, %v1501_v59  ;;  %v7468_v53 = vld [vmem:[#allocation58_spill] sm:$0xff] }
 0x2de   : > { %3734 = vrcp.f32 %v1635_v12  ;;  %v6144_v41 = vpop.eup %3724 }
 0x2df   : > { %v6146_v4 = vpop.eup %3726  ;;  %3736 = vpow2.f32 %v1574_v0  ;;  %v1793_v12 = vsel %vm4314_vm12, %v1749_v50, %v7468_v53 }
 0x2e0   : > { %v6148_v58 = vpop.eup %3728  ;;  %3738 = vpow2.f32 %v2067_v63  ;;  %v1576_v63 = vmul.f32 1.442695, %v1499_v56 }
 0x2e1   : > { %2153 = vadd.xlane.f32.xlu1 %v6144_v41  ;;  %2149 = vadd.xlane.f32.xlu2 %v6146_v4  ;;  %v3731_v20 = vpop.eup %3730  ;;  %3740 = vpow2.f32 %v2063_v3 }
 0x2e2   : > { %1666 = vadd.xlane.f32.xlu0 %v6148_v58  ;;  %v2235_v43 = vmul.f32 %v3731_v20, %v7469_v62 }
 0x2e3   : > { %v3733_v23 = vpop.eup %3732 }
 0x2e4   : > { %v3735_v36 = vpop.eup %3734  ;;  %v2236_v16 = vmul.f32 %v3733_v23, %v5811_v27  ;;  %v1639_v5 = vpop.xlane.xlu1 %1638 }
 0x2e5   : > { %v2126_v10 = vpop.xlane.xlu2 %2125  ;;  %v1748_v0 = vmul.f32 %v3735_v36, %v5809_v13  ;;  %3742 = vrcp.f32 %v1639_v5  ;;  %v2128_v21 = vpop.xlane.xlu0 %2127 }
 0x2e6   : > { %v6166_v3 = vsel %vm4302_vm10, %v2236_v16, %v1793_v12  ;;  %3744 = vrcp.f32 %v2126_v10  ;;  %v6168_v27 = vpop.eup %3736  ;;  %v7474_v10 = vld [vmem:[#allocation86_spill] sm:$0xff] }
 0x2e7   : > { %7470 = vst [vmem:[#allocation150_spill] sm:$0xff] %v6166_v3  ;;  %v1792_v59 = vsel %vm4314_vm12, %v1748_v0, %v7471_v1  ;;  %v6173_v23 = vpop.eup %3738  ;;  %3746 = vpow2.f32 %v1580_v45  ;;  %v7475_v0 = vld [vmem:[#allocation66_spill] sm:$0xff]  ;;  %v7480_v3 = vld [vmem:[#allocation88_spill] sm:$0xff] }
 0x2e8   : > { %v6177_v13 = vsel %vm4302_vm10, %v2235_v43, %v1792_v59  ;;  %v6179_v50 = vpop.eup %3740  ;;  %3748 = vpow2.f32 %v1576_v63 }
 0x2e9   : > { %7472 = vst [vmem:[#allocation31_spill] sm:$0xff] %v6177_v13  ;;  %1662 = vadd.xlane.f32.xlu1 %v6168_v27  ;;  %2155 = vadd.xlane.f32.xlu2 %v6173_v23  ;;  %3750 = vrcp.f32 %v2158_v24 }
 0x2ea   : > { %7473 = vst [vmem:[#allocation141_spill] sm:$0xff] %v6179_v50  ;;  %2151 = vadd.xlane.f32.xlu0 %v6179_v50 }
 0x2eb   : > { %v3743_v20 = vpop.eup %3742 }
 0x2ec   : > { %v3745_v56 = vpop.eup %3744  ;;  %v1750_v36 = vmul.f32 %v3743_v20, %v5830_v34  ;;  %v2160_v16 = vpop.xlane.xlu1 %2159  ;;  %v7478_v34 = vld [vmem:[#allocation78_spill] sm:$0xff] }
 0x2ed   : > { %v1671_v5 = vpop.xlane.xlu2 %1670  ;;  %v2237_v53 = vmul.f32 %v3745_v56, %v7474_v10  ;;  %3752 = vrcp.f32 %v2160_v16  ;;  %v1673_v12 = vpop.xlane.xlu0 %1672  ;;  %v6201_v43 = vsel %vm4308_vm11, %v7478_v34, -1e+30 }
 0x2ee   : > { %v1794_v45 = vsel %vm4314_vm12, %v1750_v36, %v7475_v0  ;;  %3754 = vrcp.f32 %v1671_v5  ;;  %v6189_v62 = vpop.eup %3746 }
 0x2ef   : > { %v6193_v63 = vsel %vm4302_vm10, %v2237_v53, %v1794_v45  ;;  %3756 = vrcp.f32 %v1673_v12  ;;  %v6195_v24 = vpop.eup %3748  ;;  %v7479_v12 = vld [vmem:[#allocation194_spill] sm:$0xff] }
 0x2f0   : > { %7476 = vst [vmem:[#allocation151_spill] sm:$0xff] %v6193_v63  ;;  %v3751_v1 = vpop.eup %3750  ;;  %3758 = vrcp.f32 %v2128_v21 }
 0x2f1   : > { %7477 = vst [vmem:[#allocation154_spill] sm:$0xff] %v6195_v24  ;;  %1668 = vadd.xlane.f32.xlu1 %v6189_v62  ;;  %1664 = vadd.xlane.f32.xlu2 %v6195_v24  ;;  %v2253_v0 = vmul.f32 %v3751_v1, %v7479_v12  ;;  %v7495_v24 = vld [vmem:[#allocation73_spill] sm:$0xff] }
 0x2f2   : > { %2426 = vmax.xlane.f32.xlu0 %v6201_v43 }
 0x2f3   : > { %v3753_v59 = vpop.eup %3752 }
 0x2f4   : > { %v3755_v20 = vpop.eup %3754  ;;  %v2130_v56 = vpop.xlane.xlu1 %2129  ;;  %v2254_v5 = vmul.f32 %v3753_v59, %v5851_v52  ;;  %v7482_v52 = vld [vmem:[#allocation102_spill] sm:$0xff]  ;;  %v7486_v59 = vld [vmem:[#allocation4_spill] sm:$0xff] }
 0x2f5   : > { %v1641_v36 = vpop.xlane.xlu2 %1640  ;;  %v3757_v16 = vpop.eup %3756  ;;  %v1766_v10 = vmul.f32 %v3755_v20, %v5849_v48  ;;  %3760 = vrcp.f32 %v2130_v56  ;;  %v6218_v48 = vsel %vm4308_vm11, %v7480_v3, -1e+30  ;;  %v6223_v1 = vsel %vm4308_vm11, %v7482_v52, -1e+30 }
 0x2f6   : > { %v1643_v53 = vpop.xlane.xlu0 %1642  ;;  %v1767_v45 = vmul.f32 %v3757_v16, %v5853_v11  ;;  %3762 = vrcp.f32 %v1641_v36  ;;  %7481 = vst [vmem:[#allocation33_spill] sm:$0xff] %v6218_v48  ;;  %v3759_v16 = vpop.eup %3758 }
 0x2f7   : > { %v1810_v63 = vsel %vm4314_vm12, %v1766_v10, %v7453_v33  ;;  %3764 = vrcp.f32 %v1643_v53  ;;  %7483 = vst [vmem:[#allocation146_spill] sm:$0xff] %v6223_v1  ;;  %v7485_v33 = vld [vmem:[#allocation32_spill] sm:$0xff]  ;;  %v7490_v10 = vld [vmem:[#allocation37_spill] sm:$0xff] }
 0x2f8   : > { %v1811_v21 = vsel %vm4314_vm12, %v1767_v45, %v7478_v34  ;;  %v6227_v11 = vsel %vm4302_vm10, %v2253_v0, %v1810_v63  ;;  %v2440_v20 = vsub.f32 %v7486_v59, %v7485_v33  ;;  %v7487_v34 = vld [vmem:[#allocation111_spill] sm:$0xff]  ;;  %v7492_v0 = vld [vmem:[#allocation42_spill] sm:$0xff] }
 0x2f9   : > { %7484 = vst [vmem:[#allocation158_spill] sm:$0xff] %v6227_v11  ;;  %2428 = vmax.xlane.f32.xlu1 %v6218_v48  ;;  %v6235_v56 = vsel %vm4308_vm11, %v7487_v34, -1e+30  ;;  %2430 = vmax.xlane.f32.xlu2 %v6223_v1  ;;  %v6240_v36 = vsel %vm4302_vm10, %v2254_v5, %v1811_v21  ;;  %v7491_v63 = vld [vmem:[#allocation7_spill] sm:$0xff]  ;;  %v7493_v45 = vld [vmem:[#allocation10_spill] sm:$0xff] }
 0x2fa   : > { %7488 = vst [vmem:[#allocation159_spill] sm:$0xff] %v6235_v56  ;;  %v2441_v53 = vsub.f32 %v7491_v63, %v7490_v10  ;;  %2432 = vmax.xlane.f32.xlu0 %v6235_v56  ;;  %v2442_v33 = vsub.f32 %v7493_v45, %v7492_v0  ;;  %v2484_v50 = vmul.f32 1.442695, %v2440_v20  ;;  %v7494_v48 = vld [vmem:[#allocation195_spill] sm:$0xff]  ;;  %v7496_v45 = vld [vmem:[#allocation84_spill] sm:$0xff] }
 0x2fb   : > { %7489 = vst [vmem:[#allocation162_spill] sm:$0xff] %v6240_v36  ;;  %v3761_v12 = vpop.eup %3760  ;;  %v2238_v10 = vmul.f32 %v3759_v16, %v7494_v48  ;;  %v7502_v16 = vld [vmem:[#allocation149_spill] sm:$0xff] }
 0x2fc   : > { %v3763_v59 = vpop.eup %3762  ;;  %v1675_v11 = vpop.xlane.xlu1 %1674  ;;  %v2239_v1 = vmul.f32 %v3761_v12, %v5870_v15  ;;  %v2486_v36 = vmul.f32 1.442695, %v2441_v53  ;;  %v2488_v56 = vmul.f32 1.442695, %v2442_v33  ;;  %v7497_v15 = vld [vmem:[#allocation122_spill] sm:$0xff]  ;;  %v7504_v33 = vld [vmem:[#allocation45_spill] sm:$0xff] }
 0x2fd   : > { %v2162_v13 = vpop.xlane.xlu2 %2161  ;;  %v3765_v38 = vpop.eup %3764  ;;  %v1751_v5 = vmul.f32 %v3763_v59, %v5868_v6  ;;  %3766 = vrcp.f32 %v1675_v11  ;;  %v6260_v6 = vsel %vm4308_vm11, %v7497_v15, -1e+30  ;;  %v7498_v11 = vld [vmem:[#allocation138_spill] sm:$0xff]  ;;  %v6277_v53 = vsel %vm4308_vm11, %v7502_v16, -1e+30  ;;  %v7505_v59 = vld [vmem:[#allocation12_spill] sm:$0xff] }
 0x2fe   : > { %v2164_v21 = vpop.xlane.xlu0 %2163  ;;  %v1752_v63 = vmul.f32 %v3765_v38, %v5872_v46  ;;  %3768 = vrcp.f32 %v2162_v13  ;;  %v6265_v48 = vsel %vm4308_vm11, %v7498_v11, -1e+30  ;;  %v7500_v38 = vld [vmem:[#allocation41_spill] sm:$0xff] }
 0x2ff   : > { %v1795_v0 = vsel %vm4314_vm12, %v1751_v5, %v7495_v24  ;;  %3770 = vpow2.f32 %v2484_v50  ;;  %v7501_v13 = vld [vmem:[#allocation9_spill] sm:$0xff]  ;;  %v2444_v50 = vsub.f32 %v7505_v59, %v7504_v33 }
 0x300   : > { %v1796_v20 = vsel %vm4314_vm12, %v1752_v63, %v7496_v45  ;;  %v6269_v46 = vsel %vm4302_vm10, %v2238_v10, %v1795_v0  ;;  %v2443_v24 = vsub.f32 %v7501_v13, %v7500_v38  ;;  %3772 = vpow2.f32 %v2486_v36  ;;  %v7506_v10 = vld [vmem:[#allocation52_spill] sm:$0xff]  ;;  %v7507_v63 = vld [vmem:[#allocation15_spill] sm:$0xff] }
 0x301   : > { %7499 = vst [vmem:[#allocation163_spill] sm:$0xff] %v6269_v46  ;;  %2434 = vmax.xlane.f32.xlu1 %v6260_v6  ;;  %2436 = vmax.xlane.f32.xlu2 %v6265_v48  ;;  %v6282_v12 = vsel %vm4302_vm10, %v2239_v1, %v1796_v20  ;;  %3774 = vpow2.f32 %v2488_v56  ;;  %v2445_v0 = vsub.f32 %v7507_v63, %v7506_v10  ;;  %v2492_v20 = vmul.f32 1.442695, %v2444_v50 }
 0x302   : > { %7503 = vst [vmem:[#allocation173_spill] sm:$0xff] %v6282_v12  ;;  %2438 = vmax.xlane.f32.xlu0 %v6277_v53  ;;  %v2490_v25 = vmul.f32 1.442695, %v2443_v24 }
 0x303   : > { %v3767_v5 = vpop.eup %3766  ;;  %v2494_v59 = vmul.f32 1.442695, %v2445_v0 }
 0x304   : > { %v3769_v45 = vpop.eup %3768  ;;  %v1768_v38 = vmul.f32 %v3767_v5, %v5898_v19  ;;  %v1645_v13 = vpop.xlane.xlu1 %1644  ;;  %v7510_v5 = vld [vmem:[#allocation17_spill] sm:$0xff] }
 0x305   : > { %v2132_v46 = vpop.xlane.xlu2 %2131  ;;  %v2255_v1 = vmul.f32 %v3769_v45, %v5892_v14  ;;  %3776 = vrcp.f32 %v1645_v13  ;;  %v6294_v56 = vpop.eup %3770  ;;  %v7509_v14 = vld [vmem:[#allocation56_spill] sm:$0xff]  ;;  %v7513_v45 = vld [vmem:[#allocation65_spill] sm:$0xff] }
 0x306   : > { %v2134_v36 = vpop.xlane.xlu0 %2133  ;;  %v1812_v33 = vsel %vm4314_vm12, %v1768_v38, %v7480_v3  ;;  %3778 = vrcp.f32 %v2132_v46  ;;  %v6300_v19 = vpop.eup %3772  ;;  %v2446_v50 = vsub.f32 %v7510_v5, %v7509_v14  ;;  %v7511_v3 = vld [vmem:[#allocation57_spill] sm:$0xff]  ;;  %v7512_v46 = vld [vmem:[#allocation18_spill] sm:$0xff] }
 0x307   : > { %v6298_v10 = vsel %vm4302_vm10, %v2255_v1, %v1812_v33  ;;  %v6302_v24 = vpop.eup %3774  ;;  %3780 = vpow2.f32 %v2490_v25  ;;  %v2447_v63 = vsub.f32 %v7512_v46, %v7511_v3  ;;  %v7514_v38 = vld [vmem:[#allocation21_spill] sm:$0xff]  ;;  %v7515_v3 = vld [vmem:[#allocation98_spill] sm:$0xff] }
 0x308   : > { %7508 = vst [vmem:[#allocation38_spill] sm:$0xff] %v6298_v10  ;;  %3782 = vpow2.f32 %v2492_v20  ;;  %v2448_v13 = vsub.f32 %v7514_v38, %v7513_v45  ;;  %v2496_v5 = vmul.f32 1.442695, %v2446_v50 }
 0x309   : > { %2572 = vadd.xlane.f32.xlu1 %v6294_v56  ;;  %2574 = vadd.xlane.f32.xlu2 %v6300_v19  ;;  %3784 = vpow2.f32 %v2494_v59  ;;  %v2498_v12 = vmul.f32 1.442695, %v2447_v63  ;;  %v7520_v63 = vld [vmem:[#allocation22_spill] sm:$0xff] }
 0x30a   : > { %2576 = vadd.xlane.f32.xlu0 %v6302_v24  ;;  %3786 = vrcp.f32 %v2164_v21  ;;  %v2500_v45 = vmul.f32 1.442695, %v2448_v13  ;;  %v7521_v13 = vld [vmem:[#allocation69_spill] sm:$0xff] }
 0x30b   : > { %v3777_v0 = vpop.eup %3776 }
 0x30c   : > { %v3779_v1 = vpop.eup %3778  ;;  %v1753_v25 = vmul.f32 %v3777_v0, %v5915_v60  ;;  %v2166_v33 = vpop.xlane.xlu1 %2165 }
 0x30d   : > { %v1677_v14 = vpop.xlane.xlu2 %1676  ;;  %v2240_v10 = vmul.f32 %v3779_v1, %v5917_v2  ;;  %3788 = vrcp.f32 %v2166_v33  ;;  %v6318_v59 = vpop.eup %3780  ;;  %v7519_v2 = vld [vmem:[#allocation68_spill] sm:$0xff]  ;;  %v7523_v33 = vld [vmem:[#allocation77_spill] sm:$0xff] }
 0x30e   : > { %v1679_v20 = vpop.xlane.xlu0 %1678  ;;  %v1797_v46 = vsel %vm4314_vm12, %v1753_v25, %v7515_v3  ;;  %3790 = vrcp.f32 %v1677_v14  ;;  %v6324_v60 = vpop.eup %3782  ;;  %v2449_v0 = vsub.f32 %v7520_v63, %v7519_v2  ;;  %v7522_v1 = vld [vmem:[#allocation24_spill] sm:$0xff]  ;;  %v7524_v14 = vld [vmem:[#allocation27_spill] sm:$0xff] }
 0x30f   : > { %v6322_v21 = vsel %vm4302_vm10, %v2240_v10, %v1797_v46  ;;  %3792 = vrcp.f32 %v1679_v20  ;;  %7517 = vst [vmem:[#allocation168_spill] sm:$0xff] %v6324_v60  ;;  %v6326_v50 = vpop.eup %3784  ;;  %v2450_v25 = vsub.f32 %v7522_v1, %v7521_v13  ;;  %v2451_v20 = vsub.f32 %v7524_v14, %v7523_v33 }
 0x310   : > { %7516 = vst [vmem:[#allocation70_spill] sm:$0xff] %v6322_v21  ;;  %3794 = vpow2.f32 %v2496_v5  ;;  %v3787_v38 = vpop.eup %3786  ;;  %v2502_v63 = vmul.f32 1.442695, %v2449_v0 }
 0x311   : > { %7518 = vst [vmem:[#allocation178_spill] sm:$0xff] %v6326_v50  ;;  %2578 = vadd.xlane.f32.xlu1 %v6318_v59  ;;  %2580 = vadd.xlane.f32.xlu2 %v6324_v60  ;;  %3796 = vpow2.f32 %v2498_v12  ;;  %v2504_v13 = vmul.f32 1.442695, %v2450_v25  ;;  %v2256_v1 = vmul.f32 %v3787_v38, %v5900_v61  ;;  %v2506_v33 = vmul.f32 1.442695, %v2451_v20  ;;  %v7527_v38 = vld [vmem:[#allocation28_spill] sm:$0xff] }
 0x312   : > { %2582 = vadd.xlane.f32.xlu0 %v6326_v50  ;;  %3798 = vpow2.f32 %v2500_v45 }
 0x313   : > { %v3789_v10 = vpop.eup %3788  ;;  %3800 = vrcp.f32 %v2134_v36 }
 0x314   : > { %v3791_v5 = vpop.eup %3790  ;;  %v2136_v3 = vpop.xlane.xlu1 %2135  ;;  %v2257_v21 = vmul.f32 %v3789_v10, %v5945_v44  ;;  %v7530_v10 = vld [vmem:[#allocation30_spill] sm:$0xff] }
 0x315   : > { %v1647_v46 = vpop.xlane.xlu2 %1646  ;;  %v3793_v2 = vpop.eup %3792  ;;  %v1769_v12 = vmul.f32 %v3791_v5, %v5943_v32  ;;  %3802 = vrcp.f32 %v2136_v3  ;;  %v7531_v5 = vld [vmem:[#allocation92_spill] sm:$0xff]  ;;  %v7532_v3 = vld [vmem:[#allocation34_spill] sm:$0xff] }
 0x316   : > { %v1649_v60 = vpop.xlane.xlu0 %1648  ;;  %v1770_v45 = vmul.f32 %v3793_v2, %v5947_v31  ;;  %3804 = vrcp.f32 %v1647_v46  ;;  %v6341_v50 = vpop.eup %3794  ;;  %v7526_v31 = vld [vmem:[#allocation82_spill] sm:$0xff]  ;;  %v2454_v46 = vsub.f32 %v7532_v3, %v7531_v5 }
 0x317   : > { %v1813_v36 = vsel %vm4314_vm12, %v1769_v12, %v7482_v52  ;;  %3806 = vrcp.f32 %v1649_v60  ;;  %v6346_v0 = vpop.eup %3796  ;;  %v2452_v25 = vsub.f32 %v7527_v38, %v7526_v31 }
 0x318   : > { %v1814_v32 = vsel %vm4314_vm12, %v1770_v45, %v7487_v34  ;;  %v6353_v61 = vsel %vm4302_vm10, %v2256_v1, %v1813_v36  ;;  %v6355_v44 = vpop.eup %3798  ;;  %3808 = vpow2.f32 %v2502_v63  ;;  %v7529_v34 = vld [vmem:[#allocation83_spill] sm:$0xff] }
 0x319   : > { %7525 = vst [vmem:[#allocation177_spill] sm:$0xff] %v6353_v61  ;;  %2584 = vadd.xlane.f32.xlu1 %v6341_v50  ;;  %2586 = vadd.xlane.f32.xlu2 %v6346_v0  ;;  %v6363_v52 = vsel %vm4302_vm10, %v2257_v21, %v1814_v32  ;;  %v3801_v60 = vpop.eup %3800  ;;  %3810 = vpow2.f32 %v2504_v13  ;;  %v2453_v14 = vsub.f32 %v7530_v10, %v7529_v34  ;;  %v2508_v45 = vmul.f32 1.442695, %v2452_v25  ;;  %v7533_v10 = vld [vmem:[#allocation106_spill] sm:$0xff] }
 0x31a   : > { %7528 = vst [vmem:[#allocation183_spill] sm:$0xff] %v6363_v52  ;;  %2588 = vadd.xlane.f32.xlu0 %v6355_v44  ;;  %3812 = vpow2.f32 %v2506_v33  ;;  %v2241_v31 = vmul.f32 %v3801_v60, %v5919_v26  ;;  %v2512_v34 = vmul.f32 1.442695, %v2454_v46  ;;  %v7537_v60 = vld [vmem:[#allocation36_spill] sm:$0xff]  ;;  %v7539_v46 = vld [vmem:[#allocation101_spill] sm:$0xff]  ;;  %v7558_v52 = vld [vmem:[#allocation118_spill] sm:$0xff] }
 0x31b   : > { %v3803_v20 = vpop.eup %3802  ;;  %v2510_v32 = vmul.f32 1.442695, %v2453_v14 }
 0x31c   : > { %v3805_v2 = vpop.eup %3804  ;;  %v1681_v63 = vpop.xlane.xlu1 %1680  ;;  %v2242_v21 = vmul.f32 %v3803_v20, %v5962_v54  ;;  %v7534_v54 = vld [vmem:[#allocation116_spill] sm:$0xff] }
 0x31d   : > { %v2168_v12 = vpop.xlane.xlu2 %2167  ;;  %v3807_v1 = vpop.eup %3806  ;;  %v1754_v36 = vmul.f32 %v3805_v2, %v5960_v51  ;;  %3814 = vrcp.f32 %v1681_v63  ;;  %v7540_v2 = vld [vmem:[#allocation40_spill] sm:$0xff] }
 0x31e   : > { %v2170_v13 = vpop.xlane.xlu0 %2169  ;;  %v1755_v38 = vmul.f32 %v3807_v1, %v5964_v39  ;;  %3816 = vrcp.f32 %v2168_v12  ;;  %v6374_v33 = vpop.eup %3808  ;;  %v7536_v39 = vld [vmem:[#allocation96_spill] sm:$0xff]  ;;  %v2456_v63 = vsub.f32 %v7540_v2, %v7539_v46  ;;  %v7541_v1 = vld [vmem:[#allocation110_spill] sm:$0xff]  ;;  %v7545_v2 = vld [vmem:[#allocation55_spill] sm:$0xff] }
 0x31f   : > { %v1798_v5 = vsel %vm4314_vm12, %v1754_v36, %v7533_v10  ;;  %v6379_v25 = vpop.eup %3810  ;;  %3818 = vpow2.f32 %v2508_v45  ;;  %v2455_v20 = vsub.f32 %v7537_v60, %v7536_v39  ;;  %v7542_v45 = vld [vmem:[#allocation47_spill] sm:$0xff] }
 0x320   : > { %v1799_v51 = vsel %vm4314_vm12, %v1755_v38, %v7534_v54  ;;  %v6386_v14 = vsel %vm4302_vm10, %v2241_v31, %v1798_v5  ;;  %v6388_v26 = vpop.eup %3812  ;;  %3820 = vpow2.f32 %v2510_v32  ;;  %v2457_v36 = vsub.f32 %v7542_v45, %v7541_v1 }
 0x321   : > { %7535 = vst [vmem:[#allocation184_spill] sm:$0xff] %v6386_v14  ;;  %2590 = vadd.xlane.f32.xlu1 %v6374_v33  ;;  %2592 = vadd.xlane.f32.xlu2 %v6379_v25  ;;  %v6396_v3 = vsel %vm4302_vm10, %v2242_v21, %v1799_v51  ;;  %3822 = vpow2.f32 %v2512_v34  ;;  %v2514_v54 = vmul.f32 1.442695, %v2455_v20  ;;  %v2516_v51 = vmul.f32 1.442695, %v2456_v63 }
 0x322   : > { %7538 = vst [vmem:[#allocation182_spill] sm:$0xff] %v6396_v3  ;;  %2594 = vadd.xlane.f32.xlu0 %v6388_v26  ;;  %v2518_v60 = vmul.f32 1.442695, %v2457_v36  ;;  %v7548_v36 = vld [vmem:[#allocation137_spill] sm:$0xff] }
 0x323   : > { %v3815_v12 = vpop.eup %3814 }
 0x324   : > { %v3817_v31 = vpop.eup %3816  ;;  %v1771_v38 = vmul.f32 %v3815_v12, %v5990_v35  ;;  %v1651_v10 = vpop.xlane.xlu1 %1650  ;;  %v7547_v12 = vld [vmem:[#allocation61_spill] sm:$0xff] }
 0x325   : > { %v2138_v5 = vpop.xlane.xlu2 %2137  ;;  %v2258_v21 = vmul.f32 %v3817_v31, %v5984_v29  ;;  %3824 = vrcp.f32 %v1651_v10  ;;  %v6408_v34 = vpop.eup %3818  ;;  %v7544_v29 = vld [vmem:[#allocation120_spill] sm:$0xff]  ;;  %v7549_v31 = vld [vmem:[#allocation67_spill] sm:$0xff] }
 0x326   : > { %v2140_v32 = vpop.xlane.xlu0 %2139  ;;  %v1815_v39 = vsel %vm4314_vm12, %v1771_v38, %v7497_v15  ;;  %3826 = vrcp.f32 %v2138_v5  ;;  %v6414_v35 = vpop.eup %3820  ;;  %v2458_v63 = vsub.f32 %v7545_v2, %v7544_v29  ;;  %v7546_v15 = vld [vmem:[#allocation127_spill] sm:$0xff]  ;;  %v2460_v38 = vsub.f32 %v7549_v31, %v7548_v36 }
 0x327   : > { %v6412_v46 = vsel %vm4302_vm10, %v2258_v21, %v1815_v39  ;;  %v6416_v20 = vpop.eup %3822  ;;  %3828 = vpow2.f32 %v2514_v54  ;;  %v2459_v1 = vsub.f32 %v7547_v12, %v7546_v15  ;;  %v7550_v15 = vld [vmem:[#allocation133_spill] sm:$0xff] }
 0x328   : > { %7543 = vst [vmem:[#allocation46_spill] sm:$0xff] %v6412_v46  ;;  %3830 = vpow2.f32 %v2516_v51  ;;  %v2520_v39 = vmul.f32 1.442695, %v2458_v63  ;;  %v2524_v36 = vmul.f32 1.442695, %v2460_v38  ;;  %v7554_v38 = vld [vmem:[#allocation157_spill] sm:$0xff] }
 0x329   : > { %2596 = vadd.xlane.f32.xlu1 %v6408_v34  ;;  %2598 = vadd.xlane.f32.xlu2 %v6414_v35  ;;  %3832 = vpow2.f32 %v2518_v60  ;;  %v2522_v2 = vmul.f32 1.442695, %v2459_v1  ;;  %v7553_v1 = vld [vmem:[#allocation75_spill] sm:$0xff] }
 0x32a   : > { %2600 = vadd.xlane.f32.xlu0 %v6416_v20  ;;  %3834 = vrcp.f32 %v2170_v13 }
 0x32b   : > { %v3825_v45 = vpop.eup %3824 }
 0x32c   : > { %v3827_v10 = vpop.eup %3826  ;;  %v1756_v5 = vmul.f32 %v3825_v45, %v6012_v7  ;;  %v2172_v54 = vpop.xlane.xlu1 %2171 }
 0x32d   : > { %v1683_v21 = vpop.xlane.xlu2 %1682  ;;  %v2243_v29 = vmul.f32 %v3827_v10, %v6018_v42  ;;  %3836 = vrcp.f32 %v2172_v54  ;;  %v6432_v60 = vpop.eup %3828  ;;  %v7552_v42 = vld [vmem:[#allocation148_spill] sm:$0xff]  ;;  %v7555_v10 = vld [vmem:[#allocation87_spill] sm:$0xff] }
 0x32e   : > { %v1685_v51 = vpop.xlane.xlu0 %1684  ;;  %v1800_v12 = vsel %vm4314_vm12, %v1756_v5, %v7550_v15  ;;  %3838 = vrcp.f32 %v1683_v21  ;;  %v6438_v7 = vpop.eup %3830  ;;  %v2461_v45 = vsub.f32 %v7553_v1, %v7552_v42  ;;  %v2462_v5 = vsub.f32 %v7555_v10, %v7554_v38  ;;  %v7556_v21 = vld [vmem:[#allocation169_spill] sm:$0xff] }
 0x32f   : > { %v6436_v13 = vsel %vm4302_vm10, %v2243_v29, %v1800_v12  ;;  %3840 = vrcp.f32 %v1685_v51  ;;  %v6440_v63 = vpop.eup %3832  ;;  %v7557_v29 = vld [vmem:[#allocation99_spill] sm:$0xff] }
 0x330   : > { %7551 = vst [vmem:[#allocation188_spill] sm:$0xff] %v6436_v13  ;;  %3842 = vpow2.f32 %v2520_v39  ;;  %v3835_v31 = vpop.eup %3834  ;;  %v2463_v51 = vsub.f32 %v7557_v29, %v7556_v21  ;;  %v2526_v1 = vmul.f32 1.442695, %v2461_v45  ;;  %v2528_v10 = vmul.f32 1.442695, %v2462_v5  ;;  %v7561_v45 = vld [vmem:[#allocation176_spill] sm:$0xff] }
 0x331   : > { %2602 = vadd.xlane.f32.xlu1 %v6432_v60  ;;  %2604 = vadd.xlane.f32.xlu2 %v6438_v7  ;;  %3844 = vpow2.f32 %v2522_v2  ;;  %v2259_v61 = vmul.f32 %v3835_v31, %v7558_v52  ;;  %v7562_v31 = vld [vmem:[#allocation108_spill] sm:$0xff] }
 0x332   : > { %2606 = vadd.xlane.f32.xlu0 %v6440_v63  ;;  %3846 = vpow2.f32 %v2524_v36  ;;  %v7559_v36 = vld [vmem:[#allocation123_spill] sm:$0xff]  ;;  %v2530_v21 = vmul.f32 1.442695, %v2463_v51  ;;  %v2464_v5 = vsub.f32 %v7562_v31, %v7561_v45 }
 0x333   : > { %v3837_v54 = vpop.eup %3836  ;;  %3848 = vrcp.f32 %v2140_v32  ;;  %v7569_v31 = vld [vmem:[#allocation143_spill] sm:$0xff] }
 0x334   : > { %v3839_v39 = vpop.eup %3838  ;;  %v6451_v15 = vpop.xlane.xlu1 %2422  ;;  %v2260_v46 = vmul.f32 %v3837_v54, %v6037_v8  ;;  %v7565_v54 = vld [vmem:[#allocation119_spill] sm:$0xff] }
 0x335   : > { %v1653_v12 = vpop.xlane.xlu2 %1652  ;;  %v3841_v42 = vpop.eup %3840  ;;  %v1772_v2 = vmul.f32 %v3839_v39, %v6035_v47  ;;  %v7566_v39 = vld [vmem:[#allocation51_spill] sm:$0xff] }
 0x336   : > { %3850 = vrcp.f32 %v1653_v12  ;;  %v1655_v38 = vpop.xlane.xlu0 %1654  ;;  %v1773_v13 = vmul.f32 %v3841_v42, %v7559_v36  ;;  %v6457_v3 = vpop.eup %3842  ;;  %v7567_v12 = vld [vmem:[#allocation134_spill] sm:$0xff]  ;;  %v2532_v36 = vmul.f32 1.442695, %v2464_v5 }
 0x337   : > { %v1816_v32 = vsel %vm4314_vm12, %v1772_v2, %v7498_v11  ;;  %v6462_v29 = vpop.eup %3844  ;;  %3852 = vrcp.f32 %v1655_v38  ;;  %v2466_v42 = vsub.f32 %v7567_v12, %v7566_v39  ;;  %v7572_v39 = vld [vmem:[#allocation145_spill] sm:$0xff] }
 0x338   : > { %v1817_v47 = vsel %vm4314_vm12, %v1773_v13, %v7502_v16  ;;  %v6469_v8 = vsel %vm4302_vm10, %v2259_v61, %v1816_v32  ;;  %v6471_v52 = vpop.eup %3846  ;;  %3854 = vpow2.f32 %v2526_v1  ;;  %v7564_v13 = vld [vmem:[#allocation186_spill] sm:$0xff] }
 0x339   : > { %7560 = vst [vmem:[#allocation190_spill] sm:$0xff] %v6469_v8  ;;  %2608 = vadd.xlane.f32.xlu1 %v6457_v3  ;;  %2610 = vadd.xlane.f32.xlu2 %v6462_v29  ;;  %v6479_v11 = vsel %vm4302_vm10, %v2260_v46, %v1817_v47  ;;  %v3849_v16 = vpop.eup %3848  ;;  %3856 = vpow2.f32 %v2528_v10  ;;  %v2465_v61 = vsub.f32 %v7565_v54, %v7564_v13  ;;  %v7568_v46 = vld [vmem:[#allocation124_spill] sm:$0xff]  ;;  %v2536_v54 = vmul.f32 1.442695, %v2466_v42 }
 0x33a   : > { %7563 = vst [vmem:[#allocation191_spill] sm:$0xff] %v6479_v11  ;;  %2612 = vadd.xlane.f32.xlu0 %v6471_v52  ;;  %3858 = vpow2.f32 %v2530_v21  ;;  %v2244_v32 = vmul.f32 %v3849_v16, %v7568_v46  ;;  %v7571_v16 = vld [vmem:[#allocation80_spill] sm:$0xff] }
 0x33b   : > { %v2534_v45 = vmul.f32 1.442695, %v2465_v61  ;;  %v2467_v12 = vsub.f32 %v7572_v39, %v7571_v16  ;;  %v7573_v42 = vld [vmem:[#allocation76_spill] sm:$0xff] }
 0x33c   : > { %v3851_v51 = vpop.eup %3850  ;;  %v2142_v2 = vpop.xlane.xlu1 %2141 }
 0x33d   : > { %v1757_v1 = vmul.f32 %v3851_v51, %v6050_v40  ;;  %v6487_v38 = vpop.xlane.xlu2 %2424  ;;  %3860 = vrcp.f32 %v2142_v2  ;;  %v3853_v47 = vpop.eup %3852 }
 0x33e   : > { %v6490_v10 = vpop.xlane.xlu0 %2420  ;;  %v6495_v13 = vpop.eup %3854  ;;  %3862 = vpow2.f32 %v2532_v36  ;;  %v1758_v61 = vmul.f32 %v3853_v47, %v6057_v37  ;;  %v2538_v37 = vmul.f32 1.442695, %v2467_v12  ;;  %v7577_v47 = vld [vmem:[#allocation153_spill] sm:$0xff]  ;;  %v7580_v12 = vld [vmem:[#allocation94_spill] sm:$0xff] }
 0x33f   : > { %v1801_v21 = vsel %vm4314_vm12, %v1757_v1, %v7569_v31  ;;  %v6501_v51 = vpop.eup %3856  ;;  %3864 = vpow2.f32 %v2534_v45  ;;  %v7574_v1 = vld [vmem:[#allocation155_spill] sm:$0xff] }
 0x340   : > { %v6499_v40 = vsel %vm4302_vm10, %v2244_v32, %v1801_v21  ;;  %v6503_v5 = vpop.eup %3858  ;;  %v2468_v2 = vsub.f32 %v7574_v1, %v7573_v42  ;;  %3866 = vpow2.f32 %v2536_v54  ;;  %v7575_v32 = vld [vmem:[#allocation89_spill] sm:$0xff]  ;;  %v7576_v31 = vld [vmem:[#allocation167_spill] sm:$0xff]  ;;  %v1802_v11 = vsel %vm4314_vm12, %v1758_v61, %v7577_v47  ;;  %v7582_v61 = vld [vmem:[#allocation26_spill] sm:$0xff] }
 0x341   : > { %7570 = vst [vmem:[#allocation58_spill] sm:$0xff] %v6499_v40  ;;  %2614 = vadd.xlane.f32.xlu1 %v6495_v13  ;;  %2616 = vadd.xlane.f32.xlu2 %v6501_v51  ;;  %v2469_v36 = vsub.f32 %v7576_v31, %v7575_v32  ;;  %v7586_v40 = vld [vmem:[#allocation135_spill] sm:$0xff] }
 0x342   : > { %2618 = vadd.xlane.f32.xlu0 %v6503_v5  ;;  %v2540_v8 = vmul.f32 1.442695, %v2468_v2 }
 0x343   : > { %v3861_v46 = vpop.eup %3860  ;;  %v2542_v1 = vmul.f32 1.442695, %v2469_v36  ;;  %v7584_v36 = vld [vmem:[#allocation29_spill] sm:$0xff] }
 0x344   : > { %v2245_v21 = vmul.f32 %v3861_v46, %v6083_v18  ;;  %v1657_v16 = vpop.xlane.xlu1 %1656  ;;  %v6523_v54 = vpop.eup %3862  ;;  %v7581_v46 = vld [vmem:[#allocation170_spill] sm:$0xff] }
 0x345   : > { %v2144_v39 = vpop.xlane.xlu2 %2143  ;;  %3868 = vrcp.f32 %v1657_v16  ;;  %v6525_v32 = vpop.eup %3864  ;;  %v2470_v31 = vsub.f32 %v7581_v46, %v7580_v12  ;;  %v7585_v16 = vld [vmem:[#allocation189_spill] sm:$0xff] }
 0x346   : > { %v2146_v45 = vpop.xlane.xlu0 %2145  ;;  %v6521_v42 = vsel %vm4302_vm10, %v2245_v21, %v1802_v11  ;;  %3870 = vrcp.f32 %v2144_v39  ;;  %7579 = vst [vmem:[#allocation48_spill] sm:$0xff] %v6525_v32  ;;  %v6527_v18 = vpop.eup %3866  ;;  %v7583_v11 = vld [vmem:[#allocation174_spill] sm:$0xff]  ;;  %v2472_v39 = vsub.f32 %v7585_v16, %v7584_v36  ;;  %v7590_v16 = vld [vmem:[#allocation140_spill] sm:$0xff] }
 0x347   : > { %7578 = vst [vmem:[#allocation193_spill] sm:$0xff] %v6521_v42  ;;  %3872 = vpow2.f32 %v2538_v37  ;;  %v2471_v2 = vsub.f32 %v7583_v11, %v7582_v61  ;;  %v2544_v42 = vmul.f32 1.442695, %v2470_v31  ;;  %v7587_v61 = vld [vmem:[#allocation160_spill] sm:$0xff] }
 0x348   : > { %3874 = vpow2.f32 %v2540_v8  ;;  %v2548_v36 = vmul.f32 1.442695, %v2472_v39  ;;  %v2474_v39 = vsub.f32 %v7590_v16, %v6490_v10 }
 0x349   : > { %2620 = vadd.xlane.f32.xlu1 %v6523_v54  ;;  %2622 = vadd.xlane.f32.xlu2 %v6525_v32  ;;  %3876 = vpow2.f32 %v2542_v1  ;;  %v2546_v32 = vmul.f32 1.442695, %v2471_v2 }
 0x34a   : > { %2624 = vadd.xlane.f32.xlu0 %v6527_v18  ;;  %3878 = vrcp.f32 %v2146_v45 }
 0x34b   : > { %v3869_v21 = vpop.eup %3868 }
 0x34c   : > { %v3871_v47 = vpop.eup %3870  ;;  %v1759_v37 = vmul.f32 %v3869_v21, %v6104_v55  ;;  %v2148_v12 = vpop.xlane.xlu1 %2147 }
 0x34d   : > { %v1659_v46 = vpop.xlane.xlu2 %1658  ;;  %v2246_v14 = vmul.f32 %v3871_v47, %v7586_v40  ;;  %3880 = vrcp.f32 %v2148_v12  ;;  %v6543_v1 = vpop.eup %3872  ;;  %v7589_v40 = vld [vmem:[#allocation63_spill] sm:$0xff]  ;;  %v7591_v47 = vld [vmem:[#allocation161_spill] sm:$0xff] }
 0x34e   : > { %v1661_v8 = vpop.xlane.xlu0 %1660  ;;  %v1803_v11 = vsel %vm4314_vm12, %v1759_v37, %v7587_v61  ;;  %3882 = vrcp.f32 %v1659_v46  ;;  %v6549_v45 = vpop.eup %3874  ;;  %v2473_v2 = vsub.f32 %v7589_v40, %v6120_v17  ;;  %v2475_v37 = vsub.f32 %v7591_v47, %v6451_v15  ;;  %v7592_v15 = vld [vmem:[#allocation166_spill] sm:$0xff] }
 0x34f   : > { %v6547_v55 = vsel %vm4302_vm10, %v2246_v14, %v1803_v11  ;;  %3884 = vrcp.f32 %v1661_v8  ;;  %v6551_v31 = vpop.eup %3876  ;;  %v2552_v40 = vmul.f32 1.442695, %v2474_v39 }
 0x350   : > { %7588 = vst [vmem:[#allocation86_spill] sm:$0xff] %v6547_v55  ;;  %3886 = vpow2.f32 %v2544_v42  ;;  %v3879_v21 = vpop.eup %3878  ;;  %v2550_v8 = vmul.f32 1.442695, %v2473_v2  ;;  %v2554_v55 = vmul.f32 1.442695, %v2475_v37 }
 0x351   : > { %2626 = vadd.xlane.f32.xlu1 %v6543_v1  ;;  %2628 = vadd.xlane.f32.xlu2 %v6549_v45  ;;  %3888 = vpow2.f32 %v2546_v32  ;;  %v2247_v10 = vmul.f32 %v3879_v21, %v6108_v57  ;;  %v7594_v21 = vld [vmem:[#allocation129_spill] sm:$0xff] }
 0x352   : > { %2630 = vadd.xlane.f32.xlu0 %v6551_v31  ;;  %3890 = vpow2.f32 %v2548_v36 }
 0x353   : > { %v3881_v14 = vpop.eup %3880 }
 0x354   : > { %v3883_v42 = vpop.eup %3882  ;;  %v2154_v12 = vpop.xlane.xlu1 %2153  ;;  %v2248_v61 = vmul.f32 %v3881_v14, %v6132_v28  ;;  %v7593_v28 = vld [vmem:[#allocation172_spill] sm:$0xff]  ;;  %v2476_v14 = vsub.f32 %v7594_v21, %v6487_v38 }
 0x355   : > { %v2150_v46 = vpop.xlane.xlu2 %2149  ;;  %v3885_v17 = vpop.eup %3884  ;;  %v1760_v11 = vmul.f32 %v3883_v42, %v6126_v49  ;;  %3892 = vrcp.f32 %v2154_v12  ;;  %v7595_v38 = vld [vmem:[#allocation180_spill] sm:$0xff] }
 0x356   : > { %v1667_v32 = vpop.xlane.xlu0 %1666  ;;  %v1761_v16 = vmul.f32 %v3885_v17, %v6134_v9  ;;  %v6566_v36 = vpop.eup %3886 }
 0x357   : > { %v1804_v47 = vsel %vm4314_vm12, %v1760_v11, %v7592_v15  ;;  %3894 = vrcp.f32 %v1667_v32  ;;  %v6571_v2 = vpop.eup %3888  ;;  %v2556_v32 = vmul.f32 1.442695, %v2476_v14  ;;  %v7598_v14 = vld [vmem:[#allocation181_spill] sm:$0xff] }
 0x358   : > { %v1805_v49 = vsel %vm4314_vm12, %v1761_v16, %v7593_v28  ;;  %v6578_v39 = vsel %vm4302_vm10, %v2247_v10, %v1804_v47  ;;  %v6580_v57 = vpop.eup %3890  ;;  %3896 = vpow2.f32 %v2550_v8 }
 0x359   : > { %2632 = vadd.xlane.f32.xlu1 %v6566_v36  ;;  %2634 = vadd.xlane.f32.xlu2 %v6571_v2  ;;  %v6586_v9 = vsel %vm4302_vm10, %v2248_v61, %v1805_v49  ;;  %3898 = vpow2.f32 %v2552_v40 }
 0x35a   : > { %2636 = vadd.xlane.f32.xlu0 %v6580_v57  ;;  %3900 = vpow2.f32 %v2554_v55 }
 0x35b   : > { %v3893_v37 = vpop.eup %3892  ;;  %3902 = vrcp.f32 %v2150_v46 }
 0x35c   : > { %v1663_v42 = vpop.xlane.xlu1 %1662  ;;  %v2251_v8 = vmul.f32 %v3893_v37, %v6144_v41 }
 0x35d   : > { %v2156_v12 = vpop.xlane.xlu2 %2155  ;;  %v3895_v17 = vpop.eup %3894  ;;  %3904 = vrcp.f32 %v1663_v42 }
 0x35e   : > { %v2152_v11 = vpop.xlane.xlu0 %2151  ;;  %v1764_v61 = vmul.f32 %v3895_v17, %v6148_v58  ;;  %v6593_v10 = vpop.eup %3896  ;;  %3906 = vpow2.f32 %v2556_v32 }
 0x35f   : > { %v6595_v16 = vpop.eup %3898  ;;  %3908 = vrcp.f32 %v2156_v12 }
 0x360   : > { %v1808_v40 = vsel %vm4314_vm12, %v1764_v61, %v7595_v38  ;;  %v6600_v55 = vpop.eup %3900  ;;  %3910 = vrcp.f32 %v2152_v11  ;;  %v7600_v11 = vld [vmem:[#allocation97_spill] sm:$0xff]  ;;  %v7601_v61 = vld [vmem:[#allocation100_spill] sm:$0xff] }
 0x361   : > { %7596 = vst [vmem:[#allocation66_spill] sm:$0xff] %v6600_v55  ;;  %2638 = vadd.xlane.f32.xlu1 %v6593_v10  ;;  %2640 = vadd.xlane.f32.xlu2 %v6595_v16  ;;  %v6606_v41 = vsel %vm4302_vm10, %v2251_v8, %v1808_v40  ;;  %v3903_v46 = vpop.eup %3902  ;;  %v7602_v40 = vld [vmem:[#allocation104_spill] sm:$0xff] }
 0x362   : > { %7597 = vst [vmem:[#allocation78_spill] sm:$0xff] %v6606_v41  ;;  %2642 = vadd.xlane.f32.xlu0 %v6600_v55  ;;  %v2249_v49 = vmul.f32 %v3903_v46, %v6146_v4 }
 0x363   : > { %v3905_v58 = vpop.eup %3904 }
 0x364   : > { %v1762_v15 = vmul.f32 %v3905_v58, %v6168_v27  ;;  %v1669_v47 = vpop.xlane.xlu1 %1668  ;;  %v6619_v12 = vpop.eup %3906 }
 0x365   : > { %v1665_v28 = vpop.xlane.xlu2 %1664  ;;  %3912 = vrcp.f32 %v1669_v47  ;;  %7599 = vst [vmem:[#allocation194_spill] sm:$0xff] %v6619_v12  ;;  %v3909_v8 = vpop.eup %3908  ;;  %v7603_v47 = vld [vmem:[#allocation154_spill] sm:$0xff] }
 0x366   : > { %v2427_v21 = vpop.xlane.xlu0 %2426  ;;  %v1806_v37 = vsel %vm4314_vm12, %v1762_v15, %v7598_v14  ;;  %3914 = vrcp.f32 %v1665_v28  ;;  %v3911_v4 = vpop.eup %3910  ;;  %v2252_v15 = vmul.f32 %v3909_v8, %v6173_v23  ;;  %v7605_v14 = vld [vmem:[#allocation146_spill] sm:$0xff] }
 0x367   : > { %v2477_v42 = vsub.f32 %v6201_v43, %v2427_v21  ;;  %v6617_v17 = vsel %vm4302_vm10, %v2249_v49, %v1806_v37  ;;  %3916 = vrcp.f32 %v7600_v11  ;;  %v7604_v49 = vld [vmem:[#allocation33_spill] sm:$0xff]  ;;  %v7610_v23 = vld [vmem:[#allocation54_spill] sm:$0xff] }
 0x368   : > { %v7607_v11 = vld [vmem:[#allocation141_spill] sm:$0xff] }
 0x369   : > { %v2558_v27 = vmul.f32 1.442695, %v2477_v42  ;;  %2644 = vadd.xlane.f32.xlu1 %v6619_v12  ;;  %v7608_v12 = vld [vmem:[#allocation187_spill] sm:$0xff] }
 0x36b   : > { %3918 = vpow2.f32 %v2558_v27  ;;  %v3913_v32 = vpop.eup %3912  ;;  %v7606_v27 = vld [vmem:[#allocation105_spill] sm:$0xff] }
 0x36c   : > { %3920 = vrcp.f32 %v7601_v61  ;;  %v3915_v38 = vpop.eup %3914  ;;  %v1765_v43 = vmul.f32 %v3913_v32, %v6189_v62  ;;  %v2429_v46 = vpop.xlane.xlu1 %2428  ;;  %v2250_v61 = vmul.f32 %v3911_v4, %v7607_v11  ;;  %v7609_v62 = vld [vmem:[#allocation159_spill] sm:$0xff]  ;;  %v7613_v4 = vld [vmem:[#allocation114_spill] sm:$0xff] }
 0x36d   : > { %3922 = vrcp.f32 %v7602_v40  ;;  %v2431_v58 = vpop.xlane.xlu2 %2430  ;;  %v1763_v28 = vmul.f32 %v3915_v38, %v7603_v47  ;;  %v2478_v21 = vsub.f32 %v7604_v49, %v2429_v46  ;;  %v6636_v41 = vpop.eup %3916 }
 0x36e   : > { %v2479_v37 = vsub.f32 %v7605_v14, %v2431_v58  ;;  %v2433_v42 = vpop.xlane.xlu0 %2432  ;;  %3924 = vrcp.f32 %v7606_v27  ;;  %v1809_v40 = vsel %vm4314_vm12, %v1765_v43, %v7608_v12  ;;  %v7615_v14 = vld [vmem:[#allocation115_spill] sm:$0xff] }
 0x36f   : > { %v2480_v32 = vsub.f32 %v7609_v62, %v2433_v42  ;;  %v1807_v8 = vsel %vm4314_vm12, %v1763_v28, %v7610_v23  ;;  %v2560_v38 = vmul.f32 1.442695, %v2478_v21  ;;  %v6643_v58 = vsel %vm4302_vm10, %v2252_v15, %v1809_v40  ;;  %v7616_v42 = vld [vmem:[#allocation121_spill] sm:$0xff]  ;;  %v7617_v62 = vld [vmem:[#allocation126_spill] sm:$0xff] }
 0x370   : > { %v2562_v46 = vmul.f32 1.442695, %v2479_v37  ;;  %7611 = vst [vmem:[#allocation88_spill] sm:$0xff] %v6643_v58  ;;  %3926 = vrcp.f32 %v7613_v4  ;;  %v6650_v12 = vsel %vm4302_vm10, %v2250_v61, %v1807_v8  ;;  %v7619_v8 = vld [vmem:[#allocation131_spill] sm:$0xff] }
 0x371   : > { %v6645_v47 = vpop.eup %3918  ;;  %v2564_v49 = vmul.f32 1.442695, %v2480_v32  ;;  %7614 = vst [vmem:[#allocation32_spill] sm:$0xff] %v6650_v12  ;;  %3928 = vpow2.f32 %v2560_v38  ;;  %v7637_v58 = vld [vmem:[#allocation59_spill] sm:$0xff]  ;;  %v7639_v12 = vld [vmem:[#allocation6_spill] sm:$0xff] }
 0x372   : > { %7612 = vst [vmem:[#allocation102_spill] sm:$0xff] %v6645_v47  ;;  %v3921_v43 = vpop.eup %3920  ;;  %2646 = vadd.xlane.f32.xlu2 %v6645_v47  ;;  %3930 = vpow2.f32 %v2562_v46 }
 0x373   : > { %v3923_v28 = vpop.eup %3922  ;;  %3932 = vpow2.f32 %v2564_v49  ;;  %v7621_v49 = vld [vmem:[#allocation132_spill] sm:$0xff] }
 0x374   : > { %v3925_v21 = vpop.eup %3924  ;;  %3934 = vrcp.f32 %v7615_v14  ;;  %v2435_v15 = vpop.xlane.xlu1 %2434 }
 0x375   : > { %v2437_v37 = vpop.xlane.xlu2 %2436  ;;  %3936 = vrcp.f32 %v7616_v42  ;;  %v2481_v27 = vsub.f32 %v6260_v6, %v2435_v15 }
 0x376   : > { %v2482_v11 = vsub.f32 %v6265_v48, %v2437_v37  ;;  %v2439_v61 = vpop.xlane.xlu0 %2438  ;;  %v3927_v40 = vpop.eup %3926  ;;  %3938 = vrcp.f32 %v7617_v62  ;;  %v7623_v37 = vld [vmem:[#allocation147_spill] sm:$0xff] }
 0x377   : > { %v2483_v32 = vsub.f32 %v6277_v53, %v2439_v61  ;;  %v6659_v23 = vpop.eup %3928  ;;  %3940 = vrcp.f32 %v7619_v8  ;;  %v2566_v38 = vmul.f32 1.442695, %v2481_v27 }
 0x378   : > { %7618 = vst [vmem:[#allocation4_spill] sm:$0xff] %v6659_v23  ;;  %v2568_v46 = vmul.f32 1.442695, %v2482_v11  ;;  %v6662_v4 = vpop.eup %3930  ;;  %3942 = vrcp.f32 %v7621_v49  ;;  %2648 = vadd.xlane.f32.xlu0 %v6659_v23 }
 0x379   : > { %7620 = vst [vmem:[#allocation111_spill] sm:$0xff] %v6662_v4  ;;  %v2570_v14 = vmul.f32 1.442695, %v2483_v32  ;;  %v6666_v6 = vpop.eup %3932  ;;  %3944 = vpow2.f32 %v2566_v38  ;;  %2650 = vadd.xlane.f32.xlu1 %v6662_v4  ;;  %v7624_v32 = vld [vmem:[#allocation39_spill] sm:$0xff] }
 0x37a   : > { %7622 = vst [vmem:[#allocation37_spill] sm:$0xff] %v6666_v6  ;;  %v3935_v48 = vpop.eup %3934  ;;  %3946 = vpow2.f32 %v2568_v46  ;;  %2652 = vadd.xlane.f32.xlu2 %v6666_v6  ;;  %v1730_v8 = vmul.f32 %v3921_v43, %v7624_v32  ;;  %v7626_v46 = vld [vmem:[#allocation44_spill] sm:$0xff] }
 0x37b   : > { %v6670_v53 = vpop.eup %3936  ;;  %3948 = vpow2.f32 %v2570_v14  ;;  %v1731_v49 = vmul.f32 %v3925_v21, %v7626_v46  ;;  %v7628_v14 = vld [vmem:[#allocation49_spill] sm:$0xff] }
 0x37c   : > { %v3939_v15 = vpop.eup %3938  ;;  %3950 = vrcp.f32 %v7623_v37  ;;  %v2573_v42 = vpop.xlane.xlu1 %2572  ;;  %v1732_v4 = vmul.f32 %v3927_v40, %v7628_v14  ;;  %v7629_v37 = vld [vmem:[#allocation142_spill] sm:$0xff]  ;;  %v7633_v40 = vld [vmem:[#allocation43_spill] sm:$0xff]  ;;  %v7634_v14 = vld [vmem:[#allocation156_spill] sm:$0xff] }
 0x37d   : > { %v2575_v27 = vpop.xlane.xlu2 %2574  ;;  %v3941_v11 = vpop.eup %3940  ;;  %3952 = vrcp.f32 %v2573_v42  ;;  %v7630_v42 = vld [vmem:[#allocation152_spill] sm:$0xff]  ;;  %v2218_v46 = vmul.f32 %v3923_v28, %v7633_v40  ;;  %v1733_v55 = vmul.f32 %v3939_v15, %v7637_v58 }
 0x37e   : > { %v2577_v61 = vpop.xlane.xlu0 %2576  ;;  %v3943_v62 = vpop.eup %3942  ;;  %3954 = vrcp.f32 %v2575_v27  ;;  %v7631_v27 = vld [vmem:[#allocation35_spill] sm:$0xff]  ;;  %v1776_v28 = vsel %vm4314_vm12, %v1732_v4, %v7639_v12 }
 0x37f   : > { %v6674_v38 = vpop.eup %3944  ;;  %3956 = vrcp.f32 %v2577_v61  ;;  %v2217_v21 = vmul.f32 %v6636_v41, %v7631_v27  ;;  %v7632_v61 = vld [vmem:[#allocation3_spill] sm:$0xff]  ;;  %v7638_v41 = vld [vmem:[#allocation165_spill] sm:$0xff] }
 0x380   : > { %7625 = vst [vmem:[#allocation7_spill] sm:$0xff] %v6674_v38  ;;  %v6677_v6 = vpop.eup %3946  ;;  %3958 = vrcp.f32 %v7629_v37  ;;  %2654 = vadd.xlane.f32.xlu0 %v6674_v38  ;;  %v1774_v32 = vsel %vm4314_vm12, %v1730_v8, %v7632_v61  ;;  %v7635_v38 = vld [vmem:[#allocation5_spill] sm:$0xff]  ;;  %v7640_v8 = vld [vmem:[#allocation175_spill] sm:$0xff] }
 0x381   : > { %7627 = vst [vmem:[#allocation42_spill] sm:$0xff] %v6677_v6  ;;  %v6682_v23 = vpop.eup %3948  ;;  %3960 = vrcp.f32 %v7630_v42  ;;  %2656 = vadd.xlane.f32.xlu1 %v6677_v6  ;;  %v1775_v42 = vsel %vm4314_vm12, %v1731_v49, %v7635_v38  ;;  %v7636_v6 = vld [vmem:[#allocation50_spill] sm:$0xff]  ;;  %v2261_v61 = vsel %vm4302_vm10, %v2217_v21, %v1774_v32  ;;  %v7643_v21 = vld [vmem:[#allocation8_spill] sm:$0xff] }
 0x382   : > { %v3951_v43 = vpop.eup %3950  ;;  %3962 = vrcp.f32 %v7634_v14  ;;  %2658 = vadd.xlane.f32.xlu2 %v6682_v23  ;;  %v2219_v47 = vmul.f32 %v3935_v48, %v7636_v6  ;;  %v7641_v48 = vld [vmem:[#allocation64_spill] sm:$0xff] }
 0x383   : > { %v3953_v37 = vpop.eup %3952  ;;  %3964 = vrcp.f32 %v7638_v41  ;;  %v1734_v15 = vmul.f32 %v3943_v62, %v7641_v48 }
 0x384   : > { %v3955_v27 = vpop.eup %3954  ;;  %3966 = vrcp.f32 %v7640_v8  ;;  %v2704_v38 = vmul.f32 %v3953_v37, %v6294_v56  ;;  %v2579_v49 = vpop.xlane.xlu1 %2578  ;;  %v2262_v56 = vsel %vm4302_vm10, %v2218_v46, %v1775_v42  ;;  %v2263_v62 = vsel %vm4302_vm10, %v2219_v47, %v1776_v28  ;;  %v7645_v42 = vld [vmem:[#allocation74_spill] sm:$0xff] }
 0x385   : > { %v2581_v6 = vpop.xlane.xlu2 %2580  ;;  %v3957_v58 = vpop.eup %3956  ;;  %v2705_v12 = vmul.f32 %v3955_v27, %v6300_v19  ;;  %3968 = vrcp.f32 %v2579_v49  ;;  %v1777_v19 = vsel %vm4314_vm12, %v1733_v55, %v7643_v21  ;;  %v7646_v49 = vld [vmem:[#allocation164_spill] sm:$0xff] }
 0x386   : > { %v2583_v4 = vpop.xlane.xlu0 %2582  ;;  %v3959_v40 = vpop.eup %3958  ;;  %v2748_v41 = vsel %vm4308_vm11, %v2704_v38, %v2261_v61  ;;  %v2706_v37 = vmul.f32 %v3957_v58, %v6302_v24  ;;  %3970 = vrcp.f32 %v2581_v6  ;;  %v7644_v38 = vld [vmem:[#allocation62_spill] sm:$0xff]  ;;  %v1735_v24 = vmul.f32 %v3951_v43, %v7645_v42  ;;  %v7647_v6 = vld [vmem:[#allocation53_spill] sm:$0xff]  ;;  %v7648_v58 = vld [vmem:[#allocation11_spill] sm:$0xff] }
 0x387   : > { %v3961_v8 = vpop.eup %3960  ;;  %2792 = vst [vmem:[%s6708_s16] sm:$0xff] %v2748_v41  ;;  %v2749_v32 = vsel %vm4308_vm11, %v2705_v12, %v2262_v56  ;;  %3972 = vrcp.f32 %v2583_v4  ;;  %v2221_v46 = vmul.f32 %v3941_v11, %v7644_v38  ;;  %v2220_v55 = vmul.f32 %v6670_v53, %v7647_v6  ;;  %v7649_v61 = vld [vmem:[#allocation171_spill] sm:$0xff]  ;;  %v7650_v12 = vld [vmem:[#allocation185_spill] sm:$0xff]  ;;  %v7651_v4 = vld [vmem:[#allocation192_spill] sm:$0xff] }
 0x388   : > { %v3963_v27 = vpop.eup %3962  ;;  %3974 = vrcp.f32 %v7646_v49  ;;  %2793 = vst [vmem:[%s6708_s16 + $0x8] sm:$0xff] %v2749_v32  ;;  %v2750_v47 = vsel %vm4308_vm11, %v2706_v37, %v2263_v62  ;;  %v1778_v48 = vsel %vm4314_vm12, %v1734_v15, %v7648_v58  ;;  %v7652_v37 = vld [vmem:[#allocation13_spill] sm:$0xff]  ;;  %v7653_v62 = vld [vmem:[#allocation72_spill] sm:$0xff]  ;;  %v7654_v49 = vld [vmem:[#allocation71_spill] sm:$0xff] }
 0x389   : > { %v3965_v28 = vpop.eup %3964  ;;  %3976 = vrcp.f32 %v7649_v61  ;;  %2794 = vst [vmem:[%s6708_s16 + $0x10] sm:$0xff] %v2750_v47  ;;  %v2264_v41 = vsel %vm4302_vm10, %v2220_v55, %v1777_v19  ;;  %v1779_v53 = vsel %vm4314_vm12, %v1735_v24, %v7652_v37  ;;  %v2265_v21 = vsel %vm4302_vm10, %v2221_v46, %v1778_v48  ;;  %v7655_v6 = vld [vmem:[#allocation85_spill] sm:$0xff]  ;;  %v7656_v55 = vld [vmem:[#allocation168_spill] sm:$0xff]  ;;  %v7659_v37 = vld [vmem:[#allocation107_spill] sm:$0xff] }
 0x38a   : > { %v3967_v11 = vpop.eup %3966  ;;  %3978 = vrcp.f32 %v7650_v12  ;;  %v2222_v47 = vmul.f32 %v3959_v40, %v7654_v49  ;;  %v1736_v19 = vmul.f32 %v3963_v27, %v7655_v6  ;;  %v7657_v12 = vld [vmem:[#allocation95_spill] sm:$0xff]  ;;  %v7662_v49 = vld [vmem:[#allocation60_spill] sm:$0xff] }
 0x38b   : > { %v3969_v43 = vpop.eup %3968  ;;  %3980 = vrcp.f32 %v7651_v4  ;;  %v1737_v4 = vmul.f32 %v3965_v28, %v7657_v12  ;;  %v7664_v6 = vld [vmem:[#allocation16_spill] sm:$0xff]  ;;  %v7666_v12 = vld [vmem:[#allocation19_spill] sm:$0xff] }
 0x38c   : > { %v3971_v56 = vpop.eup %3970  ;;  %3982 = vrcp.f32 %v7653_v62  ;;  %v2707_v15 = vmul.f32 %v3969_v43, %v6318_v59  ;;  %v2585_v32 = vpop.xlane.xlu1 %2584  ;;  %v7658_v43 = vld [vmem:[#allocation178_spill] sm:$0xff]  ;;  %v2266_v27 = vsel %vm4302_vm10, %v2222_v47, %v1779_v53  ;;  %v1738_v62 = vmul.f32 %v3967_v11, %v7659_v37  ;;  %v7663_v53 = vld [vmem:[#allocation81_spill] sm:$0xff] }
 0x38d   : > { %v2587_v38 = vpop.xlane.xlu2 %2586  ;;  %v3973_v42 = vpop.eup %3972  ;;  %v2708_v58 = vmul.f32 %v3971_v56, %v7656_v55  ;;  %3984 = vrcp.f32 %v2585_v32  ;;  %v2223_v47 = vmul.f32 %v3961_v8, %v7663_v53  ;;  %v1781_v11 = vsel %vm4314_vm12, %v1737_v4, %v7664_v6  ;;  %v7665_v55 = vld [vmem:[#allocation179_spill] sm:$0xff]  ;;  %v7670_v53 = vld [vmem:[#allocation130_spill] sm:$0xff]  ;;  %v7671_v6 = vld [vmem:[#allocation144_spill] sm:$0xff] }
 0x38e   : > { %v2589_v24 = vpop.xlane.xlu0 %2588  ;;  %v3975_v61 = vpop.eup %3974  ;;  %v2751_v59 = vsel %vm4308_vm11, %v2707_v15, %v2264_v41  ;;  %v2709_v46 = vmul.f32 %v3973_v42, %v7658_v43  ;;  %3986 = vrcp.f32 %v2587_v38  ;;  %v7660_v15 = vld [vmem:[#allocation14_spill] sm:$0xff]  ;;  %v7661_v38 = vld [vmem:[#allocation93_spill] sm:$0xff]  ;;  %v7668_v4 = vld [vmem:[#allocation103_spill] sm:$0xff] }
 0x38f   : > { %v3977_v48 = vpop.eup %3976  ;;  %2795 = vst [vmem:[%s6708_s16 + $0x18] sm:$0xff] %v2751_v59  ;;  %v2752_v40 = vsel %vm4308_vm11, %v2708_v58, %v2265_v21  ;;  %3988 = vrcp.f32 %v2589_v24  ;;  %v1780_v32 = vsel %vm4314_vm12, %v1736_v19, %v7660_v15  ;;  %v2224_v42 = vmul.f32 %v3975_v61, %v7661_v38  ;;  %v7667_v59 = vld [vmem:[#allocation79_spill] sm:$0xff]  ;;  %v7669_v15 = vld [vmem:[#allocation117_spill] sm:$0xff] }
 0x390   : > { %v3979_v56 = vpop.eup %3978  ;;  %2796 = vst [vmem:[%s6708_s16 + $0x20] sm:$0xff] %v2752_v40  ;;  %v2753_v28 = vsel %vm4308_vm11, %v2709_v46, %v2266_v27  ;;  %3990 = vrcp.f32 %v7662_v49  ;;  %v1782_v19 = vsel %vm4314_vm12, %v1738_v62, %v7666_v12  ;;  %v2267_v61 = vsel %vm4302_vm10, %v2223_v47, %v1780_v32 }
 0x391   : > { %v3981_v41 = vpop.eup %3980  ;;  %2797 = vst [vmem:[%s6708_s16 + $0x28] sm:$0xff] %v2753_v28  ;;  %3992 = vrcp.f32 %v7665_v55  ;;  %v2225_v27 = vmul.f32 %v3977_v48, %v7668_v4  ;;  %v2268_v37 = vsel %vm4302_vm10, %v2224_v42, %v1781_v11  ;;  %v1739_v38 = vmul.f32 %v3979_v56, %v7669_v15  ;;  %v7672_v55 = vld [vmem:[#allocation20_spill] sm:$0xff] }
 0x392   : > { %v3983_v21 = vpop.eup %3982  ;;  %3994 = vrcp.f32 %v7667_v59  ;;  %v1740_v48 = vmul.f32 %v3981_v41, %v7670_v53  ;;  %v7674_v59 = vld [vmem:[#allocation113_spill] sm:$0xff] }
 0x393   : > { %v3985_v58 = vpop.eup %3984  ;;  %v1741_v56 = vmul.f32 %v3983_v21, %v7671_v6  ;;  %v1783_v41 = vsel %vm4314_vm12, %v1739_v38, %v7672_v55 }
 0x394   : > { %v3987_v24 = vpop.eup %3986  ;;  %v2710_v8 = vmul.f32 %v3985_v58, %v6341_v50  ;;  %v2591_v43 = vpop.xlane.xlu1 %2590  ;;  %v7673_v58 = vld [vmem:[#allocation128_spill] sm:$0xff] }
 0x395   : > { %v2593_v46 = vpop.xlane.xlu2 %2592  ;;  %v3989_v40 = vpop.eup %3988  ;;  %v2711_v28 = vmul.f32 %v3987_v24, %v6346_v0  ;;  %3996 = vrcp.f32 %v2591_v43  ;;  %v2269_v0 = vsel %vm4302_vm10, %v2225_v27, %v1782_v19  ;;  %v7675_v19 = vld [vmem:[#allocation23_spill] sm:$0xff]  ;;  %v7676_v43 = vld [vmem:[#allocation25_spill] sm:$0xff] }
 0x396   : > { %v2595_v62 = vpop.xlane.xlu0 %2594  ;;  %v2754_v32 = vsel %vm4308_vm11, %v2710_v8, %v2267_v61  ;;  %v2712_v50 = vmul.f32 %v3989_v40, %v6355_v44  ;;  %3998 = vrcp.f32 %v2593_v46  ;;  %v3991_v49 = vpop.eup %3990  ;;  %v1784_v8 = vsel %vm4314_vm12, %v1740_v48, %v7675_v19 }
 0x397   : > { %2798 = vst [vmem:[%s6708_s16 + $0x30] sm:$0xff] %v2754_v32  ;;  %v2755_v42 = vsel %vm4308_vm11, %v2711_v28, %v2268_v37  ;;  %4000 = vrcp.f32 %v2595_v62  ;;  %v3993_v47 = vpop.eup %3992  ;;  %v2227_v24 = vmul.f32 %v3991_v49, %v7673_v58  ;;  %v1785_v46 = vsel %vm4314_vm12, %v1741_v56, %v7676_v43  ;;  %v7677_v28 = vld [vmem:[#allocation139_spill] sm:$0xff]  ;;  %v7681_v43 = vld [vmem:[#allocation109_spill] sm:$0xff] }
 0x398   : > { %2799 = vst [vmem:[%s6708_s16 + $0x38] sm:$0xff] %v2755_v42  ;;  %v2756_v11 = vsel %vm4308_vm11, %v2712_v50, %v2269_v0  ;;  %v3995_v44 = vpop.eup %3994  ;;  %v2226_v61 = vmul.f32 %v3993_v47, %v7674_v59 }
 0x399   : > { %2800 = vst [vmem:[%s6708_s16 + $0x40] sm:$0xff] %v2756_v11  ;;  %v2228_v62 = vmul.f32 %v3995_v44, %v7677_v28  ;;  %v7678_v11 = vld [vmem:[#allocation90_spill] sm:$0xff] }
 0x39a   : > { %v2270_v15 = vsel %vm4302_vm10, %v2226_v61, %v1783_v41  ;;  %v7679_v41 = vld [vmem:[#allocation91_spill] sm:$0xff] }
 0x39b   : > { %v3997_v12 = vpop.eup %3996  ;;  %v2272_v53 = vsel %vm4302_vm10, %v2228_v62, %v1785_v46 }
 0x39c   : > { %v3999_v21 = vpop.eup %3998  ;;  %v2713_v40 = vmul.f32 %v3997_v12, %v6374_v33  ;;  %v2597_v4 = vpop.xlane.xlu1 %2596  ;;  %v2271_v33 = vsel %vm4302_vm10, %v2227_v24, %v1784_v8 }
 0x39d   : > { %v2599_v27 = vpop.xlane.xlu2 %2598  ;;  %v4001_v37 = vpop.eup %4000  ;;  %v2714_v38 = vmul.f32 %v3999_v21, %v6379_v25  ;;  %4002 = vrcp.f32 %v2597_v4  ;;  %v7682_v4 = vld [vmem:[#allocation125_spill] sm:$0xff] }
 0x39e   : > { %v2601_v32 = vpop.xlane.xlu0 %2600  ;;  %v2757_v30 = vsel %vm4308_vm11, %v2713_v40, %v2270_v15  ;;  %v2715_v50 = vmul.f32 %v4001_v37, %v6388_v26  ;;  %4004 = vrcp.f32 %v2599_v27 }
 0x39f   : > { %2801 = vst [vmem:[%s6708_s16 + $0x48] sm:$0xff] %v2757_v30  ;;  %v2758_v49 = vsel %vm4308_vm11, %v2714_v38, %v2271_v33  ;;  %4006 = vrcp.f32 %v2601_v32  ;;  %v7684_v33 = vld [vmem:[#allocation31_spill] sm:$0xff] }
 0x3a0   : > { %2802 = vst [vmem:[%s6708_s16 + $0x50] sm:$0xff] %v2758_v49  ;;  %v2759_v25 = vsel %vm4308_vm11, %v2715_v50, %v2272_v53  ;;  %v7685_v53 = vld [vmem:[#allocation150_spill] sm:$0xff] }
 0x3a1   : > { %2803 = vst [vmem:[%s6708_s16 + $0x58] sm:$0xff] %v2759_v25 }
 0x3a3   : > { %v4003_v48 = vpop.eup %4002 }
 0x3a4   : > { %v4005_v42 = vpop.eup %4004  ;;  %v2716_v26 = vmul.f32 %v4003_v48, %v6408_v34  ;;  %v2603_v0 = vpop.xlane.xlu1 %2602  ;;  %v7680_v34 = vld [vmem:[#allocation112_spill] sm:$0xff] }
 0x3a5   : > { %v2605_v47 = vpop.xlane.xlu2 %2604  ;;  %v4007_v6 = vpop.eup %4006  ;;  %v2717_v56 = vmul.f32 %v4005_v42, %v6414_v35  ;;  %4008 = vrcp.f32 %v2603_v0 }
 0x3a6   : > { %v2607_v22 = vpop.xlane.xlu0 %2606  ;;  %v2760_v44 = vsel %vm4308_vm11, %v2716_v26, %v7678_v11  ;;  %v2718_v55 = vmul.f32 %v4007_v6, %v6416_v20  ;;  %4010 = vrcp.f32 %v2605_v47 }
 0x3a7   : > { %2804 = vst [vmem:[%s6708_s16 + $0x60] sm:$0xff] %v2760_v44  ;;  %v2761_v58 = vsel %vm4308_vm11, %v2717_v56, %v7679_v41  ;;  %4012 = vrcp.f32 %v2607_v22  ;;  %v7687_v22 = vld [vmem:[#allocation163_spill] sm:$0xff] }
 0x3a8   : > { %2805 = vst [vmem:[%s6708_s16 + $0x68] sm:$0xff] %v2761_v58  ;;  %v2762_v35 = vsel %vm4308_vm11, %v2718_v55, %v7680_v34  ;;  %v7688_v55 = vld [vmem:[#allocation173_spill] sm:$0xff] }
 0x3a9   : > { %2806 = vst [vmem:[%s6708_s16 + $0x70] sm:$0xff] %v2762_v35 }
 0x3ab   : > { %v4009_v24 = vpop.eup %4008 }
 0x3ac   : > { %v4011_v12 = vpop.eup %4010  ;;  %v2719_v20 = vmul.f32 %v4009_v24, %v6432_v60  ;;  %v2609_v59 = vpop.xlane.xlu1 %2608  ;;  %v7683_v60 = vld [vmem:[#allocation136_spill] sm:$0xff] }
 0x3ad   : > { %v2611_v61 = vpop.xlane.xlu2 %2610  ;;  %v4013_v19 = vpop.eup %4012  ;;  %v2720_v8 = vmul.f32 %v4011_v12, %v6438_v7  ;;  %4014 = vrcp.f32 %v2609_v59 }
 0x3ae   : > { %v2613_v21 = vpop.xlane.xlu0 %2612  ;;  %v2763_v46 = vsel %vm4308_vm11, %v2719_v20, %v7681_v43  ;;  %v2721_v40 = vmul.f32 %v4013_v19, %v6440_v63  ;;  %4016 = vrcp.f32 %v2611_v61  ;;  %v7690_v20 = vld [vmem:[#allocation48_spill] sm:$0xff]  ;;  %v7692_v43 = vld [vmem:[#allocation182_spill] sm:$0xff] }
 0x3af   : > { %2807 = vst [vmem:[%s6708_s16 + $0x78] sm:$0xff] %v2763_v46  ;;  %v2764_v27 = vsel %vm4308_vm11, %v2720_v8, %v7682_v4  ;;  %4018 = vrcp.f32 %v2613_v21  ;;  %v7691_v19 = vld [vmem:[#allocation184_spill] sm:$0xff] }
 0x3b0   : > { %2808 = vst [vmem:[%s6708_s16 + $0x80] sm:$0xff] %v2764_v27  ;;  %v2765_v7 = vsel %vm4308_vm11, %v2721_v40, %v7683_v60 }
 0x3b1   : > { %2809 = vst [vmem:[%s6708_s16 + $0x88] sm:$0xff] %v2765_v7 }
 0x3b3   : > { %v4015_v37 = vpop.eup %4014 }
 0x3b4   : > { %v4017_v28 = vpop.eup %4016  ;;  %v2722_v63 = vmul.f32 %v4015_v37, %v6457_v3  ;;  %v2615_v62 = vpop.xlane.xlu1 %2614  ;;  %v7686_v3 = vld [vmem:[#allocation151_spill] sm:$0xff] }
 0x3b5   : > { %v2617_v15 = vpop.xlane.xlu2 %2616  ;;  %v4019_v38 = vpop.eup %4018  ;;  %v2723_v32 = vmul.f32 %v4017_v28, %v6462_v29  ;;  %4020 = vrcp.f32 %v2615_v62  ;;  %v7694_v62 = vld [vmem:[#allocation58_spill] sm:$0xff] }
 0x3b6   : > { %v2619_v30 = vpop.xlane.xlu0 %2618  ;;  %v2766_v50 = vsel %vm4308_vm11, %v2722_v63, %v7684_v33  ;;  %v2724_v49 = vmul.f32 %v4019_v38, %v6471_v52  ;;  %4022 = vrcp.f32 %v2617_v15 }
 0x3b7   : > { %2810 = vst [vmem:[%s6708_s16 + $0x90] sm:$0xff] %v2766_v50  ;;  %v2767_v25 = vsel %vm4308_vm11, %v2723_v32, %v7685_v53  ;;  %4024 = vrcp.f32 %v2619_v30  ;;  %v7695_v32 = vld [vmem:[#allocation193_spill] sm:$0xff] }
 0x3b8   : > { %2811 = vst [vmem:[%s6708_s16 + $0x98] sm:$0xff] %v2767_v25  ;;  %v2768_v29 = vsel %vm4308_vm11, %v2724_v49, %v7686_v3 }
 0x3b9   : > { %2812 = vst [vmem:[%s6708_s16 + $0xa0] sm:$0xff] %v2768_v29 }
 0x3bb   : > { %v4021_v48 = vpop.eup %4020 }
 0x3bc   : > { %v4023_v42 = vpop.eup %4022  ;;  %v2725_v52 = vmul.f32 %v4021_v48, %v6495_v13  ;;  %v2621_v26 = vpop.xlane.xlu1 %2620  ;;  %v7689_v13 = vld [vmem:[#allocation70_spill] sm:$0xff] }
 0x3bd   : > { %v2623_v0 = vpop.xlane.xlu2 %2622  ;;  %v4025_v47 = vpop.eup %4024  ;;  %v2726_v6 = vmul.f32 %v4023_v42, %v6501_v51  ;;  %4026 = vrcp.f32 %v2621_v26 }
 0x3be   : > { %v2625_v56 = vpop.xlane.xlu0 %2624  ;;  %v2769_v11 = vsel %vm4308_vm11, %v2725_v52, %v7687_v22  ;;  %v2727_v44 = vmul.f32 %v4025_v47, %v6503_v5  ;;  %4028 = vrcp.f32 %v2623_v0 }
 0x3bf   : > { %2813 = vst [vmem:[%s6708_s16 + $0xa8] sm:$0xff] %v2769_v11  ;;  %v2770_v41 = vsel %vm4308_vm11, %v2726_v6, %v7688_v55  ;;  %4030 = vrcp.f32 %v2625_v56  ;;  %v7698_v56 = vld [vmem:[#allocation66_spill] sm:$0xff] }
 0x3c0   : > { %2814 = vst [vmem:[%s6708_s16 + $0xb0] sm:$0xff] %v2770_v41  ;;  %v2771_v51 = vsel %vm4308_vm11, %v2727_v44, %v7689_v13  ;;  %v7699_v11 = vld [vmem:[#allocation78_spill] sm:$0xff]  ;;  %v7700_v44 = vld [vmem:[#allocation88_spill] sm:$0xff] }
 0x3c1   : > { %2815 = vst [vmem:[%s6708_s16 + $0xb8] sm:$0xff] %v2771_v51  ;;  %v7701_v55 = vld [vmem:[#allocation194_spill] sm:$0xff] }
 0x3c2   : > { %v7702_v51 = vld [vmem:[#allocation158_spill] sm:$0xff] }
 0x3c3   : > { %v4027_v58 = vpop.eup %4026 }
 0x3c4   : > { %v4029_v34 = vpop.eup %4028  ;;  %v2728_v5 = vmul.f32 %v4027_v58, %v6523_v54  ;;  %v2627_v35 = vpop.xlane.xlu1 %2626  ;;  %v7693_v54 = vld [vmem:[#allocation188_spill] sm:$0xff] }
 0x3c5   : > { %v2629_v24 = vpop.xlane.xlu2 %2628  ;;  %v4031_v12 = vpop.eup %4030  ;;  %v2729_v59 = vmul.f32 %v4029_v34, %v7690_v20  ;;  %4032 = vrcp.f32 %v2627_v35  ;;  %v7703_v35 = vld [vmem:[#allocation102_spill] sm:$0xff] }
 0x3c6   : > { %v2631_v61 = vpop.xlane.xlu0 %2630  ;;  %v2772_v8 = vsel %vm4308_vm11, %v2728_v5, %v7691_v19  ;;  %v2730_v21 = vmul.f32 %v4031_v12, %v6527_v18  ;;  %4034 = vrcp.f32 %v2629_v24 }
 0x3c7   : > { %2816 = vst [vmem:[%s6708_s16 + $0xc0] sm:$0xff] %v2772_v8  ;;  %v2773_v46 = vsel %vm4308_vm11, %v2729_v59, %v7692_v43  ;;  %4036 = vrcp.f32 %v2631_v61  ;;  %v7704_v59 = vld [vmem:[#allocation162_spill] sm:$0xff] }
 0x3c8   : > { %2817 = vst [vmem:[%s6708_s16 + $0xc8] sm:$0xff] %v2773_v46  ;;  %v2774_v40 = vsel %vm4308_vm11, %v2730_v21, %v7693_v54  ;;  %v7705_v21 = vld [vmem:[#allocation4_spill] sm:$0xff] }
 0x3c9   : > { %2818 = vst [vmem:[%s6708_s16 + $0xd0] sm:$0xff] %v2774_v40  ;;  %v7706_v40 = vld [vmem:[#allocation111_spill] sm:$0xff] }
 0x3cb   : > { %v4033_v4 = vpop.eup %4032 }
 0x3cc   : > { %v4035_v27 = vpop.eup %4034  ;;  %v2731_v18 = vmul.f32 %v4033_v4, %v6543_v1  ;;  %v2633_v60 = vpop.xlane.xlu1 %2632  ;;  %v7696_v1 = vld [vmem:[#allocation86_spill] sm:$0xff] }
 0x3cd   : > { %v2635_v7 = vpop.xlane.xlu2 %2634  ;;  %v4037_v37 = vpop.eup %4036  ;;  %v2732_v28 = vmul.f32 %v4035_v27, %v6549_v45  ;;  %4038 = vrcp.f32 %v2633_v60 }
 0x3ce   : > { %v2637_v63 = vpop.xlane.xlu0 %2636  ;;  %v2775_v15 = vsel %vm4308_vm11, %v2731_v18, %v7694_v62  ;;  %v2733_v38 = vmul.f32 %v4037_v37, %v6551_v31  ;;  %4040 = vrcp.f32 %v2635_v7  ;;  %v7707_v18 = vld [vmem:[#allocation37_spill] sm:$0xff]  ;;  %v7708_v7 = vld [vmem:[#allocation38_spill] sm:$0xff] }
 0x3cf   : > { %2819 = vst [vmem:[%s6708_s16 + $0xd8] sm:$0xff] %v2775_v15  ;;  %v2776_v30 = vsel %vm4308_vm11, %v2732_v28, %v7695_v32  ;;  %4042 = vrcp.f32 %v2637_v63  ;;  %v7709_v63 = vld [vmem:[#allocation177_spill] sm:$0xff]  ;;  %v7710_v15 = vld [vmem:[#allocation183_spill] sm:$0xff] }
 0x3d0   : > { %2820 = vst [vmem:[%s6708_s16 + $0xe0] sm:$0xff] %v2776_v30  ;;  %v2777_v45 = vsel %vm4308_vm11, %v2733_v38, %v7696_v1  ;;  %v7711_v1 = vld [vmem:[#allocation7_spill] sm:$0xff] }
 0x3d1   : > { %2821 = vst [vmem:[%s6708_s16 + $0xe8] sm:$0xff] %v2777_v45 }
 0x3d3   : > { %v4039_v33 = vpop.eup %4038 }
 0x3d4   : > { %v4041_v50 = vpop.eup %4040  ;;  %v2734_v31 = vmul.f32 %v4039_v33, %v6566_v36  ;;  %v2639_v49 = vpop.xlane.xlu1 %2638 }
 0x3d5   : > { %v2641_v53 = vpop.xlane.xlu2 %2640  ;;  %v4043_v25 = vpop.eup %4042  ;;  %v2735_v3 = vmul.f32 %v4041_v50, %v6571_v2  ;;  %4044 = vrcp.f32 %v2639_v49  ;;  %v7712_v50 = vld [vmem:[#allocation42_spill] sm:$0xff] }
 0x3d6   : > { %v2643_v29 = vpop.xlane.xlu0 %2642  ;;  %v2778_v48 = vsel %vm4308_vm11, %v2734_v31, %v6578_v39  ;;  %v2736_v42 = vmul.f32 %v4043_v25, %v6580_v57  ;;  %4046 = vrcp.f32 %v2641_v53  ;;  %v7713_v53 = vld [vmem:[#allocation46_spill] sm:$0xff] }
 0x3d7   : > { %2822 = vst [vmem:[%s6708_s16 + $0xf0] sm:$0xff] %v2778_v48  ;;  %v2779_v36 = vsel %vm4308_vm11, %v2735_v3, %v6586_v9  ;;  %4048 = vrcp.f32 %v2643_v29  ;;  %v7697_v9 = vld [vmem:[#allocation32_spill] sm:$0xff]  ;;  %v7714_v3 = vld [vmem:[#allocation190_spill] sm:$0xff]  ;;  %v7715_v48 = vld [vmem:[#allocation191_spill] sm:$0xff] }
 0x3d8   : > { %2823 = vst [vmem:[%s6708_s16 + $0xf8] sm:$0xff] %v2779_v36  ;;  %v2780_v2 = vsel %vm4308_vm11, %v2736_v42, %v6617_v17 }
 0x3d9   : > { %2824 = vst [vmem:[%s6708_s16 + $0x100] sm:$0xff] %v2780_v2 }
 0x3db   : > { %v4045_v52 = vpop.eup %4044 }
 0x3dc   : > { %v4047_v39 = vpop.eup %4046  ;;  %v2737_v57 = vmul.f32 %v4045_v52, %v6593_v10  ;;  %v2645_v26 = vpop.xlane.xlu1 %2644 }
 0x3dd   : > { %v4049_v0 = vpop.eup %4048  ;;  %v2738_v47 = vmul.f32 %v4047_v39, %v6595_v16  ;;  %4050 = vrcp.f32 %v2645_v26 }
 0x3de   : > { %v2781_v6 = vsel %vm4308_vm11, %v2737_v57, %v7697_v9  ;;  %v2739_v22 = vmul.f32 %v4049_v0, %v7698_v56 }
 0x3df   : > { %2825 = vst [vmem:[%s6708_s16 + $0x108] sm:$0xff] %v2781_v6  ;;  %v2782_v17 = vsel %vm4308_vm11, %v2738_v47, %v7699_v11 }
 0x3e0   : > { %2826 = vst [vmem:[%s6708_s16 + $0x110] sm:$0xff] %v2782_v17  ;;  %v2783_v10 = vsel %vm4308_vm11, %v2739_v22, %v7700_v44 }
 0x3e1   : > { %2827 = vst [vmem:[%s6708_s16 + $0x118] sm:$0xff] %v2783_v10 }
 0x3e3   : > { %v4051_v16 = vpop.eup %4050 }
 0x3e4   : > { %v2740_v41 = vmul.f32 %v4051_v16, %v7701_v55 }
 0x3e5   : > { %v2647_v13 = vpop.xlane.xlu2 %2646 }
 0x3e6   : > { %4052 = vrcp.f32 %v2647_v13  ;;  %v2784_v58 = vsel %vm4308_vm11, %v2740_v41, %v7702_v51 }
 0x3e7   : > { %2828 = vst [vmem:[%s6708_s16 + $0x120] sm:$0xff] %v2784_v58 }
 0x3eb   : > { %v2649_v5 = vpop.xlane.xlu0 %2648 }
 0x3ec   : > { %v4053_v34 = vpop.eup %4052  ;;  %v2651_v12 = vpop.xlane.xlu1 %2650  ;;  %4054 = vrcp.f32 %v2649_v5 }
 0x3ed   : > { %v2741_v24 = vmul.f32 %v4053_v34, %v7703_v35  ;;  %4056 = vrcp.f32 %v2651_v12  ;;  %v2653_v20 = vpop.xlane.xlu2 %2652 }
 0x3ee   : > { %4058 = vrcp.f32 %v2653_v20 }
 0x3ef   : > { %v2785_v61 = vsel %vm4308_vm11, %v2741_v24, %v7704_v59 }
 0x3f0   : > { %2829 = vst [vmem:[%s6708_s16 + $0x128] sm:$0xff] %v2785_v61 }
 0x3f2   : > { %v4055_v19 = vpop.eup %4054 }
 0x3f3   : > { %v4057_v8 = vpop.eup %4056  ;;  %v2742_v43 = vmul.f32 %v4055_v19, %v7705_v21  ;;  %v2655_v46 = vpop.xlane.xlu0 %2654 }
 0x3f4   : > { %v4059_v54 = vpop.eup %4058  ;;  %v2743_v4 = vmul.f32 %v4057_v8, %v7706_v40  ;;  %v2657_v27 = vpop.xlane.xlu1 %2656  ;;  %4060 = vrcp.f32 %v2655_v46 }
 0x3f5   : > { %v2744_v60 = vmul.f32 %v4059_v54, %v7707_v18  ;;  %v2786_v37 = vsel %vm4308_vm11, %v2742_v43, %v7708_v7  ;;  %4062 = vrcp.f32 %v2657_v27  ;;  %v2659_v28 = vpop.xlane.xlu2 %2658 }
 0x3f6   : > { %v2787_v62 = vsel %vm4308_vm11, %v2743_v4, %v7709_v63  ;;  %2830 = vst [vmem:[%s6708_s16 + $0x130] sm:$0xff] %v2786_v37  ;;  %4064 = vrcp.f32 %v2659_v28 }
 0x3f7   : > { %2831 = vst [vmem:[%s6708_s16 + $0x138] sm:$0xff] %v2787_v62  ;;  %v2788_v38 = vsel %vm4308_vm11, %v2744_v60, %v7710_v15 }
 0x3f8   : > { %2832 = vst [vmem:[%s6708_s16 + $0x140] sm:$0xff] %v2788_v38 }
 0x3fa   : > { %v4061_v32 = vpop.eup %4060 }
 0x3fb   : > { %v4063_v30 = vpop.eup %4062  ;;  %v2745_v45 = vmul.f32 %v4061_v32, %v7711_v1 }
 0x3fc   : > { %v4065_v33 = vpop.eup %4064  ;;  %v2746_v31 = vmul.f32 %v4063_v30, %v7712_v50 }
 0x3fd   : > { %v2747_v49 = vmul.f32 %v4065_v33, %v6682_v23  ;;  %v2789_v25 = vsel %vm4308_vm11, %v2745_v45, %v7713_v53 }
 0x3fe   : > { %v2790_v29 = vsel %vm4308_vm11, %v2746_v31, %v7714_v3  ;;  %2833 = vst [vmem:[%s6708_s16 + $0x148] sm:$0xff] %v2789_v25 }
 0x3ff   : > { %2834 = vst [vmem:[%s6708_s16 + $0x150] sm:$0xff] %v2790_v29  ;;  %v2791_v42 = vsel %vm4308_vm11, %v2747_v49, %v7715_v48 }
 0x400   : > { %2835 = vst [vmem:[%s6708_s16 + $0x158] sm:$0xff] %v2791_v42 }
 0x401 PF: > { %s13_s14 = sadd.s32 1, %s4089_s14   ;;  %s7716_s12 = smov %s4085_s13 }
 0x402   : > { %p10_p5 = scmp.ge.s32.totalorder %s13_s14, 4   ;;  %s7717_s13 = smov %s7719_s15 }
 0x404   :  { %12 = sbr.rel (!%p10_p5) target bundleno = 2 (0x2), region = 68 }

// kernel: yolact_forward.24
= control target key start
LH: loop header
LB: loop body
LE: loop exit
PB: predicated region body
PF: predicated region fallthrough
CT: control target
= control target key end

     0   :  { %s2812_s12 = smov 0   ;;  %s2814_s13 = smov 0   ;;  %s3345_s0 = inlined_call_operand.vmem [shape: bf16[1,2048,288], index: 0, kind: input, shape index: {}]   ;;  %s3346_s1 = inlined_call_operand.vmem [shape: bf16[1,288,128], index: 1, kind: input, shape index: {}]   ;;  %s3347_s2 = inlined_call_operand.vmem [shape: f32[1,1,128], index: 2, kind: input, shape index: {}]   ;;  %s3348_s3 = inlined_call_operand.vmem [shape: bf16[1,2048,128], index: 3, kind: output, shape index: {}]  }
   0x1   :  { %s2816_s14 = smov 0  }
   0x2 LB: > { %s22_s15 = sadd.s32 1, %s2786_s13  ;;  %p1923_p0 = scmp.ge.s32.totalorder %s2790_s14, 1  ;;  %s2790_s14 = sphi %s2816_s14, %s13_s14   ;;  %s2786_s13 = sphi %s2814_s13, %s3350_s13   ;;  %s2782_s12 = sphi %s2812_s12, %s3349_s12  }
   0x3   : > { %p23_p1 = scmp.ge.s32.totalorder %s22_s15, 4  ;;  %p177_p2 = scmp.lt.s32.totalorder %s2790_s14, 5 }
   0x5   : > { %s3352_s15 = smov (%p23_p1, %s22_s15), 0  ;;  %p178_p3 = pnand %p1923_p0, %p177_p2 }
   0x6   : > { %s1924_s22 = sshll.u32 (!%p178_p3), %s2782_s12, 6 }
   0x7   : > { %181 = sbr.rel (%p178_p3) target bundleno = 569 (0x239), region = 32  ;;  %p221_p4 = scmp.lt.s32.totalorder (!%p178_p3), %s1924_s22, 255 }
   0xc   : > { %v2521_v0 = vld [vmem:[%s3346_s1 + $0x38] sm:$0xff]  ;;  %v2836_v1 = vld [vmem:[%s3346_s1 + $0x88] sm:$0xff]  ;;  %v2520_v3 = vld [vmem:[%s3346_s1 + $0x30] sm:$0xff]  ;;  %s3354_s22 = smov (!%p221_p4, %s1924_s22), 255  ;;  %vm1004_vm0 = vcmask 261120  }
   0xd   : > { %v2841_v2 = vld [vmem:[%s3346_s1 + $0x78] sm:$0xff]  ;;  %1101 = vmatpush.bf16.msra.mxu0 %v2521_v0  ;;  %2723 = vmatpush.bf16.msra.mxu3 %v2521_v0  ;;  %v2851_v4 = vld [vmem:[%s3346_s1 + $0x80] sm:$0xff]  ;;  %v2528_v5 = vld [vmem:[%s3346_s1 + $0x70] sm:$0xff]  ;;  %s2741_s29 = smul.u32 12, %s3354_s22  ;;  %s1927_s10 = sshll.u32 %s3354_s22, 2 }
   0xe   : > { %1445 = vmatpush.bf16.msra.mxu2 %v2836_v1  ;;  %1270 = vmatpush.bf16.msra.mxu1 %v2841_v2  ;;  %v2519_v6 = vld [vmem:[%s3346_s1 + $0x28] sm:$0xff]  ;;  %v2518_v11 = vld [vmem:[%s3346_s1 + $0x20] sm:$0xff]  ;;  %v2517_v13 = vld [vmem:[%s3346_s1 + $0x18] sm:$0xff]  ;;  %s3012_s16 = scalar_lea.vmem %s3348_s3, %s1927_s10 }
   0xf   : > { %s2866_s7 = scalar_lea.vmem %s3345_s0, %s2741_s29  ;;  %v2527_v7 = vld [vmem:[%s3346_s1 + $0x68] sm:$0xff]  ;;  %v2526_v12 = vld [vmem:[%s3346_s1 + $0x60] sm:$0xff]  ;;  %v2525_v14 = vld [vmem:[%s3346_s1 + $0x58] sm:$0xff] }
  0x10   : > { %v1938_v8 = vld [vmem:[%s2866_s7 + $0x8] sm:$0xf]  ;;  %v2420_v9 = vld [vmem:[%s2866_s7 + $0x10] sm:$0xf0]  ;;  %v1950_v17 = vld [vmem:[%s2866_s7 + $0x20] sm:$0xf] }
  0x11   : > { %1102 = vmatpush.bf16.msra.mxu0 %v2520_v3  ;;  %2724 = vmatpush.bf16.msra.mxu3 %v2520_v3  ;;  %v1939_v10 = vor.u32 %v2420_v9, %v1938_v8  ;;  %v2516_v15 = vld [vmem:[%s3346_s1 + $0x10] sm:$0xff]  ;;  %v2423_v18 = vld [vmem:[%s2866_s7 + $0x28] sm:$0xf0]  ;;  %v2514_v22 = vld [vmem:[%s3346_s1] sm:$0xff] }
  0x12   : > { %1446 = vmatpush.bf16.msra.mxu2 %v2851_v4  ;;  %1271 = vmatpush.bf16.msra.mxu1 %v2528_v5  ;;  %v2524_v16 = vld [vmem:[%s3346_s1 + $0x50] sm:$0xff]  ;;  %v2515_v19 = vld [vmem:[%s3346_s1 + $0x8] sm:$0xff]  ;;  %v1951_v20 = vor.u32 %v2423_v18, %v1950_v17  ;;  %v1930_v23 = vld [vmem:[%s2866_s7] sm:$0xf] }
  0x13   : > { %v2523_v21 = vld [vmem:[%s3346_s1 + $0x48] sm:$0xff]  ;;  %v2218_v25 = vld [vmem:[%s2866_s7 + $0x240] sm:$0xf]  ;;  %v2418_v28 = vld [vmem:[%s2866_s7 + $0x4] sm:$0xf] }
  0x14   : > { %v2419_v24 = vld [vmem:[%s2866_s7 + $0x8] sm:$0xf0]  ;;  %v2522_v27 = vld [vmem:[%s3346_s1 + $0x40] sm:$0xff]  ;;  %v1932_v29 = vld [vmem:[%s2866_s7 + $0xc] sm:$0xf0] }
  0x15   : > { %1103 = vmatpush.bf16.msra.mxu0 %v2519_v6  ;;  %2725 = vmatpush.bf16.msra.mxu3 %v2519_v6  ;;  %v2491_v26 = vld [vmem:[%s2866_s7 + $0x248] sm:$0xf0]  ;;  %v1931_v30 = vor.u32 %v2419_v24, %v1930_v23  ;;  %v1935_v32 = vor.u32 %v2418_v28, %v1932_v29  ;;  %v1962_v33 = vld [vmem:[%s2866_s7 + $0x38] sm:$0xf]  ;;  %v2426_v34 = vld [vmem:[%s2866_s7 + $0x40] sm:$0xf0] }
  0x16   : > { %2384 = vmatmul.msk.bf16.vlgmr.msra.gmra.mxu2 %vm1004_vm0, %v1939_v10  ;;  %1272 = vmatpush.bf16.msra.mxu1 %v2527_v7  ;;  %v2219_v31 = vor.u32 %v2491_v26, %v2218_v25  ;;  %v1963_v35 = vor.u32 %v2426_v34, %v1962_v33  ;;  %v1942_v36 = vld [vmem:[%s2866_s7 + $0x18] sm:$0xf]  ;;  %v2422_v37 = vld [vmem:[%s2866_s7 + $0x20] sm:$0xf0]  ;;  %v2421_v40 = vld [vmem:[%s2866_s7 + $0x1c] sm:$0xf] }
  0x17   : > { %v2230_v38 = vld [vmem:[%s2866_s7 + $0x258] sm:$0xf]  ;;  %v2494_v39 = vld [vmem:[%s2866_s7 + $0x260] sm:$0xf0]  ;;  %v1944_v41 = vld [vmem:[%s2866_s7 + $0x24] sm:$0xf0]  ;;  %v1943_v42 = vor.u32 %v2422_v37, %v1942_v36 }
  0x18   : > { %v2231_v43 = vor.u32 %v2494_v39, %v2230_v38  ;;  %v1947_v44 = vor.u32 %v2421_v40, %v1944_v41  ;;  %v1974_v45 = vld [vmem:[%s2866_s7 + $0x50] sm:$0xf]  ;;  %v2429_v46 = vld [vmem:[%s2866_s7 + $0x58] sm:$0xf0]  ;;  %v2424_v52 = vld [vmem:[%s2866_s7 + $0x34] sm:$0xf] }
  0x19   : > { %1104 = vmatpush.bf16.msra.mxu0 %v2518_v11  ;;  %2726 = vmatpush.bf16.msra.mxu3 %v2518_v11  ;;  %v1975_v47 = vor.u32 %v2429_v46, %v1974_v45  ;;  %v1954_v48 = vld [vmem:[%s2866_s7 + $0x30] sm:$0xf]  ;;  %v2425_v49 = vld [vmem:[%s2866_s7 + $0x38] sm:$0xf0]  ;;  %v1956_v53 = vld [vmem:[%s2866_s7 + $0x3c] sm:$0xf0] }
  0x1a   : > { %1273 = vmatpush.bf16.msra.mxu1 %v2526_v12  ;;  %v2242_v50 = vld [vmem:[%s2866_s7 + $0x270] sm:$0xf]  ;;  %v2497_v51 = vld [vmem:[%s2866_s7 + $0x278] sm:$0xf0]  ;;  %v1955_v54 = vor.u32 %v2425_v49, %v1954_v48  ;;  %v1959_v56 = vor.u32 %v2424_v52, %v1956_v53  ;;  %v1986_v57 = vld [vmem:[%s2866_s7 + $0x68] sm:$0xf] }
  0x1b   : > { %v2243_v55 = vor.u32 %v2497_v51, %v2242_v50  ;;  %v2432_v58 = vld [vmem:[%s2866_s7 + $0x70] sm:$0xf0]  ;;  %v1966_v60 = vld [vmem:[%s2866_s7 + $0x48] sm:$0xf]  ;;  %v2427_v0 = vld [vmem:[%s2866_s7 + $0x4c] sm:$0xf] }
  0x1c   : > { %v1987_v59 = vor.u32 %v2432_v58, %v1986_v57  ;;  %v2428_v61 = vld [vmem:[%s2866_s7 + $0x50] sm:$0xf0]  ;;  %v2254_v62 = vld [vmem:[%s2866_s7 + $0x288] sm:$0xf]  ;;  %v2435_v6 = vld [vmem:[%s2866_s7 + $0x88] sm:$0xf0] }
  0x1d   : > { %1105 = vmatpush.bf16.msra.mxu0 %v2517_v13  ;;  %2727 = vmatpush.bf16.msra.mxu3 %v2517_v13  ;;  %v2500_v63 = vld [vmem:[%s2866_s7 + $0x290] sm:$0xf0]  ;;  %v1978_v8 = vld [vmem:[%s2866_s7 + $0x60] sm:$0xf]  ;;  %v2431_v9 = vld [vmem:[%s2866_s7 + $0x68] sm:$0xf0] }
  0x1e   : > { %1274 = vmatpush.bf16.msra.mxu1 %v2525_v14  ;;  %v2255_v3 = vor.u32 %v2500_v63, %v2254_v62  ;;  %v2266_v10 = vld [vmem:[%s2866_s7 + $0x2a0] sm:$0xf]  ;;  %v2503_v11 = vld [vmem:[%s2866_s7 + $0x2a8] sm:$0xf0]  ;;  %v1980_v13 = vld [vmem:[%s2866_s7 + $0x6c] sm:$0xf0] }
  0x1f   : > { %v2010_v17 = vld [vmem:[%s2866_s7 + $0x98] sm:$0xf]  ;;  %v2438_v18 = vld [vmem:[%s2866_s7 + $0xa0] sm:$0xf0]  ;;  %v2433_v24 = vld [vmem:[%s2866_s7 + $0x7c] sm:$0xf] }
  0x20   : > { %v2506_v23 = vld [vmem:[%s2866_s7 + $0x2c0] sm:$0xf0]  ;;  %v1992_v25 = vld [vmem:[%s2866_s7 + $0x84] sm:$0xf0]  ;;  %v2022_v29 = vld [vmem:[%s2866_s7 + $0xb0] sm:$0xf] }
  0x21   : > { %1106 = vmatpush.bf16.msra.mxu0 %v2516_v15  ;;  %2728 = vmatpush.bf16.msra.mxu3 %v2516_v15  ;;  %v2267_v15 = vor.u32 %v2503_v11, %v2266_v10  ;;  %v1995_v28 = vor.u32 %v2433_v24, %v1992_v25  ;;  %v2437_v33 = vld [vmem:[%s2866_s7 + $0x98] sm:$0xf0]  ;;  %v2290_v34 = vld [vmem:[%s2866_s7 + $0x2d0] sm:$0xf]  ;;  %v2436_v36 = vld [vmem:[%s2866_s7 + $0x94] sm:$0xf] }
  0x22   : > { %1275 = vmatpush.bf16.msra.mxu1 %v2524_v16  ;;  %v2004_v37 = vld [vmem:[%s2866_s7 + $0x9c] sm:$0xf0]  ;;  %v2034_v41 = vld [vmem:[%s2866_s7 + $0xc8] sm:$0xf]  ;;  %v2440_v45 = vld [vmem:[%s2866_s7 + $0xb0] sm:$0xf0] }
  0x23   : > { %v2007_v40 = vor.u32 %v2436_v36, %v2004_v37  ;;  %v2302_v46 = vld [vmem:[%s2866_s7 + $0x2e8] sm:$0xf]  ;;  %v2439_v48 = vld [vmem:[%s2866_s7 + $0xac] sm:$0xf]  ;;  %v2016_v49 = vld [vmem:[%s2866_s7 + $0xb4] sm:$0xf0] }
  0x24   : > { %v2019_v53 = vor.u32 %v2439_v48, %v2016_v49  ;;  %v2026_v58 = vld [vmem:[%s2866_s7 + $0xc0] sm:$0xf]  ;;  %v2442_v62 = vld [vmem:[%s2866_s7 + $0xc4] sm:$0xf]  ;;  %v2028_v63 = vld [vmem:[%s2866_s7 + $0xcc] sm:$0xf0] }
  0x25   : > { %1107 = vmatpush.bf16.msra.mxu0 %v2515_v19  ;;  %2729 = vmatpush.bf16.msra.mxu3 %v2515_v19  ;;  %v2011_v19 = vor.u32 %v2438_v18, %v2010_v17  ;;  %v2450_v10 = vld [vmem:[%s2866_s7 + $0x100] sm:$0xf0]  ;;  %v2445_v24 = vld [vmem:[%s2866_s7 + $0xdc] sm:$0xf]  ;;  %v2040_v25 = vld [vmem:[%s2866_s7 + $0xe4] sm:$0xf0] }
  0x26   : > { %2385 = vmatmul.msk.bf16.gmra.mxu2 %vm1004_vm0, %v1951_v20  ;;  %1276 = vmatpush.bf16.msra.mxu1 %v2523_v21  ;;  %v1990_v20 = vld [vmem:[%s2866_s7 + $0x78] sm:$0xf]  ;;  %v2050_v48 = vld [vmem:[%s2866_s7 + $0xf0] sm:$0xf]  ;;  %v2449_v49 = vld [vmem:[%s2866_s7 + $0xf8] sm:$0xf0] }
  0x29   : > { %1108 = vmatpush.bf16.msra.mxu0 %v2514_v22  ;;  %2730 = vmatpush.bf16.msra.mxu3 %v2514_v22  ;;  %v2278_v22 = vld [vmem:[%s2866_s7 + $0x2b8] sm:$0xf] }
  0x2a   : > { %1277 = vmatpush.bf16.msra.mxu1 %v2522_v27 }
  0x2c   : > { %1109 = vmatmul.bf16.vlgmr.msra.gmra.mxu0 %v1931_v30  ;;  %1229 = vmatmul.bf16.vlgmr.msra.gmra.mxu3 %v2219_v31  ;;  %v2441_v30 = vld [vmem:[%s2866_s7 + $0xb8] sm:$0xf0] }
  0x2d   : > { %2731 = vmatpush.bf16.msrb.mxu3 %v2841_v2  ;;  %1278 = vmatmul.bf16.vlgmr.msra.gmra.mxu1 %v1935_v32  ;;  %v1967_v2 = vor.u32 %v2428_v61, %v1966_v60  ;;  %v2023_v31 = vor.u32 %v2441_v30, %v2022_v29  ;;  %v2002_v32 = vld [vmem:[%s2866_s7 + $0x90] sm:$0xf]  ;;  %v2490_v60 = vld [vmem:[%s2866_s7 + $0x244] sm:$0xf] }
  0x2e   : > { %v2003_v38 = vor.u32 %v2437_v33, %v2002_v32  ;;  %v2220_v61 = vld [vmem:[%s2866_s7 + $0x24c] sm:$0xf0]  ;;  %v2043_v33 = vor.u32 %v2445_v24, %v2040_v25 }
  0x31   : > { %2732 = vmatpush.bf16.msrb.mxu3 %v2528_v5  ;;  %v1998_v5 = vld [vmem:[%s2866_s7 + $0x80] sm:$0xf] }
  0x35   : > { %2733 = vmatpush.bf16.msrb.mxu3 %v2527_v7  ;;  %v1999_v7 = vor.u32 %v2435_v6, %v1998_v5  ;;  %v2031_v5 = vor.u32 %v2442_v62, %v2028_v63 }
  0x36   : > { %2386 = vmatmul.msk.bf16.gmra.mxu2 %vm1004_vm0, %v1963_v35  ;;  %v2509_v35 = vld [vmem:[%s2866_s7 + $0x2d8] sm:$0xf0] }
  0x37   : > { %v2291_v39 = vor.u32 %v2509_v35, %v2290_v34 }
  0x39   : > { %2734 = vmatpush.bf16.msrb.mxu3 %v2526_v12  ;;  %v2430_v12 = vld [vmem:[%s2866_s7 + $0x64] sm:$0xf] }
  0x3c   : > { %1114 = vmatmul.bf16.gmra.mxu0 %v1943_v42  ;;  %1234 = vmatmul.bf16.gmra.mxu3 %v2231_v43  ;;  %v2444_v42 = vld [vmem:[%s2866_s7 + $0xd0] sm:$0xf0] }
  0x3d   : > { %2735 = vmatpush.bf16.msrb.mxu3 %v2525_v14  ;;  %1283 = vmatmul.bf16.gmra.mxu1 %v1947_v44  ;;  %v1979_v14 = vor.u32 %v2431_v9, %v1978_v8  ;;  %v2035_v43 = vor.u32 %v2444_v42, %v2034_v41  ;;  %v2014_v44 = vld [vmem:[%s2866_s7 + $0xa8] sm:$0xf]  ;;  %v2058_v9 = vld [vmem:[%s2866_s7 + $0xf8] sm:$0xf] }
  0x3e   : > { %v2015_v50 = vor.u32 %v2440_v45, %v2014_v44 }
  0x41   : > { %2736 = vmatpush.bf16.msrb.mxu3 %v2524_v16  ;;  %v1983_v16 = vor.u32 %v2430_v12, %v1980_v13 }
  0x45   : > { %2737 = vmatpush.bf16.msrb.mxu3 %v2523_v21  ;;  %v2434_v21 = vld [vmem:[%s2866_s7 + $0x80] sm:$0xf0] }
  0x46   : > { %2387 = vmatmul.msk.bf16.gmra.mxu2 %vm1004_vm0, %v1975_v47  ;;  %v1991_v26 = vor.u32 %v2434_v21, %v1990_v20  ;;  %v2512_v47 = vld [vmem:[%s2866_s7 + $0x2f0] sm:$0xf0]  ;;  %v2446_v20 = vld [vmem:[%s2866_s7 + $0xe0] sm:$0xf0]  ;;  %v2493_v21 = vld [vmem:[%s2866_s7 + $0x25c] sm:$0xf] }
  0x47   : > { %v2303_v51 = vor.u32 %v2512_v47, %v2302_v46 }
  0x49   : > { %2738 = vmatpush.bf16.msrb.mxu3 %v2522_v27  ;;  %v2279_v27 = vor.u32 %v2506_v23, %v2278_v22  ;;  %v2232_v22 = vld [vmem:[%s2866_s7 + $0x264] sm:$0xf0] }
  0x4a   : > { %v2235_v30 = vor.u32 %v2493_v21, %v2232_v22  ;;  %v2064_v21 = vld [vmem:[%s2866_s7 + $0x114] sm:$0xf0] }
  0x4c   : > { %1119 = vmatmul.bf16.gmra.mxu0 %v1955_v54  ;;  %1239 = vmatmul.bf16.gmra.mxu3 %v2243_v55  ;;  %v2046_v54 = vld [vmem:[%s2866_s7 + $0xe0] sm:$0xf]  ;;  %v2447_v55 = vld [vmem:[%s2866_s7 + $0xe8] sm:$0xf0] }
  0x4d   : > { %2739 = vmatpush.bf16.msra.mxu3 %v2836_v1  ;;  %1288 = vmatmul.bf16.gmra.mxu1 %v1959_v56  ;;  %v1968_v1 = vld [vmem:[%s2866_s7 + $0x54] sm:$0xf0]  ;;  %v2047_v57 = vor.u32 %v2447_v55, %v2046_v54  ;;  %v2052_v54 = vld [vmem:[%s2866_s7 + $0xfc] sm:$0xf0] }
  0x51   : > { %2740 = vmatpush.bf16.msra.mxu3 %v2851_v4  ;;  %v1971_v4 = vor.u32 %v2427_v0, %v1968_v1  ;;  %v2991_v0 = vld [vmem:[%s3347_s2] ss:$0 sm:$0xff] }
  0x56   : > { %2388 = vmatmul.msk.bf16.gmra.mxu2 %vm1004_vm0, %v1987_v59  ;;  %v2443_v59 = vld [vmem:[%s2866_s7 + $0xc8] sm:$0xf0] }
  0x57   : > { %v2027_v1 = vor.u32 %v2443_v59, %v2026_v58  ;;  %v2051_v58 = vor.u32 %v2449_v49, %v2050_v48  ;;  %v2502_v48 = vld [vmem:[%s2866_s7 + $0x2a4] sm:$0xf]  ;;  %v2268_v49 = vld [vmem:[%s2866_s7 + $0x2ac] sm:$0xf0] }
  0x5c   : > { %1124 = vmatmul.bf16.gmra.mxu0 %v1967_v2  ;;  %1244 = vmatmul.bf16.gmra.mxu3 %v2255_v3  ;;  %v2223_v2 = vor.u32 %v2490_v60, %v2220_v61 }
  0x5d   : > { %1293 = vmatmul.bf16.gmra.mxu1 %v1971_v4 }
  0x66   : > { %2389 = vmatmul.msk.bf16.gmra.mxu2 %vm1004_vm0, %v1999_v7 }
  0x6c   : > { %1129 = vmatmul.bf16.gmra.mxu0 %v1979_v14  ;;  %1249 = vmatmul.bf16.gmra.mxu3 %v2267_v15 }
  0x6d   : > { %1298 = vmatmul.bf16.gmra.mxu1 %v1983_v16  ;;  %v2059_v16 = vor.u32 %v2450_v10, %v2058_v9 }
  0x76   : > { %2390 = vmatmul.msk.bf16.gmra.mxu2 %vm1004_vm0, %v2011_v19  ;;  %v2038_v19 = vld [vmem:[%s2866_s7 + $0xd8] sm:$0xf] }
  0x77   : > { %v2039_v29 = vor.u32 %v2446_v20, %v2038_v19  ;;  %v2451_v20 = vld [vmem:[%s2866_s7 + $0x10c] sm:$0xf] }
  0x7c   : > { %1134 = vmatmul.bf16.gmra.mxu0 %v1991_v26  ;;  %1254 = vmatmul.bf16.gmra.mxu3 %v2279_v27 }
  0x7d   : > { %1303 = vmatmul.bf16.gmra.mxu1 %v1995_v28 }
  0x86   : > { %2391 = vmatmul.msk.bf16.gmra.mxu2 %vm1004_vm0, %v2023_v31 }
  0x8c   : > { %1139 = vmatmul.bf16.gmra.mxu0 %v2003_v38  ;;  %1259 = vmatmul.bf16.gmra.mxu3 %v2291_v39  ;;  %v2070_v38 = vld [vmem:[%s2866_s7 + $0x110] sm:$0xf]  ;;  %v2453_v39 = vld [vmem:[%s2866_s7 + $0x118] sm:$0xf0] }
  0x8d   : > { %1308 = vmatmul.bf16.gmra.mxu1 %v2007_v40  ;;  %v2071_v45 = vor.u32 %v2453_v39, %v2070_v38 }
  0x96   : > { %2392 = vmatmul.msk.bf16.gmra.mxu2 %vm1004_vm0, %v2035_v43 }
  0x99   : > { %v1448_v52 = vpop.f32.mrf.mxu2 }
  0x9c   : > { %1144 = vmatmul.bf16.gmra.mxu0 %v2015_v50  ;;  %1264 = vmatmul.bf16.gmra.mxu3 %v2303_v51  ;;  %v2496_v50 = vld [vmem:[%s2866_s7 + $0x274] sm:$0xf]  ;;  %v2244_v51 = vld [vmem:[%s2866_s7 + $0x27c] sm:$0xf0] }
  0x9d   : > { %1313 = vmatmul.bf16.gmra.mxu1 %v2019_v53  ;;  %v2448_v53 = vld [vmem:[%s2866_s7 + $0xf4] sm:$0xf]  ;;  %v2247_v59 = vor.u32 %v2496_v50, %v2244_v51  ;;  %v2454_v51 = vld [vmem:[%s2866_s7 + $0x124] sm:$0xf] }
  0x9e   : > { %v2055_v62 = vor.u32 %v2448_v53, %v2052_v54 }
  0xa1   : > { %v1450_v56 = vpop.f32.mrf.mxu2 }
  0xa6   : > { %2393 = vmatmul.msk.bf16.gmra.mxu2 %vm1004_vm0, %v2047_v57 }
  0xa9   : > { %v1453_v3 = vpop.f32.mrf.mxu2  ;;  %v1110_v4 = vpop.f32.mrf.mxu0 }
  0xaa   : > { %v1279_v6 = vpop.f32.mrf.mxu1  ;;  %v1111_v7 = vadd.f32 %v2991_v0, %v1110_v4  ;;  %v2082_v4 = vld [vmem:[%s2866_s7 + $0x128] sm:$0xf] }
  0xac   : > { %1149 = vmatmul.bf16.gmra.mxu0 %v2027_v1  ;;  %1398 = vmatmul.bf16.vlgmr.msrb.gmra.mxu3 %v2223_v2  ;;  %v1280_v11 = vadd.f32 %v1279_v6, %v1111_v7 }
  0xad   : > { %1318 = vmatmul.bf16.gmra.mxu1 %v2031_v5  ;;  %v2456_v5 = vld [vmem:[%s2866_s7 + $0x130] sm:$0xf0] }
  0xae   : > { %v1449_v17 = vadd.f32 %v1448_v52, %v1280_v11 }
  0xaf   : > { %v2994_v8 = vpop.f32.mrf.mxu3 }
  0xb0   : > { %v1608_v27 = vmax.f32 %v1449_v17, 0.0  ;;  %v2499_v17 = vld [vmem:[%s2866_s7 + $0x28c] sm:$0xf] }
  0xb1   : > { %v1455_v12 = vpop.f32.mrf.mxu2  ;;  %v1112_v13 = vpop.f32.mrf.mxu0 }
  0xb2   : > { %v1113_v14 = vadd.f32 %v2991_v0, %v1112_v13  ;;  %v1281_v15 = vpop.f32.mrf.mxu1 }
  0xb4   : > { %v1282_v18 = vadd.f32 %v1281_v15, %v1113_v14  ;;  %v2062_v15 = vld [vmem:[%s2866_s7 + $0x108] sm:$0xf] }
  0xb6   : > { %v1451_v23 = vadd.f32 %v1450_v56, %v1282_v18  ;;  %2394 = vmatmul.msk.bf16.gmra.mxu2 %vm1004_vm0, %v2059_v16  ;;  %v2452_v16 = vld [vmem:[%s2866_s7 + $0x110] sm:$0xf0]  ;;  %v2256_v18 = vld [vmem:[%s2866_s7 + $0x294] sm:$0xf0] }
  0xb7   : > { %v3007_v26 = vpop.f32.mrf.mxu3  ;;  %v2063_v25 = vor.u32 %v2452_v16, %v2062_v15  ;;  %v2086_v15 = vld [vmem:[%s2866_s7 + $0x138] sm:$0xf]  ;;  %v2458_v16 = vld [vmem:[%s2866_s7 + $0x140] sm:$0xf0] }
  0xb8   : > { %v1609_v28 = vmax.f32 %v1451_v23, 0.0 }
  0xb9   : > { %v1458_v31 = vpop.f32.mrf.mxu2  ;;  %v1115_v32 = vpop.f32.mrf.mxu0 }
  0xba   : > { %v2535_v34 = vpack.c.bf16 %v1609_v28, %v1608_v27  ;;  %v1284_v35 = vpop.f32.mrf.mxu1  ;;  %v1116_v36 = vadd.f32 %v2991_v0, %v1115_v32  ;;  %v2259_v27 = vor.u32 %v2499_v17, %v2256_v18  ;;  %v2505_v17 = vld [vmem:[%s2866_s7 + $0x2bc] sm:$0xf]  ;;  %v2280_v18 = vld [vmem:[%s2866_s7 + $0x2c4] sm:$0xf0] }
  0xbc   : > { %2536 = vst [vmem:[%s3012_s16] sm:$0xff] %v2535_v34   ;;  %1154 = vmatmul.bf16.gmra.mxu0 %v2039_v29  ;;  %1403 = vmatmul.bf16.gmra.mxu3 %v2235_v30  ;;  %v1285_v40 = vadd.f32 %v1284_v35, %v1116_v36  ;;  %v2067_v30 = vor.u32 %v2451_v20, %v2064_v21  ;;  %v2094_v35 = vld [vmem:[%s2866_s7 + $0x140] sm:$0xf]  ;;  %v2459_v36 = vld [vmem:[%s2866_s7 + $0x148] sm:$0xf0]  ;;  %v2457_v20 = vld [vmem:[%s2866_s7 + $0x13c] sm:$0xf] }
  0xbd   : > { %1323 = vmatmul.bf16.gmra.mxu1 %v2043_v33  ;;  %v2088_v21 = vld [vmem:[%s2866_s7 + $0x144] sm:$0xf0] }
  0xbe   : > { %v1454_v46 = vadd.f32 %v1453_v3, %v1285_v40 }
  0xbf   : > { %v3016_v37 = vpop.f32.mrf.mxu3 }
  0xc0   : > { %v1610_v56 = vmax.f32 %v1454_v46, 0.0  ;;  %v2074_v46 = vld [vmem:[%s2866_s7 + $0x120] sm:$0xf] }
  0xc1   : > { %v1460_v41 = vpop.f32.mrf.mxu2  ;;  %v1117_v42 = vpop.f32.mrf.mxu0 }
  0xc2   : > { %v1118_v43 = vadd.f32 %v2991_v0, %v1117_v42  ;;  %v1286_v44 = vpop.f32.mrf.mxu1 }
  0xc4   : > { %v1287_v47 = vadd.f32 %v1286_v44, %v1118_v43  ;;  %v2095_v43 = vor.u32 %v2459_v36, %v2094_v35 }
  0xc6   : > { %v1456_v52 = vadd.f32 %v1455_v12, %v1287_v47  ;;  %2395 = vmatmul.msk.bf16.gmra.mxu2 %vm1004_vm0, %v2071_v45  ;;  %v2083_v12 = vor.u32 %v2456_v5, %v2082_v4  ;;  %v2455_v47 = vld [vmem:[%s2866_s7 + $0x128] sm:$0xf0]  ;;  %v2106_v4 = vld [vmem:[%s2866_s7 + $0x158] sm:$0xf]  ;;  %v2462_v5 = vld [vmem:[%s2866_s7 + $0x160] sm:$0xf0] }
  0xc7   : > { %v3028_v55 = vpop.f32.mrf.mxu3 }
  0xc8   : > { %v1611_v57 = vmax.f32 %v1456_v52, 0.0  ;;  %v2076_v52 = vld [vmem:[%s2866_s7 + $0x12c] sm:$0xf0] }
  0xc9   : > { %v1463_v60 = vpop.f32.mrf.mxu2  ;;  %v1120_v61 = vpop.f32.mrf.mxu0 }
  0xca   : > { %v2540_v63 = vpack.c.bf16 %v1611_v57, %v1610_v56  ;;  %v1289_v1 = vpop.f32.mrf.mxu1  ;;  %v1121_v2 = vadd.f32 %v2991_v0, %v1120_v61  ;;  %v2075_v57 = vor.u32 %v2455_v47, %v2074_v46  ;;  %v2079_v61 = vor.u32 %v2454_v51, %v2076_v52  ;;  %v2292_v51 = vld [vmem:[%s2866_s7 + $0x2dc] sm:$0xf0] }
  0xcc   : > { %2692 = vst [vmem:[%s3012_s16 + $0x8] sm:$0xff] %v2540_v63   ;;  %1159 = vmatmul.bf16.gmra.mxu0 %v2051_v58  ;;  %1408 = vmatmul.bf16.gmra.mxu3 %v2247_v59  ;;  %v1290_v6 = vadd.f32 %v1289_v1, %v1121_v2  ;;  %v2271_v58 = vor.u32 %v2502_v48, %v2268_v49  ;;  %v2098_v48 = vld [vmem:[%s2866_s7 + $0x150] sm:$0xf]  ;;  %v2461_v49 = vld [vmem:[%s2866_s7 + $0x158] sm:$0xf0] }
  0xcd   : > { %1328 = vmatmul.bf16.gmra.mxu1 %v2055_v62 }
  0xce   : > { %v1459_v13 = vadd.f32 %v1458_v31, %v1290_v6 }
  0xcf   : > { %v3032_v3 = vpop.f32.mrf.mxu3 }
  0xd0   : > { %v1612_v23 = vmax.f32 %v1459_v13, 0.0 }
  0xd1   : > { %v1465_v7 = vpop.f32.mrf.mxu2  ;;  %v1122_v9 = vpop.f32.mrf.mxu0 }
  0xd2   : > { %v1123_v10 = vadd.f32 %v2991_v0, %v1122_v9  ;;  %v1291_v11 = vpop.f32.mrf.mxu1 }
  0xd4   : > { %v1292_v14 = vadd.f32 %v1291_v11, %v1123_v10 }
  0xd6   : > { %v1461_v19 = vadd.f32 %v1460_v41, %v1292_v14  ;;  %2396 = vmatmul.msk.bf16.gmra.mxu2 %vm1004_vm0, %v2083_v12  ;;  %v2107_v12 = vor.u32 %v2462_v5, %v2106_v4 }
  0xd7   : > { %v3044_v22 = vpop.f32.mrf.mxu3 }
  0xd8   : > { %v1613_v24 = vmax.f32 %v1461_v19, 0.0 }
  0xd9   : > { %v1468_v28 = vpop.f32.mrf.mxu2  ;;  %v1125_v29 = vpop.f32.mrf.mxu0 }
  0xda   : > { %v2545_v31 = vpack.c.bf16 %v1613_v24, %v1612_v23  ;;  %v1294_v32 = vpop.f32.mrf.mxu1  ;;  %v1126_v33 = vadd.f32 %v2991_v0, %v1125_v29  ;;  %v2283_v29 = vor.u32 %v2505_v17, %v2280_v18 }
  0xdc   : > { %2693 = vst [vmem:[%s3012_s16 + $0x10] sm:$0xff] %v2545_v31   ;;  %1164 = vmatmul.bf16.gmra.mxu0 %v2063_v25  ;;  %1413 = vmatmul.bf16.gmra.mxu3 %v2259_v27  ;;  %v1295_v38 = vadd.f32 %v1294_v32, %v1126_v33  ;;  %v2087_v27 = vor.u32 %v2458_v16, %v2086_v15 }
  0xdd   : > { %1333 = vmatmul.bf16.gmra.mxu1 %v2067_v30  ;;  %v2091_v31 = vor.u32 %v2457_v20, %v2088_v21  ;;  %v2464_v20 = vld [vmem:[%s2866_s7 + $0x170] sm:$0xf0]  ;;  %v2511_v21 = vld [vmem:[%s2866_s7 + $0x2ec] sm:$0xf] }
  0xde   : > { %v1464_v44 = vadd.f32 %v1463_v60, %v1295_v38  ;;  %v2118_v38 = vld [vmem:[%s2866_s7 + $0x170] sm:$0xf] }
  0xdf   : > { %v3048_v34 = vpop.f32.mrf.mxu3 }
  0xe0   : > { %v1614_v54 = vmax.f32 %v1464_v44, 0.0 }
  0xe1   : > { %v1470_v39 = vpop.f32.mrf.mxu2  ;;  %v1127_v40 = vpop.f32.mrf.mxu0 }
  0xe2   : > { %v1128_v41 = vadd.f32 %v2991_v0, %v1127_v40  ;;  %v1296_v42 = vpop.f32.mrf.mxu1 }
  0xe4   : > { %v1297_v45 = vadd.f32 %v1296_v42, %v1128_v41 }
  0xe6   : > { %v1466_v50 = vadd.f32 %v1465_v7, %v1297_v45  ;;  %2397 = vmatmul.msk.bf16.gmra.mxu2 %vm1004_vm0, %v2095_v43 }
  0xe7   : > { %v3060_v53 = vpop.f32.mrf.mxu3 }
  0xe8   : > { %v1615_v56 = vmax.f32 %v1466_v50, 0.0  ;;  %v2508_v50 = vld [vmem:[%s2866_s7 + $0x2d4] sm:$0xf] }
  0xe9   : > { %v1473_v59 = vpop.f32.mrf.mxu2  ;;  %v1130_v60 = vpop.f32.mrf.mxu0 }
  0xea   : > { %v2550_v62 = vpack.c.bf16 %v1615_v56, %v1614_v54  ;;  %v1299_v63 = vpop.f32.mrf.mxu1  ;;  %v1131_v1 = vadd.f32 %v2991_v0, %v1130_v60  ;;  %v2460_v54 = vld [vmem:[%s2866_s7 + $0x154] sm:$0xf]  ;;  %v2100_v56 = vld [vmem:[%s2866_s7 + $0x15c] sm:$0xf0] }
  0xec   : > { %2694 = vst [vmem:[%s3012_s16 + $0x18] sm:$0xff] %v2550_v62   ;;  %1169 = vmatmul.bf16.gmra.mxu0 %v2075_v57  ;;  %1418 = vmatmul.bf16.gmra.mxu3 %v2271_v58  ;;  %v1300_v6 = vadd.f32 %v1299_v63, %v1131_v1  ;;  %v2295_v62 = vor.u32 %v2508_v50, %v2292_v51 }
  0xed   : > { %1338 = vmatmul.bf16.gmra.mxu1 %v2079_v61  ;;  %v2099_v61 = vor.u32 %v2461_v49, %v2098_v48  ;;  %v2103_v1 = vor.u32 %v2460_v54, %v2100_v56  ;;  %v2122_v56 = vld [vmem:[%s2866_s7 + $0x180] sm:$0xf] }
  0xee   : > { %v1469_v13 = vadd.f32 %v1468_v28, %v1300_v6 }
  0xef   : > { %v3064_v2 = vpop.f32.mrf.mxu3 }
  0xf0   : > { %v1616_v24 = vmax.f32 %v1469_v13, 0.0 }
  0xf1   : > { %v1475_v7 = vpop.f32.mrf.mxu2  ;;  %v1132_v9 = vpop.f32.mrf.mxu0 }
  0xf2   : > { %v1133_v10 = vadd.f32 %v2991_v0, %v1132_v9  ;;  %v1301_v11 = vpop.f32.mrf.mxu1  ;;  %v2130_v9 = vld [vmem:[%s2866_s7 + $0x188] sm:$0xf] }
  0xf4   : > { %v1302_v14 = vadd.f32 %v1301_v11, %v1133_v10  ;;  %v2468_v10 = vld [vmem:[%s2866_s7 + $0x190] sm:$0xf0] }
  0xf5   : > { %v2131_v16 = vor.u32 %v2468_v10, %v2130_v9 }
  0xf6   : > { %v1471_v19 = vadd.f32 %v1470_v39, %v1302_v14  ;;  %2398 = vmatmul.msk.bf16.gmra.mxu2 %vm1004_vm0, %v2107_v12  ;;  %v2465_v39 = vld [vmem:[%s2866_s7 + $0x178] sm:$0xf0] }
  0xf7   : > { %v3076_v23 = vpop.f32.mrf.mxu3  ;;  %v2119_v45 = vor.u32 %v2465_v39, %v2118_v38 }
  0xf8   : > { %v1617_v25 = vmax.f32 %v1471_v19, 0.0  ;;  %v2110_v19 = vld [vmem:[%s2866_s7 + $0x168] sm:$0xf] }
  0xf9   : > { %v1478_v28 = vpop.f32.mrf.mxu2  ;;  %v1135_v30 = vpop.f32.mrf.mxu0 }
  0xfa   : > { %v2555_v32 = vpack.c.bf16 %v1617_v25, %v1616_v24  ;;  %v1304_v33 = vpop.f32.mrf.mxu1  ;;  %v1136_v35 = vadd.f32 %v2991_v0, %v1135_v30  ;;  %v2304_v24 = vld [vmem:[%s2866_s7 + $0x2f4] sm:$0xf0] }
  0xfc   : > { %2695 = vst [vmem:[%s3012_s16 + $0x20] sm:$0xff] %v2555_v32   ;;  %1174 = vmatmul.bf16.gmra.mxu0 %v2087_v27  ;;  %1423 = vmatmul.bf16.gmra.mxu3 %v2283_v29  ;;  %v1305_v40 = vadd.f32 %v1304_v33, %v1136_v35  ;;  %v2463_v27 = vld [vmem:[%s2866_s7 + $0x16c] sm:$0xf]  ;;  %v2112_v29 = vld [vmem:[%s2866_s7 + $0x174] sm:$0xf0]  ;;  %v2111_v33 = vor.u32 %v2464_v20, %v2110_v19 }
  0xfd   : > { %1343 = vmatmul.bf16.gmra.mxu1 %v2091_v31  ;;  %v2307_v35 = vor.u32 %v2511_v21, %v2304_v24  ;;  %v2115_v39 = vor.u32 %v2463_v27, %v2112_v29  ;;  %v2474_v19 = vld [vmem:[%s2866_s7 + $0x1c0] sm:$0xf0] }
  0xfe   : > { %v1474_v46 = vadd.f32 %v1473_v59, %v1305_v40 }
  0xff   : > { %v3080_v36 = vpop.f32.mrf.mxu3 }
 0x100   : > { %v1618_v58 = vmax.f32 %v1474_v46, 0.0 }
 0x101   : > { %v1480_v41 = vpop.f32.mrf.mxu2  ;;  %v1137_v42 = vpop.f32.mrf.mxu0 }
 0x102   : > { %v1138_v43 = vadd.f32 %v2991_v0, %v1137_v42  ;;  %v1306_v44 = vpop.f32.mrf.mxu1 }
 0x104   : > { %v1307_v47 = vadd.f32 %v1306_v44, %v1138_v43  ;;  %v2142_v44 = vld [vmem:[%s2866_s7 + $0x1a0] sm:$0xf] }
 0x106   : > { %v1476_v52 = vadd.f32 %v1475_v7, %v1307_v47  ;;  %2399 = vmatmul.msk.bf16.gmra.mxu2 %vm1004_vm0, %v2119_v45  ;;  %v2471_v45 = vld [vmem:[%s2866_s7 + $0x1a8] sm:$0xf0] }
 0x107   : > { %v3092_v57 = vpop.f32.mrf.mxu3  ;;  %v2143_v51 = vor.u32 %v2471_v45, %v2142_v44  ;;  %v2136_v44 = vld [vmem:[%s2866_s7 + $0x1a4] sm:$0xf0] }
 0x108   : > { %v1619_v60 = vmax.f32 %v1476_v52, 0.0 }
 0x109   : > { %v1483_v59 = vpop.f32.mrf.mxu2  ;;  %v1140_v63 = vpop.f32.mrf.mxu0 }
 0x10a   : > { %v2560_v4 = vpack.c.bf16 %v1619_v60, %v1618_v58  ;;  %v1309_v5 = vpop.f32.mrf.mxu1  ;;  %v1141_v6 = vadd.f32 %v2991_v0, %v1140_v63  ;;  %v2467_v58 = vld [vmem:[%s2866_s7 + $0x188] sm:$0xf0]  ;;  %v2250_v60 = vld [vmem:[%s2866_s7 + $0x278] sm:$0xf]  ;;  %v2466_v63 = vld [vmem:[%s2866_s7 + $0x184] sm:$0xf] }
 0x10b   : > { %v2123_v9 = vor.u32 %v2467_v58, %v2122_v56  ;;  %v1236_v58 = vadd.f32 %v2991_v0, %v3016_v37  ;;  %v2274_v37 = vld [vmem:[%s2866_s7 + $0x2a8] sm:$0xf] }
 0x10c   : > { %2696 = vst [vmem:[%s3012_s16 + $0x28] sm:$0xff] %v2560_v4   ;;  %1179 = vmatmul.bf16.gmra.mxu0 %v2099_v61  ;;  %1428 = vmatmul.bf16.gmra.mxu3 %v2295_v62  ;;  %v1310_v11 = vadd.f32 %v1309_v5, %v1141_v6  ;;  %v2498_v61 = vld [vmem:[%s2866_s7 + $0x280] sm:$0xf0] }
 0x10d   : > { %1348 = vmatmul.bf16.gmra.mxu1 %v2103_v1  ;;  %v2124_v1 = vld [vmem:[%s2866_s7 + $0x18c] sm:$0xf0]  ;;  %v2251_v10 = vor.u32 %v2498_v61, %v2250_v60 }
 0x10e   : > { %v1479_v17 = vadd.f32 %v1478_v28, %v1310_v11  ;;  %v2166_v61 = vld [vmem:[%s2866_s7 + $0x1d0] sm:$0xf] }
 0x10f   : > { %v3096_v7 = vpop.f32.mrf.mxu3 }
 0x110   : > { %v1620_v31 = vmax.f32 %v1479_v17, 0.0 }
 0x111   : > { %v1485_v12 = vpop.f32.mrf.mxu2  ;;  %v1142_v13 = vpop.f32.mrf.mxu0 }
 0x112   : > { %v1143_v14 = vadd.f32 %v2991_v0, %v1142_v13  ;;  %v1311_v15 = vpop.f32.mrf.mxu1  ;;  %v2127_v13 = vor.u32 %v2466_v63, %v2124_v1 }
 0x114   : > { %v1312_v18 = vadd.f32 %v1311_v15, %v1143_v14 }
 0x116   : > { %v1481_v25 = vadd.f32 %v1480_v41, %v1312_v18  ;;  %2400 = vmatmul.msk.bf16.gmra.mxu2 %vm1004_vm0, %v2131_v16  ;;  %v1231_v16 = vadd.f32 %v2991_v0, %v2994_v8  ;;  %v2154_v18 = vld [vmem:[%s2866_s7 + $0x1b8] sm:$0xf]  ;;  %v2262_v8 = vld [vmem:[%s2866_s7 + $0x290] sm:$0xf] }
 0x117   : > { %v3108_v30 = vpop.f32.mrf.mxu3 }
 0x118   : > { %v1621_v32 = vmax.f32 %v1481_v25, 0.0 }
 0x119   : > { %v1488_v28 = vpop.f32.mrf.mxu2  ;;  %v1145_v38 = vpop.f32.mrf.mxu0 }
 0x11a   : > { %v2565_v40 = vpack.c.bf16 %v1621_v32, %v1620_v31  ;;  %v1314_v42 = vpop.f32.mrf.mxu1  ;;  %v1146_v41 = vadd.f32 %v2991_v0, %v1145_v38  ;;  %v2155_v31 = vor.u32 %v2474_v19, %v2154_v18  ;;  %v2470_v38 = vld [vmem:[%s2866_s7 + $0x1a0] sm:$0xf0]  ;;  %v2472_v19 = vld [vmem:[%s2866_s7 + $0x1b4] sm:$0xf] }
 0x11c   : > { %2697 = vst [vmem:[%s3012_s16 + $0x30] sm:$0xff] %v2565_v40   ;;  %1184 = vmatmul.bf16.gmra.mxu0 %v2111_v33  ;;  %1433 = vmatmul.bf16.gmra.mxu3 %v2307_v35  ;;  %v1315_v46 = vadd.f32 %v1314_v42, %v1146_v41  ;;  %v2134_v35 = vld [vmem:[%s2866_s7 + $0x198] sm:$0xf]  ;;  %v1233_v40 = vadd.f32 %v2991_v0, %v3007_v26  ;;  %v2469_v41 = vld [vmem:[%s2866_s7 + $0x19c] sm:$0xf] }
 0x11d   : > { %1353 = vmatmul.bf16.gmra.mxu1 %v2115_v39  ;;  %v2501_v39 = vld [vmem:[%s2866_s7 + $0x298] sm:$0xf0] }
 0x11e   : > { %v1484_v52 = vadd.f32 %v1483_v59, %v1315_v46  ;;  %v2135_v46 = vor.u32 %v2470_v38, %v2134_v35 }
 0x11f   : > { %v3112_v43 = vpop.f32.mrf.mxu3 }
 0x120   : > { %v1622_v5 = vmax.f32 %v1484_v52, 0.0 }
 0x121   : > { %v1490_v47 = vpop.f32.mrf.mxu2  ;;  %v1147_v48 = vpop.f32.mrf.mxu0 }
 0x122   : > { %v1148_v49 = vadd.f32 %v2991_v0, %v1147_v48  ;;  %v1316_v50 = vpop.f32.mrf.mxu1 }
 0x124   : > { %v1317_v54 = vadd.f32 %v1316_v50, %v1148_v49  ;;  %v2263_v50 = vor.u32 %v2501_v39, %v2262_v8  ;;  %v1241_v39 = vadd.f32 %v2991_v0, %v3032_v3  ;;  %v2286_v3 = vld [vmem:[%s2866_s7 + $0x2c0] sm:$0xf] }
 0x126   : > { %v1486_v62 = vadd.f32 %v1485_v12, %v1317_v54  ;;  %2401 = vmatmul.msk.bf16.gmra.mxu2 %vm1004_vm0, %v2143_v51  ;;  %v2139_v54 = vor.u32 %v2469_v41, %v2136_v44  ;;  %v2480_v41 = vld [vmem:[%s2866_s7 + $0x1f0] sm:$0xf0] }
 0x127   : > { %v3124_v4 = vpop.f32.mrf.mxu3 }
 0x128   : > { %v1623_v6 = vmax.f32 %v1486_v62, 0.0  ;;  %v2477_v62 = vld [vmem:[%s2866_s7 + $0x1d8] sm:$0xf0] }
 0x129   : > { %v1493_v59 = vpop.f32.mrf.mxu2  ;;  %v1150_v11 = vpop.f32.mrf.mxu0 }
 0x12a   : > { %v2570_v14 = vpack.c.bf16 %v1623_v6, %v1622_v5  ;;  %v1319_v15 = vpop.f32.mrf.mxu1  ;;  %v1151_v12 = vadd.f32 %v2991_v0, %v1150_v11  ;;  %v2167_v11 = vor.u32 %v2477_v62, %v2166_v61  ;;  %v2475_v62 = vld [vmem:[%s2866_s7 + $0x1cc] sm:$0xf] }
 0x12c   : > { %2698 = vst [vmem:[%s3012_s16 + $0x38] sm:$0xff] %v2570_v14   ;;  %1189 = vmatmul.bf16.gmra.mxu0 %v2123_v9  ;;  %2410 = vmatmul.msk.bf16.vlgmr.msra.gmra.mxu3 %vm1004_vm0, %v2251_v10  ;;  %v1320_v20 = vadd.f32 %v1319_v15, %v1151_v12  ;;  %v2146_v15 = vld [vmem:[%s2866_s7 + $0x1b0] sm:$0xf]  ;;  %v2473_v12 = vld [vmem:[%s2866_s7 + $0x1b8] sm:$0xf0] }
 0x12d   : > { %1358 = vmatmul.bf16.gmra.mxu1 %v2127_v13 }
 0x12e   : > { %v1489_v32 = vadd.f32 %v1488_v28, %v1320_v20  ;;  %v2148_v20 = vld [vmem:[%s2866_s7 + $0x1bc] sm:$0xf0] }
 0x12f   : > { %v1399_v17 = vpop.f32.mrf.mxu3  ;;  %v2151_v38 = vor.u32 %v2472_v19, %v2148_v20  ;;  %v2483_v19 = vld [vmem:[%s2866_s7 + $0x208] sm:$0xf0] }
 0x130   : > { %v3133_v21 = vadd.f32 %v1399_v17, %v1231_v16  ;;  %v1624_v48 = vmax.f32 %v1489_v32, 0.0  ;;  %v2504_v16 = vld [vmem:[%s2866_s7 + $0x2b0] sm:$0xf0]  ;;  %v1238_v17 = vadd.f32 %v2991_v0, %v3028_v55 }
 0x131   : > { %v1495_v24 = vpop.f32.mrf.mxu2  ;;  %v1152_v25 = vpop.f32.mrf.mxu0  ;;  %v2275_v32 = vor.u32 %v2504_v16, %v2274_v37  ;;  %v1246_v16 = vadd.f32 %v2991_v0, %v3048_v34  ;;  %v2298_v34 = vld [vmem:[%s2866_s7 + $0x2d8] sm:$0xf] }
 0x132   : > { %v1153_v27 = vadd.f32 %v2991_v0, %v1152_v25  ;;  %v1321_v29 = vpop.f32.mrf.mxu1 }
 0x134   : > { %v1322_v33 = vadd.f32 %v1321_v29, %v1153_v27  ;;  %v2147_v27 = vor.u32 %v2473_v12, %v2146_v15 }
 0x136   : > { %v1491_v42 = vadd.f32 %v1490_v47, %v1322_v33  ;;  %2402 = vmatmul.msk.bf16.gmra.mxu2 %vm1004_vm0, %v2155_v31 }
 0x137   : > { %v1401_v45 = vpop.f32.mrf.mxu3 }
 0x138   : > { %v1625_v49 = vmax.f32 %v1491_v42, 0.0  ;;  %v3145_v28 = vadd.f32 %v1401_v45, %v1233_v40  ;;  %v2178_v42 = vld [vmem:[%s2866_s7 + $0x1e8] sm:$0xf] }
 0x139   : > { %v1498_v51 = vpop.f32.mrf.mxu2  ;;  %v1155_v52 = vpop.f32.mrf.mxu0 }
 0x13a   : > { %v2575_v56 = vpack.c.bf16 %v1625_v49, %v1624_v48  ;;  %v1324_v26 = vpop.f32.mrf.mxu1  ;;  %v1156_v47 = vadd.f32 %v2991_v0, %v1155_v52  ;;  %v2179_v52 = vor.u32 %v2480_v41, %v2178_v42  ;;  %v2478_v41 = vld [vmem:[%s2866_s7 + $0x1e4] sm:$0xf] }
 0x13c   : > { %2699 = vst [vmem:[%s3012_s16 + $0x40] sm:$0xff] %v2575_v56   ;;  %1194 = vmatmul.bf16.gmra.mxu0 %v2135_v46  ;;  %2411 = vmatmul.msk.bf16.gmra.mxu3 %vm1004_vm0, %v2263_v50  ;;  %v1325_v63 = vadd.f32 %v1324_v26, %v1156_v47  ;;  %v2158_v26 = vld [vmem:[%s2866_s7 + $0x1c8] sm:$0xf]  ;;  %v2476_v47 = vld [vmem:[%s2866_s7 + $0x1d0] sm:$0xf0] }
 0x13d   : > { %1363 = vmatmul.bf16.gmra.mxu1 %v2139_v54 }
 0x13e   : > { %v1494_v13 = vadd.f32 %v1493_v59, %v1325_v63  ;;  %v2160_v63 = vld [vmem:[%s2866_s7 + $0x1d4] sm:$0xf0] }
 0x13f   : > { %v1404_v60 = vpop.f32.mrf.mxu3  ;;  %v2163_v12 = vor.u32 %v2475_v62, %v2160_v63  ;;  %v2486_v62 = vld [vmem:[%s2866_s7 + $0x220] sm:$0xf0] }
 0x140   : > { %v3154_v1 = vadd.f32 %v1404_v60, %v1236_v58  ;;  %v1626_v29 = vmax.f32 %v1494_v13, 0.0  ;;  %v2507_v58 = vld [vmem:[%s2866_s7 + $0x2c8] sm:$0xf0]  ;;  %v1243_v60 = vadd.f32 %v2991_v0, %v3044_v22 }
 0x141   : > { %v1500_v5 = vpop.f32.mrf.mxu2  ;;  %v1157_v6 = vpop.f32.mrf.mxu0  ;;  %v2287_v13 = vor.u32 %v2507_v58, %v2286_v3  ;;  %v1251_v58 = vadd.f32 %v2991_v0, %v3064_v2  ;;  %v2310_v2 = vld [vmem:[%s2866_s7 + $0x2f0] sm:$0xf] }
 0x142   : > { %v1158_v9 = vadd.f32 %v2991_v0, %v1157_v6  ;;  %v1326_v10 = vpop.f32.mrf.mxu1 }
 0x144   : > { %v1327_v14 = vadd.f32 %v1326_v10, %v1158_v9  ;;  %v2159_v9 = vor.u32 %v2476_v47, %v2158_v26 }
 0x146   : > { %v1496_v18 = vadd.f32 %v1495_v24, %v1327_v14  ;;  %2403 = vmatmul.msk.bf16.gmra.mxu2 %vm1004_vm0, %v2167_v11 }
 0x147   : > { %v1406_v25 = vpop.f32.mrf.mxu3 }
 0x148   : > { %v1627_v31 = vmax.f32 %v1496_v18, 0.0  ;;  %v3166_v59 = vadd.f32 %v1406_v25, %v1238_v17  ;;  %v2190_v18 = vld [vmem:[%s2866_s7 + $0x200] sm:$0xf] }
 0x149   : > { %v1503_v33 = vpop.f32.mrf.mxu2  ;;  %v1160_v35 = vpop.f32.mrf.mxu0 }
 0x14a   : > { %v2580_v8 = vpack.c.bf16 %v1627_v31, %v1626_v29  ;;  %v1329_v55 = vpop.f32.mrf.mxu1  ;;  %v1161_v24 = vadd.f32 %v2991_v0, %v1160_v35  ;;  %v2191_v35 = vor.u32 %v2483_v19, %v2190_v18  ;;  %v2481_v19 = vld [vmem:[%s2866_s7 + $0x1fc] sm:$0xf] }
 0x14c   : > { %2700 = vst [vmem:[%s3012_s16 + $0x48] sm:$0xff] %v2580_v8   ;;  %1199 = vmatmul.bf16.gmra.mxu0 %v2147_v27  ;;  %2412 = vmatmul.msk.bf16.gmra.mxu3 %vm1004_vm0, %v2275_v32  ;;  %v1330_v44 = vadd.f32 %v1329_v55, %v1161_v24  ;;  %v2170_v55 = vld [vmem:[%s2866_s7 + $0x1e0] sm:$0xf]  ;;  %v2479_v24 = vld [vmem:[%s2866_s7 + $0x1e8] sm:$0xf0] }
 0x14d   : > { %1368 = vmatmul.bf16.gmra.mxu1 %v2151_v38 }
 0x14e   : > { %v1499_v54 = vadd.f32 %v1498_v51, %v1330_v44  ;;  %v2172_v44 = vld [vmem:[%s2866_s7 + $0x1ec] sm:$0xf0] }
 0x14f   : > { %v1409_v40 = vpop.f32.mrf.mxu3  ;;  %v2175_v47 = vor.u32 %v2478_v41, %v2172_v44  ;;  %v2489_v41 = vld [vmem:[%s2866_s7 + $0x238] sm:$0xf0] }
 0x150   : > { %v3175_v45 = vadd.f32 %v1409_v40, %v1241_v39  ;;  %v1628_v10 = vmax.f32 %v1499_v54, 0.0  ;;  %v2510_v39 = vld [vmem:[%s2866_s7 + $0x2e0] sm:$0xf0]  ;;  %v1248_v40 = vadd.f32 %v2991_v0, %v3060_v53 }
 0x151   : > { %v1505_v46 = vpop.f32.mrf.mxu2  ;;  %v1162_v48 = vpop.f32.mrf.mxu0  ;;  %v2299_v54 = vor.u32 %v2510_v39, %v2298_v34  ;;  %v1256_v39 = vadd.f32 %v2991_v0, %v3080_v36  ;;  %v1258_v36 = vadd.f32 %v2991_v0, %v3092_v57 }
 0x152   : > { %v1163_v49 = vadd.f32 %v2991_v0, %v1162_v48  ;;  %v1331_v50 = vpop.f32.mrf.mxu1 }
 0x154   : > { %v1332_v56 = vadd.f32 %v1331_v50, %v1163_v49  ;;  %v2171_v49 = vor.u32 %v2479_v24, %v2170_v55 }
 0x156   : > { %v1501_v61 = vadd.f32 %v1500_v5, %v1332_v56  ;;  %2404 = vmatmul.msk.bf16.gmra.mxu2 %vm1004_vm0, %v2179_v52 }
 0x157   : > { %v1411_v6 = vpop.f32.mrf.mxu3 }
 0x158   : > { %v1629_v11 = vmax.f32 %v1501_v61, 0.0  ;;  %v3187_v51 = vadd.f32 %v1411_v6, %v1243_v60  ;;  %v2202_v61 = vld [vmem:[%s2866_s7 + $0x218] sm:$0xf] }
 0x159   : > { %v1508_v14 = vpop.f32.mrf.mxu2  ;;  %v1165_v15 = vpop.f32.mrf.mxu0 }
 0x15a   : > { %v2585_v37 = vpack.c.bf16 %v1629_v11, %v1628_v10  ;;  %v1334_v22 = vpop.f32.mrf.mxu1  ;;  %v1166_v5 = vadd.f32 %v2991_v0, %v1165_v15  ;;  %v2203_v15 = vor.u32 %v2486_v62, %v2202_v61  ;;  %v2196_v61 = vld [vmem:[%s2866_s7 + $0x21c] sm:$0xf0] }
 0x15c   : > { %2701 = vst [vmem:[%s3012_s16 + $0x50] sm:$0xff] %v2585_v37   ;;  %1204 = vmatmul.bf16.gmra.mxu0 %v2159_v9  ;;  %2413 = vmatmul.msk.bf16.gmra.mxu3 %vm1004_vm0, %v2287_v13  ;;  %v1335_v20 = vadd.f32 %v1334_v22, %v1166_v5  ;;  %v2182_v22 = vld [vmem:[%s2866_s7 + $0x1f8] sm:$0xf]  ;;  %v2482_v5 = vld [vmem:[%s2866_s7 + $0x200] sm:$0xf0] }
 0x15d   : > { %1373 = vmatmul.bf16.gmra.mxu1 %v2163_v12 }
 0x15e   : > { %v1504_v38 = vadd.f32 %v1503_v33, %v1335_v20  ;;  %v2184_v20 = vld [vmem:[%s2866_s7 + $0x204] sm:$0xf0] }
 0x15f   : > { %v1414_v17 = vpop.f32.mrf.mxu3  ;;  %v2187_v24 = vor.u32 %v2481_v19, %v2184_v20 }
 0x160   : > { %v3196_v25 = vadd.f32 %v1414_v17, %v1246_v16  ;;  %v1630_v50 = vmax.f32 %v1504_v38, 0.0  ;;  %v2513_v16 = vld [vmem:[%s2866_s7 + $0x2f8] sm:$0xf0]  ;;  %v1253_v17 = vadd.f32 %v2991_v0, %v3076_v23 }
 0x161   : > { %v1510_v27 = vpop.f32.mrf.mxu2  ;;  %v1167_v29 = vpop.f32.mrf.mxu0  ;;  %v2311_v38 = vor.u32 %v2513_v16, %v2310_v2  ;;  %v2226_v2 = vld [vmem:[%s2866_s7 + $0x248] sm:$0xf]  ;;  %v2492_v16 = vld [vmem:[%s2866_s7 + $0x250] sm:$0xf0] }
 0x162   : > { %v1168_v31 = vadd.f32 %v2991_v0, %v1167_v29  ;;  %v1336_v32 = vpop.f32.mrf.mxu1 }
 0x164   : > { %v1337_v8 = vadd.f32 %v1336_v32, %v1168_v31  ;;  %v2183_v31 = vor.u32 %v2482_v5, %v2182_v22 }
 0x166   : > { %v1506_v42 = vadd.f32 %v1505_v46, %v1337_v8  ;;  %2405 = vmatmul.msk.bf16.gmra.mxu2 %vm1004_vm0, %v2191_v35 }
 0x167   : > { %v1416_v48 = vpop.f32.mrf.mxu3 }
 0x168   : > { %v1631_v52 = vmax.f32 %v1506_v42, 0.0  ;;  %v3208_v33 = vadd.f32 %v1416_v48, %v1248_v40  ;;  %v2214_v42 = vld [vmem:[%s2866_s7 + $0x230] sm:$0xf] }
 0x169   : > { %v1513_v56 = vpop.f32.mrf.mxu2  ;;  %v1170_v26 = vpop.f32.mrf.mxu0 }
 0x16a   : > { %v2590_v3 = vpack.c.bf16 %v1631_v52, %v1630_v50  ;;  %v1339_v53 = vpop.f32.mrf.mxu1  ;;  %v1171_v46 = vadd.f32 %v2991_v0, %v1170_v26  ;;  %v2215_v26 = vor.u32 %v2489_v41, %v2214_v42 }
 0x16c   : > { %2702 = vst [vmem:[%s3012_s16 + $0x58] sm:$0xff] %v2590_v3   ;;  %1209 = vmatmul.bf16.gmra.mxu0 %v2171_v49  ;;  %2414 = vmatmul.msk.bf16.gmra.mxu3 %vm1004_vm0, %v2299_v54  ;;  %v1340_v63 = vadd.f32 %v1339_v53, %v1171_v46  ;;  %v2194_v53 = vld [vmem:[%s2866_s7 + $0x210] sm:$0xf]  ;;  %v2485_v46 = vld [vmem:[%s2866_s7 + $0x218] sm:$0xf0] }
 0x16d   : > { %1378 = vmatmul.bf16.gmra.mxu1 %v2175_v47 }
 0x16e   : > { %v1509_v12 = vadd.f32 %v1508_v14, %v1340_v63 }
 0x16f   : > { %v1419_v60 = vpop.f32.mrf.mxu3 }
 0x170   : > { %v3217_v6 = vadd.f32 %v1419_v60, %v1251_v58  ;;  %v1632_v32 = vmax.f32 %v1509_v12, 0.0  ;;  %v2484_v60 = vld [vmem:[%s2866_s7 + $0x214] sm:$0xf] }
 0x171   : > { %v1515_v9 = vpop.f32.mrf.mxu2  ;;  %v1172_v10 = vpop.f32.mrf.mxu0  ;;  %v2199_v12 = vor.u32 %v2484_v60, %v2196_v61 }
 0x172   : > { %v1173_v11 = vadd.f32 %v2991_v0, %v1172_v10  ;;  %v1341_v13 = vpop.f32.mrf.mxu1 }
 0x174   : > { %v1342_v37 = vadd.f32 %v1341_v13, %v1173_v11 }
 0x176   : > { %v1511_v18 = vadd.f32 %v1510_v27, %v1342_v37  ;;  %2406 = vmatmul.msk.bf16.gmra.mxu2 %vm1004_vm0, %v2203_v15 }
 0x177   : > { %v1421_v29 = vpop.f32.mrf.mxu3 }
 0x178   : > { %v1633_v35 = vmax.f32 %v1511_v18, 0.0  ;;  %v3229_v14 = vadd.f32 %v1421_v29, %v1253_v17  ;;  %v3261_v29 = vld [vmem:[%s3347_s2] ss:$0 sm:$0xff] }
 0x179   : > { %v1518_v8 = vpop.f32.mrf.mxu2  ;;  %v1175_v55 = vpop.f32.mrf.mxu0 }
 0x17a   : > { %v2595_v34 = vpack.c.bf16 %v1633_v35, %v1632_v32  ;;  %v1344_v23 = vpop.f32.mrf.mxu1  ;;  %v1176_v27 = vadd.f32 %v2991_v0, %v1175_v55  ;;  %v2227_v35 = vor.u32 %v2492_v16, %v2226_v2  ;;  %v2488_v55 = vld [vmem:[%s2866_s7 + $0x230] sm:$0xf0] }
 0x17c   : > { %2703 = vst [vmem:[%s3012_s16 + $0x60] sm:$0xff] %v2595_v34   ;;  %1214 = vmatmul.bf16.gmra.mxu0 %v2183_v31  ;;  %2415 = vmatmul.msk.bf16.gmra.mxu3 %vm1004_vm0, %v2311_v38  ;;  %v1345_v44 = vadd.f32 %v1344_v23, %v1176_v27  ;;  %v2206_v38 = vld [vmem:[%s2866_s7 + $0x228] sm:$0xf]  ;;  %v2487_v23 = vld [vmem:[%s2866_s7 + $0x22c] sm:$0xf] }
 0x17d   : > { %1383 = vmatmul.bf16.gmra.mxu1 %v2187_v24  ;;  %v1263_v24 = vadd.f32 %v3261_v29, %v3108_v30  ;;  %v2208_v27 = vld [vmem:[%s2866_s7 + $0x234] sm:$0xf0] }
 0x17e   : > { %v1514_v47 = vadd.f32 %v1513_v56, %v1345_v44  ;;  %v2195_v56 = vor.u32 %v2485_v46, %v2194_v53  ;;  %v2495_v53 = vld [vmem:[%s2866_s7 + $0x268] sm:$0xf0] }
 0x17f   : > { %v1424_v40 = vpop.f32.mrf.mxu3 }
 0x180   : > { %v3238_v48 = vadd.f32 %v1424_v40, %v1256_v39  ;;  %v1634_v63 = vmax.f32 %v1514_v47, 0.0 }
 0x181   : > { %v1520_v49 = vpop.f32.mrf.mxu2  ;;  %v1177_v50 = vpop.f32.mrf.mxu0 }
 0x182   : > { %v1178_v52 = vadd.f32 %v2991_v0, %v1177_v50  ;;  %v1346_v54 = vpop.f32.mrf.mxu1 }
 0x184   : > { %v1347_v3 = vadd.f32 %v1346_v54, %v1178_v52  ;;  %v2211_v52 = vor.u32 %v2487_v23, %v2208_v27 }
 0x186   : > { %v1516_v58 = vadd.f32 %v1515_v9, %v1347_v3  ;;  %2407 = vmatmul.msk.bf16.gmra.mxu2 %vm1004_vm0, %v2215_v26  ;;  %v1261_v9 = vadd.f32 %v2991_v0, %v3096_v7  ;;  %v2238_v3 = vld [vmem:[%s2866_s7 + $0x260] sm:$0xf] }
 0x187   : > { %v1426_v62 = vpop.f32.mrf.mxu3 }
 0x188   : > { %v1635_v10 = vmax.f32 %v1516_v58, 0.0  ;;  %v3248_v11 = vadd.f32 %v1426_v62, %v1258_v36 }
 0x189   : > { %v1523_v13 = vpop.f32.mrf.mxu2  ;;  %v1180_v15 = vpop.f32.mrf.mxu0 }
 0x18a   : > { %v2600_v37 = vpack.c.bf16 %v1635_v10, %v1634_v63  ;;  %v1349_v22 = vpop.f32.mrf.mxu1  ;;  %v1181_v57 = vadd.f32 %v2991_v0, %v1180_v15  ;;  %v2239_v63 = vor.u32 %v2495_v53, %v2238_v3  ;;  %v1268_v15 = vadd.f32 %v3261_v29, %v3124_v4 }
 0x18c   : > { %2704 = vst [vmem:[%s3012_s16 + $0x68] sm:$0xff] %v2600_v37   ;;  %1219 = vmatmul.bf16.gmra.mxu0 %v2195_v56  ;;  %v1350_v17 = vadd.f32 %v1349_v22, %v1181_v57 }
 0x18d   : > { %1388 = vmatmul.bf16.gmra.mxu1 %v2199_v12 }
 0x18e   : > { %v1519_v0 = vadd.f32 %v1518_v8, %v1350_v17  ;;  %v2207_v8 = vor.u32 %v2488_v55, %v2206_v38 }
 0x18f   : > { %v1429_v5 = vpop.f32.mrf.mxu3 }
 0x190   : > { %v3256_v18 = vadd.f32 %v1429_v5, %v1261_v9  ;;  %v1636_v40 = vmax.f32 %v1519_v0, 0.0 }
 0x191   : > { %v1525_v19 = vpop.f32.mrf.mxu2  ;;  %v1182_v20 = vpop.f32.mrf.mxu0 }
 0x192   : > { %v1183_v31 = vadd.f32 %v3261_v29, %v1182_v20  ;;  %v1351_v32 = vpop.f32.mrf.mxu1 }
 0x194   : > { %v1352_v7 = vadd.f32 %v1351_v32, %v1183_v31 }
 0x196   : > { %v1521_v34 = vadd.f32 %v1520_v49, %v1352_v7  ;;  %2408 = vmatmul.msk.bf16.gmra.mxu2 %vm1004_vm0, %v2227_v35  ;;  %v1266_v49 = vadd.f32 %v3261_v29, %v3112_v43 }
 0x197   : > { %v1431_v39 = vpop.f32.mrf.mxu3 }
 0x198   : > { %v1637_v42 = vmax.f32 %v1521_v34, 0.0  ;;  %v3271_v41 = vadd.f32 %v1431_v39, %v1263_v24 }
 0x199   : > { %v1528_v44 = vpop.f32.mrf.mxu2  ;;  %v1185_v50 = vpop.f32.mrf.mxu0 }
 0x19a   : > { %v2605_v54 = vpack.c.bf16 %v1637_v42, %v1636_v40  ;;  %v1354_v26 = vpop.f32.mrf.mxu1  ;;  %v1186_v30 = vadd.f32 %v3261_v29, %v1185_v50 }
 0x19c   : > { %2705 = vst [vmem:[%s3012_s16 + $0x70] sm:$0xff] %v2605_v54   ;;  %1224 = vmatmul.bf16.gmra.mxu0 %v2207_v8  ;;  %v1355_v46 = vadd.f32 %v1354_v26, %v1186_v30 }
 0x19d   : > { %1393 = vmatmul.bf16.gmra.mxu1 %v2211_v52 }
 0x19e   : > { %v1524_v10 = vadd.f32 %v1523_v13, %v1355_v46 }
 0x19f   : > { %v1434_v47 = vpop.f32.mrf.mxu3 }
 0x1a0   : > { %v3279_v36 = vadd.f32 %v1434_v47, %v1266_v49  ;;  %v1638_v37 = vmax.f32 %v1524_v10, 0.0 }
 0x1a1   : > { %v1530_v58 = vpop.f32.mrf.mxu2  ;;  %v1187_v60 = vpop.f32.mrf.mxu0 }
 0x1a2   : > { %v1188_v61 = vadd.f32 %v3261_v29, %v1187_v60  ;;  %v1356_v62 = vpop.f32.mrf.mxu1 }
 0x1a4   : > { %v1357_v56 = vadd.f32 %v1356_v62, %v1188_v61 }
 0x1a6   : > { %v1526_v12 = vadd.f32 %v1525_v19, %v1357_v56  ;;  %2409 = vmatmul.msk.bf16.gmra.mxu2 %vm1004_vm0, %v2239_v63 }
 0x1a7   : > { %v1436_v43 = vpop.f32.mrf.mxu3 }
 0x1a8   : > { %v1639_v22 = vmax.f32 %v1526_v12, 0.0  ;;  %v3285_v57 = vadd.f32 %v1436_v43, %v1268_v15 }
 0x1a9   : > { %v1533_v9 = vpop.f32.mrf.mxu2  ;;  %v1190_v5 = vpop.f32.mrf.mxu0 }
 0x1aa   : > { %v2610_v2 = vpack.c.bf16 %v1639_v22, %v1638_v37  ;;  %v1359_v16 = vpop.f32.mrf.mxu1  ;;  %v1191_v17 = vadd.f32 %v3261_v29, %v1190_v5 }
 0x1ac   : > { %2706 = vst [vmem:[%s3012_s16 + $0x78] sm:$0xff] %v2610_v2   ;;  %v1360_v20 = vadd.f32 %v1359_v16, %v1191_v17 }
 0x1ae   : > { %v1529_v35 = vadd.f32 %v1528_v44, %v1360_v20 }
 0x1af   : > { %v1578_v13 = vpop.f32.mrf.mxu3 }
 0x1b0   : > { %v1579_v7 = vadd.f32 %v1578_v13, %v3175_v45  ;;  %v1640_v24 = vmax.f32 %v1529_v35, 0.0 }
 0x1b1   : > { %v1535_v31 = vpop.f32.mrf.mxu2  ;;  %v1192_v32 = vpop.f32.mrf.mxu0 }
 0x1b2   : > { %v1193_v4 = vadd.f32 %v3261_v29, %v1192_v32  ;;  %v1361_v19 = vpop.f32.mrf.mxu1  ;;  %v1660_v40 = vmax.f32 %v1579_v7, 0.0 }
 0x1b4   : > { %v1362_v0 = vadd.f32 %v1361_v19, %v1193_v4 }
 0x1b6   : > { %v1531_v38 = vadd.f32 %v1530_v58, %v1362_v0 }
 0x1b7   : > { %v1580_v55 = vpop.f32.mrf.mxu3 }
 0x1b8   : > { %v1641_v34 = vmax.f32 %v1531_v38, 0.0  ;;  %v1581_v23 = vadd.f32 %v1580_v55, %v3187_v51 }
 0x1b9   : > { %v1538_v27 = vpop.f32.mrf.mxu2  ;;  %v1195_v39 = vpop.f32.mrf.mxu0 }
 0x1ba   : > { %v2615_v42 = vpack.c.bf16 %v1641_v34, %v1640_v24  ;;  %v1661_v8 = vmax.f32 %v1581_v23, 0.0  ;;  %v1364_v50 = vpop.f32.mrf.mxu1  ;;  %v1196_v44 = vadd.f32 %v3261_v29, %v1195_v39 }
 0x1bc   : > { %2707 = vst [vmem:[%s3012_s16 + $0x80] sm:$0xff] %v2615_v42   ;;  %v2665_v52 = vpack.c.bf16 %v1661_v8, %v1660_v40  ;;  %v1365_v26 = vadd.f32 %v1364_v50, %v1196_v44 }
 0x1be   : > { %2717 = vst [vmem:[%s3012_s16 + $0xd0] sm:$0xff] %v2665_v52   ;;  %v1534_v51 = vadd.f32 %v1533_v9, %v1365_v26 }
 0x1bf   : > { %v1583_v54 = vpop.f32.mrf.mxu3 }
 0x1c0   : > { %v1584_v53 = vadd.f32 %v1583_v54, %v3196_v25  ;;  %v1642_v60 = vmax.f32 %v1534_v51, 0.0 }
 0x1c1   : > { %v1540_v45 = vpop.f32.mrf.mxu2  ;;  %v1197_v30 = vpop.f32.mrf.mxu0 }
 0x1c2   : > { %v1198_v49 = vadd.f32 %v3261_v29, %v1197_v30  ;;  %v1366_v47 = vpop.f32.mrf.mxu1  ;;  %v1662_v56 = vmax.f32 %v1584_v53, 0.0 }
 0x1c4   : > { %v1367_v3 = vadd.f32 %v1366_v47, %v1198_v49 }
 0x1c6   : > { %v1536_v46 = vadd.f32 %v1535_v31, %v1367_v3 }
 0x1c7   : > { %v1585_v58 = vpop.f32.mrf.mxu3 }
 0x1c8   : > { %v1643_v61 = vmax.f32 %v1536_v46, 0.0  ;;  %v1586_v62 = vadd.f32 %v1585_v58, %v3208_v33 }
 0x1c9   : > { %v1543_v63 = vpop.f32.mrf.mxu2  ;;  %v1200_v10 = vpop.f32.mrf.mxu0 }
 0x1ca   : > { %v2620_v15 = vpack.c.bf16 %v1643_v61, %v1642_v60  ;;  %v1663_v12 = vmax.f32 %v1586_v62, 0.0  ;;  %v1369_v43 = vpop.f32.mrf.mxu1  ;;  %v1201_v22 = vadd.f32 %v3261_v29, %v1200_v10 }
 0x1cc   : > { %2708 = vst [vmem:[%s3012_s16 + $0x88] sm:$0xff] %v2620_v15   ;;  %v2670_v37 = vpack.c.bf16 %v1663_v12, %v1662_v56  ;;  %v1370_v5 = vadd.f32 %v1369_v43, %v1201_v22 }
 0x1ce   : > { %2718 = vst [vmem:[%s3012_s16 + $0xd8] sm:$0xff] %v2670_v37   ;;  %v1539_v33 = vadd.f32 %v1538_v27, %v1370_v5 }
 0x1cf   : > { %v1588_v9 = vpop.f32.mrf.mxu3 }
 0x1d0   : > { %v1589_v20 = vadd.f32 %v1588_v9, %v3217_v6  ;;  %v1644_v4 = vmax.f32 %v1539_v33, 0.0 }
 0x1d1   : > { %v1545_v25 = vpop.f32.mrf.mxu2  ;;  %v1202_v2 = vpop.f32.mrf.mxu0 }
 0x1d2   : > { %v1203_v16 = vadd.f32 %v3261_v29, %v1202_v2  ;;  %v1371_v17 = vpop.f32.mrf.mxu1  ;;  %v1664_v38 = vmax.f32 %v1589_v20, 0.0 }
 0x1d4   : > { %v1372_v13 = vadd.f32 %v1371_v17, %v1203_v16 }
 0x1d6   : > { %v1541_v31 = vadd.f32 %v1540_v45, %v1372_v13 }
 0x1d7   : > { %v1590_v32 = vpop.f32.mrf.mxu3 }
 0x1d8   : > { %v1645_v19 = vmax.f32 %v1541_v31, 0.0  ;;  %v1591_v35 = vadd.f32 %v1590_v32, %v3229_v14 }
 0x1d9   : > { %v1548_v0 = vpop.f32.mrf.mxu2  ;;  %v1205_v7 = vpop.f32.mrf.mxu0 }
 0x1da   : > { %v2625_v55 = vpack.c.bf16 %v1645_v19, %v1644_v4  ;;  %v1665_v24 = vmax.f32 %v1591_v35, 0.0  ;;  %v1374_v34 = vpop.f32.mrf.mxu1  ;;  %v1206_v27 = vadd.f32 %v3261_v29, %v1205_v7 }
 0x1dc   : > { %2709 = vst [vmem:[%s3012_s16 + $0x90] sm:$0xff] %v2625_v55   ;;  %v2675_v23 = vpack.c.bf16 %v1665_v24, %v1664_v38  ;;  %v1375_v40 = vadd.f32 %v1374_v34, %v1206_v27 }
 0x1de   : > { %2719 = vst [vmem:[%s3012_s16 + $0xe0] sm:$0xff] %v2675_v23   ;;  %v1544_v14 = vadd.f32 %v1543_v63, %v1375_v40 }
 0x1df   : > { %v1593_v39 = vpop.f32.mrf.mxu3 }
 0x1e0   : > { %v1594_v44 = vadd.f32 %v1593_v39, %v3238_v48  ;;  %v1646_v45 = vmax.f32 %v1544_v14, 0.0 }
 0x1e1   : > { %v1550_v6 = vpop.f32.mrf.mxu2  ;;  %v1207_v42 = vpop.f32.mrf.mxu0 }
 0x1e2   : > { %v1208_v8 = vadd.f32 %v3261_v29, %v1207_v42  ;;  %v1376_v50 = vpop.f32.mrf.mxu1  ;;  %v1666_v3 = vmax.f32 %v1594_v44, 0.0 }
 0x1e4   : > { %v1377_v52 = vadd.f32 %v1376_v50, %v1208_v8 }
 0x1e6   : > { %v1546_v54 = vadd.f32 %v1545_v25, %v1377_v52 }
 0x1e7   : > { %v1595_v26 = vpop.f32.mrf.mxu3 }
 0x1e8   : > { %v1647_v30 = vmax.f32 %v1546_v54, 0.0  ;;  %v1596_v49 = vadd.f32 %v1595_v26, %v3248_v11 }
 0x1e9   : > { %v1553_v47 = vpop.f32.mrf.mxu2  ;;  %v1210_v51 = vpop.f32.mrf.mxu0 }
 0x1ea   : > { %v2630_v53 = vpack.c.bf16 %v1647_v30, %v1646_v45  ;;  %v1667_v46 = vmax.f32 %v1596_v49, 0.0  ;;  %v1379_v58 = vpop.f32.mrf.mxu1  ;;  %v1211_v61 = vadd.f32 %v3261_v29, %v1210_v51 }
 0x1ec   : > { %2710 = vst [vmem:[%s3012_s16 + $0x98] sm:$0xff] %v2630_v53   ;;  %v2680_v60 = vpack.c.bf16 %v1667_v46, %v1666_v3  ;;  %v1380_v63 = vadd.f32 %v1379_v58, %v1211_v61 }
 0x1ee   : > { %2720 = vst [vmem:[%s3012_s16 + $0xe8] sm:$0xff] %v2680_v60   ;;  %v1549_v11 = vadd.f32 %v1548_v0, %v1380_v63 }
 0x1ef   : > { %v1598_v62 = vpop.f32.mrf.mxu3 }
 0x1f0   : > { %v1599_v43 = vadd.f32 %v1598_v62, %v3256_v18  ;;  %v1648_v9 = vmax.f32 %v1549_v11, 0.0 }
 0x1f1   : > { %v1555_v48 = vpop.f32.mrf.mxu2  ;;  %v1212_v10 = vpop.f32.mrf.mxu0 }
 0x1f2   : > { %v1213_v56 = vadd.f32 %v3261_v29, %v1212_v10  ;;  %v1381_v15 = vpop.f32.mrf.mxu1  ;;  %v1668_v17 = vmax.f32 %v1599_v43, 0.0 }
 0x1f4   : > { %v1382_v12 = vadd.f32 %v1381_v15, %v1213_v56 }
 0x1f6   : > { %v1551_v37 = vadd.f32 %v1550_v6, %v1382_v12 }
 0x1f7   : > { %v1600_v22 = vpop.f32.mrf.mxu3 }
 0x1f8   : > { %v1649_v5 = vmax.f32 %v1551_v37, 0.0  ;;  %v1601_v25 = vadd.f32 %v1600_v22, %v3271_v41 }
 0x1f9   : > { %v1558_v2 = vpop.f32.mrf.mxu2  ;;  %v1215_v16 = vpop.f32.mrf.mxu0 }
 0x1fa   : > { %v2635_v33 = vpack.c.bf16 %v1649_v5, %v1648_v9  ;;  %v1669_v13 = vmax.f32 %v1601_v25, 0.0  ;;  %v1384_v20 = vpop.f32.mrf.mxu1  ;;  %v1216_v32 = vadd.f32 %v3261_v29, %v1215_v16 }
 0x1fc   : > { %2711 = vst [vmem:[%s3012_s16 + $0xa0] sm:$0xff] %v2635_v33   ;;  %v2685_v31 = vpack.c.bf16 %v1669_v13, %v1668_v17  ;;  %v1385_v19 = vadd.f32 %v1384_v20, %v1216_v32 }
 0x1fe   : > { %2721 = vst [vmem:[%s3012_s16 + $0xf0] sm:$0xff] %v2685_v31   ;;  %v1554_v41 = vadd.f32 %v1553_v47, %v1385_v19 }
 0x1ff   : > { %v1603_v4 = vpop.f32.mrf.mxu3 }
 0x200   : > { %v1604_v55 = vadd.f32 %v1603_v4, %v3279_v36  ;;  %v1650_v23 = vmax.f32 %v1554_v41, 0.0 }
 0x201   : > { %v1560_v18 = vpop.f32.mrf.mxu2  ;;  %v1217_v35 = vpop.f32.mrf.mxu0 }
 0x202   : > { %v1218_v0 = vadd.f32 %v3261_v29, %v1217_v35  ;;  %v1386_v7 = vpop.f32.mrf.mxu1  ;;  %v1670_v42 = vmax.f32 %v1604_v55, 0.0 }
 0x204   : > { %v1387_v38 = vadd.f32 %v1386_v7, %v1218_v0 }
 0x206   : > { %v1556_v24 = vadd.f32 %v1555_v48, %v1387_v38 }
 0x207   : > { %v1605_v34 = vpop.f32.mrf.mxu3 }
 0x208   : > { %v1651_v27 = vmax.f32 %v1556_v24, 0.0  ;;  %v1606_v39 = vadd.f32 %v1605_v34, %v3285_v57 }
 0x209   : > { %v1563_v40 = vpop.f32.mrf.mxu2  ;;  %v1220_v6 = vpop.f32.mrf.mxu0 }
 0x20a   : > { %v2640_v8 = vpack.c.bf16 %v1651_v27, %v1650_v23  ;;  %v1671_v50 = vmax.f32 %v1606_v39, 0.0  ;;  %v1389_v14 = vpop.f32.mrf.mxu1  ;;  %v1221_v44 = vadd.f32 %v3261_v29, %v1220_v6 }
 0x20c   : > { %2712 = vst [vmem:[%s3012_s16 + $0xa8] sm:$0xff] %v2640_v8   ;;  %v2690_v52 = vpack.c.bf16 %v1671_v50, %v1670_v42  ;;  %v1390_v54 = vadd.f32 %v1389_v14, %v1221_v44 }
 0x20e   : > { %2722 = vst [vmem:[%s3012_s16 + $0xf8] sm:$0xff] %v2690_v52   ;;  %v1559_v49 = vadd.f32 %v1558_v2, %v1390_v54 }
 0x210   : > { %v1652_v51 = vmax.f32 %v1559_v49, 0.0 }
 0x211   : > { %v1565_v36 = vpop.f32.mrf.mxu2  ;;  %v1222_v26 = vpop.f32.mrf.mxu0 }
 0x212   : > { %v1223_v45 = vadd.f32 %v3261_v29, %v1222_v26  ;;  %v1391_v30 = vpop.f32.mrf.mxu1 }
 0x214   : > { %v1392_v57 = vadd.f32 %v1391_v30, %v1223_v45 }
 0x216   : > { %v1561_v47 = vadd.f32 %v1560_v18, %v1392_v57 }
 0x218   : > { %v1653_v3 = vmax.f32 %v1561_v47, 0.0 }
 0x219   : > { %v1568_v53 = vpop.f32.mrf.mxu2  ;;  %v1225_v46 = vpop.f32.mrf.mxu0 }
 0x21a   : > { %v2645_v58 = vpack.c.bf16 %v1653_v3, %v1652_v51  ;;  %v1394_v60 = vpop.f32.mrf.mxu1  ;;  %v1226_v61 = vadd.f32 %v3261_v29, %v1225_v46  ;;  %v1569_v62 = vadd.f32 %v1568_v53, %v3133_v21 }
 0x21c   : > { %2713 = vst [vmem:[%s3012_s16 + $0xb0] sm:$0xff] %v2645_v58   ;;  %v1395_v63 = vadd.f32 %v1394_v60, %v1226_v61  ;;  %v1656_v12 = vmax.f32 %v1569_v62, 0.0 }
 0x21e   : > { %v1564_v43 = vadd.f32 %v1563_v40, %v1395_v63 }
 0x220   : > { %v1654_v25 = vmax.f32 %v1564_v43, 0.0 }
 0x221   : > { %v1570_v48 = vpop.f32.mrf.mxu2  ;;  %v1227_v10 = vpop.f32.mrf.mxu0 }
 0x222   : > { %v1571_v56 = vadd.f32 %v1570_v48, %v3145_v28  ;;  %v1228_v15 = vadd.f32 %v3261_v29, %v1227_v10  ;;  %v1396_v11 = vpop.f32.mrf.mxu1 }
 0x224   : > { %v1657_v37 = vmax.f32 %v1571_v56, 0.0  ;;  %v1397_v22 = vadd.f32 %v1396_v11, %v1228_v15 }
 0x226   : > { %v2655_v9 = vpack.c.bf16 %v1657_v37, %v1656_v12  ;;  %v1566_v5 = vadd.f32 %v1565_v36, %v1397_v22 }
 0x228   : > { %2715 = vst [vmem:[%s3012_s16 + $0xc0] sm:$0xff] %v2655_v9   ;;  %v1655_v2 = vmax.f32 %v1566_v5, 0.0 }
 0x229   : > { %v1573_v21 = vpop.f32.mrf.mxu2 }
 0x22a   : > { %v2650_v16 = vpack.c.bf16 %v1655_v2, %v1654_v25  ;;  %v1574_v17 = vadd.f32 %v1573_v21, %v3154_v1 }
 0x22c   : > { %2714 = vst [vmem:[%s3012_s16 + $0xb8] sm:$0xff] %v2650_v16   ;;  %v1658_v29 = vmax.f32 %v1574_v17, 0.0 }
 0x231   : > { %v1575_v33 = vpop.f32.mrf.mxu2 }
 0x232   : > { %v1576_v28 = vadd.f32 %v1575_v33, %v3166_v59 }
 0x234   : > { %v1659_v13 = vmax.f32 %v1576_v28, 0.0 }
 0x236   : > { %v2660_v20 = vpack.c.bf16 %v1659_v13, %v1658_v29 }
 0x238   : > { %2716 = vst [vmem:[%s3012_s16 + $0xc8] sm:$0xff] %v2660_v20  }
 0x239 PF: > { %s13_s14 = sadd.s32 1, %s2790_s14   ;;  %s3349_s12 = smov %s2786_s13 }
 0x23a   : > { %p10_p5 = scmp.ge.s32.totalorder %s13_s14, 6   ;;  %s3350_s13 = smov %s3352_s15 }
 0x23c   :  { %12 = sbr.rel (!%p10_p5) target bundleno = 2 (0x2), region = 68 }

// kernel: yolact_forward.25
= control target key start
LH: loop header
LB: loop body
LE: loop exit
PB: predicated region body
PF: predicated region fallthrough
CT: control target
= control target key end

     0   :  { %s1287_s12 = smov 0   ;;  %s1289_s13 = smov 0   ;;  %s1531_s0 = inlined_call_operand.vmem [shape: bf16[1,2048,32], index: 0, kind: input, shape index: {}]   ;;  %s1532_s1 = inlined_call_operand.vmem [shape: bf16[1,32,128], index: 1, kind: input, shape index: {}]   ;;  %s1533_s2 = inlined_call_operand.vmem [shape: f32[1,1,128], index: 2, kind: input, shape index: {}]   ;;  %s1534_s3 = inlined_call_operand.vmem [shape: f32[1,2048,128], index: 3, kind: output, shape index: {}]  }
   0x1   :  { %s1291_s14 = smov 0  }
   0x2 LB: > { %s22_s15 = sadd.s32 1, %s1261_s13  ;;  %p1003_p0 = scmp.ge.s32.totalorder %s1265_s14, 1  ;;  %s1265_s14 = sphi %s1291_s14, %s13_s14   ;;  %s1261_s13 = sphi %s1289_s13, %s1536_s13   ;;  %s1257_s12 = sphi %s1287_s12, %s1535_s12  }
   0x3   : > { %p23_p1 = scmp.ge.s32.totalorder %s22_s15, 4  ;;  %p176_p2 = scmp.lt.s32.totalorder %s1265_s14, 5 }
   0x5   : > { %s1538_s15 = smov (%p23_p1, %s22_s15), 0  ;;  %p177_p3 = pnand %p1003_p0, %p176_p2 }
   0x6   : > { %s1004_s18 = sshll.u32 (!%p177_p3), %s1257_s12, 6 }
   0x7   : > { %180 = sbr.rel (%p177_p3) target bundleno = 279 (0x117), region = 32  ;;  %p219_p4 = scmp.lt.s32.totalorder (!%p177_p3), %s1004_s18, 255 }
   0xc   : > { %v1211_v0 = vld [vmem:[%s1532_s1 + $0x8] sm:$0xff]  ;;  %v1210_v1 = vld [vmem:[%s1532_s1] sm:$0xff]  ;;  %s1540_s18 = smov (!%p219_p4, %s1004_s18), 255  ;;  %vm489_vm0 = vcmask 261120  }
   0xd   : > { %592 = vmatpush.bf16.msra.mxu0 %v1211_v0  ;;  %1212 = vmatpush.bf16.msra.mxu1 %v1211_v0  ;;  %s1005_s21 = sshll.u32 %s1540_s18, 2  ;;  %v1386_v34 = vld [vmem:[%s1533_s2] ss:$0 sm:$0xff]  ;;  %s1007_s27 = sshll.u32 %s1540_s18, 3 }
   0xe   : > { %1213 = vmatpush.bf16.msra.mxu2 %v1211_v0  ;;  %1214 = vmatpush.bf16.msra.mxu3 %v1211_v0  ;;  %s1317_s24 = scalar_lea.vmem %s1531_s0, %s1005_s21  ;;  %s1394_s30 = scalar_lea.vmem %s1534_s3, %s1007_s27 }
   0xf   : > { %v1178_v2 = vld [vmem:[%s1317_s24] sm:$0xff]  ;;  %v1179_v6 = vld [vmem:[%s1317_s24 + $0x8] sm:$0xff]  ;;  %v1180_v10 = vld [vmem:[%s1317_s24 + $0x10] sm:$0xff] }
  0x10   : > { %v1186_v3 = vld [vmem:[%s1317_s24 + $0x40] sm:$0xff]  ;;  %v1187_v7 = vld [vmem:[%s1317_s24 + $0x48] sm:$0xff]  ;;  %v1188_v11 = vld [vmem:[%s1317_s24 + $0x50] sm:$0xff] }
  0x11   : > { %593 = vmatpush.bf16.msra.mxu0 %v1210_v1  ;;  %1215 = vmatpush.bf16.msra.mxu1 %v1210_v1  ;;  %v1194_v4 = vld [vmem:[%s1317_s24 + $0x80] sm:$0xff]  ;;  %v1195_v8 = vld [vmem:[%s1317_s24 + $0x88] sm:$0xff]  ;;  %v1196_v12 = vld [vmem:[%s1317_s24 + $0x90] sm:$0xff] }
  0x12   : > { %1216 = vmatpush.bf16.msra.mxu2 %v1210_v1  ;;  %1217 = vmatpush.bf16.msra.mxu3 %v1210_v1  ;;  %v1202_v5 = vld [vmem:[%s1317_s24 + $0xc0] sm:$0xff]  ;;  %v1203_v9 = vld [vmem:[%s1317_s24 + $0xc8] sm:$0xff]  ;;  %v1204_v13 = vld [vmem:[%s1317_s24 + $0xd0] sm:$0xff] }
  0x13   : > { %v1181_v14 = vld [vmem:[%s1317_s24 + $0x18] sm:$0xff]  ;;  %v1182_v18 = vld [vmem:[%s1317_s24 + $0x20] sm:$0xff]  ;;  %v1183_v22 = vld [vmem:[%s1317_s24 + $0x28] sm:$0xff] }
  0x14   : > { %1144 = vmatmul.msk.bf16.vlgmr.msra.gmra.mxu0 %vm489_vm0, %v1178_v2  ;;  %1152 = vmatmul.msk.bf16.vlgmr.msra.gmra.mxu1 %vm489_vm0, %v1186_v3  ;;  %v1189_v15 = vld [vmem:[%s1317_s24 + $0x58] sm:$0xff]  ;;  %v1190_v19 = vld [vmem:[%s1317_s24 + $0x60] sm:$0xff]  ;;  %v1191_v23 = vld [vmem:[%s1317_s24 + $0x68] sm:$0xff] }
  0x15   : > { %1160 = vmatmul.msk.bf16.vlgmr.msra.gmra.mxu2 %vm489_vm0, %v1194_v4  ;;  %1168 = vmatmul.msk.bf16.vlgmr.msra.gmra.mxu3 %vm489_vm0, %v1202_v5  ;;  %v1197_v16 = vld [vmem:[%s1317_s24 + $0x98] sm:$0xff]  ;;  %v1198_v20 = vld [vmem:[%s1317_s24 + $0xa0] sm:$0xff]  ;;  %v1199_v24 = vld [vmem:[%s1317_s24 + $0xa8] sm:$0xff] }
  0x16   : > { %v1205_v17 = vld [vmem:[%s1317_s24 + $0xd8] sm:$0xff]  ;;  %v1206_v21 = vld [vmem:[%s1317_s24 + $0xe0] sm:$0xff]  ;;  %v1207_v25 = vld [vmem:[%s1317_s24 + $0xe8] sm:$0xff] }
  0x17   : > { %v1184_v26 = vld [vmem:[%s1317_s24 + $0x30] sm:$0xff]  ;;  %v1185_v30 = vld [vmem:[%s1317_s24 + $0x38] sm:$0xff] }
  0x18   : > { %v1192_v27 = vld [vmem:[%s1317_s24 + $0x70] sm:$0xff]  ;;  %v1193_v31 = vld [vmem:[%s1317_s24 + $0x78] sm:$0xff] }
  0x19   : > { %v1200_v28 = vld [vmem:[%s1317_s24 + $0xb0] sm:$0xff]  ;;  %v1201_v32 = vld [vmem:[%s1317_s24 + $0xb8] sm:$0xff] }
  0x1a   : > { %v1208_v29 = vld [vmem:[%s1317_s24 + $0xf0] sm:$0xff]  ;;  %v1209_v33 = vld [vmem:[%s1317_s24 + $0xf8] sm:$0xff] }
  0x24   : > { %1145 = vmatmul.msk.bf16.gmra.mxu0 %vm489_vm0, %v1179_v6  ;;  %1153 = vmatmul.msk.bf16.gmra.mxu1 %vm489_vm0, %v1187_v7 }
  0x25   : > { %1161 = vmatmul.msk.bf16.gmra.mxu2 %vm489_vm0, %v1195_v8  ;;  %1169 = vmatmul.msk.bf16.gmra.mxu3 %vm489_vm0, %v1203_v9 }
  0x34   : > { %1146 = vmatmul.msk.bf16.gmra.mxu0 %vm489_vm0, %v1180_v10  ;;  %1154 = vmatmul.msk.bf16.gmra.mxu1 %vm489_vm0, %v1188_v11 }
  0x35   : > { %1162 = vmatmul.msk.bf16.gmra.mxu2 %vm489_vm0, %v1196_v12  ;;  %1170 = vmatmul.msk.bf16.gmra.mxu3 %vm489_vm0, %v1204_v13 }
  0x44   : > { %1147 = vmatmul.msk.bf16.gmra.mxu0 %vm489_vm0, %v1181_v14  ;;  %1155 = vmatmul.msk.bf16.gmra.mxu1 %vm489_vm0, %v1189_v15 }
  0x45   : > { %1163 = vmatmul.msk.bf16.gmra.mxu2 %vm489_vm0, %v1197_v16  ;;  %1171 = vmatmul.msk.bf16.gmra.mxu3 %vm489_vm0, %v1205_v17 }
  0x54   : > { %1148 = vmatmul.msk.bf16.gmra.mxu0 %vm489_vm0, %v1182_v18  ;;  %1156 = vmatmul.msk.bf16.gmra.mxu1 %vm489_vm0, %v1190_v19 }
  0x55   : > { %1164 = vmatmul.msk.bf16.gmra.mxu2 %vm489_vm0, %v1198_v20  ;;  %1172 = vmatmul.msk.bf16.gmra.mxu3 %vm489_vm0, %v1206_v21 }
  0x64   : > { %1149 = vmatmul.msk.bf16.gmra.mxu0 %vm489_vm0, %v1183_v22  ;;  %1157 = vmatmul.msk.bf16.gmra.mxu1 %vm489_vm0, %v1191_v23 }
  0x65   : > { %1165 = vmatmul.msk.bf16.gmra.mxu2 %vm489_vm0, %v1199_v24  ;;  %1173 = vmatmul.msk.bf16.gmra.mxu3 %vm489_vm0, %v1207_v25 }
  0x74   : > { %1150 = vmatmul.msk.bf16.gmra.mxu0 %vm489_vm0, %v1184_v26  ;;  %1158 = vmatmul.msk.bf16.gmra.mxu1 %vm489_vm0, %v1192_v27 }
  0x75   : > { %1166 = vmatmul.msk.bf16.gmra.mxu2 %vm489_vm0, %v1200_v28  ;;  %1174 = vmatmul.msk.bf16.gmra.mxu3 %vm489_vm0, %v1208_v29 }
  0x84   : > { %1151 = vmatmul.msk.bf16.gmra.mxu0 %vm489_vm0, %v1185_v30  ;;  %1159 = vmatmul.msk.bf16.gmra.mxu1 %vm489_vm0, %v1193_v31 }
  0x85   : > { %1167 = vmatmul.msk.bf16.gmra.mxu2 %vm489_vm0, %v1201_v32  ;;  %1175 = vmatmul.msk.bf16.gmra.mxu3 %vm489_vm0, %v1209_v33 }
  0x91   : > { %v595_v35 = vpop.f32.mrf.mxu0  ;;  %v635_v36 = vpop.f32.mrf.mxu1 }
  0x92   : > { %v596_v37 = vadd.f32 %v1386_v34, %v595_v35  ;;  %v636_v38 = vadd.f32 %v1386_v34, %v635_v36 }
  0x94   : > { %v755_v39 = vmax.f32 %v596_v37, 0.0  ;;  %v771_v40 = vmax.f32 %v636_v38, 0.0 }
  0x96   : > { %819 = vst [vmem:[%s1394_s30] sm:$0xff] %v755_v39 }
  0x97   : > { %835 = vst [vmem:[%s1394_s30 + $0x80] sm:$0xff] %v771_v40 }
  0x98   : > { %v675_v41 = vpop.f32.mrf.mxu2  ;;  %v715_v42 = vpop.f32.mrf.mxu3 }
  0x99   : > { %v676_v43 = vadd.f32 %v1386_v34, %v675_v41  ;;  %v716_v44 = vadd.f32 %v1386_v34, %v715_v42  ;;  %v597_v45 = vpop.f32.mrf.mxu0  ;;  %v637_v46 = vpop.f32.mrf.mxu1 }
  0x9a   : > { %v598_v47 = vadd.f32 %v1386_v34, %v597_v45  ;;  %v638_v48 = vadd.f32 %v1386_v34, %v637_v46 }
  0x9b   : > { %v787_v49 = vmax.f32 %v676_v43, 0.0  ;;  %v803_v50 = vmax.f32 %v716_v44, 0.0 }
  0x9c   : > { %v756_v51 = vmax.f32 %v598_v47, 0.0  ;;  %v772_v52 = vmax.f32 %v638_v48, 0.0 }
  0x9d   : > { %851 = vst [vmem:[%s1394_s30 + $0x100] sm:$0xff] %v787_v49 }
  0x9e   : > { %867 = vst [vmem:[%s1394_s30 + $0x180] sm:$0xff] %v803_v50 }
  0x9f   : > { %820 = vst [vmem:[%s1394_s30 + $0x8] sm:$0xff] %v756_v51 }
  0xa0   : > { %836 = vst [vmem:[%s1394_s30 + $0x88] sm:$0xff] %v772_v52  ;;  %v677_v53 = vpop.f32.mrf.mxu2  ;;  %v717_v54 = vpop.f32.mrf.mxu3 }
  0xa1   : > { %v678_v55 = vadd.f32 %v1386_v34, %v677_v53  ;;  %v718_v56 = vadd.f32 %v1386_v34, %v717_v54  ;;  %v600_v57 = vpop.f32.mrf.mxu0  ;;  %v640_v58 = vpop.f32.mrf.mxu1 }
  0xa2   : > { %v601_v59 = vadd.f32 %v1386_v34, %v600_v57  ;;  %v641_v60 = vadd.f32 %v1386_v34, %v640_v58 }
  0xa3   : > { %v788_v61 = vmax.f32 %v678_v55, 0.0  ;;  %v804_v62 = vmax.f32 %v718_v56, 0.0 }
  0xa4   : > { %v757_v63 = vmax.f32 %v601_v59, 0.0  ;;  %v773_v0 = vmax.f32 %v641_v60, 0.0 }
  0xa5   : > { %852 = vst [vmem:[%s1394_s30 + $0x108] sm:$0xff] %v788_v61 }
  0xa6   : > { %868 = vst [vmem:[%s1394_s30 + $0x188] sm:$0xff] %v804_v62 }
  0xa7   : > { %821 = vst [vmem:[%s1394_s30 + $0x10] sm:$0xff] %v757_v63 }
  0xa8   : > { %837 = vst [vmem:[%s1394_s30 + $0x90] sm:$0xff] %v773_v0  ;;  %v680_v1 = vpop.f32.mrf.mxu2  ;;  %v720_v2 = vpop.f32.mrf.mxu3 }
  0xa9   : > { %v681_v3 = vadd.f32 %v1386_v34, %v680_v1  ;;  %v721_v4 = vadd.f32 %v1386_v34, %v720_v2  ;;  %v602_v5 = vpop.f32.mrf.mxu0  ;;  %v642_v6 = vpop.f32.mrf.mxu1 }
  0xaa   : > { %v603_v7 = vadd.f32 %v1386_v34, %v602_v5  ;;  %v643_v8 = vadd.f32 %v1386_v34, %v642_v6 }
  0xab   : > { %v789_v9 = vmax.f32 %v681_v3, 0.0  ;;  %v805_v10 = vmax.f32 %v721_v4, 0.0 }
  0xac   : > { %v758_v11 = vmax.f32 %v603_v7, 0.0  ;;  %v774_v12 = vmax.f32 %v643_v8, 0.0 }
  0xad   : > { %853 = vst [vmem:[%s1394_s30 + $0x110] sm:$0xff] %v789_v9 }
  0xae   : > { %869 = vst [vmem:[%s1394_s30 + $0x190] sm:$0xff] %v805_v10 }
  0xaf   : > { %822 = vst [vmem:[%s1394_s30 + $0x18] sm:$0xff] %v758_v11 }
  0xb0   : > { %838 = vst [vmem:[%s1394_s30 + $0x98] sm:$0xff] %v774_v12  ;;  %v682_v13 = vpop.f32.mrf.mxu2  ;;  %v722_v14 = vpop.f32.mrf.mxu3 }
  0xb1   : > { %v683_v15 = vadd.f32 %v1386_v34, %v682_v13  ;;  %v723_v16 = vadd.f32 %v1386_v34, %v722_v14  ;;  %v605_v17 = vpop.f32.mrf.mxu0  ;;  %v645_v18 = vpop.f32.mrf.mxu1 }
  0xb2   : > { %v606_v19 = vadd.f32 %v1386_v34, %v605_v17  ;;  %v646_v20 = vadd.f32 %v1386_v34, %v645_v18 }
  0xb3   : > { %v790_v21 = vmax.f32 %v683_v15, 0.0  ;;  %v806_v22 = vmax.f32 %v723_v16, 0.0 }
  0xb4   : > { %v759_v23 = vmax.f32 %v606_v19, 0.0  ;;  %v775_v24 = vmax.f32 %v646_v20, 0.0 }
  0xb5   : > { %854 = vst [vmem:[%s1394_s30 + $0x118] sm:$0xff] %v790_v21 }
  0xb6   : > { %870 = vst [vmem:[%s1394_s30 + $0x198] sm:$0xff] %v806_v22 }
  0xb7   : > { %823 = vst [vmem:[%s1394_s30 + $0x20] sm:$0xff] %v759_v23 }
  0xb8   : > { %839 = vst [vmem:[%s1394_s30 + $0xa0] sm:$0xff] %v775_v24  ;;  %v685_v25 = vpop.f32.mrf.mxu2  ;;  %v725_v26 = vpop.f32.mrf.mxu3 }
  0xb9   : > { %v686_v27 = vadd.f32 %v1386_v34, %v685_v25  ;;  %v726_v28 = vadd.f32 %v1386_v34, %v725_v26  ;;  %v607_v29 = vpop.f32.mrf.mxu0  ;;  %v647_v30 = vpop.f32.mrf.mxu1 }
  0xba   : > { %v608_v31 = vadd.f32 %v1386_v34, %v607_v29  ;;  %v648_v32 = vadd.f32 %v1386_v34, %v647_v30 }
  0xbb   : > { %v791_v33 = vmax.f32 %v686_v27, 0.0  ;;  %v807_v35 = vmax.f32 %v726_v28, 0.0 }
  0xbc   : > { %v760_v36 = vmax.f32 %v608_v31, 0.0  ;;  %v776_v37 = vmax.f32 %v648_v32, 0.0 }
  0xbd   : > { %855 = vst [vmem:[%s1394_s30 + $0x120] sm:$0xff] %v791_v33 }
  0xbe   : > { %871 = vst [vmem:[%s1394_s30 + $0x1a0] sm:$0xff] %v807_v35 }
  0xbf   : > { %824 = vst [vmem:[%s1394_s30 + $0x28] sm:$0xff] %v760_v36 }
  0xc0   : > { %840 = vst [vmem:[%s1394_s30 + $0xa8] sm:$0xff] %v776_v37  ;;  %v687_v38 = vpop.f32.mrf.mxu2  ;;  %v727_v39 = vpop.f32.mrf.mxu3 }
  0xc1   : > { %v688_v40 = vadd.f32 %v1386_v34, %v687_v38  ;;  %v728_v41 = vadd.f32 %v1386_v34, %v727_v39  ;;  %v610_v42 = vpop.f32.mrf.mxu0  ;;  %v650_v43 = vpop.f32.mrf.mxu1 }
  0xc2   : > { %v611_v44 = vadd.f32 %v1386_v34, %v610_v42  ;;  %v651_v45 = vadd.f32 %v1386_v34, %v650_v43 }
  0xc3   : > { %v792_v46 = vmax.f32 %v688_v40, 0.0  ;;  %v808_v47 = vmax.f32 %v728_v41, 0.0 }
  0xc4   : > { %v761_v48 = vmax.f32 %v611_v44, 0.0  ;;  %v777_v49 = vmax.f32 %v651_v45, 0.0 }
  0xc5   : > { %856 = vst [vmem:[%s1394_s30 + $0x128] sm:$0xff] %v792_v46 }
  0xc6   : > { %872 = vst [vmem:[%s1394_s30 + $0x1a8] sm:$0xff] %v808_v47 }
  0xc7   : > { %825 = vst [vmem:[%s1394_s30 + $0x30] sm:$0xff] %v761_v48 }
  0xc8   : > { %841 = vst [vmem:[%s1394_s30 + $0xb0] sm:$0xff] %v777_v49  ;;  %v690_v50 = vpop.f32.mrf.mxu2  ;;  %v730_v51 = vpop.f32.mrf.mxu3 }
  0xc9   : > { %v691_v52 = vadd.f32 %v1386_v34, %v690_v50  ;;  %v731_v53 = vadd.f32 %v1386_v34, %v730_v51  ;;  %v612_v54 = vpop.f32.mrf.mxu0  ;;  %v652_v55 = vpop.f32.mrf.mxu1 }
  0xca   : > { %v613_v56 = vadd.f32 %v1386_v34, %v612_v54  ;;  %v653_v57 = vadd.f32 %v1386_v34, %v652_v55 }
  0xcb   : > { %v793_v58 = vmax.f32 %v691_v52, 0.0  ;;  %v809_v59 = vmax.f32 %v731_v53, 0.0 }
  0xcc   : > { %v762_v60 = vmax.f32 %v613_v56, 0.0  ;;  %v778_v61 = vmax.f32 %v653_v57, 0.0 }
  0xcd   : > { %857 = vst [vmem:[%s1394_s30 + $0x130] sm:$0xff] %v793_v58 }
  0xce   : > { %873 = vst [vmem:[%s1394_s30 + $0x1b0] sm:$0xff] %v809_v59 }
  0xcf   : > { %826 = vst [vmem:[%s1394_s30 + $0x38] sm:$0xff] %v762_v60 }
  0xd0   : > { %842 = vst [vmem:[%s1394_s30 + $0xb8] sm:$0xff] %v778_v61  ;;  %v692_v62 = vpop.f32.mrf.mxu2  ;;  %v732_v63 = vpop.f32.mrf.mxu3 }
  0xd1   : > { %v693_v0 = vadd.f32 %v1386_v34, %v692_v62  ;;  %v733_v1 = vadd.f32 %v1386_v34, %v732_v63  ;;  %v615_v2 = vpop.f32.mrf.mxu0  ;;  %v655_v3 = vpop.f32.mrf.mxu1 }
  0xd2   : > { %v616_v4 = vadd.f32 %v1386_v34, %v615_v2  ;;  %v656_v5 = vadd.f32 %v1386_v34, %v655_v3 }
  0xd3   : > { %v794_v6 = vmax.f32 %v693_v0, 0.0  ;;  %v810_v7 = vmax.f32 %v733_v1, 0.0 }
  0xd4   : > { %v763_v8 = vmax.f32 %v616_v4, 0.0  ;;  %v779_v9 = vmax.f32 %v656_v5, 0.0 }
  0xd5   : > { %858 = vst [vmem:[%s1394_s30 + $0x138] sm:$0xff] %v794_v6 }
  0xd6   : > { %874 = vst [vmem:[%s1394_s30 + $0x1b8] sm:$0xff] %v810_v7 }
  0xd7   : > { %827 = vst [vmem:[%s1394_s30 + $0x40] sm:$0xff] %v763_v8 }
  0xd8   : > { %843 = vst [vmem:[%s1394_s30 + $0xc0] sm:$0xff] %v779_v9  ;;  %v695_v10 = vpop.f32.mrf.mxu2  ;;  %v735_v11 = vpop.f32.mrf.mxu3 }
  0xd9   : > { %v696_v12 = vadd.f32 %v1386_v34, %v695_v10  ;;  %v736_v13 = vadd.f32 %v1386_v34, %v735_v11  ;;  %v617_v14 = vpop.f32.mrf.mxu0  ;;  %v657_v15 = vpop.f32.mrf.mxu1 }
  0xda   : > { %v618_v16 = vadd.f32 %v1386_v34, %v617_v14  ;;  %v658_v17 = vadd.f32 %v1386_v34, %v657_v15 }
  0xdb   : > { %v795_v18 = vmax.f32 %v696_v12, 0.0  ;;  %v811_v19 = vmax.f32 %v736_v13, 0.0 }
  0xdc   : > { %v764_v20 = vmax.f32 %v618_v16, 0.0  ;;  %v780_v21 = vmax.f32 %v658_v17, 0.0 }
  0xdd   : > { %859 = vst [vmem:[%s1394_s30 + $0x140] sm:$0xff] %v795_v18 }
  0xde   : > { %875 = vst [vmem:[%s1394_s30 + $0x1c0] sm:$0xff] %v811_v19 }
  0xdf   : > { %828 = vst [vmem:[%s1394_s30 + $0x48] sm:$0xff] %v764_v20 }
  0xe0   : > { %844 = vst [vmem:[%s1394_s30 + $0xc8] sm:$0xff] %v780_v21  ;;  %v697_v22 = vpop.f32.mrf.mxu2  ;;  %v737_v23 = vpop.f32.mrf.mxu3 }
  0xe1   : > { %v698_v24 = vadd.f32 %v1386_v34, %v697_v22  ;;  %v738_v25 = vadd.f32 %v1386_v34, %v737_v23  ;;  %v620_v26 = vpop.f32.mrf.mxu0  ;;  %v660_v27 = vpop.f32.mrf.mxu1 }
  0xe2   : > { %v621_v28 = vadd.f32 %v1386_v34, %v620_v26  ;;  %v661_v29 = vadd.f32 %v1386_v34, %v660_v27 }
  0xe3   : > { %v796_v30 = vmax.f32 %v698_v24, 0.0  ;;  %v812_v31 = vmax.f32 %v738_v25, 0.0 }
  0xe4   : > { %v765_v32 = vmax.f32 %v621_v28, 0.0  ;;  %v781_v33 = vmax.f32 %v661_v29, 0.0 }
  0xe5   : > { %860 = vst [vmem:[%s1394_s30 + $0x148] sm:$0xff] %v796_v30 }
  0xe6   : > { %876 = vst [vmem:[%s1394_s30 + $0x1c8] sm:$0xff] %v812_v31 }
  0xe7   : > { %829 = vst [vmem:[%s1394_s30 + $0x50] sm:$0xff] %v765_v32 }
  0xe8   : > { %845 = vst [vmem:[%s1394_s30 + $0xd0] sm:$0xff] %v781_v33  ;;  %v700_v35 = vpop.f32.mrf.mxu2  ;;  %v740_v36 = vpop.f32.mrf.mxu3 }
  0xe9   : > { %v701_v37 = vadd.f32 %v1386_v34, %v700_v35  ;;  %v741_v38 = vadd.f32 %v1386_v34, %v740_v36  ;;  %v622_v39 = vpop.f32.mrf.mxu0  ;;  %v662_v40 = vpop.f32.mrf.mxu1 }
  0xea   : > { %v623_v41 = vadd.f32 %v1386_v34, %v622_v39  ;;  %v663_v42 = vadd.f32 %v1386_v34, %v662_v40 }
  0xeb   : > { %v797_v43 = vmax.f32 %v701_v37, 0.0  ;;  %v813_v44 = vmax.f32 %v741_v38, 0.0 }
  0xec   : > { %v766_v45 = vmax.f32 %v623_v41, 0.0  ;;  %v782_v46 = vmax.f32 %v663_v42, 0.0 }
  0xed   : > { %861 = vst [vmem:[%s1394_s30 + $0x150] sm:$0xff] %v797_v43 }
  0xee   : > { %877 = vst [vmem:[%s1394_s30 + $0x1d0] sm:$0xff] %v813_v44 }
  0xef   : > { %830 = vst [vmem:[%s1394_s30 + $0x58] sm:$0xff] %v766_v45 }
  0xf0   : > { %846 = vst [vmem:[%s1394_s30 + $0xd8] sm:$0xff] %v782_v46  ;;  %v702_v47 = vpop.f32.mrf.mxu2  ;;  %v742_v48 = vpop.f32.mrf.mxu3 }
  0xf1   : > { %v703_v49 = vadd.f32 %v1386_v34, %v702_v47  ;;  %v743_v50 = vadd.f32 %v1386_v34, %v742_v48  ;;  %v625_v51 = vpop.f32.mrf.mxu0  ;;  %v665_v52 = vpop.f32.mrf.mxu1 }
  0xf2   : > { %v626_v53 = vadd.f32 %v1386_v34, %v625_v51  ;;  %v666_v54 = vadd.f32 %v1386_v34, %v665_v52 }
  0xf3   : > { %v798_v55 = vmax.f32 %v703_v49, 0.0  ;;  %v814_v56 = vmax.f32 %v743_v50, 0.0 }
  0xf4   : > { %v767_v57 = vmax.f32 %v626_v53, 0.0  ;;  %v783_v58 = vmax.f32 %v666_v54, 0.0 }
  0xf5   : > { %862 = vst [vmem:[%s1394_s30 + $0x158] sm:$0xff] %v798_v55 }
  0xf6   : > { %878 = vst [vmem:[%s1394_s30 + $0x1d8] sm:$0xff] %v814_v56 }
  0xf7   : > { %831 = vst [vmem:[%s1394_s30 + $0x60] sm:$0xff] %v767_v57 }
  0xf8   : > { %847 = vst [vmem:[%s1394_s30 + $0xe0] sm:$0xff] %v783_v58  ;;  %v705_v59 = vpop.f32.mrf.mxu2  ;;  %v745_v60 = vpop.f32.mrf.mxu3 }
  0xf9   : > { %v706_v61 = vadd.f32 %v1386_v34, %v705_v59  ;;  %v746_v62 = vadd.f32 %v1386_v34, %v745_v60  ;;  %v627_v63 = vpop.f32.mrf.mxu0  ;;  %v667_v0 = vpop.f32.mrf.mxu1 }
  0xfa   : > { %v628_v1 = vadd.f32 %v1386_v34, %v627_v63  ;;  %v668_v2 = vadd.f32 %v1386_v34, %v667_v0 }
  0xfb   : > { %v799_v3 = vmax.f32 %v706_v61, 0.0  ;;  %v815_v4 = vmax.f32 %v746_v62, 0.0 }
  0xfc   : > { %v768_v5 = vmax.f32 %v628_v1, 0.0  ;;  %v784_v6 = vmax.f32 %v668_v2, 0.0 }
  0xfd   : > { %863 = vst [vmem:[%s1394_s30 + $0x160] sm:$0xff] %v799_v3 }
  0xfe   : > { %879 = vst [vmem:[%s1394_s30 + $0x1e0] sm:$0xff] %v815_v4 }
  0xff   : > { %832 = vst [vmem:[%s1394_s30 + $0x68] sm:$0xff] %v768_v5 }
 0x100   : > { %848 = vst [vmem:[%s1394_s30 + $0xe8] sm:$0xff] %v784_v6  ;;  %v707_v7 = vpop.f32.mrf.mxu2  ;;  %v747_v8 = vpop.f32.mrf.mxu3 }
 0x101   : > { %v708_v9 = vadd.f32 %v1386_v34, %v707_v7  ;;  %v748_v10 = vadd.f32 %v1386_v34, %v747_v8  ;;  %v630_v11 = vpop.f32.mrf.mxu0  ;;  %v670_v12 = vpop.f32.mrf.mxu1 }
 0x102   : > { %v631_v13 = vadd.f32 %v1386_v34, %v630_v11  ;;  %v671_v14 = vadd.f32 %v1386_v34, %v670_v12 }
 0x103   : > { %v800_v15 = vmax.f32 %v708_v9, 0.0  ;;  %v816_v16 = vmax.f32 %v748_v10, 0.0 }
 0x104   : > { %v769_v17 = vmax.f32 %v631_v13, 0.0  ;;  %v785_v18 = vmax.f32 %v671_v14, 0.0 }
 0x105   : > { %864 = vst [vmem:[%s1394_s30 + $0x168] sm:$0xff] %v800_v15 }
 0x106   : > { %880 = vst [vmem:[%s1394_s30 + $0x1e8] sm:$0xff] %v816_v16 }
 0x107   : > { %833 = vst [vmem:[%s1394_s30 + $0x70] sm:$0xff] %v769_v17 }
 0x108   : > { %849 = vst [vmem:[%s1394_s30 + $0xf0] sm:$0xff] %v785_v18  ;;  %v710_v19 = vpop.f32.mrf.mxu2  ;;  %v750_v20 = vpop.f32.mrf.mxu3 }
 0x109   : > { %v711_v21 = vadd.f32 %v1386_v34, %v710_v19  ;;  %v751_v22 = vadd.f32 %v1386_v34, %v750_v20  ;;  %v632_v23 = vpop.f32.mrf.mxu0  ;;  %v672_v24 = vpop.f32.mrf.mxu1 }
 0x10a   : > { %v633_v25 = vadd.f32 %v1386_v34, %v632_v23  ;;  %v673_v26 = vadd.f32 %v1386_v34, %v672_v24 }
 0x10b   : > { %v801_v27 = vmax.f32 %v711_v21, 0.0  ;;  %v817_v28 = vmax.f32 %v751_v22, 0.0 }
 0x10c   : > { %v770_v29 = vmax.f32 %v633_v25, 0.0  ;;  %v786_v30 = vmax.f32 %v673_v26, 0.0 }
 0x10d   : > { %865 = vst [vmem:[%s1394_s30 + $0x170] sm:$0xff] %v801_v27 }
 0x10e   : > { %881 = vst [vmem:[%s1394_s30 + $0x1f0] sm:$0xff] %v817_v28 }
 0x10f   : > { %834 = vst [vmem:[%s1394_s30 + $0x78] sm:$0xff] %v770_v29 }
 0x110   : > { %850 = vst [vmem:[%s1394_s30 + $0xf8] sm:$0xff] %v786_v30  ;;  %v712_v31 = vpop.f32.mrf.mxu2  ;;  %v752_v32 = vpop.f32.mrf.mxu3 }
 0x111   : > { %v713_v33 = vadd.f32 %v1386_v34, %v712_v31  ;;  %v753_v35 = vadd.f32 %v1386_v34, %v752_v32 }
 0x113   : > { %v802_v36 = vmax.f32 %v713_v33, 0.0  ;;  %v818_v37 = vmax.f32 %v753_v35, 0.0 }
 0x115   : > { %866 = vst [vmem:[%s1394_s30 + $0x178] sm:$0xff] %v802_v36 }
 0x116   : > { %882 = vst [vmem:[%s1394_s30 + $0x1f8] sm:$0xff] %v818_v37 }
 0x117 PF: > { %s13_s14 = sadd.s32 1, %s1265_s14   ;;  %s1535_s12 = smov %s1261_s13 }
 0x118   : > { %p10_p5 = scmp.ge.s32.totalorder %s13_s14, 6   ;;  %s1536_s13 = smov %s1538_s15 }
 0x11a   :  { %12 = sbr.rel (!%p10_p5) target bundleno = 2 (0x2), region = 68 }

</bundles_post_ra>
